<compile_context>
chip_gen: v7x
topology: tpu7x:2x2x1
jax: 0.10.0
libtpu: 0.0.40
codegen_flags: <defaults>
</compile_context>

<pallas_src>
import functools

import jax
import jax.numpy as jnp
from jax.experimental import pallas as pl
from jax.experimental.pallas import tpu as pltpu


def _round_up(v, m):
    return (v + m - 1) // m * m


def _leaky(v, slope):
    return jnp.where(v >= 0, v, slope * v)


# ---------------------------------------------------------------------------
# Fused kernel (one grid step = one batch image):
#   out      = LeakyReLU(conv_2(LeakyReLU(conv_1(x)))) + identity_1x1(x)
#   out_down = conv_down(out)          (4x4, stride 2, pad 1, no bias)
#
# Layouts (all spatially flattened with row stride Wf = round_up(W+2, 8)):
#   xc_ref : (1, H*Wf, 9*Cin)  im2col of the 1-px zero-padded x (bf16)
#   s1_ref : ((H+2)*Wf+8, Cp)  conv_1 activation as a zero-padded image (f32)
#   s2_ref : ((H+4)*Wf,   Cp)  residual output as a zero-padded image (f32)
# Flattened output row i = h*Wf + w; columns w in [W, Wf) are garbage and are
# masked to zero in-kernel (they double as the left/right zero padding of the
# next stage) and sliced off in the wrapper.
# ---------------------------------------------------------------------------
def _fused_block_kernel(slope, H, W, Wf,
                        xc_ref, w1_ref, b1_ref, w2_ref, b2_ref,
                        wid_ref, bid_ref, wd_ref,
                        out_ref, down_ref, s1_ref, s2_ref):
    Cp = out_ref.shape[-1]
    M1 = H * Wf                     # conv_1/conv_2 output rows (incl. garbage)
    Ho = H // 2
    Md = Ho * Wf                    # down-conv output rows (incl. garbage)
    L = (H + 2) * Wf                # conv_2 kw-window length (covers kh=0..2)
    R1 = s1_ref.shape[0]
    R2 = s2_ref.shape[0]
    f32 = jnp.float32
    bf16 = jnp.bfloat16

    # valid-column mask: flattened row i = h*Wf + w, columns w >= W are garbage
    col = jax.lax.broadcasted_iota(jnp.int32, (M1, 1), 0) % Wf
    valid = col < W

    # ---- conv_1: ONE K = 9*Cin MXU dot on the im2col slab ------------------
    xc = xc_ref[0]                                           # (M1, 9*Cin) bf16
    acc1 = jnp.dot(xc, w1_ref[...], preferred_element_type=f32)
    out1 = _leaky(acc1 + b1_ref[...], slope)
    out1 = jnp.where(valid, out1, 0.0)                       # zero garbage cols

    # identity 1x1 conv: folded into a (9*Cin, Cp) matrix (only the centre-tap
    # rows are non-zero) so it reuses the same xc stream.
    ident = jnp.dot(xc, wid_ref[...], preferred_element_type=f32)

    # ---- conv_1 activation -> zero-padded image in VMEM (stride Wf) --------
    # Only the halo rows are zeroed (every step -> megacore-safe); the interior
    # M1 rows are fully overwritten right after.
    s1_ref[pl.ds(0, Wf + 8), :] = jnp.zeros((Wf + 8, Cp), f32)
    s1_ref[pl.ds((H + 1) * Wf, R1 - (H + 1) * Wf), :] = (
        jnp.zeros((R1 - (H + 1) * Wf, Cp), f32))
    s1_ref[pl.ds(Wf + 1, M1), :] = out1

    # ---- conv_2 (3x3, pad 1): 3 kw-shifted windows, 9 aligned tap slices ---
    acc2 = b2_ref[...] + jnp.zeros((M1, Cp), f32)
    for kw in range(3):
        win = s1_ref[pl.ds(kw, L), :].astype(bf16)           # one shift per kw
        for kh in range(3):
            tap = win[kh * Wf: kh * Wf + M1]                 # aligned (Wf%8==0)
            acc2 = acc2 + jnp.dot(tap, w2_ref[kh * 3 + kw],
                                  preferred_element_type=f32)
    acc2 = _leaky(acc2, slope)

    # ---- residual add + write `out` (bf16, lane-dense) ---------------------
    outv = acc2 + ident + bid_ref[...]
    outv = jnp.where(valid, outv, 0.0)
    out_ref[0] = outv.astype(out_ref.dtype)

    # ---- conv_down fused: residual output -> padded image in VMEM ----------
    s2_ref[pl.ds(0, Wf + 8), :] = jnp.zeros((Wf + 8, Cp), f32)
    s2_ref[pl.ds((H + 1) * Wf, R2 - (H + 1) * Wf), :] = (
        jnp.zeros((R2 - (H + 1) * Wf, Cp), f32))
    s2_ref[pl.ds(Wf + 1, M1), :] = outv

    # 4x4 stride-2 conv: tap (kh, kw) reads s2[kh*Wf + kw + 2*t] for output
    # row t = ho*Wf + wo  -> a stride-2 sublane slice of the scratch.
    accd = jnp.zeros((Md, Cp), f32)
    for kh in range(4):
        for kw in range(4):
            tap = s2_ref[pl.ds(kh * Wf + kw, Md, stride=2), :].astype(bf16)
            accd = accd + jnp.dot(tap, wd_ref[kh * 4 + kw],
                                  preferred_element_type=f32)
    down_ref[0] = accd.astype(down_ref.dtype)


# ---------------------------------------------------------------------------
# UNetConvBlock forward (downsample=True, use_emgc=False, num_heads=None)
# ---------------------------------------------------------------------------
@functools.partial(jax.jit, static_argnames=("relu_slope",))
def unet_conv_block_forward(x_nchw, params, *, relu_slope):
    w1, b1 = params["w1"], params["b1"]          # (3,3,Cin,Cout), (Cout,)
    w2, b2 = params["w2"], params["b2"]          # (3,3,Cout,Cout), (Cout,)
    wid, bid = params["wid"], params["bid"]      # (1,1,Cin,Cout), (Cout,)
    wd = params["wd"]                            # (4,4,Cout,Cout), no bias

    N, Cin, H, W = x_nchw.shape
    Cout = w1.shape[-1]
    assert H % 2 == 0 and W % 2 == 0

    bf16 = jnp.bfloat16
    f32 = jnp.float32
    Cp = _round_up(Cout, 128)                    # lane-dense output channels
    cpad = Cp - Cout
    Wf = _round_up(W + 2, 8)                     # 8-aligned flattened row stride
    M1 = H * Wf
    Ho, Wo = H // 2, W // 2
    Md = Ho * Wf
    R1 = (H + 2) * Wf + 8
    R2 = (H + 4) * Wf
    K1 = 9 * Cin

    # --- x: NHWC, 1-px halo, zero cols out to stride Wf, im2col (9 taps) ----
    # (Module interface stays NCHW; drop these transposes if the surrounding
    #  model is NHWC.)
    x = jnp.transpose(x_nchw, (0, 2, 3, 1))
    xq = jnp.pad(x, ((0, 0), (1, 1), (1, Wf + 1 - W), (0, 0)))  # (N,H+2,Wf+2,Cin)
    cols = [xq[:, kh:kh + H, kw:kw + Wf, :] for kh in range(3) for kw in range(3)]
    xc = jnp.concatenate(cols, axis=-1).reshape(N, M1, K1).astype(bf16)

    # --- weights: lane-padded Cout -> Cp, bf16 operands; f32 biases ----------
    w1k = jnp.pad(w1.reshape(K1, Cout), ((0, 0), (0, cpad))).astype(bf16)
    w2k = jnp.pad(w2, ((0, 0), (0, 0), (0, cpad), (0, cpad))
                  ).reshape(9, Cp, Cp).astype(bf16)
    wdk = jnp.pad(wd, ((0, 0), (0, 0), (0, cpad), (0, cpad))
                  ).reshape(16, Cp, Cp).astype(bf16)
    wid_e = jnp.zeros((K1, Cout), f32).at[4 * Cin:5 * Cin].set(
        wid.reshape(Cin, Cout))
    wid_e = jnp.pad(wid_e, ((0, 0), (0, cpad))).astype(bf16)
    b1k = jnp.pad(b1, (0, cpad)).reshape(1, Cp).astype(f32)
    b2k = jnp.pad(b2, (0, cpad)).reshape(1, Cp).astype(f32)
    bidk = jnp.pad(bid, (0, cpad)).reshape(1, Cp).astype(f32)

    # --- VMEM budget from actual per-step buffers (+2x headroom), <= 48 MiB --
    def nbytes(shape, dt):
        n = 1
        for s in shape:
            n *= s
        return n * jnp.dtype(dt).itemsize

    est = (2 * nbytes((M1, K1), bf16)                 # x_cols block (dbl-buf)
           + 2 * nbytes((M1, Cp), bf16)               # out block
           + 2 * nbytes((Md, Cp), bf16)               # down block
           + 2 * (2 * nbytes((K1, Cp), bf16) + nbytes((9, Cp, Cp), bf16)
                  + nbytes((16, Cp, Cp), bf16) + 3 * nbytes((1, Cp), f32))
           + nbytes((R1, Cp), f32) + nbytes((R2, Cp), f32)   # scratches
           + 10 * nbytes((M1, Cp), f32))              # in-kernel temporaries
    vmem_limit = int(min(48 * 1024 * 1024, max(2 * est, 16 * 1024 * 1024)))

    kernel = functools.partial(_fused_block_kernel, relu_slope, H, W, Wf)
    out_flat, down_flat = pl.pallas_call(
        kernel,
        out_shape=(jax.ShapeDtypeStruct((N, M1, Cp), bf16),
                   jax.ShapeDtypeStruct((N, Md, Cp), bf16)),
        grid=(N,),
        in_specs=[
            pl.BlockSpec((1, M1, K1), lambda n: (n, 0, 0)),   # x im2col
            pl.BlockSpec((K1, Cp), lambda n: (0, 0)),         # w1
            pl.BlockSpec((1, Cp), lambda n: (0, 0)),          # b1
            pl.BlockSpec((9, Cp, Cp), lambda n: (0, 0, 0)),   # w2
            pl.BlockSpec((1, Cp), lambda n: (0, 0)),          # b2
            pl.BlockSpec((K1, Cp), lambda n: (0, 0)),         # identity (folded)
            pl.BlockSpec((1, Cp), lambda n: (0, 0)),          # identity bias
            pl.BlockSpec((16, Cp, Cp), lambda n: (0, 0, 0)),  # wd
        ],
        out_specs=(pl.BlockSpec((1, M1, Cp), lambda n: (n, 0, 0)),
                   pl.BlockSpec((1, Md, Cp), lambda n: (n, 0, 0))),
        scratch_shapes=[pltpu.VMEM((R1, Cp), f32),
                        pltpu.VMEM((R2, Cp), f32)],
        compiler_params=pltpu.CompilerParams(
            dimension_semantics=("parallel",),
            vmem_limit_bytes=vmem_limit,
        ),
    )(xc, w1k, b1k, w2k, b2k, wid_e, bidk, wdk)

    out = out_flat.reshape(N, H, Wf, Cp)[:, :, :W, :Cout].astype(f32)
    down = down_flat.reshape(N, Ho, Wf, Cp)[:, :, :Wo, :Cout].astype(f32)
    return (jnp.transpose(down, (0, 3, 1, 2)),        # NHWC -> NCHW
            jnp.transpose(out, (0, 3, 1, 2)))


# ---------------------------------------------------------------------------
# Pure-JAX reference (lax conv, f32 math on bf16-rounded x / weights)
# ---------------------------------------------------------------------------
def _ref_forward(x_nchw, params, slope):
    rnd = lambda a: a.astype(jnp.bfloat16).astype(jnp.float32)
    x = rnd(jnp.transpose(x_nchw, (0, 2, 3, 1)))
    dn = ("NHWC", "HWIO", "NHWC")

    def conv(v, w, pad, stride):
        return jax.lax.conv_general_dilated(
            v, rnd(w), (stride, stride), [(pad, pad), (pad, pad)],
            dimension_numbers=dn, precision=jax.lax.Precision.HIGHEST)

    def lrelu(v):
        return jnp.where(v >= 0, v, slope * v)

    o1 = lrelu(conv(x, params["w1"], 1, 1) + params["b1"])
    o2 = lrelu(conv(o1, params["w2"], 1, 1) + params["b2"])
    out = o2 + conv(x, params["wid"], 0, 1) + params["bid"]
    out_down = conv(out, params["wd"], 1, 2)
    return jnp.transpose(out_down, (0, 3, 1, 2)), jnp.transpose(out, (0, 3, 1, 2))


if __name__ == "__main__":
    key = jax.random.PRNGKey(0)
    N, Cin, H, W = 2, 4, 16, 16
    Cout = 8
    relu_slope = 0.2

    ks = jax.random.split(key, 8)

    def init(k, shape, fan_in):
        return jax.random.normal(k, shape, jnp.float32) / jnp.sqrt(float(fan_in))

    params = {
        "w1": init(ks[0], (3, 3, Cin, Cout), 9 * Cin),      # conv_1 (3x3, bias)
        "b1": init(ks[1], (Cout,), Cout),
        "w2": init(ks[2], (3, 3, Cout, Cout), 9 * Cout),    # conv_2 (3x3, bias)
        "b2": init(ks[3], (Cout,), Cout),
        "wid": init(ks[4], (1, 1, Cin, Cout), Cin),         # identity (1x1, bias)
        "bid": init(ks[5], (Cout,), Cout),
        "wd": init(ks[6], (4, 4, Cout, Cout), 16 * Cout),   # conv_down (4x4 s2)
    }
    x = jax.random.normal(ks[7], (N, Cin, H, W), jnp.float32)

    out_down, out = unet_conv_block_forward(x, params, relu_slope=relu_slope)
    jax.block_until_ready((out_down, out))

    ref_down, ref_out = _ref_forward(x, params, relu_slope)
    assert out.shape == (N, Cout, H, W)
    assert out_down.shape == (N, Cout, H // 2, W // 2)
    # bf16 operands / bf16 kernel outputs (f32 accumulation) -> loose tolerance
    assert jnp.allclose(out, ref_out, atol=5e-2, rtol=5e-2)
    assert jnp.allclose(out_down, ref_down, atol=5e-2, rtol=5e-2)

    print("KERNEL_OK")
</pallas_src>

<mosaic_0001>
module attributes {stable_mosaic.version = 11 : i64} {
  func.func @_fused_block_kernel(%arg0: i32, %arg1: memref<1x384x36xbf16, #tpu.memory_space<vmem>>, %arg2: memref<36x128xbf16, #tpu.memory_space<vmem>>, %arg3: memref<1x128xf32, #tpu.memory_space<vmem>>, %arg4: memref<9x128x128xbf16, #tpu.memory_space<vmem>>, %arg5: memref<1x128xf32, #tpu.memory_space<vmem>>, %arg6: memref<36x128xbf16, #tpu.memory_space<vmem>>, %arg7: memref<1x128xf32, #tpu.memory_space<vmem>>, %arg8: memref<16x128x128xbf16, #tpu.memory_space<vmem>>, %arg9: memref<1x384x128xbf16, #tpu.memory_space<vmem>>, %arg10: memref<1x192x128xbf16, #tpu.memory_space<vmem>>, %arg11: memref<440x128xf32, #tpu.memory_space<vmem>>, %arg12: memref<480x128xf32, #tpu.memory_space<vmem>>) attributes {dimension_semantics = [#tpu.dimension_semantics<parallel>], iteration_bounds = array<i64: 2>, scalar_prefetch = 0 : i64, scratch_operands = 2 : i64, tpu.core_type = #tpu.core_type<tc>, window_params = [{transform_indices = @transform_0, window_bounds = array<i64: 1, 384, 36>}, {pipeline_mode = #tpu.pipeline_mode<synchronous>, transform_indices = @transform_1, window_bounds = array<i64: 36, 128>}, {pipeline_mode = #tpu.pipeline_mode<synchronous>, transform_indices = @transform_2, window_bounds = array<i64: 1, 128>}, {pipeline_mode = #tpu.pipeline_mode<synchronous>, transform_indices = @transform_3, window_bounds = array<i64: 9, 128, 128>}, {pipeline_mode = #tpu.pipeline_mode<synchronous>, transform_indices = @transform_4, window_bounds = array<i64: 1, 128>}, {pipeline_mode = #tpu.pipeline_mode<synchronous>, transform_indices = @transform_5, window_bounds = array<i64: 36, 128>}, {pipeline_mode = #tpu.pipeline_mode<synchronous>, transform_indices = @transform_6, window_bounds = array<i64: 1, 128>}, {pipeline_mode = #tpu.pipeline_mode<synchronous>, transform_indices = @transform_7, window_bounds = array<i64: 16, 128, 128>}, {transform_indices = @transform_8, window_bounds = array<i64: 1, 384, 128>}, {transform_indices = @transform_9, window_bounds = array<i64: 1, 192, 128>}]} {
    %0 = tpu.iota {dimensions = array<i32: 0>} : vector<384x1xi32>
    %c24_i32 = arith.constant 24 : i32
    %c0_i32 = arith.constant 0 : i32
    %1 = arith.cmpi eq, %c24_i32, %c0_i32 : i32
    %c1_i32 = arith.constant 1 : i32
    %2 = arith.select %1, %c1_i32, %c24_i32 : i32
    %3 = vector.broadcast %2 : i32 to vector<384x1xi32>
    %4 = arith.remsi %0, %3 : vector<384x1xi32>
    %c0_i32_0 = arith.constant 0 : i32
    %5 = vector.broadcast %c0_i32_0 : i32 to vector<384x1xi32>
    %6 = arith.cmpi ne, %4, %5 : vector<384x1xi32>
    %c0_i32_1 = arith.constant 0 : i32
    %7 = vector.broadcast %c0_i32_1 : i32 to vector<384x1xi32>
    %8 = arith.cmpi slt, %4, %7 : vector<384x1xi32>
    %c0_i32_2 = arith.constant 0 : i32
    %9 = arith.cmpi slt, %2, %c0_i32_2 : i32
    %10 = vector.broadcast %9 : i1 to vector<384x1xi1>
    %11 = vector.broadcast %10 : vector<384x1xi1> to vector<384x1xi1>
    %12 = arith.xori %8, %11 : vector<384x1xi1>
    %13 = arith.andi %12, %6 : vector<384x1xi1>
    %14 = vector.broadcast %2 : i32 to vector<384x1xi32>
    %15 = arith.addi %4, %14 : vector<384x1xi32>
    %16 = arith.select %13, %15, %4 : vector<384x1xi1>, vector<384x1xi32>
    %c16_i32 = arith.constant 16 : i32
    %17 = vector.broadcast %c16_i32 : i32 to vector<384x1xi32>
    %18 = arith.cmpi slt, %16, %17 : vector<384x1xi32>
    %c0 = arith.constant 0 : index
    %c0_3 = arith.constant 0 : index
    %c0_4 = arith.constant 0 : index
    %19 = vector.load %arg1[%c0, %c0_3, %c0_4] : memref<1x384x36xbf16, #tpu.memory_space<vmem>>, vector<1x384x36xbf16>
    %20 = vector.shape_cast %19 : vector<1x384x36xbf16> to vector<384x36xbf16>
    %c0_5 = arith.constant 0 : index
    %c0_6 = arith.constant 0 : index
    %21 = vector.load %arg2[%c0_5, %c0_6] : memref<36x128xbf16, #tpu.memory_space<vmem>>, vector<36x128xbf16>
    %cst = arith.constant dense<0.000000e+00> : vector<384x128xf32>
    %22 = tpu.matmul %20, %21, %cst {dimension_numbers = #tpu.dot_dimension_numbers<[1], [0], [0], [1], [0, 0, 1, 1], [], []>} : vector<384x36xbf16>, vector<36x128xbf16>, vector<384x128xf32> -> vector<384x128xf32>
    %c0_7 = arith.constant 0 : index
    %c0_8 = arith.constant 0 : index
    %23 = vector.load %arg3[%c0_7, %c0_8] : memref<1x128xf32, #tpu.memory_space<vmem>>, vector<1x128xf32>
    %24 = vector.broadcast %23 : vector<1x128xf32> to vector<384x128xf32>
    %25 = arith.addf %22, %24 : vector<384x128xf32>
    %cst_9 = arith.constant 0.000000e+00 : f32
    %26 = vector.broadcast %cst_9 : f32 to vector<384x128xf32>
    %27 = arith.cmpf oge, %25, %26 : vector<384x128xf32>
    %cst_10 = arith.constant 2.000000e-01 : f32
    %28 = vector.broadcast %cst_10 : f32 to vector<384x128xf32>
    %29 = arith.mulf %28, %25 : vector<384x128xf32>
    %30 = arith.select %27, %25, %29 : vector<384x128xi1>, vector<384x128xf32>
    %cst_11 = arith.constant 0.000000e+00 : f32
    %31 = vector.shape_cast %18 : vector<384x1xi1> to vector<384x1xi1>
    %32 = vector.broadcast %31 : vector<384x1xi1> to vector<384x128xi1>
    %33 = vector.broadcast %cst_11 : f32 to vector<384x128xf32>
    %34 = arith.select %32, %30, %33 : vector<384x128xi1>, vector<384x128xf32>
    %c0_12 = arith.constant 0 : index
    %c0_13 = arith.constant 0 : index
    %35 = vector.load %arg6[%c0_12, %c0_13] : memref<36x128xbf16, #tpu.memory_space<vmem>>, vector<36x128xbf16>
    %cst_14 = arith.constant dense<0.000000e+00> : vector<384x128xf32>
    %36 = tpu.matmul %20, %35, %cst_14 {dimension_numbers = #tpu.dot_dimension_numbers<[1], [0], [0], [1], [0, 0, 1, 1], [], []>} : vector<384x36xbf16>, vector<36x128xbf16>, vector<384x128xf32> -> vector<384x128xf32>
    %cst_15 = arith.constant 0.000000e+00 : f32
    %37 = vector.broadcast %cst_15 : f32 to vector<32x128xf32>
    %c0_16 = arith.constant 0 : index
    %c0_17 = arith.constant 0 : index
    %38 = vector.load %arg11[%c0_16, %c0_17] : memref<440x128xf32, #tpu.memory_space<vmem>>, vector<32x128xf32>
    tpu.vector_store %arg11[%c0_16, %c0_17], %37 {strides = array<i32>} : memref<440x128xf32, #tpu.memory_space<vmem>>, vector<32x128xf32>,
    %cst_18 = arith.constant 0.000000e+00 : f32
    %39 = vector.broadcast %cst_18 : f32 to vector<32x128xf32>
    %c408 = arith.constant 408 : index
    %c0_19 = arith.constant 0 : index
    %40 = vector.load %arg11[%c408, %c0_19] : memref<440x128xf32, #tpu.memory_space<vmem>>, vector<32x128xf32>
    tpu.vector_store %arg11[%c408, %c0_19], %39 {strides = array<i32>} : memref<440x128xf32, #tpu.memory_space<vmem>>, vector<32x128xf32>,
    %c25 = arith.constant 25 : index
    %c0_20 = arith.constant 0 : index
    %41 = vector.load %arg11[%c25, %c0_20] : memref<440x128xf32, #tpu.memory_space<vmem>>, vector<384x128xf32>
    tpu.vector_store %arg11[%c25, %c0_20], %34 {strides = array<i32>} : memref<440x128xf32, #tpu.memory_space<vmem>>, vector<384x128xf32>,
    %c0_21 = arith.constant 0 : index
    %c0_22 = arith.constant 0 : index
    %42 = vector.load %arg5[%c0_21, %c0_22] : memref<1x128xf32, #tpu.memory_space<vmem>>, vector<1x128xf32>
    %cst_23 = arith.constant 0.000000e+00 : f32
    %43 = vector.broadcast %cst_23 : f32 to vector<384x128xf32>
    %44 = vector.broadcast %42 : vector<1x128xf32> to vector<384x128xf32>
    %45 = arith.addf %44, %43 : vector<384x128xf32>
    %c0_24 = arith.constant 0 : index
    %c0_25 = arith.constant 0 : index
    %46 = vector.load %arg11[%c0_24, %c0_25] : memref<440x128xf32, #tpu.memory_space<vmem>>, vector<432x128xf32>
    %47 = arith.truncf %46 : vector<432x128xf32> to vector<432x128xbf16>
    %48 = vector.extract_strided_slice %47 {offsets = [0, 0], sizes = [384, 128], strides = [1, 1]} : vector<432x128xbf16> to vector<384x128xbf16>
    %c0_26 = arith.constant 0 : index
    %c0_27 = arith.constant 0 : index
    %c0_28 = arith.constant 0 : index
    %49 = vector.load %arg4[%c0_26, %c0_27, %c0_28] : memref<9x128x128xbf16, #tpu.memory_space<vmem>>, vector<1x128x128xbf16>
    %50 = vector.shape_cast %49 : vector<1x128x128xbf16> to vector<128x128xbf16>
    %cst_29 = arith.constant dense<0.000000e+00> : vector<384x128xf32>
    %51 = tpu.matmul %48, %50, %cst_29 {dimension_numbers = #tpu.dot_dimension_numbers<[1], [0], [0], [1], [0, 0, 1, 1], [], []>} : vector<384x128xbf16>, vector<128x128xbf16>, vector<384x128xf32> -> vector<384x128xf32>
    %52 = arith.addf %45, %51 : vector<384x128xf32>
    %53 = vector.extract_strided_slice %47 {offsets = [24, 0], sizes = [384, 128], strides = [1, 1]} : vector<432x128xbf16> to vector<384x128xbf16>
    %c3 = arith.constant 3 : index
    %c0_30 = arith.constant 0 : index
    %c0_31 = arith.constant 0 : index
    %54 = vector.load %arg4[%c3, %c0_30, %c0_31] : memref<9x128x128xbf16, #tpu.memory_space<vmem>>, vector<1x128x128xbf16>
    %55 = vector.shape_cast %54 : vector<1x128x128xbf16> to vector<128x128xbf16>
    %cst_32 = arith.constant dense<0.000000e+00> : vector<384x128xf32>
    %56 = tpu.matmul %53, %55, %cst_32 {dimension_numbers = #tpu.dot_dimension_numbers<[1], [0], [0], [1], [0, 0, 1, 1], [], []>} : vector<384x128xbf16>, vector<128x128xbf16>, vector<384x128xf32> -> vector<384x128xf32>
    %57 = arith.addf %52, %56 : vector<384x128xf32>
    %58 = vector.extract_strided_slice %47 {offsets = [48, 0], sizes = [384, 128], strides = [1, 1]} : vector<432x128xbf16> to vector<384x128xbf16>
    %c6 = arith.constant 6 : index
    %c0_33 = arith.constant 0 : index
    %c0_34 = arith.constant 0 : index
    %59 = vector.load %arg4[%c6, %c0_33, %c0_34] : memref<9x128x128xbf16, #tpu.memory_space<vmem>>, vector<1x128x128xbf16>
    %60 = vector.shape_cast %59 : vector<1x128x128xbf16> to vector<128x128xbf16>
    %cst_35 = arith.constant dense<0.000000e+00> : vector<384x128xf32>
    %61 = tpu.matmul %58, %60, %cst_35 {dimension_numbers = #tpu.dot_dimension_numbers<[1], [0], [0], [1], [0, 0, 1, 1], [], []>} : vector<384x128xbf16>, vector<128x128xbf16>, vector<384x128xf32> -> vector<384x128xf32>
    %62 = arith.addf %57, %61 : vector<384x128xf32>
    %c1 = arith.constant 1 : index
    %c0_36 = arith.constant 0 : index
    %63 = vector.load %arg11[%c1, %c0_36] : memref<440x128xf32, #tpu.memory_space<vmem>>, vector<432x128xf32>
    %64 = arith.truncf %63 : vector<432x128xf32> to vector<432x128xbf16>
    %65 = vector.extract_strided_slice %64 {offsets = [0, 0], sizes = [384, 128], strides = [1, 1]} : vector<432x128xbf16> to vector<384x128xbf16>
    %c1_37 = arith.constant 1 : index
    %c0_38 = arith.constant 0 : index
    %c0_39 = arith.constant 0 : index
    %66 = vector.load %arg4[%c1_37, %c0_38, %c0_39] : memref<9x128x128xbf16, #tpu.memory_space<vmem>>, vector<1x128x128xbf16>
    %67 = vector.shape_cast %66 : vector<1x128x128xbf16> to vector<128x128xbf16>
    %cst_40 = arith.constant dense<0.000000e+00> : vector<384x128xf32>
    %68 = tpu.matmul %65, %67, %cst_40 {dimension_numbers = #tpu.dot_dimension_numbers<[1], [0], [0], [1], [0, 0, 1, 1], [], []>} : vector<384x128xbf16>, vector<128x128xbf16>, vector<384x128xf32> -> vector<384x128xf32>
    %69 = arith.addf %62, %68 : vector<384x128xf32>
    %70 = vector.extract_strided_slice %64 {offsets = [24, 0], sizes = [384, 128], strides = [1, 1]} : vector<432x128xbf16> to vector<384x128xbf16>
    %c4 = arith.constant 4 : index
    %c0_41 = arith.constant 0 : index
    %c0_42 = arith.constant 0 : index
    %71 = vector.load %arg4[%c4, %c0_41, %c0_42] : memref<9x128x128xbf16, #tpu.memory_space<vmem>>, vector<1x128x128xbf16>
    %72 = vector.shape_cast %71 : vector<1x128x128xbf16> to vector<128x128xbf16>
    %cst_43 = arith.constant dense<0.000000e+00> : vector<384x128xf32>
    %73 = tpu.matmul %70, %72, %cst_43 {dimension_numbers = #tpu.dot_dimension_numbers<[1], [0], [0], [1], [0, 0, 1, 1], [], []>} : vector<384x128xbf16>, vector<128x128xbf16>, vector<384x128xf32> -> vector<384x128xf32>
    %74 = arith.addf %69, %73 : vector<384x128xf32>
    %75 = vector.extract_strided_slice %64 {offsets = [48, 0], sizes = [384, 128], strides = [1, 1]} : vector<432x128xbf16> to vector<384x128xbf16>
    %c7 = arith.constant 7 : index
    %c0_44 = arith.constant 0 : index
    %c0_45 = arith.constant 0 : index
    %76 = vector.load %arg4[%c7, %c0_44, %c0_45] : memref<9x128x128xbf16, #tpu.memory_space<vmem>>, vector<1x128x128xbf16>
    %77 = vector.shape_cast %76 : vector<1x128x128xbf16> to vector<128x128xbf16>
    %cst_46 = arith.constant dense<0.000000e+00> : vector<384x128xf32>
    %78 = tpu.matmul %75, %77, %cst_46 {dimension_numbers = #tpu.dot_dimension_numbers<[1], [0], [0], [1], [0, 0, 1, 1], [], []>} : vector<384x128xbf16>, vector<128x128xbf16>, vector<384x128xf32> -> vector<384x128xf32>
    %79 = arith.addf %74, %78 : vector<384x128xf32>
    %c2 = arith.constant 2 : index
    %c0_47 = arith.constant 0 : index
    %80 = vector.load %arg11[%c2, %c0_47] : memref<440x128xf32, #tpu.memory_space<vmem>>, vector<432x128xf32>
    %81 = arith.truncf %80 : vector<432x128xf32> to vector<432x128xbf16>
    %82 = vector.extract_strided_slice %81 {offsets = [0, 0], sizes = [384, 128], strides = [1, 1]} : vector<432x128xbf16> to vector<384x128xbf16>
    %c2_48 = arith.constant 2 : index
    %c0_49 = arith.constant 0 : index
    %c0_50 = arith.constant 0 : index
    %83 = vector.load %arg4[%c2_48, %c0_49, %c0_50] : memref<9x128x128xbf16, #tpu.memory_space<vmem>>, vector<1x128x128xbf16>
    %84 = vector.shape_cast %83 : vector<1x128x128xbf16> to vector<128x128xbf16>
    %cst_51 = arith.constant dense<0.000000e+00> : vector<384x128xf32>
    %85 = tpu.matmul %82, %84, %cst_51 {dimension_numbers = #tpu.dot_dimension_numbers<[1], [0], [0], [1], [0, 0, 1, 1], [], []>} : vector<384x128xbf16>, vector<128x128xbf16>, vector<384x128xf32> -> vector<384x128xf32>
    %86 = arith.addf %79, %85 : vector<384x128xf32>
    %87 = vector.extract_strided_slice %81 {offsets = [24, 0], sizes = [384, 128], strides = [1, 1]} : vector<432x128xbf16> to vector<384x128xbf16>
    %c5 = arith.constant 5 : index
    %c0_52 = arith.constant 0 : index
    %c0_53 = arith.constant 0 : index
    %88 = vector.load %arg4[%c5, %c0_52, %c0_53] : memref<9x128x128xbf16, #tpu.memory_space<vmem>>, vector<1x128x128xbf16>
    %89 = vector.shape_cast %88 : vector<1x128x128xbf16> to vector<128x128xbf16>
    %cst_54 = arith.constant dense<0.000000e+00> : vector<384x128xf32>
    %90 = tpu.matmul %87, %89, %cst_54 {dimension_numbers = #tpu.dot_dimension_numbers<[1], [0], [0], [1], [0, 0, 1, 1], [], []>} : vector<384x128xbf16>, vector<128x128xbf16>, vector<384x128xf32> -> vector<384x128xf32>
    %91 = arith.addf %86, %90 : vector<384x128xf32>
    %92 = vector.extract_strided_slice %81 {offsets = [48, 0], sizes = [384, 128], strides = [1, 1]} : vector<432x128xbf16> to vector<384x128xbf16>
    %c8 = arith.constant 8 : index
    %c0_55 = arith.constant 0 : index
    %c0_56 = arith.constant 0 : index
    %93 = vector.load %arg4[%c8, %c0_55, %c0_56] : memref<9x128x128xbf16, #tpu.memory_space<vmem>>, vector<1x128x128xbf16>
    %94 = vector.shape_cast %93 : vector<1x128x128xbf16> to vector<128x128xbf16>
    %cst_57 = arith.constant dense<0.000000e+00> : vector<384x128xf32>
    %95 = tpu.matmul %92, %94, %cst_57 {dimension_numbers = #tpu.dot_dimension_numbers<[1], [0], [0], [1], [0, 0, 1, 1], [], []>} : vector<384x128xbf16>, vector<128x128xbf16>, vector<384x128xf32> -> vector<384x128xf32>
    %96 = arith.addf %91, %95 : vector<384x128xf32>
    %cst_58 = arith.constant 0.000000e+00 : f32
    %97 = vector.broadcast %cst_58 : f32 to vector<384x128xf32>
    %98 = arith.cmpf oge, %96, %97 : vector<384x128xf32>
    %cst_59 = arith.constant 2.000000e-01 : f32
    %99 = vector.broadcast %cst_59 : f32 to vector<384x128xf32>
    %100 = arith.mulf %99, %96 : vector<384x128xf32>
    %101 = arith.select %98, %96, %100 : vector<384x128xi1>, vector<384x128xf32>
    %102 = arith.addf %101, %36 : vector<384x128xf32>
    %c0_60 = arith.constant 0 : index
    %c0_61 = arith.constant 0 : index
    %103 = vector.load %arg7[%c0_60, %c0_61] : memref<1x128xf32, #tpu.memory_space<vmem>>, vector<1x128xf32>
    %104 = vector.broadcast %103 : vector<1x128xf32> to vector<384x128xf32>
    %105 = arith.addf %102, %104 : vector<384x128xf32>
    %cst_62 = arith.constant 0.000000e+00 : f32
    %106 = vector.shape_cast %18 : vector<384x1xi1> to vector<384x1xi1>
    %107 = vector.broadcast %106 : vector<384x1xi1> to vector<384x128xi1>
    %108 = vector.broadcast %cst_62 : f32 to vector<384x128xf32>
    %109 = arith.select %107, %105, %108 : vector<384x128xi1>, vector<384x128xf32>
    %110 = arith.truncf %109 : vector<384x128xf32> to vector<384x128xbf16>
    %c0_63 = arith.constant 0 : index
    %c0_64 = arith.constant 0 : index
    %c0_65 = arith.constant 0 : index
    %111 = vector.load %arg9[%c0_63, %c0_64, %c0_65] : memref<1x384x128xbf16, #tpu.memory_space<vmem>>, vector<1x384x128xbf16>
    %112 = vector.shape_cast %111 : vector<1x384x128xbf16> to vector<384x128xbf16>
    %113 = vector.shape_cast %110 : vector<384x128xbf16> to vector<1x384x128xbf16>
    tpu.vector_store %arg9[%c0_63, %c0_64, %c0_65], %113 {strides = array<i32>} : memref<1x384x128xbf16, #tpu.memory_space<vmem>>, vector<1x384x128xbf16>,
    %cst_66 = arith.constant 0.000000e+00 : f32
    %114 = vector.broadcast %cst_66 : f32 to vector<32x128xf32>
    %c0_67 = arith.constant 0 : index
    %c0_68 = arith.constant 0 : index
    %115 = vector.load %arg12[%c0_67, %c0_68] : memref<480x128xf32, #tpu.memory_space<vmem>>, vector<32x128xf32>
    tpu.vector_store %arg12[%c0_67, %c0_68], %114 {strides = array<i32>} : memref<480x128xf32, #tpu.memory_space<vmem>>, vector<32x128xf32>,
    %cst_69 = arith.constant 0.000000e+00 : f32
    %116 = vector.broadcast %cst_69 : f32 to vector<72x128xf32>
    %c408_70 = arith.constant 408 : index
    %c0_71 = arith.constant 0 : index
    %117 = vector.load %arg12[%c408_70, %c0_71] : memref<480x128xf32, #tpu.memory_space<vmem>>, vector<72x128xf32>
    tpu.vector_store %arg12[%c408_70, %c0_71], %116 {strides = array<i32>} : memref<480x128xf32, #tpu.memory_space<vmem>>, vector<72x128xf32>,
    %c25_72 = arith.constant 25 : index
    %c0_73 = arith.constant 0 : index
    %118 = vector.load %arg12[%c25_72, %c0_73] : memref<480x128xf32, #tpu.memory_space<vmem>>, vector<384x128xf32>
    tpu.vector_store %arg12[%c25_72, %c0_73], %109 {strides = array<i32>} : memref<480x128xf32, #tpu.memory_space<vmem>>, vector<384x128xf32>,
    %cst_74 = arith.constant 0.000000e+00 : f32
    %119 = vector.broadcast %cst_74 : f32 to vector<192x128xf32>
    %c0_75 = arith.constant 0 : index
    %c0_76 = arith.constant 0 : index
    %120 = tpu.strided_load %arg12[%c0_75, %c0_76] {strides = array<i32: 2, 1>} : memref<480x128xf32, #tpu.memory_space<vmem>>, vector<192x128xf32>
    %121 = arith.truncf %120 : vector<192x128xf32> to vector<192x128xbf16>
    %c0_77 = arith.constant 0 : index
    %c0_78 = arith.constant 0 : index
    %c0_79 = arith.constant 0 : index
    %122 = vector.load %arg8[%c0_77, %c0_78, %c0_79] : memref<16x128x128xbf16, #tpu.memory_space<vmem>>, vector<1x128x128xbf16>
    %123 = vector.shape_cast %122 : vector<1x128x128xbf16> to vector<128x128xbf16>
    %cst_80 = arith.constant dense<0.000000e+00> : vector<192x128xf32>
    %124 = tpu.matmul %121, %123, %cst_80 {dimension_numbers = #tpu.dot_dimension_numbers<[1], [0], [0], [1], [0, 0, 1, 1], [], []>} : vector<192x128xbf16>, vector<128x128xbf16>, vector<192x128xf32> -> vector<192x128xf32>
    %125 = arith.addf %119, %124 : vector<192x128xf32>
    %c1_81 = arith.constant 1 : index
    %c0_82 = arith.constant 0 : index
    %126 = tpu.strided_load %arg12[%c1_81, %c0_82] {strides = array<i32: 2, 1>} : memref<480x128xf32, #tpu.memory_space<vmem>>, vector<192x128xf32>
    %127 = arith.truncf %126 : vector<192x128xf32> to vector<192x128xbf16>
    %c1_83 = arith.constant 1 : index
    %c0_84 = arith.constant 0 : index
    %c0_85 = arith.constant 0 : index
    %128 = vector.load %arg8[%c1_83, %c0_84, %c0_85] : memref<16x128x128xbf16, #tpu.memory_space<vmem>>, vector<1x128x128xbf16>
    %129 = vector.shape_cast %128 : vector<1x128x128xbf16> to vector<128x128xbf16>
    %cst_86 = arith.constant dense<0.000000e+00> : vector<192x128xf32>
    %130 = tpu.matmul %127, %129, %cst_86 {dimension_numbers = #tpu.dot_dimension_numbers<[1], [0], [0], [1], [0, 0, 1, 1], [], []>} : vector<192x128xbf16>, vector<128x128xbf16>, vector<192x128xf32> -> vector<192x128xf32>
    %131 = arith.addf %125, %130 : vector<192x128xf32>
    %c2_87 = arith.constant 2 : index
    %c0_88 = arith.constant 0 : index
    %132 = tpu.strided_load %arg12[%c2_87, %c0_88] {strides = array<i32: 2, 1>} : memref<480x128xf32, #tpu.memory_space<vmem>>, vector<192x128xf32>
    %133 = arith.truncf %132 : vector<192x128xf32> to vector<192x128xbf16>
    %c2_89 = arith.constant 2 : index
    %c0_90 = arith.constant 0 : index
    %c0_91 = arith.constant 0 : index
    %134 = vector.load %arg8[%c2_89, %c0_90, %c0_91] : memref<16x128x128xbf16, #tpu.memory_space<vmem>>, vector<1x128x128xbf16>
    %135 = vector.shape_cast %134 : vector<1x128x128xbf16> to vector<128x128xbf16>
    %cst_92 = arith.constant dense<0.000000e+00> : vector<192x128xf32>
    %136 = tpu.matmul %133, %135, %cst_92 {dimension_numbers = #tpu.dot_dimension_numbers<[1], [0], [0], [1], [0, 0, 1, 1], [], []>} : vector<192x128xbf16>, vector<128x128xbf16>, vector<192x128xf32> -> vector<192x128xf32>
    %137 = arith.addf %131, %136 : vector<192x128xf32>
    %c3_93 = arith.constant 3 : index
    %c0_94 = arith.constant 0 : index
    %138 = tpu.strided_load %arg12[%c3_93, %c0_94] {strides = array<i32: 2, 1>} : memref<480x128xf32, #tpu.memory_space<vmem>>, vector<192x128xf32>
    %139 = arith.truncf %138 : vector<192x128xf32> to vector<192x128xbf16>
    %c3_95 = arith.constant 3 : index
    %c0_96 = arith.constant 0 : index
    %c0_97 = arith.constant 0 : index
    %140 = vector.load %arg8[%c3_95, %c0_96, %c0_97] : memref<16x128x128xbf16, #tpu.memory_space<vmem>>, vector<1x128x128xbf16>
    %141 = vector.shape_cast %140 : vector<1x128x128xbf16> to vector<128x128xbf16>
    %cst_98 = arith.constant dense<0.000000e+00> : vector<192x128xf32>
    %142 = tpu.matmul %139, %141, %cst_98 {dimension_numbers = #tpu.dot_dimension_numbers<[1], [0], [0], [1], [0, 0, 1, 1], [], []>} : vector<192x128xbf16>, vector<128x128xbf16>, vector<192x128xf32> -> vector<192x128xf32>
    %143 = arith.addf %137, %142 : vector<192x128xf32>
    %c24 = arith.constant 24 : index
    %c0_99 = arith.constant 0 : index
    %144 = tpu.strided_load %arg12[%c24, %c0_99] {strides = array<i32: 2, 1>} : memref<480x128xf32, #tpu.memory_space<vmem>>, vector<192x128xf32>
    %145 = arith.truncf %144 : vector<192x128xf32> to vector<192x128xbf16>
    %c4_100 = arith.constant 4 : index
    %c0_101 = arith.constant 0 : index
    %c0_102 = arith.constant 0 : index
    %146 = vector.load %arg8[%c4_100, %c0_101, %c0_102] : memref<16x128x128xbf16, #tpu.memory_space<vmem>>, vector<1x128x128xbf16>
    %147 = vector.shape_cast %146 : vector<1x128x128xbf16> to vector<128x128xbf16>
    %cst_103 = arith.constant dense<0.000000e+00> : vector<192x128xf32>
    %148 = tpu.matmul %145, %147, %cst_103 {dimension_numbers = #tpu.dot_dimension_numbers<[1], [0], [0], [1], [0, 0, 1, 1], [], []>} : vector<192x128xbf16>, vector<128x128xbf16>, vector<192x128xf32> -> vector<192x128xf32>
    %149 = arith.addf %143, %148 : vector<192x128xf32>
    %c25_104 = arith.constant 25 : index
    %c0_105 = arith.constant 0 : index
    %150 = tpu.strided_load %arg12[%c25_104, %c0_105] {strides = array<i32: 2, 1>} : memref<480x128xf32, #tpu.memory_space<vmem>>, vector<192x128xf32>
    %151 = arith.truncf %150 : vector<192x128xf32> to vector<192x128xbf16>
    %c5_106 = arith.constant 5 : index
    %c0_107 = arith.constant 0 : index
    %c0_108 = arith.constant 0 : index
    %152 = vector.load %arg8[%c5_106, %c0_107, %c0_108] : memref<16x128x128xbf16, #tpu.memory_space<vmem>>, vector<1x128x128xbf16>
    %153 = vector.shape_cast %152 : vector<1x128x128xbf16> to vector<128x128xbf16>
    %cst_109 = arith.constant dense<0.000000e+00> : vector<192x128xf32>
    %154 = tpu.matmul %151, %153, %cst_109 {dimension_numbers = #tpu.dot_dimension_numbers<[1], [0], [0], [1], [0, 0, 1, 1], [], []>} : vector<192x128xbf16>, vector<128x128xbf16>, vector<192x128xf32> -> vector<192x128xf32>
    %155 = arith.addf %149, %154 : vector<192x128xf32>
    %c26 = arith.constant 26 : index
    %c0_110 = arith.constant 0 : index
    %156 = tpu.strided_load %arg12[%c26, %c0_110] {strides = array<i32: 2, 1>} : memref<480x128xf32, #tpu.memory_space<vmem>>, vector<192x128xf32>
    %157 = arith.truncf %156 : vector<192x128xf32> to vector<192x128xbf16>
    %c6_111 = arith.constant 6 : index
    %c0_112 = arith.constant 0 : index
    %c0_113 = arith.constant 0 : index
    %158 = vector.load %arg8[%c6_111, %c0_112, %c0_113] : memref<16x128x128xbf16, #tpu.memory_space<vmem>>, vector<1x128x128xbf16>
    %159 = vector.shape_cast %158 : vector<1x128x128xbf16> to vector<128x128xbf16>
    %cst_114 = arith.constant dense<0.000000e+00> : vector<192x128xf32>
    %160 = tpu.matmul %157, %159, %cst_114 {dimension_numbers = #tpu.dot_dimension_numbers<[1], [0], [0], [1], [0, 0, 1, 1], [], []>} : vector<192x128xbf16>, vector<128x128xbf16>, vector<192x128xf32> -> vector<192x128xf32>
    %161 = arith.addf %155, %160 : vector<192x128xf32>
    %c27 = arith.constant 27 : index
    %c0_115 = arith.constant 0 : index
    %162 = tpu.strided_load %arg12[%c27, %c0_115] {strides = array<i32: 2, 1>} : memref<480x128xf32, #tpu.memory_space<vmem>>, vector<192x128xf32>
    %163 = arith.truncf %162 : vector<192x128xf32> to vector<192x128xbf16>
    %c7_116 = arith.constant 7 : index
    %c0_117 = arith.constant 0 : index
    %c0_118 = arith.constant 0 : index
    %164 = vector.load %arg8[%c7_116, %c0_117, %c0_118] : memref<16x128x128xbf16, #tpu.memory_space<vmem>>, vector<1x128x128xbf16>
    %165 = vector.shape_cast %164 : vector<1x128x128xbf16> to vector<128x128xbf16>
    %cst_119 = arith.constant dense<0.000000e+00> : vector<192x128xf32>
    %166 = tpu.matmul %163, %165, %cst_119 {dimension_numbers = #tpu.dot_dimension_numbers<[1], [0], [0], [1], [0, 0, 1, 1], [], []>} : vector<192x128xbf16>, vector<128x128xbf16>, vector<192x128xf32> -> vector<192x128xf32>
    %167 = arith.addf %161, %166 : vector<192x128xf32>
    %c48 = arith.constant 48 : index
    %c0_120 = arith.constant 0 : index
    %168 = tpu.strided_load %arg12[%c48, %c0_120] {strides = array<i32: 2, 1>} : memref<480x128xf32, #tpu.memory_space<vmem>>, vector<192x128xf32>
    %169 = arith.truncf %168 : vector<192x128xf32> to vector<192x128xbf16>
    %c8_121 = arith.constant 8 : index
    %c0_122 = arith.constant 0 : index
    %c0_123 = arith.constant 0 : index
    %170 = vector.load %arg8[%c8_121, %c0_122, %c0_123] : memref<16x128x128xbf16, #tpu.memory_space<vmem>>, vector<1x128x128xbf16>
    %171 = vector.shape_cast %170 : vector<1x128x128xbf16> to vector<128x128xbf16>
    %cst_124 = arith.constant dense<0.000000e+00> : vector<192x128xf32>
    %172 = tpu.matmul %169, %171, %cst_124 {dimension_numbers = #tpu.dot_dimension_numbers<[1], [0], [0], [1], [0, 0, 1, 1], [], []>} : vector<192x128xbf16>, vector<128x128xbf16>, vector<192x128xf32> -> vector<192x128xf32>
    %173 = arith.addf %167, %172 : vector<192x128xf32>
    %c49 = arith.constant 49 : index
    %c0_125 = arith.constant 0 : index
    %174 = tpu.strided_load %arg12[%c49, %c0_125] {strides = array<i32: 2, 1>} : memref<480x128xf32, #tpu.memory_space<vmem>>, vector<192x128xf32>
    %175 = arith.truncf %174 : vector<192x128xf32> to vector<192x128xbf16>
    %c9 = arith.constant 9 : index
    %c0_126 = arith.constant 0 : index
    %c0_127 = arith.constant 0 : index
    %176 = vector.load %arg8[%c9, %c0_126, %c0_127] : memref<16x128x128xbf16, #tpu.memory_space<vmem>>, vector<1x128x128xbf16>
    %177 = vector.shape_cast %176 : vector<1x128x128xbf16> to vector<128x128xbf16>
    %cst_128 = arith.constant dense<0.000000e+00> : vector<192x128xf32>
    %178 = tpu.matmul %175, %177, %cst_128 {dimension_numbers = #tpu.dot_dimension_numbers<[1], [0], [0], [1], [0, 0, 1, 1], [], []>} : vector<192x128xbf16>, vector<128x128xbf16>, vector<192x128xf32> -> vector<192x128xf32>
    %179 = arith.addf %173, %178 : vector<192x128xf32>
    %c50 = arith.constant 50 : index
    %c0_129 = arith.constant 0 : index
    %180 = tpu.strided_load %arg12[%c50, %c0_129] {strides = array<i32: 2, 1>} : memref<480x128xf32, #tpu.memory_space<vmem>>, vector<192x128xf32>
    %181 = arith.truncf %180 : vector<192x128xf32> to vector<192x128xbf16>
    %c10 = arith.constant 10 : index
    %c0_130 = arith.constant 0 : index
    %c0_131 = arith.constant 0 : index
    %182 = vector.load %arg8[%c10, %c0_130, %c0_131] : memref<16x128x128xbf16, #tpu.memory_space<vmem>>, vector<1x128x128xbf16>
    %183 = vector.shape_cast %182 : vector<1x128x128xbf16> to vector<128x128xbf16>
    %cst_132 = arith.constant dense<0.000000e+00> : vector<192x128xf32>
    %184 = tpu.matmul %181, %183, %cst_132 {dimension_numbers = #tpu.dot_dimension_numbers<[1], [0], [0], [1], [0, 0, 1, 1], [], []>} : vector<192x128xbf16>, vector<128x128xbf16>, vector<192x128xf32> -> vector<192x128xf32>
    %185 = arith.addf %179, %184 : vector<192x128xf32>
    %c51 = arith.constant 51 : index
    %c0_133 = arith.constant 0 : index
    %186 = tpu.strided_load %arg12[%c51, %c0_133] {strides = array<i32: 2, 1>} : memref<480x128xf32, #tpu.memory_space<vmem>>, vector<192x128xf32>
    %187 = arith.truncf %186 : vector<192x128xf32> to vector<192x128xbf16>
    %c11 = arith.constant 11 : index
    %c0_134 = arith.constant 0 : index
    %c0_135 = arith.constant 0 : index
    %188 = vector.load %arg8[%c11, %c0_134, %c0_135] : memref<16x128x128xbf16, #tpu.memory_space<vmem>>, vector<1x128x128xbf16>
    %189 = vector.shape_cast %188 : vector<1x128x128xbf16> to vector<128x128xbf16>
    %cst_136 = arith.constant dense<0.000000e+00> : vector<192x128xf32>
    %190 = tpu.matmul %187, %189, %cst_136 {dimension_numbers = #tpu.dot_dimension_numbers<[1], [0], [0], [1], [0, 0, 1, 1], [], []>} : vector<192x128xbf16>, vector<128x128xbf16>, vector<192x128xf32> -> vector<192x128xf32>
    %191 = arith.addf %185, %190 : vector<192x128xf32>
    %c72 = arith.constant 72 : index
    %c0_137 = arith.constant 0 : index
    %192 = tpu.strided_load %arg12[%c72, %c0_137] {strides = array<i32: 2, 1>} : memref<480x128xf32, #tpu.memory_space<vmem>>, vector<192x128xf32>
    %193 = arith.truncf %192 : vector<192x128xf32> to vector<192x128xbf16>
    %c12 = arith.constant 12 : index
    %c0_138 = arith.constant 0 : index
    %c0_139 = arith.constant 0 : index
    %194 = vector.load %arg8[%c12, %c0_138, %c0_139] : memref<16x128x128xbf16, #tpu.memory_space<vmem>>, vector<1x128x128xbf16>
    %195 = vector.shape_cast %194 : vector<1x128x128xbf16> to vector<128x128xbf16>
    %cst_140 = arith.constant dense<0.000000e+00> : vector<192x128xf32>
    %196 = tpu.matmul %193, %195, %cst_140 {dimension_numbers = #tpu.dot_dimension_numbers<[1], [0], [0], [1], [0, 0, 1, 1], [], []>} : vector<192x128xbf16>, vector<128x128xbf16>, vector<192x128xf32> -> vector<192x128xf32>
    %197 = arith.addf %191, %196 : vector<192x128xf32>
    %c73 = arith.constant 73 : index
    %c0_141 = arith.constant 0 : index
    %198 = tpu.strided_load %arg12[%c73, %c0_141] {strides = array<i32: 2, 1>} : memref<480x128xf32, #tpu.memory_space<vmem>>, vector<192x128xf32>
    %199 = arith.truncf %198 : vector<192x128xf32> to vector<192x128xbf16>
    %c13 = arith.constant 13 : index
    %c0_142 = arith.constant 0 : index
    %c0_143 = arith.constant 0 : index
    %200 = vector.load %arg8[%c13, %c0_142, %c0_143] : memref<16x128x128xbf16, #tpu.memory_space<vmem>>, vector<1x128x128xbf16>
    %201 = vector.shape_cast %200 : vector<1x128x128xbf16> to vector<128x128xbf16>
    %cst_144 = arith.constant dense<0.000000e+00> : vector<192x128xf32>
    %202 = tpu.matmul %199, %201, %cst_144 {dimension_numbers = #tpu.dot_dimension_numbers<[1], [0], [0], [1], [0, 0, 1, 1], [], []>} : vector<192x128xbf16>, vector<128x128xbf16>, vector<192x128xf32> -> vector<192x128xf32>
    %203 = arith.addf %197, %202 : vector<192x128xf32>
    %c74 = arith.constant 74 : index
    %c0_145 = arith.constant 0 : index
    %204 = tpu.strided_load %arg12[%c74, %c0_145] {strides = array<i32: 2, 1>} : memref<480x128xf32, #tpu.memory_space<vmem>>, vector<192x128xf32>
    %205 = arith.truncf %204 : vector<192x128xf32> to vector<192x128xbf16>
    %c14 = arith.constant 14 : index
    %c0_146 = arith.constant 0 : index
    %c0_147 = arith.constant 0 : index
    %206 = vector.load %arg8[%c14, %c0_146, %c0_147] : memref<16x128x128xbf16, #tpu.memory_space<vmem>>, vector<1x128x128xbf16>
    %207 = vector.shape_cast %206 : vector<1x128x128xbf16> to vector<128x128xbf16>
    %cst_148 = arith.constant dense<0.000000e+00> : vector<192x128xf32>
    %208 = tpu.matmul %205, %207, %cst_148 {dimension_numbers = #tpu.dot_dimension_numbers<[1], [0], [0], [1], [0, 0, 1, 1], [], []>} : vector<192x128xbf16>, vector<128x128xbf16>, vector<192x128xf32> -> vector<192x128xf32>
    %209 = arith.addf %203, %208 : vector<192x128xf32>
    %c75 = arith.constant 75 : index
    %c0_149 = arith.constant 0 : index
    %210 = tpu.strided_load %arg12[%c75, %c0_149] {strides = array<i32: 2, 1>} : memref<480x128xf32, #tpu.memory_space<vmem>>, vector<192x128xf32>
    %211 = arith.truncf %210 : vector<192x128xf32> to vector<192x128xbf16>
    %c15 = arith.constant 15 : index
    %c0_150 = arith.constant 0 : index
    %c0_151 = arith.constant 0 : index
    %212 = vector.load %arg8[%c15, %c0_150, %c0_151] : memref<16x128x128xbf16, #tpu.memory_space<vmem>>, vector<1x128x128xbf16>
    %213 = vector.shape_cast %212 : vector<1x128x128xbf16> to vector<128x128xbf16>
    %cst_152 = arith.constant dense<0.000000e+00> : vector<192x128xf32>
    %214 = tpu.matmul %211, %213, %cst_152 {dimension_numbers = #tpu.dot_dimension_numbers<[1], [0], [0], [1], [0, 0, 1, 1], [], []>} : vector<192x128xbf16>, vector<128x128xbf16>, vector<192x128xf32> -> vector<192x128xf32>
    %215 = arith.addf %209, %214 : vector<192x128xf32>
    %216 = arith.truncf %215 : vector<192x128xf32> to vector<192x128xbf16>
    %c0_153 = arith.constant 0 : index
    %c0_154 = arith.constant 0 : index
    %c0_155 = arith.constant 0 : index
    %217 = vector.load %arg10[%c0_153, %c0_154, %c0_155] : memref<1x192x128xbf16, #tpu.memory_space<vmem>>, vector<1x192x128xbf16>
    %218 = vector.shape_cast %217 : vector<1x192x128xbf16> to vector<192x128xbf16>
    %219 = vector.shape_cast %216 : vector<192x128xbf16> to vector<1x192x128xbf16>
    tpu.vector_store %arg10[%c0_153, %c0_154, %c0_155], %219 {strides = array<i32>} : memref<1x192x128xbf16, #tpu.memory_space<vmem>>, vector<1x192x128xbf16>,
    return
  }
  func.func @transform_0(%arg0: i32) -> (i32, i32, i32) {
    %c0_i32 = arith.constant 0 : i32
    %c0_i32_0 = arith.constant 0 : i32
    %c0_i32_1 = arith.constant 0 : i32
    return %arg0, %c0_i32, %c0_i32_0 : i32, i32, i32
  }
  func.func @transform_1(%arg0: i32) -> (i32, i32) {
    %c0_i32 = arith.constant 0 : i32
    %c0_i32_0 = arith.constant 0 : i32
    %c0_i32_1 = arith.constant 0 : i32
    return %c0_i32, %c0_i32_0 : i32, i32
  }
  func.func @transform_2(%arg0: i32) -> (i32, i32) {
    %c0_i32 = arith.constant 0 : i32
    %c0_i32_0 = arith.constant 0 : i32
    %c0_i32_1 = arith.constant 0 : i32
    return %c0_i32, %c0_i32_0 : i32, i32
  }
  func.func @transform_3(%arg0: i32) -> (i32, i32, i32) {
    %c0_i32 = arith.constant 0 : i32
    %c0_i32_0 = arith.constant 0 : i32
    %c0_i32_1 = arith.constant 0 : i32
    %c0_i32_2 = arith.constant 0 : i32
    return %c0_i32, %c0_i32_0, %c0_i32_1 : i32, i32, i32
  }
  func.func @transform_4(%arg0: i32) -> (i32, i32) {
    %c0_i32 = arith.constant 0 : i32
    %c0_i32_0 = arith.constant 0 : i32
    %c0_i32_1 = arith.constant 0 : i32
    return %c0_i32, %c0_i32_0 : i32, i32
  }
  func.func @transform_5(%arg0: i32) -> (i32, i32) {
    %c0_i32 = arith.constant 0 : i32
    %c0_i32_0 = arith.constant 0 : i32
    %c0_i32_1 = arith.constant 0 : i32
    return %c0_i32, %c0_i32_0 : i32, i32
  }
  func.func @transform_6(%arg0: i32) -> (i32, i32) {
    %c0_i32 = arith.constant 0 : i32
    %c0_i32_0 = arith.constant 0 : i32
    %c0_i32_1 = arith.constant 0 : i32
    return %c0_i32, %c0_i32_0 : i32, i32
  }
  func.func @transform_7(%arg0: i32) -> (i32, i32, i32) {
    %c0_i32 = arith.constant 0 : i32
    %c0_i32_0 = arith.constant 0 : i32
    %c0_i32_1 = arith.constant 0 : i32
    %c0_i32_2 = arith.constant 0 : i32
    return %c0_i32, %c0_i32_0, %c0_i32_1 : i32, i32, i32
  }
  func.func @transform_8(%arg0: i32) -> (i32, i32, i32) {
    %c0_i32 = arith.constant 0 : i32
    %c0_i32_0 = arith.constant 0 : i32
    %c0_i32_1 = arith.constant 0 : i32
    return %arg0, %c0_i32, %c0_i32_0 : i32, i32, i32
  }
  func.func @transform_9(%arg0: i32) -> (i32, i32, i32) {
    %c0_i32 = arith.constant 0 : i32
    %c0_i32_0 = arith.constant 0 : i32
    %c0_i32_1 = arith.constant 0 : i32
    return %arg0, %c0_i32, %c0_i32_0 : i32, i32, i32
  }
}

</mosaic_0001>

<bundles_post_ra>
// kernel: unet_conv_block_forward.1
= control target key start
LH: loop header
LB: loop body
LE: loop exit
PB: predicated region body
PF: predicated region fallthrough
CT: control target
= control target key end

     0   :  { %s15176_s30 = smov 0   ;;  %s18834_s0 = inlined_call_operand.vmem [shape: bf16[2,384,36], index: 0, kind: input, shape index: {}]   ;;  %s18835_s1 = inlined_call_operand.vmem [shape: bf16[36,128], index: 1, kind: input, shape index: {}]   ;;  %s18836_s2 = inlined_call_operand.vmem [shape: f32[1,128], index: 2, kind: input, shape index: {}]   ;;  %s18837_s3 = inlined_call_operand.vmem [shape: bf16[9,128,128], index: 3, kind: input, shape index: {}]   ;;  %s18838_s4 = inlined_call_operand.vmem [shape: f32[1,128], index: 4, kind: input, shape index: {}]   ;;  %s18839_s5 = inlined_call_operand.vmem [shape: bf16[36,128], index: 5, kind: input, shape index: {}]   ;;  %s18840_s6 = inlined_call_operand.vmem [shape: f32[1,128], index: 6, kind: input, shape index: {}]   ;;  %s18841_s7 = inlined_call_operand.vmem [shape: bf16[16,128,128], index: 7, kind: input, shape index: {}]   ;;  %s18842_s8 = inlined_call_operand.vmem [shape: bf16[2,384,128], index: 8, kind: output, shape index: {0}]   ;;  %s18843_s9 = inlined_call_operand.vmem [shape: bf16[2,192,128], index: 9, kind: output, shape index: {1}]  }
   0x1 LB: > { %s10922_s10 = sadd.s32 4294967295, %s15121_s30   ;;  %p10926_p0 = scmp.ge.s32.totalorder %s15121_s30, 1  ;;  %s15121_s30 = sphi %s15176_s30, %s20_s30  }
   0x2   : > { %p290_p1 = scmp.lt.s32.totalorder %s15121_s30, 3 }
   0x4   : > { %p291_p2 = pnand %p10926_p0, %p290_p1 }
   0x6   : > { %294 = sbr.rel (%p291_p2) target bundleno = 2338 (0x922), region = 52 }
   0xd   : > { %v14833_v0 = vld [vmem:[%s18835_s1] sm:$0xff]   ;;  %v14834_v1 = vld [vmem:[%s18835_s1 + $0x8] sm:$0xff]   ;;  %p331_p3 = scmp.lt.s32.totalorder %s10922_s10, 1  ;;  %v14835_v2 = vld [vmem:[%s18835_s1 + $0x10] ss:$0 sps:$4 sm:$0x33]   ;;  %v347_v34 = vlaneseq }
   0xe   : > { %12601 = vmatprep.subr.bf16.mxu0 %v14833_v0  ;;  %13925 = vmatprep.subr.bf16.mxu1 %v14833_v0  ;;  %vm18845_vm0 = vcmask 1041408   ;;  %vm18844_vm1 = vcmask 293888   ;;  %v14860_v3 = vld [vmem:[%s18837_s3] sm:$0xff]   ;;  %v14861_v8 = vld [vmem:[%s18837_s3 + $0x8] sm:$0xff]   ;;  %v14862_v9 = vld [vmem:[%s18837_s3 + $0x10] sm:$0xff]   ;;  %v15123_v39 = vmov 0.0  }
   0xf   : > { %12602 = vmatpush3.bf16.msra.mxu0 %v14833_v0  ;;  %s19855_s10 = smov (!%p331_p3, %s10922_s10), 1  ;;  %13928 = vmatpush3.bf16.msra.mxu1 %v14833_v0  ;;  %v1482_v4 = vsel %vm18845_vm0, %v14835_v2, 0  ;;  %v14863_v14 = vld [vmem:[%s18837_s3 + $0x18] sm:$0xff]   ;;  %v14864_v16 = vld [vmem:[%s18837_s3 + $0x20] sm:$0xff]   ;;  %v14865_v23 = vld [vmem:[%s18837_s3 + $0x28] sm:$0xff]   ;;  %v15277_v35 = vshrl.u32 %v347_v34, 7 }
  0x10   : > { %12603 = vmatprep.subr.bf16.mxu0 %v14834_v1  ;;  %13926 = vmatprep.subr.bf16.mxu1 %v14834_v1  ;;  %s14726_s17 = smul.u32 192, %s19855_s10  ;;  %2248 = vst [vmem:[#allocation2 + $0x18] sm:$0xff] %v15123_v39  ;;  %6434 = vst [vmem:[#allocation3 + $0x1d0] sm:$0xff] %v15123_v39  ;;  %v14866_v41 = vld [vmem:[%s18837_s3 + $0x30] sm:$0xff]   ;;  %v14867_v47 = vld [vmem:[%s18837_s3 + $0x38] sm:$0xff]   ;;  %v15124_v55 = vmov 0.0|0.0  }
  0x11   : > { %v350_v36 = vadd.s32 16, %v15277_v35  ;;  %2245 = vst [vmem:[#allocation2] sm:$0xff] %v15123_v39  ;;  %2246 = vst [vmem:[#allocation2 + $0x8] sm:$0xff] %v15123_v39  ;;  %v351_v40 = vadd.s32 24, %v15277_v35  ;;  %v15288_v42 = vmul.u32.u64.low 2863311531, %v15277_v35  ;;  %v15289_v43 = vmul.u32.u64.high 2863311531, %v15277_v35, %v15288_v42 }
  0x12   : > { %s15201_s20 = scalar_lea.vmem %s18834_s0, %s14726_s17  ;;  %2247 = vst [vmem:[#allocation2 + $0x10] sm:$0xff] %v15123_v39  ;;  %2249 = vst [vmem:[#allocation2 + $0x198] sm:$0xff] %v15123_v39  ;;  %v349_v46 = vadd.s32 8, %v15277_v35  ;;  %v354_v49 = vadd.s32 48, %v15277_v35  ;;  %v352_v50 = vadd.s32 32, %v15277_v35  ;;  %v355_v54 = vadd.s32 56, %v15277_v35  ;;  %s18203_s29 = scalar_lea.vmem %s18842_s8, %s14726_s17 }
  0x13   : > { %12604 = vmatpush3.bf16.msra.mxu0 %v14834_v1  ;;  %13929 = vmatpush3.bf16.msra.mxu1 %v14834_v1  ;;  %v15209_v5 = vld [vmem:[%s15201_s20] sm:$0xff]   ;;  %v14837_v6 = vld [vmem:[%s15201_s20 + $0x8] sm:$0xff]   ;;  %v14838_v7 = vld [vmem:[%s15201_s20 + $0x10] sm:$0xff]   ;;  %v15280_v37 = vmul.u32.u64.low 2863311531, %v350_v36  ;;  %v15281_v38 = vmul.u32.u64.high 2863311531, %v350_v36, %v15280_v37  ;;  %2250 = vst [vmem:[#allocation2 + $0x1a0] sm:$0xff] %v15123_v39 }
  0x14   : > { %14723 = vmatprep.subr.msk.bf16.mxu0 %vm18845_vm0, %v14835_v2  ;;  %14724 = vmatprep.subr.msk.bf16.mxu1 %vm18845_vm0, %v14835_v2  ;;  %v14839_v10 = vld [vmem:[%s15201_s20 + $0x18] sm:$0xff]   ;;  %v14840_v11 = vld [vmem:[%s15201_s20 + $0x20] sm:$0xff]   ;;  %v14847_v13 = vld [vmem:[%s15201_s20 + $0x68] sm:$0xff]   ;;  %2251 = vst [vmem:[#allocation2 + $0x1a8] sm:$0xff] %v15123_v39  ;;  %v15291_v44 = vmul.u32.u64.low 2863311531, %v351_v40  ;;  %v15292_v45 = vmul.u32.u64.high 2863311531, %v351_v40, %v15291_v44 }
  0x15   : > { %12607 = vmatprep.mubr.msk.bf16.mxu0 %vm18844_vm1, %v15209_v5  ;;  %v14846_v12 = vld [vmem:[%s15201_s20 + $0x60] sm:$0xff]   ;;  %v14850_v15 = vld [vmem:[%s15201_s20 + $0x70] sm:$0xff]   ;;  %v14841_v17 = vld [vmem:[%s15201_s20 + $0x28] sm:$0xff]   ;;  %2252 = vst [vmem:[#allocation2 + $0x1b0] sm:$0xff] %v15123_v39  ;;  %v424_v48 = vshrl.u32 %v15281_v38, 4  ;;  %v402_v53 = vshrl.u32 %v15289_v43, 4 }
  0x16   : > { %12631 = vmatprep.mubr.msk.bf16.mxu1 %vm18844_vm1, %v14846_v12  ;;  %v14851_v18 = vld [vmem:[%s15201_s20 + $0x78] sm:$0xff]   ;;  %v14852_v19 = vld [vmem:[%s15201_s20 + $0x80] sm:$0xff]   ;;  %v14842_v20 = vld [vmem:[%s15201_s20 + $0x30] sm:$0xff]   ;;  %6423 = vst [vmem:[#allocation3] sm:$0xff] %v15123_v39  ;;  %v15301_v51 = vmul.u32.u64.low 2863311531, %v349_v46  ;;  %v15302_v52 = vmul.u32.u64.high 2863311531, %v349_v46, %v15301_v51 }
  0x17   : > { %12606 = vmatpush3.bf16.msra.mxu0 %v1482_v4  ;;  %13930 = vmatpush3.bf16.msra.mxu1 %v1482_v4  ;;  %v14853_v21 = vld [vmem:[%s15201_s20 + $0x88] sm:$0xff]   ;;  %v14843_v22 = vld [vmem:[%s15201_s20 + $0x38] sm:$0xff]   ;;  %v14844_v24 = vld [vmem:[%s15201_s20 + $0x40] sm:$0xff]   ;;  %6424 = vst [vmem:[#allocation3 + $0x8] sm:$0xff] %v15123_v39  ;;  %v425_v56 = vmul.u32 24, %v424_v48  ;;  %v435_v61 = vshrl.u32 %v15292_v45, 4 }
  0x18   : > { %12709 = vmatprep.subr.bf16.mxu0 %v14860_v3  ;;  %v14854_v25 = vld [vmem:[%s15201_s20 + $0x90] sm:$0xff]   ;;  %v14855_v26 = vld [vmem:[%s15201_s20 + $0x98] sm:$0xff]   ;;  %v14845_v27 = vld [vmem:[%s15201_s20 + $0x48] sm:$0xff]   ;;  %6425 = vst [vmem:[#allocation3 + $0x10] sm:$0xff] %v15123_v39  ;;  %v15306_v57 = vmul.u32.u64.low 2863311531, %v354_v49  ;;  %v15307_v58 = vmul.u32.u64.high 2863311531, %v354_v49, %v15306_v57 }
  0x19   : > { %v14856_v28 = vld [vmem:[%s15201_s20 + $0xa0] sm:$0xff]   ;;  %v14848_v29 = vld [vmem:[%s15201_s20 + $0x50] sm:$0xff]   ;;  %v14857_v30 = vld [vmem:[%s15201_s20 + $0xa8] sm:$0xff]   ;;  %6426 = vst [vmem:[#allocation3 + $0x18] sm:$0xff] %v15123_v39  ;;  %v15309_v59 = vmul.u32.u64.low 2863311531, %v352_v50  ;;  %v15310_v60 = vmul.u32.u64.high 2863311531, %v352_v50, %v15309_v59  ;;  %v15316_v1 = vsub.s32 %v350_v36, %v425_v56 }
  0x1a   : > { %12608 = vmatmul.mubr.msk.bf16.vlgmr.msra.gmra.mrb[0].mxu0 %vm18844_vm1, %v14837_v6  ;;  %12632 = vmatmul.mubr.msk.bf16.vlgmr.msra.gmra.mrb[0].mxu1 %vm18844_vm1, %v14847_v13  ;;  %v14849_v31 = vld [vmem:[%s15201_s20 + $0x58] sm:$0xff]   ;;  %v14858_v32 = vld [vmem:[%s15201_s20 + $0xb0] sm:$0xff]   ;;  %6427 = vst [vmem:[#allocation3 + $0x198] sm:$0xff] %v15123_v39  ;;  %6428 = vst [vmem:[#allocation3 + $0x1a0] sm:$0xff] %v15123_v39  ;;  %v403_v62 = vmul.u32 24, %v402_v53  ;;  %v436_v2 = vmul.u32 24, %v435_v61 }
  0x1b   : > { %12611 = vmatprep.mubr.msk.bf16.mxu0 %vm18844_vm1, %v14838_v7  ;;  %12710 = vmatpush3.bf16.msra.mxu0 %v14860_v3  ;;  %v14859_v33 = vld [vmem:[%s15201_s20 + $0xb8] sm:$0xff]   ;;  %6429 = vst [vmem:[#allocation3 + $0x1a8] sm:$0xff] %v15123_v39  ;;  %6430 = vst [vmem:[#allocation3 + $0x1b0] sm:$0xff] %v15123_v39  ;;  %v15313_v63 = vmul.u32.u64.low 2863311531, %v355_v54  ;;  %v15314_v0 = vmul.u32.u64.high 2863311531, %v355_v54, %v15313_v63  ;;  %v413_v3 = vshrl.u32 %v15302_v52, 4 }
  0x1c   : > { %12711 = vmatprep.subr.bf16.mxu0 %v14861_v8  ;;  %12635 = vmatprep.mubr.msk.bf16.mxu1 %vm18844_vm1, %v14850_v15  ;;  %6431 = vst [vmem:[#allocation3 + $0x1b8] sm:$0xff] %v15123_v39  ;;  %6432 = vst [vmem:[#allocation3 + $0x1c0] sm:$0xff] %v15123_v39  ;;  %v15320_v4 = vadd.s32 40, %v15277_v35  ;;  %v15326_v6 = vsub.s32 %v15277_v35, %v403_v62  ;;  %vm926_vm2 = vcmp.ne.s32.totalorder %v15316_v1, 0  ;;  %vm974_vm3 = vcmp.lt.s32.totalorder %v15316_v1, 0  ;;  %s14727_s24 = smul.u32 96, %s19855_s10 }
  0x1d   : > { %6433 = vst [vmem:[#allocation3 + $0x1c8] sm:$0xff] %v15123_v39  ;;  %v468_v7 = vshrl.u32 %v15307_v58, 4  ;;  %v414_v12 = vmul.u32 24, %v413_v3  ;;  %vm15344_vm4 = vmand %vm974_vm3, %vm926_vm2  ;;  %v15427_v48 = vadd.s32 120, %v15277_v35  ;;  %v19093_v53 = vmov 0 }
  0x1e   : > { %vm924_vm5 = vcmp.ne.s32.totalorder %v15326_v6, 0  ;;  %vm972_vm6 = vcmp.lt.s32.totalorder %v15326_v6, 0  ;;  %v19098_v57 = vmov 0  ;;  %v19101_v61 = vmov 0  ;;  %s18817_s26 = scalar_lea.vmem %s18843_s9, %s14727_s24 }
  0x1f   : > { %12712 = vmatpush3.bf16.msra.mxu0 %v14861_v8  ;;  %v15332_v8 = vadd.s32 80, %v15277_v35  ;;  %vm15380_vm7 = vmand %vm972_vm6, %vm924_vm5 }
  0x20   : > { %12713 = vmatprep.subr.bf16.mxu0 %v14862_v9 }
  0x22   : > { %12612 = vmatmul.mubr.msk.bf16.gmra.mrb[4].mxu0 %vm18844_vm1, %v14839_v10  ;;  %12636 = vmatmul.mubr.msk.bf16.gmra.mrb[4].mxu1 %vm18844_vm1, %v14851_v18  ;;  %v446_v10 = vshrl.u32 %v15310_v60, 4  ;;  %v469_v18 = vmul.u32 24, %v468_v7  ;;  %v15463_v60 = vadd.s32 104, %v15277_v35 }
  0x23   : > { %12615 = vmatprep.mubr.msk.bf16.mxu0 %vm18844_vm1, %v14840_v11  ;;  %12714 = vmatpush3.bf16.msra.mxu0 %v14862_v9  ;;  %v15335_v9 = vadd.s32 24, %v15316_v1  ;;  %v15338_v11 = vsub.s32 %v351_v40, %v436_v2  ;;  %v15477_v2 = vadd.s32 144, %v15277_v35 }
  0x24   : > { %12715 = vmatprep.subr.bf16.mxu0 %v14863_v14  ;;  %12639 = vmatprep.mubr.msk.bf16.mxu1 %vm18844_vm1, %v14852_v19  ;;  %v15391_v34 = vsub.s32 %v354_v49, %v469_v18  ;;  %v15505_v18 = vadd.s32 128, %v15277_v35 }
  0x25   : > { %vm927_vm8 = vcmp.ne.s32.totalorder %v15338_v11, 0  ;;  %vm975_vm9 = vcmp.lt.s32.totalorder %v15338_v11, 0  ;;  %v15401_v39 = vadd.s32 24, %v15338_v11 }
  0x26   : > { %19087 = vst [vmem:[#allocation5_spill] sm:$0xff] %v15391_v34  ;;  %vm930_vm12 = vcmp.ne.s32.totalorder %v15391_v34, 0  ;;  %vm978_vm13 = vcmp.lt.s32.totalorder %v15391_v34, 0  ;;  %vm15433_vm15 = vmand %vm975_vm9, %vm927_vm8 }
  0x27   : > { %12716 = vmatpush3.bf16.msra.mxu0 %v14863_v14  ;;  %v15341_v13 = vmul.u32.u64.low 2863311531, %v15320_v4  ;;  %v15342_v14 = vmul.u32.u64.high 2863311531, %v15320_v4, %v15341_v13  ;;  %vm15456_vm6 = vmand %vm978_vm13, %vm930_vm12 }
  0x28   : > { %12717 = vmatprep.subr.bf16.mxu0 %v14864_v16  ;;  %v19099_v57 = vsel %vm15456_vm6, 4294967295, %v19098_v57  ;;  %v19106_v13 = vmov 0 }
  0x29   : > { %v457_v40 = vshrl.u32 %v15342_v14, 4  ;;  %19100 = vst [vmem:[#allocation12_spill] sm:$0xff] %v19099_v57  ;;  %v19217_v57 = vmov 0 }
  0x2a   : > { %12616 = vmatmul.mubr.msk.bf16.gmra.mrb[8].mxu0 %vm18844_vm1, %v14841_v17  ;;  %12640 = vmatmul.mubr.msk.bf16.gmra.mrb[8].mxu1 %vm18844_vm1, %v14853_v21  ;;  %v15352_v17 = vadd.s32 64, %v15277_v35  ;;  %v15359_v21 = vadd.s32 88, %v15277_v35 }
  0x2b   : > { %12619 = vmatprep.mubr.msk.bf16.mxu0 %vm18844_vm1, %v14842_v20  ;;  %12718 = vmatpush3.bf16.msra.mxu0 %v14864_v16  ;;  %v479_v16 = vshrl.u32 %v15314_v0, 4  ;;  %v15355_v19 = vmul.u32.u64.low 2863311531, %v15332_v8  ;;  %v15356_v20 = vmul.u32.u64.high 2863311531, %v15332_v8, %v15355_v19 }
  0x2c   : > { %12719 = vmatprep.subr.bf16.mxu0 %v14865_v23  ;;  %12643 = vmatprep.mubr.msk.bf16.mxu1 %vm18844_vm1, %v14854_v25  ;;  %v15369_v25 = vadd.s32 24, %v15326_v6  ;;  %v15473_v63 = vmul.u32.u64.low 2863311531, %v15427_v48  ;;  %v15474_v0 = vmul.u32.u64.high 2863311531, %v15427_v48, %v15473_v63 }
  0x2f   : > { %12720 = vmatpush3.bf16.msra.mxu0 %v14865_v23  ;;  %v15362_v23 = vadd.s32 72, %v15277_v35 }
  0x30   : > { %12721 = vmatprep.subr.bf16.mxu0 %v14866_v41 }
  0x31   : > { %v15396_v37 = vmul.u32.u64.low 2863311531, %v15362_v23  ;;  %v15397_v38 = vmul.u32.u64.high 2863311531, %v15362_v23, %v15396_v37 }
  0x32   : > { %12620 = vmatmul.mubr.msk.bf16.gmra.mrb[12].mxu0 %vm18844_vm1, %v14843_v22  ;;  %12644 = vmatmul.mubr.msk.bf16.gmra.mrb[12].mxu1 %vm18844_vm1, %v14855_v26  ;;  %v447_v22 = vmul.u32 24, %v446_v10  ;;  %v480_v26 = vmul.u32 24, %v479_v16 }
  0x33   : > { %12623 = vmatprep.mubr.msk.bf16.mxu0 %vm18844_vm1, %v14844_v24  ;;  %12647 = vmatprep.mubr.msk.bf16.mxu1 %vm18844_vm1, %v14856_v28  ;;  %v501_v62 = vshrl.u32 %v15397_v38, 4  ;;  %v15529_v38 = vadd.s32 152, %v15277_v35 }
  0x34   : > { %12722 = vmatpush3.bf16.msra.mxu0 %v14866_v41  ;;  %v15393_v36 = vsub.s32 %v352_v50, %v447_v22  ;;  %v15405_v41 = vadd.s32 96, %v15277_v35  ;;  %v15411_v43 = vsub.s32 %v355_v54, %v480_v26  ;;  %v458_v50 = vmul.u32 24, %v457_v40 }
  0x35   : > { %12723 = vmatprep.subr.bf16.mxu0 %v14867_v47  ;;  %v15447_v54 = vadd.s32 24, %v15391_v34  ;;  %v16114_v34 = vadd.s32 368, %v15277_v35 }
  0x36   : > { %19088 = vst [vmem:[#allocation6_spill] sm:$0xff] %v15393_v36  ;;  %19089 = vst [vmem:[#allocation7_spill] sm:$0xff] %v15411_v43  ;;  %vm928_vm14 = vcmp.ne.s32.totalorder %v15393_v36, 0  ;;  %vm976_vm2 = vcmp.lt.s32.totalorder %v15393_v36, 0  ;;  %v15439_v51 = vmul.u32.u64.low 2863311531, %v15405_v41  ;;  %v15440_v52 = vmul.u32.u64.high 2863311531, %v15405_v41, %v15439_v51 }
  0x37   : > { %19096 = vst [vmem:[#allocation10_spill] sm:$0xff] %v15447_v54  ;;  %vm931_vm5 = vcmp.ne.s32.totalorder %v15411_v43, 0  ;;  %vm979_vm8 = vcmp.lt.s32.totalorder %v15411_v43, 0  ;;  %vm15467_vm9 = vmand %vm976_vm2, %vm928_vm14  ;;  %v15488_v7 = vadd.s32 24, %v15411_v43  ;;  %v15491_v10 = vsub.s32 %v15320_v4, %v458_v50 }
  0x38   : > { %12724 = vmatpush3.bf16.msra.mxu0 %v14867_v47  ;;  %v512_v47 = vshrl.u32 %v15356_v20, 4  ;;  %v19102_v61 = vsel %vm15467_vm9, 4294967295, %v19101_v61  ;;  %v15512_v20 = vmul.u32.u64.low 2863311531, %v15463_v60  ;;  %v15513_v22 = vmul.u32.u64.high 2863311531, %v15463_v60, %v15512_v20 }
  0x39   : > { %19103 = vst [vmem:[#allocation13_spill] sm:$0xff] %v19102_v61  ;;  %19104 = vst [vmem:[#allocation14_spill] sm:$0xff] %v15488_v7  ;;  %v534_v37 = vshrl.u32 %v15440_v52, 4  ;;  %vm977_vm12 = vcmp.lt.s32.totalorder %v15491_v10, 0  ;;  %v15546_v51 = vadd.s32 136, %v15277_v35  ;;  %v567_v52 = vshrl.u32 %v15474_v0, 4 }
  0x3a   : > { %12624 = vmatmul.mubr.msk.bf16.gmra.mrb[16].mxu0 %vm18844_vm1, %v14845_v27  ;;  %12648 = vmatmul.mubr.msk.bf16.gmra.mrb[16].mxu1 %vm18844_vm1, %v14857_v30  ;;  %v15372_v27 = vmul.u32.u64.low 2863311531, %v15352_v17  ;;  %v15373_v28 = vmul.u32.u64.high 2863311531, %v15352_v17, %v15372_v27  ;;  %v513_v58 = vmul.u32 24, %v512_v47  ;;  %19105 = vst [vmem:[#allocation15_spill] sm:$0xff] %v15491_v10  ;;  %v15540_v47 = vadd.s32 24, %v15491_v10 }
  0x3b   : > { %12627 = vmatprep.mubr.msk.bf16.mxu0 %vm18844_vm1, %v14848_v29  ;;  %12651 = vmatprep.mubr.msk.bf16.mxu1 %vm18844_vm1, %v14858_v32  ;;  %v15376_v29 = vadd.s32 112, %v15277_v35  ;;  %v502_v27 = vmul.u32 24, %v501_v62  ;;  %v545_v63 = vshrl.u32 %v15513_v22, 4  ;;  %v568_v22 = vmul.u32 24, %v567_v52 }
  0x3c   : > { %v490_v56 = vshrl.u32 %v15373_v28, 4  ;;  %v15516_v26 = vsub.s32 %v15332_v8, %v513_v58  ;;  %19111 = vst [vmem:[#allocation19_spill] sm:$0xff] %v15540_v47 }
  0x3d   : > { %v15414_v44 = vmul.u32.u64.low 2863311531, %v15376_v29  ;;  %v15415_v45 = vmul.u32.u64.high 2863311531, %v15376_v29, %v15414_v44 }
  0x3e   : > { %v491_v14 = vmul.u32 24, %v490_v56  ;;  %19109 = vst [vmem:[#allocation17_spill] sm:$0xff] %v15516_v26  ;;  %vm934_vm13 = vcmp.ne.s32.totalorder %v15516_v26, 0  ;;  %vm982_vm14 = vcmp.lt.s32.totalorder %v15516_v26, 0  ;;  %v535_v56 = vmul.u32 24, %v534_v37 }
  0x3f   : > { %v556_v16 = vshrl.u32 %v15415_v45, 4  ;;  %v15535_v44 = vmul.u32.u64.low 2863311531, %v15505_v18  ;;  %v15536_v45 = vmul.u32.u64.high 2863311531, %v15505_v18, %v15535_v44  ;;  %v15562_v62 = vadd.s32 24, %v15516_v26  ;;  %vm15591_vm2 = vmand %vm982_vm14, %vm934_vm13 }
  0x40   : > { %v15532_v8 = vsub.s32 %v15352_v17, %v491_v14  ;;  %v15551_v17 = vsub.s32 %v15362_v23, %v502_v27  ;;  %v15572_v0 = vmul.u32.u64.low 2863311531, %v15546_v51  ;;  %v15573_v14 = vmul.u32.u64.high 2863311531, %v15546_v51, %v15572_v0 }
  0x41   : > { %v557_v40 = vmul.u32 24, %v556_v16  ;;  %19114 = vst [vmem:[#allocation22_spill] sm:$0xff] %v15562_v62  ;;  %v19116_v16 = vmov 0  ;;  %v15596_v20 = vsub.s32 %v15405_v41, %v535_v56  ;;  %v578_v41 = vshrl.u32 %v15536_v45, 4 }
  0x42   : > { %12628 = vmatmul.mubr.msk.bf16.gmra.mrb[20].mxu0 %vm18844_vm1, %v14849_v31  ;;  %12652 = vmatmul.mubr.msk.bf16.gmra.mrb[20].mxu1 %vm18844_vm1, %v14859_v33  ;;  %v15385_v31 = vsub.s32 %v349_v46, %v414_v12  ;;  %v15388_v32 = vmul.u32.u64.low 2863311531, %v15359_v21  ;;  %v15389_v33 = vmul.u32.u64.high 2863311531, %v15359_v21, %v15388_v32  ;;  %19110 = vst [vmem:[#allocation18_spill] sm:$0xff] %v15532_v8  ;;  %19113 = vst [vmem:[#allocation21_spill] sm:$0xff] %v15551_v17  ;;  %v15614_v37 = vadd.s32 176, %v15277_v35 }
  0x43   : > { %12661 = vmatprep.mubr.msk.bf16.mxu1 %vm18844_vm1, %v15209_v5  ;;  %12725 = vmatprep.mubr.bf16.mxu0 %v15124_v55  ;;  %v14868_v5 = vld [vmem:[%s18837_s3 + $0xc0] sm:$0xff]   ;;  %v15450_v55 = vadd.s32 24, %v15393_v36  ;;  %v15519_v28 = vmul.u32.u64.low 2863311531, %v15477_v2  ;;  %v15520_v32 = vmul.u32.u64.high 2863311531, %v15477_v2, %v15519_v28  ;;  %v15567_v23 = vsub.s32 %v15376_v29, %v557_v40  ;;  %19122 = vst [vmem:[#allocation26_spill] sm:$0xff] %v15596_v20 }
  0x44   : > { %12773 = vmatprep.subr.bf16.mxu0 %v14868_v5  ;;  %19086 = vst [vmem:[#allocation4_spill] sm:$0xff] %v15385_v31  ;;  %vm925_vm10 = vcmp.ne.s32.totalorder %v15385_v31, 0  ;;  %vm973_vm11 = vcmp.lt.s32.totalorder %v15385_v31, 0  ;;  %v15420_v46 = vadd.s32 24, %v15385_v31  ;;  %v523_v59 = vshrl.u32 %v15389_v33, 4 }
  0x45   : > { %vm15442_vm3 = vmand %vm973_vm11, %vm925_vm10  ;;  %19097 = vst [vmem:[#allocation11_spill] sm:$0xff] %v15450_v55  ;;  %vm929_vm11 = vcmp.ne.s32.totalorder %v15491_v10, 0  ;;  %v600_v29 = vshrl.u32 %v15520_v32, 4  ;;  %v19125_v32 = vmov 0  ;;  %vm938_vm13 = vcmp.ne.s32.totalorder %v15567_v23, 0 }
  0x46   : > { %19090 = vst [vmem:[#allocation8_spill] sm:$0xff] %v15420_v46  ;;  %v19094_v53 = vsel %vm15442_vm3, 4294967295, %v19093_v53  ;;  %vm15499_vm10 = vmand %vm979_vm8, %vm931_vm5  ;;  %v524_v19 = vmul.u32 24, %v523_v59  ;;  %v15555_v58 = vmul.u32.u64.low 2863311531, %v15529_v38  ;;  %v15556_v59 = vmul.u32.u64.high 2863311531, %v15529_v38, %v15555_v58 }
  0x47   : > { %19095 = vst [vmem:[#allocation9_spill] sm:$0xff] %v19094_v53  ;;  %v19107_v13 = vsel %vm15499_vm10, 4294967295, %v19106_v13  ;;  %19115 = vst [vmem:[#allocation23_spill] sm:$0xff] %v15567_v23  ;;  %vm986_vm14 = vcmp.lt.s32.totalorder %v15567_v23, 0  ;;  %v15617_v40 = vadd.s32 24, %v15532_v8  ;;  %v19130_v44 = vmov 0 }
  0x48   : > { %19108 = vst [vmem:[#allocation16_spill] sm:$0xff] %v19107_v13  ;;  %v15543_v50 = vsub.s32 %v15359_v21, %v524_v19  ;;  %v15559_v21 = vadd.s32 208, %v15277_v35  ;;  %vm15579_vm1 = vmand %vm977_vm12, %vm929_vm11  ;;  %v19119_v19 = vmov 0  ;;  %vm19123_vm11 = vcmp.ne.s32.totalorder %v15532_v8, 0 }
  0x49   : > { %v19117_v16 = vsel %vm15579_vm1, 4294967295, %v19116_v16  ;;  %v19120_v19 = vsel %vm15591_vm2, 4294967295, %v19119_v19  ;;  %vm19124_vm12 = vcmp.lt.s32.totalorder %v15532_v8, 0  ;;  %19128 = vst [vmem:[#allocation28_spill] sm:$0xff] %v15617_v40  ;;  %v15631_v56 = vadd.s32 24, %v15551_v17  ;;  %vm15654_vm1 = vmand %vm986_vm14, %vm938_vm13 }
  0x4a   : > { %19112 = vst [vmem:[#allocation20_spill] sm:$0xff] %v15543_v50  ;;  %19118 = vst [vmem:[#allocation24_spill] sm:$0xff] %v19117_v16  ;;  %vm983_vm0 = vcmp.lt.s32.totalorder %v15543_v50, 0  ;;  %v15599_v27 = vmul.u32.u64.low 2863311531, %v15559_v21  ;;  %v15600_v28 = vmul.u32.u64.high 2863311531, %v15559_v21, %v15599_v27  ;;  %vm19129_vm5 = vcmp.ne.s32.totalorder %v15543_v50, 0 }
  0x4b   : > { %19121 = vst [vmem:[#allocation25_spill] sm:$0xff] %v19120_v19  ;;  %vm15606_vm8 = vmand %vm19124_vm12, %vm19123_vm11  ;;  %v15628_v52 = vadd.s32 24, %v15543_v50  ;;  %v546_v45 = vmul.u32 24, %v545_v63  ;;  %v19137_v27 = vmov 0  ;;  %v15650_v63 = vadd.s32 24, %v15567_v23 }
  0x4c   : > { %v19126_v32 = vsel %vm15606_vm8, 4294967295, %v19125_v32  ;;  %vm15623_vm11 = vmand %vm983_vm0, %vm19129_vm5  ;;  %19134 = vst [vmem:[#allocation31_spill] sm:$0xff] %v15631_v56  ;;  %vm19135_vm0 = vcmp.ne.s32.totalorder %v15551_v17, 0  ;;  %vm19136_vm5 = vcmp.lt.s32.totalorder %v15551_v17, 0  ;;  %v601_v33 = vmul.u32 24, %v600_v29 }
  0x4d   : > { %19127 = vst [vmem:[#allocation27_spill] sm:$0xff] %v19126_v32  ;;  %v19131_v44 = vsel %vm15623_vm11, 4294967295, %v19130_v44  ;;  %19133 = vst [vmem:[#allocation30_spill] sm:$0xff] %v15628_v52  ;;  %v19141_v58 = vmov 0  ;;  %vm936_vm2 = vcmp.ne.s32.totalorder %v15596_v20, 0  ;;  %vm984_vm10 = vcmp.lt.s32.totalorder %v15596_v20, 0 }
  0x4e   : > { %19132 = vst [vmem:[#allocation29_spill] sm:$0xff] %v19131_v44  ;;  %vm15645_vm12 = vmand %vm19136_vm5, %vm19135_vm0  ;;  %v19142_v58 = vsel %vm15654_vm1, 4294967295, %v19141_v58  ;;  %v15661_v0 = vsub.s32 %v15427_v48, %v568_v22  ;;  %v611_v4 = vshrl.u32 %v15556_v59, 4  ;;  %v579_v12 = vmul.u32 24, %v578_v41 }
  0x4f   : > { %v19138_v27 = vsel %vm15645_vm12, 4294967295, %v19137_v27  ;;  %19140 = vst [vmem:[#allocation33_spill] sm:$0xff] %v15650_v63  ;;  %19143 = vst [vmem:[#allocation34_spill] sm:$0xff] %v19142_v58  ;;  %v15665_v5 = vmul.u32.u64.low 2863311531, %v15614_v37  ;;  %v15666_v3 = vmul.u32.u64.high 2863311531, %v15614_v37, %v15665_v5  ;;  %v15669_v29 = vadd.s32 192, %v15277_v35 }
  0x50   : > { %19139 = vst [vmem:[#allocation32_spill] sm:$0xff] %v19138_v27  ;;  %19144 = vst [vmem:[#allocation35_spill] sm:$0xff] %v15661_v0  ;;  %v15676_v24 = vadd.s32 24, %v15596_v20  ;;  %v15679_v48 = vsub.s32 %v15463_v60, %v546_v45  ;;  %v589_v59 = vshrl.u32 %v15573_v14, 4  ;;  %v19147_v60 = vmov 0 }
  0x51   : > { %vm15696_vm13 = vmand %vm984_vm10, %vm936_vm2  ;;  %v15701_v14 = vsub.s32 %v15477_v2, %v601_v33  ;;  %vm939_vm14 = vcmp.ne.s32.totalorder %v15661_v0, 0  ;;  %v612_v45 = vmul.u32 24, %v611_v4  ;;  %v688_v22 = vshrl.u32 %v15600_v28, 4 }
  0x52   : > { %19145 = vst [vmem:[#allocation36_spill] sm:$0xff] %v15676_v24  ;;  %19146 = vst [vmem:[#allocation37_spill] sm:$0xff] %v15679_v48  ;;  %v19148_v60 = vsel %vm15696_vm13, 4294967295, %v19147_v60  ;;  %v15707_v5 = vadd.s32 24, %v15661_v0  ;;  %v15710_v41 = vsub.s32 %v15505_v18, %v579_v12  ;;  %v590_v4 = vmul.u32 24, %v589_v59 }
  0x53   : > { %19149 = vst [vmem:[#allocation38_spill] sm:$0xff] %v19148_v60  ;;  %19150 = vst [vmem:[#allocation39_spill] sm:$0xff] %v15701_v14  ;;  %v15713_v42 = vmul.u32.u64.low 2863311531, %v15669_v29  ;;  %v15714_v23 = vmul.u32.u64.high 2863311531, %v15669_v29, %v15713_v42  ;;  %v15722_v33 = vadd.s32 160, %v15277_v35  ;;  %v15726_v12 = vadd.s32 24, %v15679_v48 }
  0x54   : > { %19151 = vst [vmem:[#allocation40_spill] sm:$0xff] %v15707_v5  ;;  %19152 = vst [vmem:[#allocation41_spill] sm:$0xff] %v15710_v41  ;;  %v15730_v42 = vadd.s32 216, %v15277_v35  ;;  %v15734_v18 = vadd.s32 24, %v15701_v14  ;;  %v15737_v28 = vsub.s32 %v15529_v38, %v612_v45  ;;  %v689_v59 = vmul.u32 24, %v688_v22 }
  0x55   : > { %19153 = vst [vmem:[#allocation42_spill] sm:$0xff] %v15726_v12  ;;  %v15742_v2 = vadd.s32 24, %v15710_v41  ;;  %v644_v20 = vshrl.u32 %v15666_v3, 4  ;;  %vm19157_vm0 = vcmp.lt.s32.totalorder %v15661_v0, 0  ;;  %v19158_v24 = vmov 0 }
  0x56   : > { %19154 = vst [vmem:[#allocation43_spill] sm:$0xff] %v15734_v18  ;;  %19155 = vst [vmem:[#allocation44_spill] sm:$0xff] %v15737_v28  ;;  %v15754_v38 = vsub.s32 %v15546_v51, %v590_v4  ;;  %v15757_v22 = vmul.u32.u64.low 2863311531, %v15722_v33  ;;  %v15758_v45 = vmul.u32.u64.high 2863311531, %v15722_v33, %v15757_v22  ;;  %v15761_v60 = vadd.s32 184, %v15277_v35 }
  0x57   : > { %19156 = vst [vmem:[#allocation45_spill] sm:$0xff] %v15742_v2  ;;  %vm15749_vm5 = vmand %vm19157_vm0, %vm939_vm14  ;;  %vm19162_vm2 = vcmp.ne.s32.totalorder %v15679_v48, 0  ;;  %vm19163_vm10 = vcmp.lt.s32.totalorder %v15679_v48, 0  ;;  %v19164_v3 = vmov 0  ;;  %v15776_v51 = vadd.s32 200, %v15277_v35 }
  0x58   : > { %v19159_v24 = vsel %vm15749_vm5, 4294967295, %v19158_v24  ;;  %19161 = vst [vmem:[#allocation47_spill] sm:$0xff] %v15754_v38  ;;  %vm15767_vm13 = vmand %vm19163_vm10, %vm19162_vm2  ;;  %v15772_v63 = vmul.u32.u64.low 2863311531, %v15730_v42  ;;  %v15773_v58 = vmul.u32.u64.high 2863311531, %v15730_v42, %v15772_v63  ;;  %v15779_v4 = vadd.s32 168, %v15277_v35 }
  0x59   : > { %19160 = vst [vmem:[#allocation46_spill] sm:$0xff] %v19159_v24  ;;  %v19165_v3 = vsel %vm15767_vm13, 4294967295, %v19164_v3  ;;  %vm19167_vm14 = vcmp.ne.s32.totalorder %v15701_v14, 0  ;;  %vm19168_vm0 = vcmp.lt.s32.totalorder %v15701_v14, 0  ;;  %v19169_v22 = vmov 0 }
  0x5a   : > { %19166 = vst [vmem:[#allocation48_spill] sm:$0xff] %v19165_v3  ;;  %vm15785_vm1 = vmand %vm19168_vm0, %vm19167_vm14  ;;  %vm943_vm10 = vcmp.ne.s32.totalorder %v15737_v28, 0  ;;  %vm991_vm2 = vcmp.lt.s32.totalorder %v15737_v28, 0  ;;  %v15792_v63 = vadd.s32 24, %v15737_v28  ;;  %v15795_v17 = vsub.s32 %v15559_v21, %v689_v59 }
  0x5b   : > { %v19170_v22 = vsel %vm15785_vm1, 4294967295, %v19169_v22  ;;  %vm19174_vm12 = vcmp.ne.s32.totalorder %v15710_v41, 0  ;;  %vm19175_vm11 = vcmp.lt.s32.totalorder %v15710_v41, 0  ;;  %v19176_v56 = vmov 0 }
  0x5c   : > { %19171 = vst [vmem:[#allocation49_spill] sm:$0xff] %v19170_v22  ;;  %19172 = vst [vmem:[#allocation50_spill] sm:$0xff] %v15792_v63  ;;  %v645_v27 = vmul.u32 24, %v644_v20  ;;  %v666_v50 = vshrl.u32 %v15714_v23, 4  ;;  %v15807_v52 = vadd.s32 240, %v15277_v35  ;;  %v15810_v44 = vadd.s32 224, %v15277_v35 }
  0x5d   : > { %19173 = vst [vmem:[#allocation51_spill] sm:$0xff] %v15795_v17  ;;  %vm15801_vm8 = vmand %vm19175_vm11, %vm19174_vm12  ;;  %v15821_v20 = vmul.u32.u64.low 2863311531, %v15761_v60  ;;  %v15822_v8 = vmul.u32.u64.high 2863311531, %v15761_v60, %v15821_v20  ;;  %v19179_v23 = vmov 0  ;;  %vm941_vm12 = vcmp.ne.s32.totalorder %v15754_v38, 0 }
  0x5e   : > { %v19177_v56 = vsel %vm15801_vm8, 4294967295, %v19176_v56  ;;  %vm15824_vm11 = vmand %vm991_vm2, %vm943_vm10  ;;  %v15829_v40 = vmul.u32.u64.low 2863311531, %v15776_v51  ;;  %v15830_v32 = vmul.u32.u64.high 2863311531, %v15776_v51, %v15829_v40  ;;  %v15846_v48 = vadd.s32 248, %v15277_v35 }
  0x5f   : > { %19178 = vst [vmem:[#allocation52_spill] sm:$0xff] %v19177_v56  ;;  %v19180_v23 = vsel %vm15824_vm11, 4294967295, %v19179_v23  ;;  %v15833_v24 = vmul.u32.u64.low 2863311531, %v15779_v4  ;;  %v15834_v21 = vmul.u32.u64.high 2863311531, %v15779_v4, %v15833_v24  ;;  %vm989_vm14 = vcmp.lt.s32.totalorder %v15754_v38, 0 }
  0x60   : > { %19181 = vst [vmem:[#allocation53_spill] sm:$0xff] %v19180_v23  ;;  %v15850_v40 = vadd.s32 24, %v15754_v38  ;;  %vm950_vm0 = vcmp.ne.s32.totalorder %v15795_v17, 0  ;;  %v15854_v24 = vadd.s32 232, %v15277_v35  ;;  %v15861_v59 = vsub.s32 %v15614_v37, %v645_v27  ;;  %vm15899_vm10 = vmand %vm989_vm14, %vm941_vm12 }
  0x61   : > { %v667_v41 = vmul.u32 24, %v666_v50  ;;  %v622_v2 = vshrl.u32 %v15758_v45, 4  ;;  %v15865_v56 = vmul.u32.u64.low 2863311531, %v15807_v52  ;;  %v15866_v14 = vmul.u32.u64.high 2863311531, %v15807_v52, %v15865_v56 }
  0x62   : > { %19182 = vst [vmem:[#allocation54_spill] sm:$0xff] %v15850_v40  ;;  %19183 = vst [vmem:[#allocation55_spill] sm:$0xff] %v15861_v59  ;;  %v15869_v18 = vmul.u32.u64.low 2863311531, %v15810_v44  ;;  %v15870_v22 = vmul.u32.u64.high 2863311531, %v15810_v44, %v15869_v18  ;;  %v15873_v12 = vmul.u32.u64.low 2863311531, %v15846_v48  ;;  %v15874_v3 = vmul.u32.u64.high 2863311531, %v15846_v48, %v15873_v12 }
  0x63   : > { %v15877_v20 = vadd.s32 272, %v15277_v35  ;;  %v15880_v37 = vadd.s32 256, %v15277_v35  ;;  %v699_v50 = vshrl.u32 %v15773_v58, 4  ;;  %v15889_v18 = vadd.s32 24, %v15795_v17 }
  0x64   : > { %v15885_v56 = vmul.u32.u64.low 2863311531, %v15854_v24  ;;  %v15886_v27 = vmul.u32.u64.high 2863311531, %v15854_v24, %v15885_v56  ;;  %vm946_vm2 = vcmp.ne.s32.totalorder %v15861_v59, 0  ;;  %v15893_v12 = vsub.s32 %v15669_v29, %v667_v41 }
  0x65   : > { %19184 = vst [vmem:[#allocation56_spill] sm:$0xff] %v15889_v18  ;;  %v623_v45 = vmul.u32 24, %v622_v2  ;;  %v19186_v28 = vmov 0  ;;  %v655_v58 = vshrl.u32 %v15822_v8, 4  ;;  %v677_v56 = vshrl.u32 %v15830_v32, 4 }
  0x66   : > { %19185 = vst [vmem:[#allocation57_spill] sm:$0xff] %v15893_v12  ;;  %v19187_v28 = vsel %vm15899_vm10, 4294967295, %v19186_v28  ;;  %v633_v63 = vshrl.u32 %v15834_v21, 4  ;;  %v15907_v23 = vadd.s32 280, %v15277_v35  ;;  %v15919_v5 = vadd.s32 24, %v15861_v59 }
  0x67   : > { %19188 = vst [vmem:[#allocation58_spill] sm:$0xff] %v19187_v28  ;;  %v15910_v29 = vmul.u32.u64.low 2863311531, %v15877_v20  ;;  %v15911_v41 = vmul.u32.u64.high 2863311531, %v15877_v20, %v15910_v29  ;;  %v15914_v2 = vmul.u32.u64.low 2863311531, %v15880_v37  ;;  %v15915_v0 = vmul.u32.u64.high 2863311531, %v15880_v37, %v15914_v2 }
  0x68   : > { %19189 = vst [vmem:[#allocation59_spill] sm:$0xff] %v15919_v5  ;;  %v700_v8 = vmul.u32 24, %v699_v50  ;;  %v15922_v32 = vadd.s32 264, %v15277_v35  ;;  %v15929_v29 = vadd.s32 24, %v15893_v12  ;;  %v15932_v26 = vsub.s32 %v15722_v33, %v623_v45 }
  0x69   : > { %v15935_v2 = vadd.s32 304, %v15277_v35  ;;  %vm19192_vm14 = vcmp.lt.s32.totalorder %v15795_v17, 0  ;;  %v19193_v50 = vmov 0  ;;  %v656_v62 = vmul.u32 24, %v655_v58 }
  0x6a   : > { %19190 = vst [vmem:[#allocation60_spill] sm:$0xff] %v15929_v29  ;;  %19191 = vst [vmem:[#allocation61_spill] sm:$0xff] %v15932_v26  ;;  %v732_v21 = vshrl.u32 %v15866_v14, 4  ;;  %v15947_v38 = vmul.u32.u64.low 2863311531, %v15907_v23  ;;  %v15948_v40 = vmul.u32.u64.high 2863311531, %v15907_v23, %v15947_v38  ;;  %v678_v33 = vmul.u32 24, %v677_v56 }
  0x6b   : > { %vm15941_vm12 = vmand %vm19192_vm14, %vm950_vm0  ;;  %v634_v45 = vmul.u32 24, %v633_v63  ;;  %v710_v28 = vshrl.u32 %v15870_v22, 4  ;;  %v743_v19 = vshrl.u32 %v15874_v3, 4  ;;  %v721_v10 = vshrl.u32 %v15886_v27, 4 }
  0x6c   : > { %v19194_v50 = vsel %vm15941_vm12, 4294967295, %v19193_v50  ;;  %v15954_v47 = vmul.u32.u64.low 2863311531, %v15922_v32  ;;  %v15955_v16 = vmul.u32.u64.high 2863311531, %v15922_v32, %v15954_v47  ;;  %v15958_v58 = vadd.s32 288, %v15277_v35 }
  0x6d   : > { %19195 = vst [vmem:[#allocation62_spill] sm:$0xff] %v19194_v50  ;;  %vm19196_vm0 = vcmp.lt.s32.totalorder %v15861_v59, 0  ;;  %v19197_v38 = vmov 0  ;;  %v15973_v3 = vsub.s32 %v15730_v42, %v700_v8  ;;  %v15980_v63 = vadd.s32 24, %v15932_v26 }
  0x6e   : > { %vm15968_vm14 = vmand %vm19196_vm0, %vm946_vm2  ;;  %v15976_v47 = vmul.u32.u64.low 2863311531, %v15935_v2  ;;  %v15977_v22 = vmul.u32.u64.high 2863311531, %v15935_v2, %v15976_v47  ;;  %v15983_v27 = vsub.s32 %v15761_v60, %v656_v62  ;;  %v733_v56 = vmul.u32 24, %v732_v21 }
  0x6f   : > { %v19198_v38 = vsel %vm15968_vm14, 4294967295, %v19197_v38  ;;  %19200 = vst [vmem:[#allocation64_spill] sm:$0xff] %v15973_v3  ;;  %19201 = vst [vmem:[#allocation65_spill] sm:$0xff] %v15980_v63  ;;  %v15986_v14 = vadd.s32 312, %v15277_v35  ;;  %v711_v43 = vmul.u32 24, %v710_v28  ;;  %v744_v7 = vmul.u32 24, %v743_v19 }
  0x70   : > { %19199 = vst [vmem:[#allocation63_spill] sm:$0xff] %v19198_v38  ;;  %19202 = vst [vmem:[#allocation66_spill] sm:$0xff] %v15983_v27  ;;  %v776_v13 = vshrl.u32 %v15911_v41, 4  ;;  %v754_v42 = vshrl.u32 %v15915_v0, 4  ;;  %v15995_v47 = vsub.s32 %v15776_v51, %v678_v33  ;;  %v16004_v19 = vadd.s32 24, %v15973_v3 }
  0x71   : > { %v15998_v62 = vmul.u32.u64.low 2863311531, %v15958_v58  ;;  %v15999_v60 = vmul.u32.u64.high 2863311531, %v15958_v58, %v15998_v62  ;;  %v16007_v0 = vsub.s32 %v15779_v4, %v634_v45  ;;  %v722_v28 = vmul.u32 24, %v721_v10 }
  0x72   : > { %v16010_v41 = vadd.s32 296, %v15277_v35  ;;  %v16015_v51 = vsub.s32 %v15807_v52, %v733_v56  ;;  %v787_v21 = vshrl.u32 %v15948_v40, 4  ;;  %v16025_v10 = vadd.s32 24, %v15983_v27 }
  0x73   : > { %19203 = vst [vmem:[#allocation67_spill] sm:$0xff] %v16007_v0  ;;  %v16019_v33 = vmul.u32.u64.low 2863311531, %v15986_v14  ;;  %v16020_v62 = vmul.u32.u64.high 2863311531, %v15986_v14, %v16019_v33  ;;  %v777_v4 = vmul.u32 24, %v776_v13  ;;  %v16028_v8 = vadd.s32 336, %v15277_v35 }
  0x74   : > { %19204 = vst [vmem:[#allocation68_spill] sm:$0xff] %v16025_v10  ;;  %v755_v45 = vmul.u32 24, %v754_v42  ;;  %v16033_v52 = vadd.s32 24, %v15995_v47  ;;  %v16036_v40 = vsub.s32 %v15810_v44, %v711_v43  ;;  %v16039_v56 = vsub.s32 %v15846_v48, %v744_v7 }
  0x75   : > { %v765_v33 = vshrl.u32 %v15955_v16, 4  ;;  %v16045_v13 = vsub.s32 %v15854_v24, %v722_v28  ;;  %v820_v42 = vshrl.u32 %v15977_v22, 4  ;;  %v16055_v43 = vadd.s32 24, %v16007_v0 }
  0x76   : > { %v16049_v59 = vmul.u32.u64.low 2863311531, %v16010_v41  ;;  %v16050_v5 = vmul.u32.u64.high 2863311531, %v16010_v41, %v16049_v59  ;;  %v16058_v7 = vadd.s32 24, %v16015_v51  ;;  %v788_v16 = vmul.u32 24, %v787_v21 }
  0x77   : > { %19205 = vst [vmem:[#allocation69_spill] sm:$0xff] %v16045_v13  ;;  %19206 = vst [vmem:[#allocation70_spill] sm:$0xff] %v16055_v43  ;;  %v16061_v44 = vadd.s32 320, %v15277_v35  ;;  %v16066_v48 = vsub.s32 %v15877_v20, %v777_v4  ;;  %v16069_v59 = vsub.s32 %v15880_v37, %v755_v45  ;;  %v16078_v28 = vadd.s32 24, %v16036_v40 }
  0x78   : > { %v16072_v24 = vmul.u32.u64.low 2863311531, %v16028_v8  ;;  %v16073_v22 = vmul.u32.u64.high 2863311531, %v16028_v8, %v16072_v24  ;;  %v766_v21 = vmul.u32 24, %v765_v33  ;;  %v798_v38 = vshrl.u32 %v15999_v60, 4 }
  0x79   : > { %19207 = vst [vmem:[#allocation71_spill] sm:$0xff] %v16066_v48  ;;  %v16082_v20 = vadd.s32 344, %v15277_v35  ;;  %v16087_v37 = vadd.s32 24, %v16039_v56  ;;  %v16090_v4 = vadd.s32 24, %v16045_v13  ;;  %v821_v45 = vmul.u32 24, %v820_v42 }
  0x7a   : > { %v16093_v24 = vadd.s32 328, %v15277_v35  ;;  %v16098_v60 = vsub.s32 %v15907_v23, %v788_v16  ;;  %v831_v33 = vshrl.u32 %v16020_v62, 4  ;;  %v16108_v42 = vadd.s32 24, %v16066_v48 }
  0x7b   : > { %v16102_v36 = vmul.u32.u64.low 2863311531, %v16061_v44  ;;  %v16103_v55 = vmul.u32.u64.high 2863311531, %v16061_v44, %v16102_v36  ;;  %v16111_v61 = vadd.s32 24, %v16069_v59  ;;  %vm19210_vm10 = vcmp.ne.s32.totalorder %v15893_v12, 0 }
  0x7c   : > { %19208 = vst [vmem:[#allocation72_spill] sm:$0xff] %v16108_v42  ;;  %vm19211_vm14 = vcmp.lt.s32.totalorder %v15893_v12, 0  ;;  %v19212_v23 = vmov 0  ;;  %v16127_v36 = vsub.s32 %v15922_v32, %v766_v21  ;;  %v799_v62 = vmul.u32 24, %v798_v38 }
  0x7d   : > { %19209 = vst [vmem:[#allocation73_spill] sm:$0xff] %v16111_v61  ;;  %vm16120_vm11 = vmand %vm19211_vm14, %vm19210_vm10  ;;  %v16130_v16 = vmul.u32.u64.low 2863311531, %v16082_v20  ;;  %v16131_v54 = vmul.u32.u64.high 2863311531, %v16082_v20, %v16130_v16  ;;  %vm19215_vm8 = vcmp.ne.s32.totalorder %v15932_v26, 0  ;;  %vm19216_vm1 = vcmp.lt.s32.totalorder %v15932_v26, 0 }
  0x7e   : > { %v19213_v23 = vsel %vm16120_vm11, 4294967295, %v19212_v23  ;;  %vm16137_vm10 = vmand %vm19216_vm1, %vm19215_vm8  ;;  %v16142_v17 = vsub.s32 %v15935_v2, %v821_v45  ;;  %v809_v18 = vshrl.u32 %v16050_v5, 4  ;;  %vm19220_vm14 = vcmp.ne.s32.totalorder %v15973_v3, 0 }
  0x7f   : > { %19214 = vst [vmem:[#allocation74_spill] sm:$0xff] %v19213_v23  ;;  %v19218_v57 = vsel %vm16137_vm10, 4294967295, %v19217_v57  ;;  %v16146_v32 = vmul.u32.u64.low 2863311531, %v16093_v24  ;;  %v16147_v38 = vmul.u32.u64.high 2863311531, %v16093_v24, %v16146_v32  ;;  %vm19221_vm2 = vcmp.lt.s32.totalorder %v15973_v3, 0 }
  0x80   : > { %19219 = vst [vmem:[#allocation75_spill] sm:$0xff] %v19218_v57  ;;  %vm16153_vm0 = vmand %vm19221_vm2, %vm19220_vm14  ;;  %v19222_v21 = vmov 0  ;;  %v832_v2 = vmul.u32 24, %v831_v33  ;;  %v864_v45 = vshrl.u32 %v16073_v22, 4  ;;  %vm19224_vm13 = vcmp.ne.s32.totalorder %v15983_v27, 0 }
  0x81   : > { %v19223_v21 = vsel %vm16153_vm0, 4294967295, %v19222_v21  ;;  %vm19225_vm5 = vcmp.lt.s32.totalorder %v15983_v27, 0  ;;  %v19226_v5 = vmov 0  ;;  %v16169_v16 = vadd.s32 24, %v16098_v60 }
  0x82   : > { %vm16164_vm9 = vmand %vm19225_vm5, %vm19224_vm13  ;;  %v16172_v32 = vmul.u32.u64.low 2863311531, %v16114_v34  ;;  %v16173_v50 = vmul.u32.u64.high 2863311531, %v16114_v34, %v16172_v32  ;;  %v16176_v61 = vadd.s32 352, %v15277_v35  ;;  %vm19230_vm2 = vcmp.ne.s32.totalorder %v15995_v47, 0 }
  0x83   : > { %v19227_v5 = vsel %vm16164_vm9, 4294967295, %v19226_v5  ;;  %19229 = vst [vmem:[#allocation77_spill] sm:$0xff] %v16169_v16  ;;  %vm19231_vm14 = vcmp.lt.s32.totalorder %v15995_v47, 0  ;;  %v19232_v22 = vmov 0  ;;  %v16189_v33 = vsub.s32 %v15958_v58, %v799_v62 }
  0x84   : > { %19228 = vst [vmem:[#allocation76_spill] sm:$0xff] %v19227_v5  ;;  %vm16182_vm8 = vmand %vm19231_vm14, %vm19230_vm2  ;;  %v842_v32 = vshrl.u32 %v16103_v55, 4  ;;  %vm19235_vm1 = vcmp.ne.s32.totalorder %v16007_v0, 0  ;;  %vm19236_vm6 = vcmp.lt.s32.totalorder %v16007_v0, 0  ;;  %v19237_v16 = vmov 0 }
  0x85   : > { %v19233_v22 = vsel %vm16182_vm8, 4294967295, %v19232_v22  ;;  %19234 = vst [vmem:[#allocation78_spill] sm:$0xff] %v16189_v33  ;;  %vm16196_vm12 = vmand %vm19236_vm6, %vm19235_vm1  ;;  %v16201_v31 = vadd.s32 24, %v16127_v36  ;;  %v810_v46 = vmul.u32 24, %v809_v18  ;;  %v875_v53 = vshrl.u32 %v16131_v54, 4 }
  0x86   : > { %v19238_v16 = vsel %vm16196_vm12, 4294967295, %v19237_v16  ;;  %vm19241_vm14 = vcmp.ne.s32.totalorder %v16015_v51, 0  ;;  %vm19242_vm6 = vcmp.lt.s32.totalorder %v16015_v51, 0  ;;  %v19243_v58 = vmov 0 }
  0x87   : > { %19239 = vst [vmem:[#allocation79_spill] sm:$0xff] %v19238_v16  ;;  %19240 = vst [vmem:[#allocation80_spill] sm:$0xff] %v16201_v31  ;;  %v16219_v62 = vsub.s32 %v15986_v14, %v832_v2  ;;  %v865_v18 = vmul.u32 24, %v864_v45  ;;  %vm19246_vm2 = vcmp.ne.s32.totalorder %v16036_v40, 0  ;;  %vm19247_vm13 = vcmp.lt.s32.totalorder %v16036_v40, 0 }
  0x88   : > { %vm16213_vm1 = vmand %vm19242_vm6, %vm19241_vm14  ;;  %v19248_v54 = vmov 0  ;;  %v853_v55 = vshrl.u32 %v16147_v38, 4  ;;  %v16231_v12 = vmul.u32.u64.low 2863311531, %v16176_v61  ;;  %v16232_v29 = vmul.u32.u64.high 2863311531, %v16176_v61, %v16231_v12 }
  0x89   : > { %v19244_v58 = vsel %vm16213_vm1, 4294967295, %v19243_v58  ;;  %19245 = vst [vmem:[#allocation81_spill] sm:$0xff] %v16219_v62  ;;  %vm16225_vm3 = vmand %vm19247_vm13, %vm19246_vm2  ;;  %v16235_v23 = vadd.s32 376, %v15277_v35  ;;  %vm19250_vm14 = vcmp.ne.s32.totalorder %v16039_v56, 0  ;;  %vm19251_vm6 = vcmp.lt.s32.totalorder %v16039_v56, 0 }
  0x8a   : > { %v19249_v54 = vsel %vm16225_vm3, 4294967295, %v19248_v54  ;;  %vm16241_vm5 = vmand %vm19251_vm6, %vm19250_vm14  ;;  %v19252_v14 = vmov 0  ;;  %v16246_v2 = vadd.s32 24, %v16142_v17  ;;  %v843_v38 = vmul.u32 24, %v842_v32  ;;  %v19346_v42 = vld [vmem:[#allocation77_spill] sm:$0xff] }
  0x8b   : > { %v19253_v14 = vsel %vm16241_vm5, 4294967295, %v19252_v14  ;;  %vm19255_vm11 = vcmp.ne.s32.totalorder %v16045_v13, 0  ;;  %vm19256_vm14 = vcmp.lt.s32.totalorder %v16045_v13, 0  ;;  %v19257_v45 = vmov 0 }
  0x8c   : > { %19254 = vst [vmem:[#allocation82_spill] sm:$0xff] %v16246_v2  ;;  %vm16258_vm6 = vmand %vm19256_vm14, %vm19255_vm11  ;;  %v16263_v2 = vadd.s32 24, %v16189_v33  ;;  %v16266_v31 = vsub.s32 %v16010_v41, %v810_v46  ;;  %v876_v32 = vmul.u32 24, %v875_v53  ;;  %vm19261_vm2 = vcmp.ne.s32.totalorder %v16066_v48, 0 }
  0x8d   : > { %v19258_v45 = vsel %vm16258_vm6, 4294967295, %v19257_v45  ;;  %vm19262_vm13 = vcmp.lt.s32.totalorder %v16066_v48, 0  ;;  %v19263_v26 = vmov 0  ;;  %v16282_v63 = vsub.s32 %v16028_v8, %v865_v18 }
  0x8e   : > { %19259 = vst [vmem:[#allocation83_spill] sm:$0xff] %v16263_v2  ;;  %19260 = vst [vmem:[#allocation84_spill] sm:$0xff] %v16266_v31  ;;  %v908_v46 = vshrl.u32 %v16173_v50, 4  ;;  %vm19267_vm10 = vcmp.ne.s32.totalorder %v16069_v59, 0  ;;  %vm19268_vm6 = vcmp.lt.s32.totalorder %v16069_v59, 0  ;;  %v19269_v53 = vmov 0 }
  0x8f   : > { %vm16276_vm11 = vmand %vm19262_vm13, %vm19261_vm2  ;;  %19266 = vst [vmem:[#allocation86_spill] sm:$0xff] %v16282_v63  ;;  %v854_v41 = vmul.u32 24, %v853_v55  ;;  %v16294_v12 = vmul.u32.u64.low 2863311531, %v16235_v23  ;;  %v16295_v57 = vmul.u32.u64.high 2863311531, %v16235_v23, %v16294_v12  ;;  %v16298_v3 = vadd.s32 360, %v15277_v35  ;;  %v19348_v13 = vld [vmem:[#allocation80_spill] sm:$0xff] }
  0x90   : > { %v19264_v26 = vsel %vm16276_vm11, 4294967295, %v19263_v26  ;;  %vm16289_vm0 = vmand %vm19268_vm6, %vm19267_vm10  ;;  %vm19271_vm13 = vcmp.ne.s32.totalorder %v16098_v60, 0  ;;  %vm19272_vm10 = vcmp.lt.s32.totalorder %v16098_v60, 0  ;;  %v19273_v8 = vmov 0 }
  0x91   : > { %19265 = vst [vmem:[#allocation85_spill] sm:$0xff] %v19264_v26  ;;  %v19270_v53 = vsel %vm16289_vm0, 4294967295, %v19269_v53  ;;  %vm16308_vm2 = vmand %vm19272_vm10, %vm19271_vm13  ;;  %v16314_v55 = vsub.s32 %v16061_v44, %v843_v38  ;;  %v886_v35 = vshrl.u32 %v16232_v29, 4  ;;  %vm19276_vm14 = vcmp.ne.s32.totalorder %v16127_v36, 0 }
  0x92   : > { %v19274_v8 = vsel %vm16308_vm2, 4294967295, %v19273_v8  ;;  %vm19277_vm9 = vcmp.lt.s32.totalorder %v16127_v36, 0  ;;  %v19278_v12 = vmov 0  ;;  %v16330_v50 = vadd.s32 24, %v16219_v62 }
  0x93   : > { %19275 = vst [vmem:[#allocation87_spill] sm:$0xff] %v16314_v55  ;;  %vm16325_vm13 = vmand %vm19277_vm9, %vm19276_vm14  ;;  %v16334_v29 = vsub.s32 %v16082_v20, %v876_v32  ;;  %vm19282_vm6 = vcmp.ne.s32.totalorder %v16142_v17, 0  ;;  %vm19283_vm8 = vcmp.lt.s32.totalorder %v16142_v17, 0  ;;  %v19284_v44 = vmov 0 }
  0x94   : > { %v19279_v12 = vsel %vm16325_vm13, 4294967295, %v19278_v12  ;;  %19280 = vst [vmem:[#allocation88_spill] sm:$0xff] %v16330_v50  ;;  %vm16340_vm2 = vmand %vm19283_vm8, %vm19282_vm6  ;;  %vm1009_vm9 = vcmp.lt.s32.totalorder %v16266_v31, 0  ;;  %v909_v38 = vmul.u32 24, %v908_v46  ;;  %vm19286_vm10 = vcmp.ne.s32.totalorder %v16189_v33, 0 }
  0x95   : > { %19281 = vst [vmem:[#allocation89_spill] sm:$0xff] %v16334_v29  ;;  %v19285_v44 = vsel %vm16340_vm2, 4294967295, %v19284_v44  ;;  %vm19287_vm0 = vcmp.lt.s32.totalorder %v16189_v33, 0  ;;  %v19288_v20 = vmov 0  ;;  %v16356_v32 = vsub.s32 %v16093_v24, %v854_v41 }
  0x96   : > { %vm16351_vm11 = vmand %vm19287_vm0, %vm19286_vm10  ;;  %v887_v18 = vmul.u32 24, %v886_v35  ;;  %v16359_v27 = vmul.u32.u64.low 2863311531, %v16298_v3  ;;  %v16360_v10 = vmul.u32.u64.high 2863311531, %v16298_v3, %v16359_v27  ;;  %vm19292_vm0 = vcmp.ne.s32.totalorder %v16219_v62, 0 }
  0x97   : > { %v19289_v20 = vsel %vm16351_vm11, 4294967295, %v19288_v20  ;;  %19291 = vst [vmem:[#allocation91_spill] sm:$0xff] %v16356_v32  ;;  %vm19293_vm8 = vcmp.lt.s32.totalorder %v16219_v62, 0  ;;  %v19294_v24 = vmov 0  ;;  %vm1012_vm13 = vcmp.lt.s32.totalorder %v16314_v55, 0 }
  0x98   : > { %19290 = vst [vmem:[#allocation90_spill] sm:$0xff] %v19289_v20  ;;  %vm16374_vm6 = vmand %vm19293_vm8, %vm19292_vm0  ;;  %vm19297_vm14 = vcmp.ne.s32.totalorder %v16266_v31, 0  ;;  %v19298_v35 = vmov 0  ;;  %v19301_v46 = vsel %vm15344_vm4, %v15335_v9, %v15316_v1  ;;  %v19302_v27 = vmov 0 }
  0x99   : > { %v19295_v24 = vsel %vm16374_vm6, 4294967295, %v19294_v24  ;;  %vm16392_vm0 = vmand %vm1009_vm9, %vm19297_vm14  ;;  %vm16403_vm12 = vcmp.lt.s32.totalorder %v19301_v46, 16  ;;  %v16408_v41 = vadd.s32 24, %v16266_v31  ;;  %vm19306_vm9 = vcmp.ne.s32.totalorder %v16282_v63, 0  ;;  %v16430_v46 = vld [vmem:[%s18836_s2] ss:$0 sm:$0xff] }
  0x9a   : > { %19296 = vst [vmem:[#allocation92_spill] sm:$0xff] %v19295_v24  ;;  %v19299_v35 = vsel %vm16392_vm0, 4294967295, %v19298_v35  ;;  %v19303_v27 = vsel %vm16403_vm12, 4294967295, %v19302_v27  ;;  %vm19307_vm14 = vcmp.lt.s32.totalorder %v16282_v63, 0  ;;  %v19308_v5 = vmov 0  ;;  %v19356_v31 = vld [vmem:[#allocation62_spill] sm:$0xff] }
  0x9b   : > { %19300 = vst [vmem:[#allocation93_spill] sm:$0xff] %v19299_v35  ;;  %19304 = vst [vmem:[#allocation94_spill] sm:$0xff] %v19303_v27  ;;  %v16419_v15 = vadd.s32 24, %v16282_v63  ;;  %v16422_v1 = vadd.s32 24, %v16314_v55  ;;  %v16425_v9 = vsub.s32 %v16114_v34, %v909_v38  ;;  %v19314_v0 = vsel %vm15380_vm7, %v15369_v25, %v15326_v6  ;;  %v19339_v38 = vld [vmem:[#allocation4_spill] sm:$0xff]  ;;  %v19391_v63 = vld [vmem:[#allocation14_spill] sm:$0xff] }
  0x9c   : > { %19305 = vst [vmem:[#allocation95_spill] sm:$0xff] %v16408_v41  ;;  %vm16414_vm5 = vmand %vm19307_vm14, %vm19306_vm9  ;;  %vm16437_vm4 = vcmp.lt.s32.totalorder %v19314_v0, 16  ;;  %v19315_v43 = vmov 0  ;;  %vm19318_vm9 = vcmp.ne.s32.totalorder %v16314_v55, 0  ;;  %v19319_v16 = vmov 0  ;;  %v19344_v0 = vld [vmem:[#allocation73_spill] sm:$0xff] }
  0x9d   : > { %v19309_v5 = vsel %vm16414_vm5, 4294967295, %v19308_v5  ;;  %19311 = vst [vmem:[#allocation97_spill] sm:$0xff] %v16419_v15  ;;  %19312 = vst [vmem:[#allocation98_spill] sm:$0xff] %v16422_v1  ;;  %v19316_v43 = vsel %vm16437_vm4, 4294967295, %v19315_v43  ;;  %v16450_v34 = vsub.s32 %v16176_v61, %v887_v18  ;;  %v919_v30 = vshrl.u32 %v16295_v57, 4  ;;  %v19336_v57 = vld [vmem:[#allocation9_spill] sm:$0xff] }
  0x9e   : > { %19310 = vst [vmem:[#allocation96_spill] sm:$0xff] %v19309_v5  ;;  %19313 = vst [vmem:[#allocation99_spill] sm:$0xff] %v16425_v9  ;;  %v19323_v6 = vsel %vm15433_vm15, %v15401_v39, %v15338_v11  ;;  %v19324_v25 = vmov 0  ;;  %vm19329_vm8 = vcmp.ne.s32.totalorder %v16334_v29, 0  ;;  %vm19330_vm10 = vcmp.lt.s32.totalorder %v16334_v29, 0  ;;  %v19338_v18 = vld [vmem:[#allocation8_spill] sm:$0xff] }
  0x9f   : > { %19317 = vst [vmem:[#allocation100_spill] sm:$0xff] %v19316_v43  ;;  %vm16443_vm14 = vmand %vm1012_vm13, %vm19318_vm9  ;;  %vm16458_vm7 = vcmp.lt.s32.totalorder %v19323_v6, 16  ;;  %v19331_v11 = vmov 0  ;;  %v16479_v39 = vadd.s32 24, %v16334_v29  ;;  %v16482_v49 = vadd.s32 24, %v16356_v32  ;;  %v19366_v55 = vld [vmem:[#allocation10_spill] sm:$0xff] }
  0xa0   : > { %v19320_v16 = vsel %vm16443_vm14, 4294967295, %v19319_v16  ;;  %19322 = vst [vmem:[#allocation102_spill] sm:$0xff] %v16450_v34  ;;  %v19325_v25 = vsel %vm16458_vm7, 4294967295, %v19324_v25  ;;  %vm16474_vm3 = vmand %vm19330_vm10, %vm19329_vm8  ;;  %vm19337_vm15 = vnez %v19336_v57  ;;  %v19341_v61 = vmov 0  ;;  %v19367_v1 = vld [vmem:[#allocation5_spill] sm:$0xff] }
  0xa1   : > { %19321 = vst [vmem:[#allocation101_spill] sm:$0xff] %v19320_v16  ;;  %19326 = vst [vmem:[#allocation103_spill] sm:$0xff] %v19325_v25  ;;  %v19332_v11 = vsel %vm16474_vm3, 4294967295, %v19331_v11  ;;  %v19340_v6 = vsel %vm19337_vm15, %v19338_v18, %v19339_v38  ;;  %v19350_v18 = vld [vmem:[#allocation82_spill] sm:$0xff]  ;;  %vm19351_vm15 = vcmp.ne.s32.totalorder %v16356_v32, 0  ;;  %vm19352_vm8 = vcmp.lt.s32.totalorder %v16356_v32, 0 }
  0xa2   : > { %19333 = vst [vmem:[#allocation104_spill] sm:$0xff] %v19332_v11  ;;  %19334 = vst [vmem:[#allocation105_spill] sm:$0xff] %v16479_v39  ;;  %vm16489_vm9 = vcmp.lt.s32.totalorder %v19340_v6, 16  ;;  %v19353_v57 = vmov 0  ;;  %vm970_vm2 = vcmp.ne.s32.totalorder %v16425_v9, 0  ;;  %v920_v26 = vmul.u32 24, %v919_v30 }
  0xa3   : > { %19335 = vst [vmem:[#allocation106_spill] sm:$0xff] %v16482_v49  ;;  %v19342_v61 = vsel %vm16489_vm9, 4294967295, %v19341_v61  ;;  %vm16521_vm13 = vmand %vm19352_vm8, %vm19351_vm15  ;;  %v897_v48 = vshrl.u32 %v16360_v10, 4  ;;  %vm19357_vm15 = vnez %v19356_v31  ;;  %v19358_v10 = vld [vmem:[#allocation56_spill] sm:$0xff]  ;;  %v19361_v35 = vmov 0 }
  0xa4   : > { %19343 = vst [vmem:[#allocation9_spill] sm:$0xff] %v19342_v61  ;;  %v19354_v57 = vsel %vm16521_vm13, 4294967295, %v19353_v57  ;;  %v16562_v33 = vadd.s32 24, %v16425_v9  ;;  %v19369_v24 = vmov 0  ;;  %vm19372_vm13 = vcmp.lt.s32.totalorder %v16425_v9, 0  ;;  %v19429_v25 = vld [vmem:[#allocation28_spill] sm:$0xff] }
  0xa5   : > { %19355 = vst [vmem:[#allocation8_spill] sm:$0xff] %v19354_v57  ;;  %vm16578_vm3 = vmand %vm19372_vm13, %vm970_vm2  ;;  %v19381_v57 = vmov 0  ;;  %vm19384_vm2 = vcmp.ne.s32.totalorder %v16450_v34, 0  ;;  %vm19385_vm13 = vcmp.lt.s32.totalorder %v16450_v34, 0  ;;  %v19386_v29 = vmov 0 }
  0xa6   : > { %vm16599_vm0 = vmand %vm19385_vm13, %vm19384_vm2  ;;  %v898_v39 = vmul.u32 24, %v897_v48  ;;  %v16613_v15 = vsub.s32 %v16235_v23, %v920_v26 }
  0xa7   : > { %v19387_v29 = vsel %vm16599_vm0, 4294967295, %v19386_v29 }
  0xa8   : > { %19388 = vst [vmem:[#allocation82_spill] sm:$0xff] %v19387_v29  ;;  %v19439_v29 = vld [vmem:[#allocation20_spill] sm:$0xff] }
  0xed   : > { %v12609_v38 = vpop.f32.mrb[0].mxu0 }
  0xee   : > { %v1527_v62 = vadd.f32 %v12609_v38, %v16430_v46  ;;  %v1518_v50 = vpop.f32.mrb[1].mxu0  ;;  %v19359_v38 = vld [vmem:[#allocation51_spill] sm:$0xff] }
  0xef   : > { %v1519_v6 = vadd.f32 %v16430_v46, %v1518_v50  ;;  %v12610_v30 = vpop.f32.mrb[2].mxu0  ;;  %v19360_v41 = vsel %vm19357_vm15, %v19358_v10, %v19359_v38  ;;  %v19364_v38 = vld [vmem:[#allocation12_spill] sm:$0xff]  ;;  %v19373_v50 = vmov 0 }
  0xf0   : > { %vm16549_vm6 = vcmp.lt.s32.totalorder %v19360_v41, 16  ;;  %vm1711_vm8 = vcmp.ge.f32.partialorder %v1527_v62, 0.0  ;;  %v1759_v31 = vmul.f32 0.2, %v1527_v62  ;;  %v1530_v41 = vadd.f32 %v12610_v30, %v16430_v46  ;;  %v1521_v10 = vpop.f32.mrb[3].mxu0 }
  0xf1   : > { %v19362_v35 = vsel %vm16549_vm6, 4294967295, %v19361_v35  ;;  %vm19365_vm15 = vnez %v19364_v38  ;;  %v19374_v50 = vsel %vm16578_vm3, 4294967295, %v19373_v50  ;;  %v16583_v30 = vadd.s32 24, %v16450_v34  ;;  %v19436_v34 = vld [vmem:[#allocation29_spill] sm:$0xff] }
  0xf2   : > { %19363 = vst [vmem:[#allocation4_spill] sm:$0xff] %v19362_v35  ;;  %v19368_v16 = vsel %vm19365_vm15, %v19366_v55, %v19367_v1  ;;  %vm1709_vm14 = vcmp.ge.f32.partialorder %v1519_v6, 0.0  ;;  %v1757_v38 = vmul.f32 0.2, %v1519_v6  ;;  %v1522_v32 = vadd.f32 %v16430_v46, %v1521_v10  ;;  %v19376_v55 = vld [vmem:[#allocation13_spill] sm:$0xff]  ;;  %v19379_v1 = vld [vmem:[#allocation6_spill] sm:$0xff] }
  0xf3   : > { %vm16570_vm10 = vcmp.lt.s32.totalorder %v19368_v16, 16  ;;  %19375 = vst [vmem:[#allocation77_spill] sm:$0xff] %v16583_v30  ;;  %vm19377_vm15 = vnez %v19376_v55  ;;  %v19378_v16 = vld [vmem:[#allocation11_spill] sm:$0xff]  ;;  %v1807_v11 = vsel %vm1711_vm8, %v1527_v62, %v1759_v31  ;;  %vm1712_vm11 = vcmp.ge.f32.partialorder %v1530_v41, 0.0  ;;  %v19389_v55 = vld [vmem:[#allocation16_spill] sm:$0xff]  ;;  %v19438_v30 = vld [vmem:[#allocation30_spill] sm:$0xff] }
  0xf4   : > { %v19370_v24 = vsel %vm16570_vm10, 4294967295, %v19369_v24  ;;  %v19380_v49 = vsel %vm19377_vm15, %v19378_v16, %v19379_v1  ;;  %v1760_v10 = vmul.f32 0.2, %v1530_v41  ;;  %vm19390_vm1 = vnez %v19389_v55  ;;  %v19392_v16 = vld [vmem:[#allocation7_spill] sm:$0xff]  ;;  %v19397_v62 = vld [vmem:[#allocation24_spill] sm:$0xff]  ;;  %v19469_v35 = vld [vmem:[#allocation26_spill] sm:$0xff] }
  0xf5   : > { %19371 = vst [vmem:[#allocation73_spill] sm:$0xff] %v19370_v24  ;;  %vm16591_vm5 = vcmp.lt.s32.totalorder %v19380_v49, 16  ;;  %v19393_v49 = vsel %vm19390_vm1, %v19391_v63, %v19392_v16  ;;  %v19394_v1 = vmov 0  ;;  %v1951_v5 = vsel %vm16403_vm12, %v1807_v11, 0.0  ;;  %v19399_v31 = vld [vmem:[#allocation19_spill] sm:$0xff]  ;;  %v12633_v16 = vpop.f32.mrb[0].mxu1 }
  0xf6   : > { %v19382_v57 = vsel %vm16591_vm5, 4294967295, %v19381_v57  ;;  %vm16608_vm15 = vcmp.lt.s32.totalorder %v19393_v49, 16  ;;  %v1805_v2 = vsel %vm1709_vm14, %v1519_v6, %v1757_v38  ;;  %vm1710_vm2 = vcmp.ge.f32.partialorder %v1522_v32, 0.0  ;;  %v19400_v55 = vld [vmem:[#allocation15_spill] sm:$0xff]  ;;  %2255 = vst [vmem:[#allocation2 + $0x29] sm:$0xff] %v1951_v5  ;;  %v19405_v49 = vld [vmem:[#allocation74_spill] sm:$0xff] }
  0xf7   : > { %19383 = vst [vmem:[#allocation80_spill] sm:$0xff] %v19382_v57  ;;  %v19395_v1 = vsel %vm16608_vm15, 4294967295, %v19394_v1  ;;  %v1758_v48 = vmul.f32 0.2, %v1522_v32  ;;  %vm19398_vm8 = vnez %v19397_v62  ;;  %v19402_v63 = vmov 0  ;;  %v19407_v11 = vld [vmem:[#allocation60_spill] sm:$0xff] }
  0xf8   : > { %19396 = vst [vmem:[#allocation62_spill] sm:$0xff] %v19395_v1  ;;  %v19401_v20 = vsel %vm19398_vm8, %v19399_v31, %v19400_v55  ;;  %v1949_v26 = vsel %vm16437_vm4, %v1805_v2, 0.0  ;;  %v1808_v23 = vsel %vm1712_vm11, %v1530_v41, %v1760_v10  ;;  %vm19406_vm1 = vnez %v19405_v49  ;;  %v19408_v6 = vld [vmem:[#allocation57_spill] sm:$0xff]  ;;  %v12613_v10 = vpop.f32.mrb[4].mxu0  ;;  %v1614_v55 = vpop.f32.mrb[1].mxu1  ;;  %v19414_v49 = vld [vmem:[#allocation64_spill] sm:$0xff] }
  0xf9   : > { %vm16622_vm13 = vcmp.lt.s32.totalorder %v19401_v20, 16  ;;  %v19409_v38 = vsel %vm19406_vm1, %v19407_v11, %v19408_v6  ;;  %v19410_v62 = vmov 0  ;;  %2253 = vst [vmem:[#allocation2 + $0x19] sm:$0xff] %v1949_v26  ;;  %v1952_v2 = vsel %vm16458_vm7, %v1808_v23, 0.0  ;;  %v1534_v26 = vpop.f32.mrb[5].mxu0  ;;  %v19419_v5 = vld [vmem:[#allocation25_spill] sm:$0xff] }
  0xfa   : > { %v19403_v63 = vsel %vm16622_vm13, 4294967295, %v19402_v63  ;;  %vm16633_vm14 = vcmp.lt.s32.totalorder %v19409_v38, 16  ;;  %v1806_v41 = vsel %vm1710_vm2, %v1522_v32, %v1758_v48  ;;  %v1623_v31 = vadd.f32 %v12633_v16, %v16430_v46  ;;  %2256 = vst [vmem:[#allocation2 + $0x31] sm:$0xff] %v1952_v2  ;;  %v19422_v20 = vld [vmem:[#allocation17_spill] sm:$0xff]  ;;  %v19538_v24 = vld [vmem:[#allocation54_spill] sm:$0xff] }
  0xfb   : > { %19404 = vst [vmem:[#allocation56_spill] sm:$0xff] %v19403_v63  ;;  %v19411_v62 = vsel %vm16633_vm14, 4294967295, %v19410_v62  ;;  %vm19413_vm11 = vnez %v19223_v21  ;;  %v19416_v6 = vmov 0  ;;  %v16658_v38 = vsub.s32 %v16298_v3, %v898_v39  ;;  %v12634_v21 = vpop.f32.mrb[2].mxu1 }
  0xfc   : > { %19412 = vst [vmem:[#allocation51_spill] sm:$0xff] %v19411_v62  ;;  %v19415_v11 = vsel %vm19413_vm11, %v16004_v19, %v19414_v49  ;;  %v1950_v32 = vsel %vm16489_vm9, %v1806_v41, 0.0  ;;  %v1543_v48 = vadd.f32 %v12613_v10, %v16430_v46  ;;  %v1615_v23 = vadd.f32 %v16430_v46, %v1614_v55  ;;  %v12614_v49 = vpop.f32.mrb[6].mxu0  ;;  %v1617_v2 = vpop.f32.mrb[3].mxu1  ;;  %v19421_v55 = vld [vmem:[#allocation22_spill] sm:$0xff] }
  0xfd   : > { %vm16653_vm8 = vcmp.lt.s32.totalorder %v19415_v11, 16  ;;  %v16665_v16 = vadd.s32 24, %v16613_v15  ;;  %2254 = vst [vmem:[#allocation2 + $0x21] sm:$0xff] %v1950_v32  ;;  %v1535_v19 = vadd.f32 %v16430_v46, %v1534_v26  ;;  %v1783_v3 = vmul.f32 0.2, %v1623_v31  ;;  %v1537_v11 = vpop.f32.mrb[7].mxu0 }
  0xfe   : > { %v19417_v6 = vsel %vm16653_vm8, 4294967295, %v19416_v6  ;;  %v1626_v39 = vadd.f32 %v12634_v21, %v16430_v46  ;;  %vm1715_vm1 = vcmp.ge.f32.partialorder %v1543_v48, 0.0  ;;  %v1763_v41 = vmul.f32 0.2, %v1543_v48 }
  0xff   : > { %19418 = vst [vmem:[#allocation12_spill] sm:$0xff] %v19417_v6  ;;  %v1546_v10 = vadd.f32 %v12614_v49, %v16430_v46  ;;  %vm19420_vm11 = vnez %v19419_v5  ;;  %v19424_v32 = vmov 0  ;;  %vm1713_vm12 = vcmp.ge.f32.partialorder %v1535_v19, 0.0  ;;  %v19427_v49 = vld [vmem:[#allocation27_spill] sm:$0xff]  ;;  %v19430_v5 = vld [vmem:[#allocation18_spill] sm:$0xff] }
 0x100   : > { %v19423_v61 = vsel %vm19420_vm11, %v19421_v55, %v19422_v20  ;;  %v1761_v26 = vmul.f32 0.2, %v1535_v19  ;;  %v1538_v21 = vadd.f32 %v16430_v46, %v1537_v11  ;;  %vm19428_vm0 = vnez %v19427_v49 }
 0x101   : > { %vm16675_vm9 = vcmp.lt.s32.totalorder %v19423_v61, 16  ;;  %v19431_v43 = vsel %vm19428_vm0, %v19429_v25, %v19430_v5  ;;  %v19432_v20 = vmov 0  ;;  %vm19435_vm11 = vcmp.ge.f32.partialorder %v1623_v31, 0.0  ;;  %v2312_v5 = vld [vmem:[#allocation2 + $0x18] sm:$0xff] }
 0x102   : > { %v19425_v32 = vsel %vm16675_vm9, 4294967295, %v19424_v32  ;;  %vm16687_vm3 = vcmp.lt.s32.totalorder %v19431_v43, 16  ;;  %v1831_v61 = vsel %vm19435_vm11, %v1623_v31, %v1783_v3  ;;  %v1811_v55 = vsel %vm1715_vm1, %v1543_v48, %v1763_v41  ;;  %v19444_v48 = vld [vmem:[#allocation32_spill] sm:$0xff]  ;;  %v19446_v3 = vld [vmem:[#allocation31_spill] sm:$0xff] }
 0x103   : > { %19426 = vst [vmem:[#allocation10_spill] sm:$0xff] %v19425_v32  ;;  %v19433_v20 = vsel %vm16687_vm3, 4294967295, %v19432_v20  ;;  %vm1716_vm7 = vcmp.ge.f32.partialorder %v1546_v10, 0.0  ;;  %v1764_v27 = vmul.f32 0.2, %v1546_v10  ;;  %vm19437_vm4 = vnez %v19436_v34  ;;  %v19447_v34 = vld [vmem:[#allocation21_spill] sm:$0xff] }
 0x104   : > { %19434 = vst [vmem:[#allocation5_spill] sm:$0xff] %v19433_v20  ;;  %v19440_v9 = vsel %vm19437_vm4, %v19438_v30, %v19439_v29  ;;  %v19441_v11 = vmov 0  ;;  %v1975_v43 = vsel %vm16549_vm6, %v1831_v61, 0.0  ;;  %v1955_v25 = vsel %vm16570_vm10, %v1811_v55, 0.0  ;;  %v16725_v55 = vpop.f32.mrb[4].mxu1 }
 0x105   : > { %vm16697_vm2 = vcmp.lt.s32.totalorder %v19440_v9, 16  ;;  %v1809_v49 = vsel %vm1713_vm12, %v1535_v19, %v1761_v26  ;;  %vm1714_vm0 = vcmp.ge.f32.partialorder %v1538_v21, 0.0  ;;  %v1762_v31 = vmul.f32 0.2, %v1538_v21  ;;  %2279 = vst [vmem:[#allocation2 + $0xe9] sm:$0xff] %v1975_v43  ;;  %2259 = vst [vmem:[#allocation2 + $0x49] sm:$0xff] %v1955_v25 }
 0x106   : > { %v19442_v11 = vsel %vm16697_vm2, 4294967295, %v19441_v11  ;;  %vm19445_vm1 = vnez %v19444_v48  ;;  %v19449_v29 = vmov 0  ;;  %v1953_v9 = vsel %vm16591_vm5, %v1809_v49, 0.0 }
 0x107   : > { %19443 = vst [vmem:[#allocation13_spill] sm:$0xff] %v19442_v11  ;;  %v19448_v41 = vsel %vm19445_vm1, %v19446_v3, %v19447_v34  ;;  %v1812_v30 = vsel %vm1716_vm7, %v1546_v10, %v1764_v27  ;;  %v1781_v61 = vmul.f32 0.2, %v1615_v23  ;;  %vm1736_vm12 = vcmp.ge.f32.partialorder %v1626_v39, 0.0  ;;  %2257 = vst [vmem:[#allocation2 + $0x39] sm:$0xff] %v1953_v9  ;;  %v12617_v27 = vpop.f32.mrb[8].mxu0 }
 0x108   : > { %vm16710_vm11 = vcmp.lt.s32.totalorder %v19448_v41, 16  ;;  %vm19452_vm4 = vnez %v19233_v22  ;;  %v19454_v26 = vmov 0  ;;  %v1956_v43 = vsel %vm16608_vm15, %v1812_v30, 0.0  ;;  %v15063_v10 = vld [vmem:[#allocation3 + $0x1d0] sm:$0xff]  ;;  %v1550_v34 = vpop.f32.mrb[9].mxu0  ;;  %v2313_v41 = vld [vmem:[#allocation2 + $0x20] sm:$0xff] }
 0x109   : > { %v19450_v29 = vsel %vm16710_vm11, 4294967295, %v19449_v29  ;;  %v19453_v19 = vsel %vm19452_vm4, %v16033_v52, %v15995_v47  ;;  %v1810_v25 = vsel %vm1714_vm0, %v1538_v21, %v1762_v31  ;;  %v16729_v49 = vpack.c.bf16 %v2312_v5, %v15063_v10  ;;  %v14869_v22 = vld [vmem:[%s18837_s3 + $0xc8] sm:$0xff]   ;;  %v16734_v52 = vpop.f32.mrb[5].mxu1  ;;  %2260 = vst [vmem:[#allocation2 + $0x51] sm:$0xff] %v1956_v43 }
 0x10a   : > { %19451 = vst [vmem:[#allocation11_spill] sm:$0xff] %v19450_v29  ;;  %vm16721_vm6 = vcmp.lt.s32.totalorder %v19453_v19, 16  ;;  %v1784_v47 = vmul.f32 0.2, %v1626_v39  ;;  %v1954_v48 = vsel %vm16622_vm13, %v1810_v25, 0.0  ;;  %v1559_v3 = vadd.f32 %v12617_v27, %v16430_v46  ;;  %v2314_v21 = vld [vmem:[#allocation2 + $0x28] sm:$0xff] }
 0x10b   : > { %v19455_v26 = vsel %vm16721_vm6, 4294967295, %v19454_v26  ;;  %vm19457_vm7 = vcmp.ge.f32.partialorder %v1615_v23, 0.0  ;;  %v16741_v9 = vadd.f32 %v16430_v46, %v1617_v2  ;;  %v16743_v30 = vpop.f32.mrb[6].mxu1  ;;  %2258 = vst [vmem:[#allocation2 + $0x41] sm:$0xff] %v1954_v48  ;;  %v1551_v5 = vadd.f32 %v16430_v46, %v1550_v34  ;;  %v12618_v19 = vpop.f32.mrb[10].mxu0  ;;  %12726 = vmatmul.mubr.bf16.vlgmr.msra.gmra.mrb[24].mxu0 %v16729_v49  ;;  %v19458_v34 = vld [vmem:[#allocation34_spill] sm:$0xff] }
 0x10c   : > { %19456 = vst [vmem:[#allocation6_spill] sm:$0xff] %v19455_v26  ;;  %v1829_v31 = vsel %vm19457_vm7, %v1615_v23, %v1781_v61  ;;  %v16747_v43 = vpack.c.bf16 %v2314_v21, %v2313_v41  ;;  %v1832_v27 = vsel %vm1736_vm12, %v1626_v39, %v1784_v47  ;;  %v16752_v10 = vpop.f32.mrb[7].mxu1  ;;  %v1767_v23 = vmul.f32 0.2, %v1559_v3  ;;  %v15064_v61 = vld [vmem:[%s18837_s3 + $0xc0] sm:$0xff]   ;;  %v1553_v48 = vpop.f32.mrb[11].mxu0 }
 0x10d   : > { %v1973_v25 = vsel %vm16633_vm14, %v1829_v31, 0.0  ;;  %v1562_v2 = vadd.f32 %v12618_v19, %v16430_v46  ;;  %12774 = vmatpush3.bf16.msra.mxu0 %v15064_v61  ;;  %vm19459_vm1 = vnez %v19458_v34  ;;  %v19460_v41 = vld [vmem:[#allocation33_spill] sm:$0xff]  ;;  %v19461_v21 = vld [vmem:[#allocation23_spill] sm:$0xff]  ;;  %v19463_v31 = vmov 0  ;;  %v19466_v61 = vld [vmem:[#allocation38_spill] sm:$0xff] }
 0x10e   : > { %v19462_v62 = vsel %vm19459_vm1, %v19460_v41, %v19461_v21  ;;  %2277 = vst [vmem:[#allocation2 + $0xd9] sm:$0xff] %v1973_v25  ;;  %v1976_v39 = vsel %vm16653_vm8, %v1832_v27, 0.0  ;;  %v1765_v47 = vmul.f32 0.2, %v1551_v5  ;;  %v1554_v19 = vadd.f32 %v16430_v46, %v1553_v48  ;;  %12729 = vmatprep.mubr.bf16.mxu0 %v16747_v43  ;;  %v19468_v34 = vld [vmem:[#allocation36_spill] sm:$0xff]  ;;  %12775 = vmatprep.subr.bf16.mxu0 %v14869_v22  ;;  %v14870_v25 = vld [vmem:[%s18837_s3 + $0xd0] sm:$0xff]  }
 0x10f   : > { %vm16763_vm4 = vcmp.lt.s32.totalorder %v19462_v62, 16  ;;  %vm19467_vm7 = vnez %v19466_v61  ;;  %v19471_v62 = vmov 0  ;;  %2280 = vst [vmem:[#allocation2 + $0xf1] sm:$0xff] %v1976_v39  ;;  %vm19474_vm12 = vnez %v19244_v58  ;;  %v19480_v21 = vld [vmem:[#allocation46_spill] sm:$0xff]  ;;  %v19482_v39 = vld [vmem:[#allocation40_spill] sm:$0xff]  ;;  %v19483_v61 = vld [vmem:[#allocation35_spill] sm:$0xff] }
 0x110   : > { %v19464_v31 = vsel %vm16763_vm4, 4294967295, %v19463_v31  ;;  %v19470_v63 = vsel %vm19467_vm7, %v19468_v34, %v19469_v35  ;;  %v19475_v27 = vsel %vm19474_vm12, %v16058_v7, %v16015_v51  ;;  %v19476_v48 = vmov 0  ;;  %v19517_v26 = vld [vmem:[#allocation45_spill] sm:$0xff] }
 0x111   : > { %19465 = vst [vmem:[#allocation16_spill] sm:$0xff] %v19464_v31  ;;  %vm16776_vm1 = vcmp.lt.s32.totalorder %v19470_v63, 16  ;;  %vm16788_vm0 = vcmp.lt.s32.totalorder %v19475_v27, 16  ;;  %v16793_v35 = vadd.s32 24, %v16658_v38  ;;  %vm19479_vm7 = vcmp.ge.f32.partialorder %v1559_v3, 0.0  ;;  %v19491_v27 = vld [vmem:[#allocation42_spill] sm:$0xff]  ;;  %12776 = vmatpush3.bf16.msra.mxu0 %v14869_v22 }
 0x112   : > { %v19472_v62 = vsel %vm16776_vm1, 4294967295, %v19471_v62  ;;  %v19477_v48 = vsel %vm16788_vm0, 4294967295, %v19476_v48  ;;  %v1815_v63 = vsel %vm19479_vm7, %v1559_v3, %v1767_v23  ;;  %vm1720_vm8 = vcmp.ge.f32.partialorder %v1562_v2, 0.0  ;;  %v19489_v23 = vld [vmem:[#allocation48_spill] sm:$0xff]  ;;  %12777 = vmatprep.subr.bf16.mxu0 %v14870_v25 }
 0x113   : > { %19473 = vst [vmem:[#allocation14_spill] sm:$0xff] %v19472_v62  ;;  %19478 = vst [vmem:[#allocation7_spill] sm:$0xff] %v19477_v48  ;;  %v1768_v41 = vmul.f32 0.2, %v1562_v2  ;;  %vm19481_vm14 = vnez %v19480_v21  ;;  %v19485_v58 = vmov 0  ;;  %v1959_v51 = vsel %vm16675_vm9, %v1815_v63, 0.0 }
 0x114   : > { %v19484_v34 = vsel %vm19481_vm14, %v19482_v39, %v19483_v61  ;;  %vm19488_vm15 = vcmp.ge.f32.partialorder %v1551_v5, 0.0  ;;  %vm1718_vm5 = vcmp.ge.f32.partialorder %v1554_v19, 0.0  ;;  %v1766_v3 = vmul.f32 0.2, %v1554_v19  ;;  %v19492_v21 = vld [vmem:[#allocation37_spill] sm:$0xff]  ;;  %2263 = vst [vmem:[#allocation2 + $0x69] sm:$0xff] %v1959_v51 }
 0x115   : > { %vm16801_vm13 = vcmp.lt.s32.totalorder %v19484_v34, 16  ;;  %v1813_v7 = vsel %vm19488_vm15, %v1551_v5, %v1765_v47  ;;  %vm19490_vm7 = vnez %v19489_v23  ;;  %v19494_v39 = vmov 0  ;;  %v2315_v63 = vld [vmem:[#allocation2 + $0x30] sm:$0xff]  ;;  %v2316_v34 = vld [vmem:[#allocation2 + $0x38] sm:$0xff]  ;;  %v16840_v51 = vpop.f32.mrb[8].mxu1  ;;  %12778 = vmatpush3.bf16.msra.mxu0 %v14870_v25 }
 0x116   : > { %v19486_v58 = vsel %vm16801_vm13, 4294967295, %v19485_v58  ;;  %v19493_v6 = vsel %vm19490_vm7, %v19491_v27, %v19492_v21  ;;  %vm19497_vm14 = vcmp.ne.s32.totalorder %v16613_v15, 0  ;;  %vm19498_vm12 = vcmp.lt.s32.totalorder %v16613_v15, 0 }
 0x117   : > { %19487 = vst [vmem:[#allocation24_spill] sm:$0xff] %v19486_v58  ;;  %vm16814_vm10 = vcmp.lt.s32.totalorder %v19493_v6, 16  ;;  %vm16822_vm13 = vmand %vm19498_vm12, %vm19497_vm14  ;;  %v19499_v61 = vmov 0  ;;  %v1957_v5 = vsel %vm16687_vm3, %v1813_v7, 0.0  ;;  %v1816_v47 = vsel %vm1720_vm8, %v1562_v2, %v1768_v41  ;;  %v12621_v41 = vpop.f32.mrb[12].mxu0 }
 0x118   : > { %v19495_v39 = vsel %vm16814_vm10, 4294967295, %v19494_v39  ;;  %v19500_v61 = vsel %vm16822_vm13, 4294967295, %v19499_v61  ;;  %v1782_v6 = vmul.f32 0.2, %v16741_v9  ;;  %v1639_v23 = vadd.f32 %v16725_v55, %v16430_v46  ;;  %2261 = vst [vmem:[#allocation2 + $0x59] sm:$0xff] %v1957_v5  ;;  %v2317_v5 = vld [vmem:[#allocation2 + $0x40] sm:$0xff] }
 0x119   : > { %19496 = vst [vmem:[#allocation19_spill] sm:$0xff] %v19495_v39  ;;  %vm19501_vm15 = vnez %v19249_v54  ;;  %v19503_v21 = vmov 0  ;;  %v1960_v22 = vsel %vm16697_vm2, %v1816_v47, 0.0  ;;  %v1814_v2 = vsel %vm1718_vm5, %v1554_v19, %v1766_v3  ;;  %v1566_v3 = vpop.f32.mrb[13].mxu0  ;;  %v2318_v47 = vld [vmem:[#allocation2 + $0x48] sm:$0xff]  ;;  %v19579_v39 = vld [vmem:[#allocation68_spill] sm:$0xff] }
 0x11a   : > { %v19502_v27 = vsel %vm19501_vm15, %v16078_v28, %v16036_v40  ;;  %v16845_v7 = vpack.c.bf16 %v2316_v34, %v2315_v63  ;;  %v16849_v54 = vadd.f32 %v16430_v46, %v16734_v52  ;;  %v16851_v40 = vpop.f32.mrb[9].mxu1  ;;  %v14871_v28 = vld [vmem:[%s18837_s3 + $0xd8] sm:$0xff]   ;;  %2264 = vst [vmem:[#allocation2 + $0x71] sm:$0xff] %v1960_v22  ;;  %v1958_v55 = vsel %vm16710_vm11, %v1814_v2, 0.0  ;;  %v12622_v22 = vpop.f32.mrb[14].mxu0  ;;  %v19508_v34 = vld [vmem:[#allocation49_spill] sm:$0xff] }
 0x11b   : > { %vm16836_vm12 = vcmp.lt.s32.totalorder %v19502_v27, 16  ;;  %v1575_v19 = vadd.f32 %v12621_v41, %v16430_v46  ;;  %vm19506_vm5 = vcmp.ge.f32.partialorder %v16741_v9, 0.0  ;;  %v16862_v63 = vpop.f32.mrb[10].mxu1  ;;  %2262 = vst [vmem:[#allocation2 + $0x61] sm:$0xff] %v1958_v55  ;;  %v1567_v27 = vadd.f32 %v16430_v46, %v1566_v3  ;;  %v1569_v11 = vpop.f32.mrb[15].mxu0  ;;  %v19510_v55 = vld [vmem:[#allocation43_spill] sm:$0xff]  ;;  %12779 = vmatprep.subr.bf16.mxu0 %v14871_v28 }
 0x11c   : > { %v19504_v21 = vsel %vm16836_vm12, 4294967295, %v19503_v21  ;;  %v1830_v52 = vsel %vm19506_vm5, %v16741_v9, %v1782_v6  ;;  %12730 = vmatmul.mubr.bf16.gmra.mrb[28].mxu0 %v16845_v7  ;;  %v16870_v2 = vpack.c.bf16 %v2318_v47, %v2317_v5  ;;  %v16874_v9 = vpop.f32.mrb[11].mxu1  ;;  %v1578_v29 = vadd.f32 %v12622_v22, %v16430_v46  ;;  %v19511_v3 = vld [vmem:[#allocation39_spill] sm:$0xff]  ;;  %v19515_v22 = vld [vmem:[#allocation52_spill] sm:$0xff] }
 0x11d   : > { %19505 = vst [vmem:[#allocation15_spill] sm:$0xff] %v19504_v21  ;;  %v1974_v41 = vsel %vm16721_vm6, %v1830_v52, 0.0  ;;  %v1771_v6 = vmul.f32 0.2, %v1575_v19  ;;  %vm19509_vm14 = vnez %v19508_v34  ;;  %v19513_v32 = vmov 0  ;;  %v19518_v34 = vld [vmem:[#allocation41_spill] sm:$0xff]  ;;  %12780 = vmatpush3.bf16.msra.mxu0 %v14871_v28 }
 0x11e   : > { %19507 = vst [vmem:[#allocation74_spill] sm:$0xff] %v16870_v2  ;;  %v19512_v20 = vsel %vm19509_vm14, %v19510_v55, %v19511_v3  ;;  %2278 = vst [vmem:[#allocation2 + $0xe1] sm:$0xff] %v1974_v41  ;;  %v1787_v5 = vmul.f32 0.2, %v1639_v23  ;;  %vm1721_vm5 = vcmp.ge.f32.partialorder %v1567_v27, 0.0  ;;  %v1570_v52 = vadd.f32 %v16430_v46, %v1569_v11  ;;  %12733 = vmatprep.mubr.bf16.mxu0 %v16870_v2  ;;  %v19528_v41 = vld [vmem:[#allocation53_spill] sm:$0xff] }
 0x11f   : > { %vm16882_vm15 = vcmp.lt.s32.totalorder %v19512_v20, 16  ;;  %v1769_v47 = vmul.f32 0.2, %v1567_v27  ;;  %vm19516_vm8 = vnez %v19515_v22  ;;  %v19520_v55 = vmov 0  ;;  %v19530_v3 = vld [vmem:[#allocation50_spill] sm:$0xff]  ;;  %v19562_v21 = vld [vmem:[#allocation65_spill] sm:$0xff] }
 0x120   : > { %v19514_v32 = vsel %vm16882_vm15, 4294967295, %v19513_v32  ;;  %v19519_v1 = vsel %vm19516_vm8, %v19517_v26, %v19518_v34  ;;  %vm19522_vm6 = vnez %v19253_v14  ;;  %v19524_v11 = vmov 0  ;;  %v14872_v26 = vld [vmem:[%s18837_s3 + $0xe0] sm:$0xff]   ;;  %v19531_v14 = vld [vmem:[#allocation44_spill] sm:$0xff]  ;;  %v14873_v28 = vld [vmem:[%s18837_s3 + $0xe8] sm:$0xff]  }
 0x121   : > { %vm16893_vm7 = vcmp.lt.s32.totalorder %v19519_v1, 16  ;;  %v19523_v20 = vsel %vm19522_vm6, %v16087_v37, %v16039_v56  ;;  %vm19527_vm8 = vcmp.ge.f32.partialorder %v1575_v19, 0.0  ;;  %vm1724_vm2 = vcmp.ge.f32.partialorder %v1578_v29, 0.0  ;;  %12781 = vmatprep.subr.bf16.mxu0 %v14872_v26 }
 0x122   : > { %v19521_v55 = vsel %vm16893_vm7, 4294967295, %v19520_v55  ;;  %vm16903_vm11 = vcmp.lt.s32.totalorder %v19523_v20, 16  ;;  %v1819_v1 = vsel %vm19527_vm8, %v1575_v19, %v1771_v6  ;;  %v1772_v25 = vmul.f32 0.2, %v1578_v29  ;;  %v2319_v19 = vld [vmem:[#allocation2 + $0x50] sm:$0xff]  ;;  %v19536_v6 = vld [vmem:[#allocation58_spill] sm:$0xff]  ;;  %12782 = vmatpush3.bf16.msra.mxu0 %v14872_v26 }
 0x123   : > { %v19525_v11 = vsel %vm16903_vm11, 4294967295, %v19524_v11  ;;  %vm19529_vm14 = vnez %v19528_v41  ;;  %v19533_v56 = vmov 0  ;;  %vm19535_vm6 = vcmp.ge.f32.partialorder %v1639_v23, 0.0  ;;  %v19539_v41 = vld [vmem:[#allocation47_spill] sm:$0xff]  ;;  %v19570_v26 = vld [vmem:[#allocation72_spill] sm:$0xff]  ;;  %12783 = vmatprep.subr.bf16.mxu0 %v14873_v28 }
 0x124   : > { %19526 = vst [vmem:[#allocation60_spill] sm:$0xff] %v19525_v11  ;;  %v19532_v22 = vsel %vm19529_vm14, %v19530_v3, %v19531_v14  ;;  %v1835_v37 = vsel %vm19535_vm6, %v1639_v23, %v1787_v5  ;;  %v1963_v34 = vsel %vm16763_vm4, %v1819_v1, 0.0  ;;  %v1817_v20 = vsel %vm1721_vm5, %v1567_v27, %v1769_v47  ;;  %v2320_v14 = vld [vmem:[#allocation2 + $0x58] sm:$0xff]  ;;  %v19544_v1 = vld [vmem:[#allocation69_spill] sm:$0xff] }
 0x125   : > { %vm16916_vm3 = vcmp.lt.s32.totalorder %v19532_v22, 16  ;;  %vm1722_vm9 = vcmp.ge.f32.partialorder %v1570_v52, 0.0  ;;  %v1770_v57 = vmul.f32 0.2, %v1570_v52  ;;  %vm19537_vm8 = vnez %v19536_v6  ;;  %2267 = vst [vmem:[#allocation2 + $0x89] sm:$0xff] %v1963_v34  ;;  %v16946_v22 = vpop.f32.mrb[12].mxu1 }
 0x126   : > { %v19534_v56 = vsel %vm16916_vm3, 4294967295, %v19533_v56  ;;  %v19540_v2 = vsel %vm19537_vm8, %v19538_v24, %v19539_v41  ;;  %v19541_v3 = vmov 0  ;;  %v1961_v23 = vsel %vm16776_vm1, %v1817_v20, 0.0  ;;  %v2322_v6 = vld [vmem:[#allocation2 + $0x68] sm:$0xff]  ;;  %12784 = vmatpush3.bf16.msra.mxu0 %v14873_v28 }
 0x127   : > { %vm16928_vm13 = vcmp.lt.s32.totalorder %v19540_v2, 16  ;;  %v1820_v5 = vsel %vm1724_vm2, %v1578_v29, %v1772_v25  ;;  %v1979_v27 = vsel %vm16788_vm0, %v1835_v37, 0.0  ;;  %v1785_v47 = vmul.f32 0.2, %v16849_v54  ;;  %2265 = vst [vmem:[#allocation2 + $0x79] sm:$0xff] %v1961_v23  ;;  %v12625_v37 = vpop.f32.mrb[16].mxu0 }
 0x128   : > { %v19542_v3 = vsel %vm16928_vm13, 4294967295, %v19541_v3  ;;  %vm19543_vm5 = vnez %v19258_v45  ;;  %v19546_v2 = vmov 0  ;;  %vm19549_vm2 = vnez %v19486_v58  ;;  %2283 = vst [vmem:[#allocation2 + $0x109] sm:$0xff] %v1979_v27 }
 0x129   : > { %v19545_v24 = vsel %vm19543_vm5, %v16090_v4, %v19544_v1  ;;  %v1964_v29 = vsel %vm19549_vm2, %v1820_v5, 0.0  ;;  %v1818_v25 = vsel %vm1722_vm9, %v1570_v52, %v1770_v57  ;;  %v16950_v34 = vpack.c.bf16 %v2320_v14, %v2319_v19  ;;  %v16954_v4 = vpop.f32.mrb[13].mxu1  ;;  %v1582_v52 = vpop.f32.mrb[17].mxu0  ;;  %v2321_v19 = vld [vmem:[#allocation2 + $0x60] sm:$0xff] }
 0x12a   : > { %vm16942_vm14 = vcmp.lt.s32.totalorder %v19545_v24, 16  ;;  %v1642_v45 = vadd.f32 %v16743_v30, %v16430_v46  ;;  %2268 = vst [vmem:[#allocation2 + $0x91] sm:$0xff] %v1964_v29  ;;  %v1962_v20 = vsel %vm16814_vm10, %v1818_v25, 0.0  ;;  %v1591_v57 = vadd.f32 %v12625_v37, %v16430_v46  ;;  %v16969_v23 = vpop.f32.mrb[14].mxu1  ;;  %v12626_v14 = vpop.f32.mrb[18].mxu0  ;;  %v19553_v29 = vld [vmem:[#allocation63_spill] sm:$0xff] }
 0x12b   : > { %v19547_v2 = vsel %vm16942_vm14, 4294967295, %v19546_v2  ;;  %19550 = vst [vmem:[#allocation64_spill] sm:$0xff] %v16950_v34  ;;  %vm19551_vm9 = vcmp.ge.f32.partialorder %v16849_v54, 0.0  ;;  %v16967_v41 = vadd.f32 %v16430_v46, %v16752_v10  ;;  %2266 = vst [vmem:[#allocation2 + $0x81] sm:$0xff] %v1962_v20  ;;  %v1583_v5 = vadd.f32 %v16430_v46, %v1582_v52  ;;  %12734 = vmatmul.mubr.bf16.gmra.mrb[32].mxu0 %v16950_v34  ;;  %v16977_v24 = vpop.f32.mrb[15].mxu1  ;;  %v19555_v25 = vld [vmem:[#allocation59_spill] sm:$0xff] }
 0x12c   : > { %19548 = vst [vmem:[#allocation57_spill] sm:$0xff] %v19547_v2  ;;  %v1833_v30 = vsel %vm19551_vm9, %v16849_v54, %v1785_v47  ;;  %v16973_v27 = vpack.c.bf16 %v2322_v6, %v2321_v19  ;;  %v1775_v54 = vmul.f32 0.2, %v1591_v57  ;;  %v1594_v10 = vadd.f32 %v12626_v14, %v16430_v46  ;;  %v1585_v47 = vpop.f32.mrb[19].mxu0  ;;  %v19556_v37 = vld [vmem:[#allocation55_spill] sm:$0xff] }
 0x12d   : > { %v1977_v1 = vsel %vm16836_vm12, %v1833_v30, 0.0  ;;  %vm19554_vm5 = vnez %v19553_v29  ;;  %v19558_v52 = vmov 0  ;;  %v1788_v19 = vmul.f32 0.2, %v1642_v45  ;;  %v19560_v14 = vld [vmem:[#allocation75_spill] sm:$0xff]  ;;  %v19563_v29 = vld [vmem:[#allocation61_spill] sm:$0xff] }
 0x12e   : > { %19552 = vst [vmem:[#allocation25_spill] sm:$0xff] %v16973_v27  ;;  %v19557_v20 = vsel %vm19554_vm5, %v19555_v25, %v19556_v37  ;;  %2281 = vst [vmem:[#allocation2 + $0xf9] sm:$0xff] %v1977_v1  ;;  %vm1725_vm6 = vcmp.ge.f32.partialorder %v1583_v5, 0.0  ;;  %v1773_v6 = vmul.f32 0.2, %v1583_v5  ;;  %v1586_v30 = vadd.f32 %v16430_v46, %v1585_v47  ;;  %12737 = vmatprep.mubr.bf16.mxu0 %v16973_v27  ;;  %v19568_v1 = vld [vmem:[#allocation85_spill] sm:$0xff] }
 0x12f   : > { %vm16985_vm9 = vcmp.lt.s32.totalorder %v19557_v20, 16  ;;  %vm19561_vm8 = vnez %v19560_v14  ;;  %v19565_v25 = vmov 0  ;;  %vm19569_vm0 = vnez %v19568_v1  ;;  %v19571_v37 = vld [vmem:[#allocation71_spill] sm:$0xff]  ;;  %v19580_v1 = vld [vmem:[#allocation66_spill] sm:$0xff] }
 0x130   : > { %v19559_v52 = vsel %vm16985_vm9, 4294967295, %v19558_v52  ;;  %v19564_v48 = vsel %vm19561_vm8, %v19562_v21, %v19563_v29  ;;  %v19572_v20 = vsel %vm19569_vm0, %v19570_v26, %v19571_v37  ;;  %v19573_v47 = vmov 0  ;;  %v14874_v21 = vld [vmem:[%s18837_s3 + $0xf0] sm:$0xff]   ;;  %v19577_v29 = vld [vmem:[#allocation76_spill] sm:$0xff]  ;;  %v19588_v27 = vld [vmem:[#allocation70_spill] sm:$0xff] }
 0x131   : > { %vm16996_vm12 = vcmp.lt.s32.totalorder %v19564_v48, 16  ;;  %vm17006_vm10 = vcmp.lt.s32.totalorder %v19572_v20, 16  ;;  %vm19576_vm8 = vcmp.ge.f32.partialorder %v1591_v57, 0.0  ;;  %vm1728_vm2 = vcmp.ge.f32.partialorder %v1594_v10, 0.0  ;;  %12785 = vmatprep.subr.bf16.mxu0 %v14874_v21 }
 0x132   : > { %v19566_v25 = vsel %vm16996_vm12, 4294967295, %v19565_v25  ;;  %v19574_v47 = vsel %vm17006_vm10, 4294967295, %v19573_v47  ;;  %v1823_v48 = vsel %vm19576_vm8, %v1591_v57, %v1775_v54  ;;  %v1776_v14 = vmul.f32 0.2, %v1594_v10  ;;  %v2323_v57 = vld [vmem:[#allocation2 + $0x70] sm:$0xff]  ;;  %12786 = vmatpush3.bf16.msra.mxu0 %v14874_v21 }
 0x133   : > { %19567 = vst [vmem:[#allocation22_spill] sm:$0xff] %v19566_v25  ;;  %19575 = vst [vmem:[#allocation17_spill] sm:$0xff] %v19574_v47  ;;  %vm19578_vm5 = vnez %v19577_v29  ;;  %v19582_v26 = vmov 0  ;;  %vm19585_vm0 = vcmp.ge.f32.partialorder %v1642_v45, 0.0  ;;  %v1967_v20 = vsel %vm16882_vm15, %v1823_v48, 0.0  ;;  %v19586_v54 = vld [vmem:[#allocation79_spill] sm:$0xff] }
 0x134   : > { %v19581_v58 = vsel %vm19578_vm5, %v19579_v39, %v19580_v1  ;;  %v1836_v37 = vsel %vm19585_vm0, %v1642_v45, %v1788_v19  ;;  %v1821_v62 = vsel %vm1725_vm6, %v1583_v5, %v1773_v6  ;;  %vm1726_vm4 = vcmp.ge.f32.partialorder %v1586_v30, 0.0  ;;  %v19589_v29 = vld [vmem:[#allocation67_spill] sm:$0xff]  ;;  %2271 = vst [vmem:[#allocation2 + $0xa9] sm:$0xff] %v1967_v20  ;;  %v2324_v19 = vld [vmem:[#allocation2 + $0x78] sm:$0xff]  ;;  %v17049_v48 = vpop.f32.mrb[16].mxu1  ;;  %v2326_v20 = vld [vmem:[#allocation2 + $0x88] sm:$0xff] }
 0x135   : > { %vm17019_vm1 = vcmp.lt.s32.totalorder %v19581_v58, 16  ;;  %v1774_v31 = vmul.f32 0.2, %v1586_v30  ;;  %vm19587_vm8 = vnez %v19586_v54  ;;  %v19591_v39 = vmov 0 }
 0x136   : > { %v19583_v26 = vsel %vm17019_vm1, 4294967295, %v19582_v26  ;;  %v19590_v34 = vsel %vm19587_vm8, %v19588_v27, %v19589_v29  ;;  %v1965_v58 = vsel %vm16893_vm7, %v1821_v62, 0.0  ;;  %v1824_v45 = vsel %vm1728_vm2, %v1594_v10, %v1776_v14  ;;  %v12629_v14 = vpop.f32.mrb[20].mxu0 }
 0x137   : > { %19584 = vst [vmem:[#allocation27_spill] sm:$0xff] %v19583_v26  ;;  %vm17031_vm10 = vcmp.lt.s32.totalorder %v19590_v34, 16  ;;  %v1980_v5 = vsel %vm16903_vm11, %v1836_v37, 0.0  ;;  %v1786_v6 = vmul.f32 0.2, %v16967_v41  ;;  %vm19594_vm6 = vnez %v19270_v53  ;;  %2269 = vst [vmem:[#allocation2 + $0x99] sm:$0xff] %v1965_v58 }
 0x138   : > { %v19592_v39 = vsel %vm17031_vm10, 4294967295, %v19591_v39  ;;  %v19595_v27 = vsel %vm19594_vm6, %v19344_v0, %v16069_v59  ;;  %v19596_v34 = vmov 0  ;;  %v1968_v62 = vsel %vm16916_vm3, %v1824_v45, 0.0  ;;  %2284 = vst [vmem:[#allocation2 + $0x111] sm:$0xff] %v1980_v5  ;;  %v17057_v59 = vpop.f32.mrb[17].mxu1  ;;  %v14875_v0 = vld [vmem:[%s18837_s3 + $0xf8] sm:$0xff]  }
 0x139   : > { %19593 = vst [vmem:[#allocation28_spill] sm:$0xff] %v19592_v39  ;;  %vm17045_vm5 = vcmp.lt.s32.totalorder %v19595_v27, 16  ;;  %v1822_v10 = vsel %vm1726_vm4, %v1586_v30, %v1774_v31  ;;  %v17053_v1 = vpack.c.bf16 %v2324_v19, %v2323_v57  ;;  %v1655_v53 = vadd.f32 %v16840_v51, %v16430_v46  ;;  %2272 = vst [vmem:[#allocation2 + $0xb1] sm:$0xff] %v1968_v62  ;;  %v1598_v30 = vpop.f32.mrb[21].mxu0  ;;  %v2325_v37 = vld [vmem:[#allocation2 + $0x80] sm:$0xff]  ;;  %v17070_v54 = vpop.f32.mrb[18].mxu1 }
 0x13a   : > { %v19597_v34 = vsel %vm17045_vm5, 4294967295, %v19596_v34  ;;  %v1966_v28 = vsel %vm16928_vm13, %v1822_v10, 0.0  ;;  %v1607_v31 = vadd.f32 %v12629_v14, %v16430_v46  ;;  %vm19599_vm4 = vcmp.ge.f32.partialorder %v16967_v41, 0.0  ;;  %v12630_v58 = vpop.f32.mrb[22].mxu0  ;;  %v17087_v5 = vpop.f32.mrb[19].mxu1  ;;  %12787 = vmatprep.subr.bf16.mxu0 %v14875_v0 }
 0x13b   : > { %19598 = vst [vmem:[#allocation18_spill] sm:$0xff] %v19597_v34  ;;  %v1834_v51 = vsel %vm19599_vm4, %v16967_v41, %v1786_v6  ;;  %v1647_v57 = vadd.f32 %v16430_v46, %v16851_v40  ;;  %2270 = vst [vmem:[#allocation2 + $0xa1] sm:$0xff] %v1966_v28  ;;  %v1599_v29 = vadd.f32 %v16430_v46, %v1598_v30  ;;  %12738 = vmatmul.mubr.bf16.gmra.mrb[36].mxu0 %v17053_v1  ;;  %v19602_v40 = vmov 0  ;;  %v1601_v62 = vpop.f32.mrb[23].mxu0  ;;  %v19687_v34 = vld [vmem:[#allocation77_spill] sm:$0xff] }
 0x13c   : > { %v17074_v45 = vpack.c.bf16 %v2326_v20, %v2325_v37  ;;  %v1978_v19 = vsel %vm16942_vm14, %v1834_v51, 0.0  ;;  %vm19600_vm0 = vnez %v19274_v8  ;;  %v1779_v6 = vmul.f32 0.2, %v1607_v31  ;;  %v2327_v37 = vld [vmem:[#allocation2 + $0x90] sm:$0xff]  ;;  %v19617_v20 = vld [vmem:[#allocation90_spill] sm:$0xff]  ;;  %12788 = vmatpush3.bf16.msra.mxu0 %v14875_v0  ;;  %v19642_v0 = vld [vmem:[#allocation96_spill] sm:$0xff] }
 0x13d   : > { %v19601_v41 = vsel %vm19600_vm0, %v19346_v42, %v16098_v60  ;;  %v1610_v27 = vadd.f32 %v12630_v58, %v16430_v46  ;;  %2282 = vst [vmem:[#allocation2 + $0x101] sm:$0xff] %v1978_v19  ;;  %v1791_v10 = vmul.f32 0.2, %v1655_v53  ;;  %vm19605_vm4 = vnez %v19279_v12  ;;  %v19619_v51 = vld [vmem:[#allocation83_spill] sm:$0xff]  ;;  %v19620_v58 = vld [vmem:[#allocation78_spill] sm:$0xff] }
 0x13e   : > { %vm17083_vm8 = vcmp.lt.s32.totalorder %v19601_v41, 16  ;;  %v19606_v8 = vsel %vm19605_vm4, %v19348_v13, %v16127_v36  ;;  %v19607_v60 = vmov 0  ;;  %vm19610_vm0 = vnez %v19285_v44  ;;  %12741 = vmatprep.mubr.bf16.mxu0 %v17074_v45 }
 0x13f   : > { %v19603_v40 = vsel %vm17083_vm8, 4294967295, %v19602_v40  ;;  %vm17095_vm2 = vcmp.lt.s32.totalorder %v19606_v8, 16  ;;  %v19611_v42 = vsel %vm19610_vm0, %v19350_v18, %v16142_v17  ;;  %v19612_v14 = vmov 0  ;;  %v17115_v17 = vld [vmem:[%s18837_s3 + $0x180] sm:$0xff]   ;;  %v19628_v8 = vld [vmem:[#allocation88_spill] sm:$0xff] }
 0x140   : > { %19604 = vst [vmem:[#allocation29_spill] sm:$0xff] %v19603_v40  ;;  %v19608_v60 = vsel %vm17095_vm2, 4294967295, %v19607_v60  ;;  %vm17104_vm6 = vcmp.lt.s32.totalorder %v19611_v42, 16  ;;  %vm1729_vm13 = vcmp.ge.f32.partialorder %v1599_v29, 0.0  ;;  %v1777_v13 = vmul.f32 0.2, %v1599_v29  ;;  %12837 = vmatprep.subr.bf16.mxu0 %v17115_v17 }
 0x141   : > { %19609 = vst [vmem:[#allocation30_spill] sm:$0xff] %v19608_v60  ;;  %v19613_v14 = vsel %vm17104_vm6, 4294967295, %v19612_v14  ;;  %v1602_v36 = vadd.f32 %v16430_v46, %v1601_v62  ;;  %vm19615_vm0 = vcmp.ge.f32.partialorder %v1607_v31, 0.0  ;;  %vm1732_vm3 = vcmp.ge.f32.partialorder %v1610_v27, 0.0  ;;  %v19629_v42 = vld [vmem:[#allocation81_spill] sm:$0xff]  ;;  %v19685_v40 = vld [vmem:[#allocation82_spill] sm:$0xff] }
 0x142   : > { %19614 = vst [vmem:[#allocation20_spill] sm:$0xff] %v19613_v14  ;;  %v1827_v12 = vsel %vm19615_vm0, %v1607_v31, %v1779_v6  ;;  %v1780_v44 = vmul.f32 0.2, %v1610_v27  ;;  %vm19616_vm14 = vcmp.ge.f32.partialorder %v1655_v53, 0.0  ;;  %v1825_v28 = vsel %vm1729_vm13, %v1599_v29, %v1777_v13  ;;  %v2328_v6 = vld [vmem:[#allocation2 + $0x98] sm:$0xff] }
 0x143   : > { %v1839_v18 = vsel %vm19616_vm14, %v1655_v53, %v1791_v10  ;;  %v1971_v21 = vsel %vm16985_vm9, %v1827_v12, 0.0  ;;  %vm1730_vm11 = vcmp.ge.f32.partialorder %v1602_v36, 0.0  ;;  %v1778_v30 = vmul.f32 0.2, %v1602_v36  ;;  %v19626_v10 = vld [vmem:[#allocation92_spill] sm:$0xff] }
 0x144   : > { %vm19618_vm4 = vnez %v19617_v20  ;;  %v19622_v41 = vmov 0  ;;  %2275 = vst [vmem:[#allocation2 + $0xc9] sm:$0xff] %v1971_v21  ;;  %v1969_v53 = vsel %vm16996_vm12, %v1825_v28, 0.0  ;;  %v1828_v31 = vsel %vm1732_vm3, %v1610_v27, %v1780_v44  ;;  %v17143_v20 = vpop.f32.mrb[20].mxu1  ;;  %v19634_v28 = vld [vmem:[#allocation93_spill] sm:$0xff] }
 0x145   : > { %v19621_v19 = vsel %vm19618_vm4, %v19619_v51, %v19620_v58  ;;  %vm19625_vm13 = vnez %v19574_v47  ;;  %v1789_v62 = vmul.f32 0.2, %v1647_v57  ;;  %vm19627_vm14 = vnez %v19626_v10  ;;  %2273 = vst [vmem:[#allocation2 + $0xb9] sm:$0xff] %v1969_v53  ;;  %v19636_v51 = vld [vmem:[#allocation95_spill] sm:$0xff]  ;;  %v19637_v58 = vld [vmem:[#allocation84_spill] sm:$0xff]  ;;  %v19644_v53 = vld [vmem:[#allocation97_spill] sm:$0xff] }
 0x146   : > { %vm17126_vm7 = vcmp.lt.s32.totalorder %v19621_v19, 16  ;;  %v1983_v29 = vsel %vm19625_vm13, %v1839_v18, 0.0  ;;  %v19630_v13 = vsel %vm19627_vm14, %v19628_v8, %v19629_v42  ;;  %v19631_v12 = vmov 0  ;;  %v2330_v8 = vld [vmem:[#allocation2 + $0xa8] sm:$0xff] }
 0x147   : > { %v19623_v41 = vsel %vm17126_vm7, 4294967295, %v19622_v41  ;;  %vm17139_vm4 = vcmp.lt.s32.totalorder %v19630_v13, 16  ;;  %v1972_v27 = vsel %vm17019_vm1, %v1828_v31, 0.0  ;;  %v1826_v44 = vsel %vm1730_vm11, %v1602_v36, %v1778_v30  ;;  %2287 = vst [vmem:[#allocation2 + $0x129] sm:$0xff] %v1983_v29  ;;  %v19645_v31 = vld [vmem:[#allocation86_spill] sm:$0xff]  ;;  %v2329_v29 = vld [vmem:[#allocation2 + $0xa0] sm:$0xff] }
 0x148   : > { %19624 = vst [vmem:[#allocation32_spill] sm:$0xff] %v19623_v41  ;;  %v19632_v12 = vsel %vm17139_vm4, 4294967295, %v19631_v12  ;;  %v17147_v21 = vpack.c.bf16 %v2328_v6, %v2327_v37  ;;  %v1658_v18 = vadd.f32 %v16862_v63, %v16430_v46  ;;  %vm19635_vm3 = vnez %v19634_v28  ;;  %v17169_v37 = vpop.f32.mrb[21].mxu1  ;;  %2276 = vst [vmem:[#allocation2 + $0xd1] sm:$0xff] %v1972_v27  ;;  %v19688_v47 = vld [vmem:[#allocation102_spill] sm:$0xff] }
 0x149   : > { %19633 = vst [vmem:[#allocation31_spill] sm:$0xff] %v19632_v12  ;;  %v19638_v19 = vsel %vm19635_vm3, %v19636_v51, %v19637_v58  ;;  %v19639_v10 = vmov 0  ;;  %vm19643_vm14 = vnez %v19642_v0  ;;  %v19647_v30 = vmov 0  ;;  %v17179_v28 = vpop.f32.mrb[22].mxu1 }
 0x14a   : > { %vm17156_vm0 = vcmp.lt.s32.totalorder %v19638_v19, 16  ;;  %v19646_v36 = vsel %vm19643_vm14, %v19644_v53, %v19645_v31  ;;  %v1970_v63 = vsel %vm17031_vm10, %v1826_v44, 0.0  ;;  %vm19650_vm3 = vcmp.ge.f32.partialorder %v1647_v57, 0.0  ;;  %12742 = vmatmul.mubr.bf16.gmra.mrb[40].mxu0 %v17147_v21  ;;  %v17193_v0 = vpop.f32.mrb[23].mxu1 }
 0x14b   : > { %v19640_v10 = vsel %vm17156_vm0, 4294967295, %v19639_v10  ;;  %vm17165_vm11 = vcmp.lt.s32.totalorder %v19646_v36, 16  ;;  %v1837_v6 = vsel %vm19650_vm3, %v1647_v57, %v1789_v62  ;;  %v1650_v42 = vadd.f32 %v16430_v46, %v16874_v9  ;;  %2274 = vst [vmem:[#allocation2 + $0xc1] sm:$0xff] %v1970_v63 }
 0x14c   : > { %19641 = vst [vmem:[#allocation21_spill] sm:$0xff] %v19640_v10  ;;  %v19648_v30 = vsel %vm17165_vm11, 4294967295, %v19647_v30  ;;  %v1671_v13 = vadd.f32 %v16946_v22, %v16430_v46  ;;  %v1981_v27 = vsel %vm17045_vm5, %v1837_v6, 0.0  ;;  %v17184_v51 = vpack.c.bf16 %v2330_v8, %v2329_v29  ;;  %v19653_v6 = vld [vmem:[#allocation98_spill] sm:$0xff]  ;;  %v19661_v8 = vld [vmem:[#allocation105_spill] sm:$0xff] }
 0x14d   : > { %19649 = vst [vmem:[#allocation34_spill] sm:$0xff] %v19648_v30  ;;  %vm1744_vm14 = vcmp.ge.f32.partialorder %v1658_v18, 0.0  ;;  %v1792_v57 = vmul.f32 0.2, %v1658_v18  ;;  %2285 = vst [vmem:[#allocation2 + $0x119] sm:$0xff] %v1981_v27  ;;  %vm1742_vm3 = vcmp.ge.f32.partialorder %v1650_v42, 0.0  ;;  %v1663_v44 = vadd.f32 %v16430_v46, %v16954_v4 }
 0x14e   : > { %v1790_v62 = vmul.f32 0.2, %v1650_v42  ;;  %vm1747_vm13 = vcmp.ge.f32.partialorder %v1671_v13, 0.0  ;;  %v1795_v9 = vmul.f32 0.2, %v1671_v13  ;;  %12745 = vmatprep.mubr.bf16.mxu0 %v17184_v51  ;;  %v1674_v58 = vadd.f32 %v16969_v23, %v16430_v46  ;;  %v19654_v4 = vld [vmem:[#allocation87_spill] sm:$0xff] }
 0x14f   : > { %v1840_v22 = vsel %vm1744_vm14, %v1658_v18, %v1792_v57  ;;  %v1666_v19 = vadd.f32 %v16430_v46, %v16977_v24  ;;  %v1687_v63 = vadd.f32 %v17049_v48, %v16430_v46  ;;  %v19651_v18 = vld [vmem:[#allocation101_spill] sm:$0xff]  ;;  %v19656_v23 = vmov 0  ;;  %v19659_v24 = vld [vmem:[#allocation104_spill] sm:$0xff] }
 0x150   : > { %v1984_v53 = vsel %vm17083_vm8, %v1840_v22, 0.0  ;;  %v1838_v31 = vsel %vm1742_vm3, %v1650_v42, %v1790_v62  ;;  %v1843_v36 = vsel %vm1747_vm13, %v1671_v13, %v1795_v9  ;;  %vm19652_vm14 = vnez %v19651_v18  ;;  %v19662_v27 = vld [vmem:[#allocation89_spill] sm:$0xff]  ;;  %v2331_v13 = vld [vmem:[#allocation2 + $0xb0] sm:$0xff]  ;;  %v19667_v22 = vld [vmem:[#allocation8_spill] sm:$0xff] }
 0x151   : > { %v19655_v29 = vsel %vm19652_vm14, %v19653_v6, %v19654_v4  ;;  %vm19660_vm10 = vnez %v19659_v24  ;;  %v19664_v42 = vmov 0  ;;  %2288 = vst [vmem:[#allocation2 + $0x131] sm:$0xff] %v1984_v53  ;;  %v1982_v48 = vsel %vm17095_vm2, %v1838_v31, 0.0  ;;  %v19669_v18 = vld [vmem:[#allocation106_spill] sm:$0xff]  ;;  %v19670_v6 = vld [vmem:[#allocation91_spill] sm:$0xff]  ;;  %v2336_v60 = vld [vmem:[#allocation2 + $0xd8] sm:$0xff] }
 0x152   : > { %vm17204_vm5 = vcmp.lt.s32.totalorder %v19655_v29, 16  ;;  %v19663_v57 = vsel %vm19660_vm10, %v19661_v8, %v19662_v27  ;;  %v1987_v62 = vsel %vm17104_vm6, %v1843_v36, 0.0  ;;  %vm1745_vm13 = vcmp.ge.f32.partialorder %v1663_v44, 0.0  ;;  %v19676_v53 = vld [vmem:[#allocation99_spill] sm:$0xff]  ;;  %2286 = vst [vmem:[#allocation2 + $0x121] sm:$0xff] %v1982_v48  ;;  %v2332_v8 = vld [vmem:[#allocation2 + $0xb8] sm:$0xff] }
 0x153   : > { %v19657_v23 = vsel %vm17204_vm5, 4294967295, %v19656_v23  ;;  %vm17213_vm8 = vcmp.lt.s32.totalorder %v19663_v57, 16  ;;  %v1793_v9 = vmul.f32 0.2, %v1663_v44  ;;  %vm19668_vm3 = vnez %v19667_v22  ;;  %2291 = vst [vmem:[#allocation2 + $0x149] sm:$0xff] %v1987_v62  ;;  %v2333_v48 = vld [vmem:[#allocation2 + $0xc0] sm:$0xff] }
 0x154   : > { %19658 = vst [vmem:[#allocation33_spill] sm:$0xff] %v19657_v23  ;;  %v19665_v42 = vsel %vm17213_vm8, 4294967295, %v19664_v42  ;;  %v19671_v4 = vsel %vm19668_vm3, %v19669_v18, %v19670_v6  ;;  %v19672_v29 = vmov 0  ;;  %vm19675_vm14 = vnez %v19374_v50  ;;  %v2335_v18 = vld [vmem:[#allocation2 + $0xd0] sm:$0xff]  ;;  %v2334_v14 = vld [vmem:[#allocation2 + $0xc8] sm:$0xff]  ;;  %v19704_v10 = vld [vmem:[#allocation25_spill] sm:$0xff] }
 0x155   : > { %19666 = vst [vmem:[#allocation23_spill] sm:$0xff] %v19665_v42  ;;  %vm17226_vm10 = vcmp.lt.s32.totalorder %v19671_v4, 16  ;;  %v19677_v31 = vsel %vm19675_vm14, %v16562_v33, %v19676_v53  ;;  %v19678_v24 = vmov 0  ;;  %vm19681_vm6 = vcmp.ne.s32.totalorder %v16658_v38, 0  ;;  %v2337_v33 = vld [vmem:[#allocation2 + $0xe0] sm:$0xff]  ;;  %v2338_v4 = vld [vmem:[#allocation2 + $0xe8] sm:$0xff] }
 0x156   : > { %v19673_v29 = vsel %vm17226_vm10, 4294967295, %v19672_v29  ;;  %vm17235_vm2 = vcmp.lt.s32.totalorder %v19677_v31, 16  ;;  %vm19682_vm1 = vcmp.lt.s32.totalorder %v16658_v38, 0  ;;  %vm1748_vm3 = vcmp.ge.f32.partialorder %v1674_v58, 0.0  ;;  %v18182_v23 = vld [vmem:[%s18840_s6] ss:$0 sm:$0xff] }
 0x157   : > { %19674 = vst [vmem:[#allocation38_spill] sm:$0xff] %v19673_v29  ;;  %v19679_v24 = vsel %vm17235_vm2, 4294967295, %v19678_v24  ;;  %vm17243_vm12 = vmand %vm19682_vm1, %vm19681_vm6  ;;  %v1796_v50 = vmul.f32 0.2, %v1674_v58  ;;  %vm1746_vm9 = vcmp.ge.f32.partialorder %v1666_v19, 0.0  ;;  %vm1751_vm15 = vcmp.ge.f32.partialorder %v1687_v63, 0.0 }
 0x158   : > { %19680 = vst [vmem:[#allocation36_spill] sm:$0xff] %v19679_v24  ;;  %v17247_v27 = vpack.c.bf16 %v2332_v8, %v2331_v13  ;;  %v1841_v57 = vsel %vm1745_vm13, %v1663_v44, %v1793_v9  ;;  %v1794_v22 = vmul.f32 0.2, %v1666_v19  ;;  %v1799_v6 = vmul.f32 0.2, %v1687_v63 }
 0x159   : > { %v19063_v53 = vrot.slane %v16747_v43, 4  ;;  %v1985_v31 = vsel %vm17126_vm7, %v1841_v57, 0.0  ;;  %v1844_v62 = vsel %vm1748_vm3, %v1674_v58, %v1796_v50  ;;  %vm19686_vm1 = vnez %v19685_v40 }
 0x15a   : > { %v19689_v13 = vsel %vm19686_vm1, %v19687_v34, %v19688_v47  ;;  %v19690_v44 = vmov 0  ;;  %v1161_v9 = vsel %vm17243_vm12, %v16793_v35, %v16658_v38  ;;  %12746 = vmatmul.mubr.bf16.gmra.mrb[44].mxu0 %v17247_v27  ;;  %2289 = vst [vmem:[#allocation2 + $0x139] sm:$0xff] %v1985_v31  ;;  %v17266_v8 = vpack.c.bf16 %v2334_v14, %v2333_v48 }
 0x15b   : > { %vm17257_vm6 = vcmp.lt.s32.totalorder %v19689_v13, 16  ;;  %v1988_v40 = vsel %vm17139_vm4, %v1844_v62, 0.0  ;;  %v1842_v58 = vsel %vm1746_vm9, %v1666_v19, %v1794_v22  ;;  %v17272_v47 = vsel %vm1751_vm15, %v1687_v63, %v1799_v6 }
 0x15c   : > { %v19691_v44 = vsel %vm17257_vm6, 4294967295, %v19690_v44  ;;  %vm19073_vm13 = vcmask 1043456   ;;  %2292 = vst [vmem:[#allocation2 + $0x151] sm:$0xff] %v1988_v40  ;;  %v1986_v34 = vsel %vm17156_vm0, %v1842_v58, 0.0  ;;  %v17279_v38 = vsel %vm17165_vm11, %v17272_v47, 0.0  ;;  %12749 = vmatprep.mubr.bf16.mxu0 %v17266_v8 }
 0x15d   : > { %19692 = vst [vmem:[#allocation26_spill] sm:$0xff] %v19691_v44  ;;  %v1679_v35 = vadd.f32 %v16430_v46, %v17057_v59  ;;  %v1690_v14 = vadd.f32 %v17070_v54, %v16430_v46  ;;  %2290 = vst [vmem:[#allocation2 + $0x141] sm:$0xff] %v1986_v34  ;;  %v17286_v19 = vpack.c.bf16 %v2336_v60, %v2335_v18  ;;  %vm19693_vm1 = vnez %v19500_v61  ;;  %v15065_v40 = vld [vmem:[%s18836_s2] ss:$0 sm:$0xff] }
 0x15e   : > { %2295 = vst [vmem:[#allocation2 + $0x169] sm:$0xff] %v17279_v38  ;;  %v17289_v63 = vpack.c.bf16 %v2338_v4, %v2337_v33  ;;  %v1682_v36 = vadd.f32 %v16430_v46, %v17087_v5  ;;  %v1703_v50 = vadd.f32 %v17143_v20, %v16430_v46  ;;  %v1695_v33 = vadd.f32 %v16430_v46, %v17169_v37 }
 0x15f   : > { %vm1749_vm12 = vcmp.ge.f32.partialorder %v1679_v35, 0.0  ;;  %v1797_v59 = vmul.f32 0.2, %v1679_v35  ;;  %vm1752_vm15 = vcmp.ge.f32.partialorder %v1690_v14, 0.0  ;;  %v1800_v57 = vmul.f32 0.2, %v1690_v14 }
 0x160   : > { %vm1750_vm9 = vcmp.ge.f32.partialorder %v1682_v36, 0.0  ;;  %v1798_v54 = vmul.f32 0.2, %v1682_v36  ;;  %vm1755_vm14 = vcmp.ge.f32.partialorder %v1703_v50, 0.0  ;;  %v1803_v22 = vmul.f32 0.2, %v1703_v50 }
 0x161   : > { %v17295_v60 = vsel %vm1749_vm12, %v1679_v35, %v1797_v59  ;;  %v17297_v18 = vsel %vm1752_vm15, %v1690_v14, %v1800_v57  ;;  %v1706_v5 = vadd.f32 %v17179_v28, %v16430_v46  ;;  %vm1753_vm3 = vcmp.ge.f32.partialorder %v1695_v33, 0.0  ;;  %v2342_v59 = vld [vmem:[#allocation2 + $0x108] sm:$0xff] }
 0x162   : > { %v17306_v20 = vsel %vm17204_vm5, %v17295_v60, 0.0  ;;  %v17311_v6 = vsel %vm17213_vm8, %v17297_v18, 0.0  ;;  %v17313_v4 = vsel %vm1750_vm9, %v1682_v36, %v1798_v54  ;;  %v1851_v31 = vsel %vm1755_vm14, %v1703_v50, %v1803_v22  ;;  %12750 = vmatmul.mubr.bf16.gmra.mrb[48].mxu0 %v17286_v19  ;;  %v2340_v36 = vld [vmem:[#allocation2 + $0xf8] sm:$0xff]  ;;  %v2341_v50 = vld [vmem:[#allocation2 + $0x100] sm:$0xff] }
 0x163   : > { %2293 = vst [vmem:[#allocation2 + $0x159] sm:$0xff] %v17306_v20  ;;  %2296 = vst [vmem:[#allocation2 + $0x171] sm:$0xff] %v17311_v6  ;;  %v17320_v46 = vsel %vm17226_vm10, %v17313_v4, 0.0  ;;  %v1995_v37 = vsel %vm17235_vm2, %v1851_v31, 0.0  ;;  %v1801_v28 = vmul.f32 0.2, %v1695_v33  ;;  %v19694_v48 = vsel %vm19693_vm1, %v16665_v16, %v16613_v15  ;;  %12753 = vmatprep.mubr.bf16.mxu0 %v17289_v63 }
 0x164   : > { %2294 = vst [vmem:[#allocation2 + $0x161] sm:$0xff] %v17320_v46  ;;  %2299 = vst [vmem:[#allocation2 + $0x189] sm:$0xff] %v1995_v37  ;;  %vm17331_vm12 = vcmp.lt.s32.totalorder %v19694_v48, 16  ;;  %v19695_v62 = vmov 0  ;;  %vm1756_vm15 = vcmp.ge.f32.partialorder %v1706_v5, 0.0  ;;  %v1698_v58 = vadd.f32 %v15065_v40, %v17193_v0  ;;  %v2339_v0 = vld [vmem:[#allocation2 + $0xf0] sm:$0xff] }
 0x165   : > { %v19696_v62 = vsel %vm17331_vm12, 4294967295, %v19695_v62  ;;  %v1804_v13 = vmul.f32 0.2, %v1706_v5  ;;  %v17340_v34 = vsel %vm1753_vm3, %v1695_v33, %v1801_v28  ;;  %vm17342_vm9 = vcmp.lt.s32.totalorder %v1161_v9, 16  ;;  %v2344_v31 = vld [vmem:[#allocation2 + $0x118] sm:$0xff]  ;;  %v2345_v37 = vld [vmem:[#allocation2 + $0x120] sm:$0xff] }
 0x166   : > { %19697 = vst [vmem:[#allocation46_spill] sm:$0xff] %v19696_v62  ;;  %v19698_v61 = vmov 0  ;;  %v2770_v15 = vrot.slane %v16729_v49, 4  ;;  %v17350_v16 = vsel %vm17257_vm6, %v17340_v34, 0.0  ;;  %vm1754_vm14 = vcmp.ge.f32.partialorder %v1698_v58, 0.0  ;;  %v2346_v28 = vld [vmem:[#allocation2 + $0x128] sm:$0xff] }
 0x167   : > { %v19699_v61 = vsel %vm17342_vm9, 4294967295, %v19698_v61  ;;  %v17352_v35 = vsel %vm1756_vm15, %v1706_v5, %v1804_v13  ;;  %v1802_v14 = vmul.f32 0.2, %v1698_v58  ;;  %2297 = vst [vmem:[#allocation2 + $0x179] sm:$0xff] %v17350_v16  ;;  %v17371_v22 = vpack.c.bf16 %v2340_v36, %v2339_v0  ;;  %v2343_v5 = vld [vmem:[#allocation2 + $0x110] sm:$0xff]  ;;  %v19701_v36 = vld [vmem:[#allocation74_spill] sm:$0xff]  ;;  %vm15094_vm15 = vmpackc.low %vm17165_vm11, %vm17226_vm10 }
 0x168   : > { %19700 = vst [vmem:[#allocation40_spill] sm:$0xff] %v19699_v61  ;;  %v17358_v9 = vsel %vm17331_vm12, %v17352_v35, 0.0  ;;  %v2772_v49 = vsel %vm19073_vm13, %v2770_v15, %v19063_v53  ;;  %v17374_v33 = vpack.c.bf16 %v2342_v59, %v2341_v50  ;;  %v17378_v48 = vpack.c.bf16 %v2344_v31, %v2343_v5  ;;  %v2347_v40 = vld [vmem:[#allocation2 + $0x130] sm:$0xff]  ;;  %v2349_v15 = vld [vmem:[#allocation2 + $0x140] sm:$0xff] }
 0x169   : > { %2300 = vst [vmem:[#allocation2 + $0x191] sm:$0xff] %v17358_v9  ;;  %v17364_v57 = vsel %vm1754_vm14, %v1698_v58, %v1802_v14  ;;  %v17380_v13 = vpack.c.bf16 %v2346_v28, %v2345_v37  ;;  %v2348_v58 = vld [vmem:[#allocation2 + $0x138] sm:$0xff]  ;;  %v2350_v14 = vld [vmem:[#allocation2 + $0x148] sm:$0xff]  ;;  %v2351_v5 = vld [vmem:[#allocation2 + $0x150] sm:$0xff]  ;;  %v2775_v24 = vrot.slane %v19701_v36, 4  ;;  %v2779_v12 = vrot.slane %v19704_v10, 4 }
 0x16a   : > { %v17369_v54 = vsel %vm17342_vm9, %v17364_v57, 0.0  ;;  %12754 = vmatmul.mubr.bf16.gmra.mrb[52].mxu0 %v17371_v22  ;;  %v17384_v0 = vpack.c.bf16 %v2348_v58, %v2347_v40  ;;  %v17390_v59 = vpack.c.bf16 %v2350_v14, %v2349_v15  ;;  %v2352_v31 = vld [vmem:[#allocation2 + $0x158] sm:$0xff]  ;;  %v2355_v58 = vld [vmem:[#allocation2 + $0x170] sm:$0xff]  ;;  %v2773_v14 = vrot.slane %v16845_v7, 4  ;;  %vm15097_vm14 = vmpackc.low %vm17257_vm6, %vm17213_vm8 }
 0x16b   : > { %2298 = vst [vmem:[#allocation2 + $0x181] sm:$0xff] %v17369_v54  ;;  %12757 = vmatprep.mubr.bf16.mxu0 %v17374_v33  ;;  %v2353_v37 = vld [vmem:[#allocation2 + $0x160] sm:$0xff]  ;;  %v2354_v28 = vld [vmem:[#allocation2 + $0x168] sm:$0xff]  ;;  %v17394_v53 = vpack.c.bf16 %v2352_v31, %v2351_v5  ;;  %v19702_v31 = vrot.slane %v16747_v43, 4  ;;  %v14879_v43 = vld [vmem:[%s18837_s3 + $0x198] sm:$0xff]   ;;  %v2797_v41 = vrot.slane %v17371_v22, 4 }
 0x16c   : > { %v17396_v40 = vpack.c.bf16 %v2354_v28, %v2353_v37  ;;  %v14877_v5 = vld [vmem:[%s18837_s3 + $0x188] sm:$0xff]   ;;  %v2776_v28 = vsel %vm19073_vm13, %v2773_v14, %v2775_v24  ;;  %vm15125_vm3 = vmmov 1  }
 0x16d   : > { %v2774_v37 = vsel %vm19073_vm13, %v19702_v31, %v2773_v14  ;;  %v14880_v31 = vld [vmem:[%s18837_s3 + $0x1a0] sm:$0xff]   ;;  %vm17613_vm1 = vmpackc.low %vm17204_vm5, %vm15125_vm3 }
 0x16e   : > { %v2356_v50 = vld [vmem:[#allocation2 + $0x178] sm:$0xff] }
 0x16f   : > { %v17400_v15 = vpack.c.bf16 %v2356_v50, %v2355_v58  ;;  %v19703_v50 = vld [vmem:[#allocation64_spill] sm:$0xff] }
 0x170   : > { %v2777_v58 = vrot.slane %v19703_v50, 4  ;;  %v2360_v39 = vld [vmem:[#allocation2 + $0x198] sm:$0xff] }
 0x171   : > { %v2813_v11 = vrot.slane %v17400_v15, 4 }
 0x172   : > { %12758 = vmatmul.mubr.bf16.gmra.mrb[56].mxu0 %v17378_v48  ;;  %v2778_v14 = vsel %vm19073_vm13, %v2775_v24, %v2777_v58  ;;  %v14881_v24 = vld [vmem:[%s18837_s3 + $0x1a8] sm:$0xff]   ;;  %v2357_v2 = vld [vmem:[#allocation2 + $0x180] sm:$0xff] }
 0x173   : > { %12761 = vmatprep.mubr.bf16.mxu0 %v17380_v13 }
 0x17a   : > { %12762 = vmatmul.mubr.bf16.gmra.mrb[60].mxu0 %v17384_v0 }
 0x17b   : > { %12765 = vmatprep.mubr.bf16.mxu0 %v17390_v59 }
 0x182   : > { %12766 = vmatmul.mubr.bf16.gmra.mrb[64].mxu0 %v17394_v53 }
 0x183   : > { %12769 = vmatprep.mubr.bf16.mxu0 %v17396_v40 }
 0x18a   : > { %12770 = vmatmul.mubr.bf16.gmra.mrb[68].mxu0 %v17400_v15 }
 0x18b   : > { %12789 = vmatprep.mubr.bf16.mxu0 %v2772_v49  ;;  %v14878_v49 = vld [vmem:[%s18837_s3 + $0x190] sm:$0xff]  }
 0x192   : > { %12790 = vmatmul.mubr.bf16.vlgmr.msra.gmra.mrb[24].mxu0 %v2774_v37  ;;  %v2781_v37 = vrot.slane %v17053_v1, 4 }
 0x193   : > { %12838 = vmatpush3.bf16.msra.mxu0 %v17115_v17  ;;  %12793 = vmatprep.mubr.bf16.mxu0 %v2776_v28  ;;  %v2780_v17 = vsel %vm19073_vm13, %v2777_v58, %v2779_v12  ;;  %v14882_v58 = vld [vmem:[%s18837_s3 + $0x1b0] sm:$0xff]  }
 0x194   : > { %12839 = vmatprep.subr.bf16.mxu0 %v14877_v5  ;;  %v2782_v28 = vsel %vm19073_vm13, %v2779_v12, %v2781_v37  ;;  %v14883_v12 = vld [vmem:[%s18837_s3 + $0x1b8] sm:$0xff]  }
 0x197   : > { %12840 = vmatpush3.bf16.msra.mxu0 %v14877_v5  ;;  %v2783_v5 = vrot.slane %v17074_v45, 4 }
 0x198   : > { %12841 = vmatprep.subr.bf16.mxu0 %v14878_v49 }
 0x19a   : > { %12794 = vmatmul.mubr.bf16.gmra.mrb[28].mxu0 %v2778_v14  ;;  %v2785_v14 = vrot.slane %v17147_v21, 4 }
 0x19b   : > { %12797 = vmatprep.mubr.bf16.mxu0 %v2780_v17  ;;  %12842 = vmatpush3.bf16.msra.mxu0 %v14878_v49  ;;  %v2784_v49 = vsel %vm19073_vm13, %v2781_v37, %v2783_v5  ;;  %v14884_v37 = vld [vmem:[%s18837_s3 + $0x40] sm:$0xff]  }
 0x19c   : > { %12843 = vmatprep.subr.bf16.mxu0 %v14879_v43  ;;  %v2786_v17 = vsel %vm19073_vm13, %v2783_v5, %v2785_v14 }
 0x19f   : > { %12844 = vmatpush3.bf16.msra.mxu0 %v14879_v43  ;;  %v2787_v43 = vrot.slane %v17184_v51, 4 }
 0x1a0   : > { %12845 = vmatprep.subr.bf16.mxu0 %v14880_v31 }
 0x1a2   : > { %12798 = vmatmul.mubr.bf16.gmra.mrb[32].mxu0 %v2782_v28  ;;  %v2789_v28 = vrot.slane %v17247_v27, 4 }
 0x1a3   : > { %12801 = vmatprep.mubr.bf16.mxu0 %v2784_v49  ;;  %12846 = vmatpush3.bf16.msra.mxu0 %v14880_v31  ;;  %v2788_v31 = vsel %vm19073_vm13, %v2785_v14, %v2787_v43  ;;  %v2793_v14 = vrot.slane %v17286_v19, 4 }
 0x1a4   : > { %12847 = vmatprep.subr.bf16.mxu0 %v14881_v24  ;;  %v2790_v49 = vsel %vm19073_vm13, %v2787_v43, %v2789_v28 }
 0x1a7   : > { %12848 = vmatpush3.bf16.msra.mxu0 %v14881_v24  ;;  %v2791_v24 = vrot.slane %v17266_v8, 4 }
 0x1a8   : > { %12849 = vmatprep.subr.bf16.mxu0 %v14882_v58 }
 0x1a9   : > { %v2792_v5 = vsel %vm19073_vm13, %v2789_v28, %v2791_v24 }
 0x1aa   : > { %12802 = vmatmul.mubr.bf16.gmra.mrb[36].mxu0 %v2786_v17  ;;  %v2794_v17 = vsel %vm19073_vm13, %v2791_v24, %v2793_v14 }
 0x1ab   : > { %12805 = vmatprep.mubr.bf16.mxu0 %v2788_v31  ;;  %12850 = vmatpush3.bf16.msra.mxu0 %v14882_v58  ;;  %v2795_v58 = vrot.slane %v17289_v63, 4 }
 0x1ac   : > { %12851 = vmatprep.subr.bf16.mxu0 %v14883_v12 }
 0x1ad   : > { %v2796_v31 = vsel %vm19073_vm13, %v2793_v14, %v2795_v58  ;;  %v2798_v43 = vsel %vm19073_vm13, %v2795_v58, %v2797_v41 }
 0x1af   : > { %12852 = vmatpush3.bf16.msra.mxu0 %v14883_v12  ;;  %v2799_v12 = vrot.slane %v17374_v33, 4 }
 0x1b0   : > { %12901 = vmatprep.subr.bf16.mxu0 %v14884_v37 }
 0x1b1   : > { %v2800_v28 = vsel %vm19073_vm13, %v2797_v41, %v2799_v12 }
 0x1b2   : > { %12806 = vmatmul.mubr.bf16.gmra.mrb[40].mxu0 %v2790_v49  ;;  %v2801_v49 = vrot.slane %v17378_v48, 4 }
 0x1b3   : > { %12809 = vmatprep.mubr.bf16.mxu0 %v2792_v5  ;;  %v2803_v5 = vrot.slane %v17380_v13, 4 }
 0x1b4   : > { %v2802_v24 = vsel %vm19073_vm13, %v2799_v12, %v2801_v49  ;;  %v2358_v12 = vld [vmem:[#allocation2 + $0x188] sm:$0xff] }
 0x1b5   : > { %v2804_v14 = vsel %vm19073_vm13, %v2801_v49, %v2803_v5 }
 0x1ba   : > { %12810 = vmatmul.mubr.bf16.gmra.mrb[44].mxu0 %v2794_v17  ;;  %v2805_v17 = vrot.slane %v17384_v0, 4 }
 0x1bb   : > { %12813 = vmatprep.mubr.bf16.mxu0 %v2796_v31  ;;  %v2807_v31 = vrot.slane %v17390_v59, 4 }
 0x1bc   : > { %v2806_v58 = vsel %vm19073_vm13, %v2803_v5, %v2805_v17 }
 0x1bd   : > { %v2808_v41 = vsel %vm19073_vm13, %v2805_v17, %v2807_v31 }
 0x1c2   : > { %12814 = vmatmul.mubr.bf16.gmra.mrb[48].mxu0 %v2798_v43  ;;  %v2809_v43 = vrot.slane %v17394_v53, 4 }
 0x1c3   : > { %12817 = vmatprep.mubr.bf16.mxu0 %v2800_v28  ;;  %v2811_v28 = vrot.slane %v17396_v40, 4 }
 0x1c5   : > { %v2812_v49 = vsel %vm19073_vm13, %v2809_v43, %v2811_v28  ;;  %v2814_v17 = vsel %vm19073_vm13, %v2811_v28, %v2813_v11  ;;  %v14896_v28 = vld [vmem:[%s18837_s3 + $0x120] sm:$0xff]  }
 0x1ca   : > { %12818 = vmatmul.mubr.bf16.gmra.mrb[52].mxu0 %v2802_v24  ;;  %v2810_v24 = vsel %vm19073_vm13, %v2807_v31, %v2809_v43 }
 0x1cb   : > { %12821 = vmatprep.mubr.bf16.mxu0 %v2804_v14  ;;  %v2387_v14 = vpack.c.bf16 %v2358_v12, %v2357_v2  ;;  %v14885_v2 = vld [vmem:[%s18837_s3 + $0x48] sm:$0xff]   ;;  %v3513_v12 = vld [vmem:[#allocation2 + $0x59] sm:$0xff] }
 0x1cd   : > { %v2815_v5 = vrot.slane %v2387_v14, 4 }
 0x1cf   : > { %v2816_v26 = vsel %vm19073_vm13, %v2813_v11, %v2815_v5  ;;  %v14886_v11 = vld [vmem:[%s18837_s3 + $0x50] sm:$0xff]  }
 0x1d2   : > { %12822 = vmatmul.mubr.bf16.gmra.mrb[56].mxu0 %v2806_v58  ;;  %v2359_v58 = vld [vmem:[#allocation2 + $0x190] sm:$0xff] }
 0x1d3   : > { %12825 = vmatprep.mubr.bf16.mxu0 %v2808_v41  ;;  %v2388_v41 = vpack.c.bf16 %v2360_v39, %v2359_v58  ;;  %v14890_v39 = vld [vmem:[%s18837_s3 + $0x70] sm:$0xff]   ;;  %v14897_v58 = vld [vmem:[%s18837_s3 + $0x128] sm:$0xff]  }
 0x1d5   : > { %v2817_v25 = vrot.slane %v2388_v41, 4 }
 0x1d7   : > { %v2818_v31 = vsel %vm19073_vm13, %v2815_v5, %v2817_v25  ;;  %v14888_v25 = vld [vmem:[%s18837_s3 + $0x60] sm:$0xff]   ;;  %v3515_v5 = vld [vmem:[#allocation2 + $0x69] sm:$0xff] }
 0x1da   : > { %12826 = vmatmul.mubr.bf16.gmra.mrb[60].mxu0 %v2810_v24  ;;  %v3514_v24 = vld [vmem:[#allocation2 + $0x61] sm:$0xff] }
 0x1db   : > { %12829 = vmatprep.mubr.bf16.mxu0 %v2812_v49  ;;  %v3512_v49 = vld [vmem:[#allocation2 + $0x51] sm:$0xff] }
 0x1e2   : > { %12830 = vmatmul.mubr.bf16.gmra.mrb[64].mxu0 %v2814_v17  ;;  %v17548_v17 = vpack.c.bf16 %v3515_v5, %v3514_v24  ;;  %v3533_v24 = vld [vmem:[#allocation2 + $0xf9] sm:$0xff]  ;;  %v3535_v5 = vld [vmem:[#allocation2 + $0x109] sm:$0xff] }
 0x1e3   : > { %12833 = vmatprep.mubr.bf16.mxu0 %v2816_v26  ;;  %v14889_v26 = vld [vmem:[%s18837_s3 + $0x68] sm:$0xff]  }
 0x1ea   : > { %12834 = vmatmul.mubr.bf16.gmra.mrb[68].mxu0 %v2818_v31  ;;  %v3517_v31 = vld [vmem:[#allocation2 + $0x79] sm:$0xff] }
 0x1eb   : > { %12853 = vmatprep.mubr.bf16.mxu0 %v16845_v7  ;;  %v14887_v7 = vld [vmem:[%s18837_s3 + $0x58] sm:$0xff]  }
 0x1f2   : > { %12854 = vmatmul.mubr.bf16.vlgmr.msra.gmra.mrb[24].mxu0 %v19701_v36  ;;  %v3509_v36 = vld [vmem:[#allocation2 + $0x39] sm:$0xff] }
 0x1f3   : > { %12902 = vmatpush3.bf16.msra.mxu0 %v14884_v37  ;;  %12857 = vmatprep.mubr.bf16.mxu0 %v19703_v50  ;;  %v3511_v50 = vld [vmem:[#allocation2 + $0x49] sm:$0xff]  ;;  %v14895_v37 = vld [vmem:[%s18837_s3 + $0x118] sm:$0xff]  }
 0x1f4   : > { %12903 = vmatprep.subr.bf16.mxu0 %v14885_v2 }
 0x1f7   : > { %12904 = vmatpush3.bf16.msra.mxu0 %v14885_v2  ;;  %v3518_v2 = vld [vmem:[#allocation2 + $0x81] sm:$0xff] }
 0x1f8   : > { %12905 = vmatprep.subr.bf16.mxu0 %v14886_v11 }
 0x1fa   : > { %12858 = vmatmul.mubr.bf16.gmra.mrb[28].mxu0 %v19704_v10  ;;  %v3503_v10 = vld [vmem:[#allocation2 + $0x9] sm:$0xff] }
 0x1fb   : > { %12861 = vmatprep.mubr.bf16.mxu0 %v17053_v1  ;;  %12906 = vmatpush3.bf16.msra.mxu0 %v14886_v11  ;;  %v14891_v1 = vld [vmem:[%s18837_s3 + $0x78] sm:$0xff]  }
 0x1fc   : > { %12907 = vmatprep.subr.bf16.mxu0 %v14887_v7  ;;  %v3516_v11 = vld [vmem:[#allocation2 + $0x71] sm:$0xff] }
 0x1ff   : > { %12908 = vmatpush3.bf16.msra.mxu0 %v14887_v7  ;;  %v17555_v7 = vpack.c.bf16 %v3517_v31, %v3516_v11  ;;  %v3536_v31 = vld [vmem:[#allocation2 + $0x111] sm:$0xff]  ;;  %v3538_v11 = vld [vmem:[#allocation2 + $0x121] sm:$0xff] }
 0x200   : > { %12909 = vmatprep.subr.bf16.mxu0 %v14888_v25 }
 0x202   : > { %12862 = vmatmul.mubr.bf16.gmra.mrb[32].mxu0 %v17074_v45  ;;  %v14892_v45 = vld [vmem:[%s18837_s3 + $0x100] sm:$0xff]  }
 0x203   : > { %12865 = vmatprep.mubr.bf16.mxu0 %v17147_v21  ;;  %12910 = vmatpush3.bf16.msra.mxu0 %v14888_v25  ;;  %v3502_v21 = vld [vmem:[#allocation2 + $0x1] sm:$0xff]  ;;  %v3519_v25 = vld [vmem:[#allocation2 + $0x89] sm:$0xff] }
 0x204   : > { %12911 = vmatprep.subr.bf16.mxu0 %v14889_v26 }
 0x207   : > { %12912 = vmatpush3.bf16.msra.mxu0 %v14889_v26  ;;  %v14899_v26 = vld [vmem:[%s18837_s3 + $0x138] sm:$0xff]  }
 0x208   : > { %12913 = vmatprep.subr.bf16.mxu0 %v14890_v39 }
 0x20a   : > { %12866 = vmatmul.mubr.bf16.gmra.mrb[36].mxu0 %v17184_v51  ;;  %v15066_v51 = vld [vmem:[#allocation3 + $0x1d0] sm:$0xff] }
 0x20b   : > { %12869 = vmatprep.mubr.bf16.mxu0 %v17247_v27  ;;  %12914 = vmatpush3.bf16.msra.mxu0 %v14890_v39  ;;  %v2389_v27 = vpack.c.bf16 %v15066_v51, %v15066_v51  ;;  %v17560_v39 = vpack.c.bf16 %v3519_v25, %v3518_v2  ;;  %v3537_v2 = vld [vmem:[#allocation2 + $0x119] sm:$0xff]  ;;  %v3539_v25 = vld [vmem:[#allocation2 + $0x129] sm:$0xff] }
 0x20c   : > { %12915 = vmatprep.subr.bf16.mxu0 %v14891_v1 }
 0x20f   : > { %12916 = vmatpush3.bf16.msra.mxu0 %v14891_v1  ;;  %v17567_v1 = vld [vmem:[%s18837_s3 + $0x1c0] sm:$0xff]  }
 0x210   : > { %12965 = vmatprep.subr.bf16.mxu0 %v14892_v45 }
 0x212   : > { %12870 = vmatmul.mubr.bf16.gmra.mrb[40].mxu0 %v17266_v8  ;;  %v3556_v8 = vpack.c.bf16 %v3503_v10, %v3502_v21  ;;  %v3522_v21 = vld [vmem:[#allocation2 + $0xa1] sm:$0xff]  ;;  %v3520_v10 = vld [vmem:[#allocation2 + $0x91] sm:$0xff] }
 0x213   : > { %12873 = vmatprep.mubr.bf16.mxu0 %v17286_v19  ;;  %v3504_v19 = vld [vmem:[#allocation2 + $0x11] sm:$0xff] }
 0x21a   : > { %12874 = vmatmul.mubr.bf16.gmra.mrb[44].mxu0 %v17289_v63  ;;  %v3505_v63 = vld [vmem:[#allocation2 + $0x19] sm:$0xff] }
 0x21b   : > { %12877 = vmatprep.mubr.bf16.mxu0 %v17371_v22  ;;  %v3506_v22 = vld [vmem:[#allocation2 + $0x21] sm:$0xff] }
 0x222   : > { %12878 = vmatmul.mubr.bf16.gmra.mrb[48].mxu0 %v17374_v33  ;;  %v17519_v33 = vpack.c.bf16 %v3505_v63, %v3504_v19  ;;  %v3525_v19 = vld [vmem:[#allocation2 + $0xb9] sm:$0xff]  ;;  %v3526_v63 = vld [vmem:[#allocation2 + $0xc1] sm:$0xff] }
 0x223   : > { %12881 = vmatprep.mubr.bf16.mxu0 %v17378_v48  ;;  %v3507_v48 = vld [vmem:[#allocation2 + $0x29] sm:$0xff] }
 0x22a   : > { %12882 = vmatmul.mubr.bf16.gmra.mrb[52].mxu0 %v17380_v13  ;;  %v17524_v13 = vpack.c.bf16 %v3507_v48, %v3506_v22  ;;  %v3524_v22 = vld [vmem:[#allocation2 + $0xb1] sm:$0xff] }
 0x22b   : > { %12885 = vmatprep.mubr.bf16.mxu0 %v17384_v0  ;;  %v14894_v0 = vld [vmem:[%s18837_s3 + $0x110] sm:$0xff]   ;;  %v17576_v48 = vpack.c.bf16 %v3525_v19, %v3524_v22 }
 0x22c   : > { %v3543_v19 = vld [vmem:[#allocation2 + $0x149] sm:$0xff] }
 0x232   : > { %12886 = vmatmul.mubr.bf16.gmra.mrb[56].mxu0 %v17390_v59  ;;  %v3510_v59 = vld [vmem:[#allocation2 + $0x41] sm:$0xff] }
 0x233   : > { %12889 = vmatprep.mubr.bf16.mxu0 %v17394_v53  ;;  %v14893_v53 = vld [vmem:[%s18837_s3 + $0x108] sm:$0xff]   ;;  %v17536_v43 = vpack.c.bf16 %v3511_v50, %v3510_v59  ;;  %v3529_v59 = vld [vmem:[#allocation2 + $0xd9] sm:$0xff] }
 0x234   : > { %v3531_v50 = vld [vmem:[#allocation2 + $0xe9] sm:$0xff] }
 0x23a   : > { %12890 = vmatmul.mubr.bf16.gmra.mrb[60].mxu0 %v17396_v40  ;;  %v3508_v40 = vld [vmem:[#allocation2 + $0x31] sm:$0xff] }
 0x23b   : > { %12893 = vmatprep.mubr.bf16.mxu0 %v17400_v15  ;;  %v17531_v15 = vpack.c.bf16 %v3509_v36, %v3508_v40  ;;  %v3528_v36 = vld [vmem:[#allocation2 + $0xd1] sm:$0xff]  ;;  %v3530_v40 = vld [vmem:[#allocation2 + $0xe1] sm:$0xff] }
 0x242   : > { %12894 = vmatmul.mubr.bf16.gmra.mrb[64].mxu0 %v2387_v14  ;;  %v17543_v14 = vpack.c.bf16 %v3513_v12, %v3512_v49  ;;  %v3532_v12 = vld [vmem:[#allocation2 + $0xf1] sm:$0xff]  ;;  %v3534_v49 = vld [vmem:[#allocation2 + $0x101] sm:$0xff] }
 0x243   : > { %12897 = vmatprep.mubr.bf16.mxu0 %v2388_v41  ;;  %v14898_v41 = vld [vmem:[%s18837_s3 + $0x130] sm:$0xff]  }
 0x24a   : > { %12898 = vmatmul.mubr.bf16.gmra.mrb[68].mxu0 %v2389_v27  ;;  %v3523_v27 = vld [vmem:[#allocation2 + $0xa9] sm:$0xff] }
 0x24b   : > { %12917 = vmatprep.mubr.bf16.mxu0 %v3556_v8  ;;  %v17572_v8 = vpack.c.bf16 %v3523_v27, %v3522_v21  ;;  %v3540_v21 = vld [vmem:[#allocation2 + $0x131] sm:$0xff]  ;;  %v3542_v27 = vld [vmem:[#allocation2 + $0x141] sm:$0xff] }
 0x24c   : > { %v17602_v22 = vpack.c.bf16 %v3543_v19, %v3542_v27  ;;  %v14905_v27 = vld [vmem:[%s18837_s3 + $0x1e8] sm:$0xff]  }
 0x252   : > { %12918 = vmatmul.mubr.bf16.vlgmr.msra.gmra.mrb[24].mxu0 %v17519_v33 }
 0x253   : > { %12966 = vmatpush3.bf16.msra.mxu0 %v14892_v45  ;;  %12921 = vmatprep.mubr.bf16.mxu0 %v17524_v13  ;;  %v3521_v45 = vld [vmem:[#allocation2 + $0x99] sm:$0xff] }
 0x254   : > { %12967 = vmatprep.subr.bf16.mxu0 %v14893_v53  ;;  %v17569_v51 = vpack.c.bf16 %v3521_v45, %v3520_v10  ;;  %v17596_v45 = vpack.c.bf16 %v3539_v25, %v3538_v11  ;;  %v3541_v10 = vld [vmem:[#allocation2 + $0x139] sm:$0xff] }
 0x255   : > { %v14904_v25 = vld [vmem:[%s18837_s3 + $0x1e0] sm:$0xff]  }
 0x257   : > { %12968 = vmatpush3.bf16.msra.mxu0 %v14893_v53  ;;  %v3527_v53 = vld [vmem:[#allocation2 + $0xc9] sm:$0xff] }
 0x258   : > { %12969 = vmatprep.subr.bf16.mxu0 %v14894_v0 }
 0x25a   : > { %12922 = vmatmul.mubr.bf16.gmra.mrb[28].mxu0 %v17531_v15 }
 0x25b   : > { %12925 = vmatprep.mubr.bf16.mxu0 %v17536_v43  ;;  %12970 = vmatpush3.bf16.msra.mxu0 %v14894_v0  ;;  %v17578_v0 = vpack.c.bf16 %v3527_v53, %v3526_v63  ;;  %v17600_v63 = vpack.c.bf16 %v3541_v10, %v3540_v21  ;;  %v17606_v53 = vld [vmem:[#allocation2 + $0x151] sm:$0xff]  ;;  %v3974_v21 = vrot.slane %v17555_v7, 4  ;;  %v3976_v10 = vrot.slane %v17560_v39, 4 }
 0x25c   : > { %12971 = vmatprep.subr.bf16.mxu0 %v14895_v37 }
 0x25f   : > { %12972 = vmatpush3.bf16.msra.mxu0 %v14895_v37  ;;  %v17582_v37 = vpack.c.bf16 %v3529_v59, %v3528_v36  ;;  %v3577_v36 = vpack.c.bf16 %v17306_v20, %v17606_v53  ;;  %v4702_v59 = vld [vmem:[#allocation2 + $0x3a] sm:$0xff] }
 0x260   : > { %12973 = vmatprep.subr.bf16.mxu0 %v14896_v28 }
 0x262   : > { %12926 = vmatmul.mubr.bf16.gmra.mrb[32].mxu0 %v17543_v14 }
 0x263   : > { %12929 = vmatprep.mubr.bf16.mxu0 %v17548_v17  ;;  %12974 = vmatpush3.bf16.msra.mxu0 %v14896_v28  ;;  %v17584_v28 = vpack.c.bf16 %v3531_v50, %v3530_v40  ;;  %v17619_v40 = vpack.c.bf16 %v17295_v60, %v17606_v53  ;;  %v17630_v50 = vpack.c.bf16 %v17272_v47, %v17313_v4  ;;  %v3964_v60 = vrot.slane %v17524_v13, 4 }
 0x264   : > { %12975 = vmatprep.subr.bf16.mxu0 %v14897_v58  ;;  %v17646_v47 = vpack.c.bf16 %v17340_v34, %v17297_v18  ;;  %v3968_v13 = vrot.slane %v17536_v43, 4 }
 0x267   : > { %12976 = vmatpush3.bf16.msra.mxu0 %v14897_v58  ;;  %v17588_v58 = vpack.c.bf16 %v3533_v24, %v3532_v12  ;;  %v3963_v12 = vrot.slane %v17519_v33, 4  ;;  %v3966_v33 = vrot.slane %v17531_v15, 4  ;;  %v14901_v24 = vld [vmem:[%s18837_s3 + $0x1c8] sm:$0xff]  }
 0x268   : > { %12977 = vmatprep.subr.bf16.mxu0 %v14898_v41 }
 0x269   : > { %v3965_v4 = vsel %vm19073_vm13, %v3963_v12, %v3964_v60  ;;  %v3967_v18 = vsel %vm19073_vm13, %v3964_v60, %v3966_v33  ;;  %v3969_v34 = vsel %vm19073_vm13, %v3966_v33, %v3968_v13  ;;  %v3977_v60 = vsel %vm19073_vm13, %v3974_v21, %v3976_v10  ;;  %v14906_v12 = vld [vmem:[%s18837_s3 + $0x1f0] sm:$0xff]  }
 0x26a   : > { %12930 = vmatmul.mubr.bf16.gmra.mrb[36].mxu0 %v17555_v7  ;;  %v3980_v33 = vrot.slane %v17572_v8, 4 }
 0x26b   : > { %12933 = vmatprep.mubr.bf16.mxu0 %v17560_v39  ;;  %12978 = vmatpush3.bf16.msra.mxu0 %v14898_v41  ;;  %v17590_v41 = vpack.c.bf16 %v3535_v5, %v3534_v49  ;;  %v14902_v49 = vld [vmem:[%s18837_s3 + $0x1d0] sm:$0xff]   ;;  %v3970_v5 = vrot.slane %v17543_v14, 4 }
 0x26c   : > { %12979 = vmatprep.subr.bf16.mxu0 %v14899_v26 }
 0x26d   : > { %v3971_v11 = vsel %vm19073_vm13, %v3968_v13, %v3970_v5  ;;  %v14907_v13 = vld [vmem:[%s18837_s3 + $0x1f8] sm:$0xff]  }
 0x26f   : > { %12980 = vmatpush3.bf16.msra.mxu0 %v14899_v26  ;;  %v17594_v26 = vpack.c.bf16 %v3537_v2, %v3536_v31  ;;  %v3972_v31 = vrot.slane %v17548_v17, 4  ;;  %v14903_v2 = vld [vmem:[%s18837_s3 + $0x1d8] sm:$0xff]  }
 0x270   : > { %13029 = vmatprep.subr.bf16.mxu0 %v17567_v1 }
 0x271   : > { %v3975_v19 = vsel %vm19073_vm13, %v3972_v31, %v3974_v21 }
 0x272   : > { %12934 = vmatmul.mubr.bf16.gmra.mrb[40].mxu0 %v17569_v51 }
 0x273   : > { %12937 = vmatprep.mubr.bf16.mxu0 %v17572_v8 }
 0x27a   : > { %12938 = vmatmul.mubr.bf16.gmra.mrb[44].mxu0 %v17576_v48 }
 0x27b   : > { %12941 = vmatprep.mubr.bf16.mxu0 %v17578_v0 }
 0x282   : > { %12942 = vmatmul.mubr.bf16.gmra.mrb[48].mxu0 %v17582_v37 }
 0x283   : > { %12945 = vmatprep.mubr.bf16.mxu0 %v17584_v28 }
 0x28a   : > { %12946 = vmatmul.mubr.bf16.gmra.mrb[52].mxu0 %v17588_v58 }
 0x28b   : > { %12949 = vmatprep.mubr.bf16.mxu0 %v17590_v41 }
 0x292   : > { %12950 = vmatmul.mubr.bf16.gmra.mrb[56].mxu0 %v17594_v26 }
 0x293   : > { %12953 = vmatprep.mubr.bf16.mxu0 %v17596_v45 }
 0x29a   : > { %12954 = vmatmul.mubr.bf16.gmra.mrb[60].mxu0 %v17600_v63 }
 0x29b   : > { %12957 = vmatprep.mubr.bf16.mxu0 %v17602_v22 }
 0x2a2   : > { %15093 = vmatmul.mubr.msk.bf16.gmra.mrb[64].mxu0 %vm17613_vm1, %v17619_v40 }
 0x2a3   : > { %15096 = vmatprep.mubr.msk.bf16.mxu0 %vm15094_vm15, %v17630_v50 }
 0x2aa   : > { %15099 = vmatmul.mubr.msk.bf16.gmra.mrb[68].mxu0 %vm15097_vm14, %v17646_v47 }
 0x2ab   : > { %12981 = vmatprep.mubr.bf16.mxu0 %v3965_v4  ;;  %v3978_v4 = vrot.slane %v17569_v51, 4 }
 0x2b2   : > { %12982 = vmatmul.mubr.bf16.vlgmr.msra.gmra.mrb[24].mxu0 %v3967_v18  ;;  %v3981_v18 = vsel %vm19073_vm13, %v3978_v4, %v3980_v33 }
 0x2b3   : > { %13030 = vmatpush3.bf16.msra.mxu0 %v17567_v1  ;;  %12985 = vmatprep.mubr.bf16.mxu0 %v3969_v34  ;;  %v3973_v1 = vsel %vm19073_vm13, %v3970_v5, %v3972_v31  ;;  %v14908_v34 = vld [vmem:[%s18837_s3 + $0x80] sm:$0xff]   ;;  %v3984_v5 = vrot.slane %v17578_v0, 4 }
 0x2b4   : > { %13031 = vmatprep.subr.bf16.mxu0 %v14901_v24 }
 0x2b7   : > { %13032 = vmatpush3.bf16.msra.mxu0 %v14901_v24  ;;  %v3979_v24 = vsel %vm19073_vm13, %v3976_v10, %v3978_v4  ;;  %v3990_v10 = vrot.slane %v17588_v58, 4  ;;  %v3996_v4 = vrot.slane %v17596_v45, 4 }
 0x2b8   : > { %13033 = vmatprep.subr.bf16.mxu0 %v14902_v49 }
 0x2ba   : > { %12986 = vmatmul.mubr.bf16.gmra.mrb[28].mxu0 %v3971_v11  ;;  %v3986_v11 = vrot.slane %v17582_v37, 4 }
 0x2bb   : > { %12989 = vmatprep.mubr.bf16.mxu0 %v3973_v1  ;;  %13034 = vmatpush3.bf16.msra.mxu0 %v14902_v49  ;;  %v3982_v49 = vrot.slane %v17576_v48, 4  ;;  %v3988_v1 = vrot.slane %v17584_v28, 4 }
 0x2bc   : > { %13035 = vmatprep.subr.bf16.mxu0 %v14903_v2 }
 0x2bd   : > { %v3983_v31 = vsel %vm19073_vm13, %v3980_v33, %v3982_v49  ;;  %v3989_v21 = vsel %vm19073_vm13, %v3986_v11, %v3988_v1 }
 0x2bf   : > { %13036 = vmatpush3.bf16.msra.mxu0 %v14903_v2  ;;  %v3985_v2 = vsel %vm19073_vm13, %v3982_v49, %v3984_v5 }
 0x2c0   : > { %13037 = vmatprep.subr.bf16.mxu0 %v14904_v25 }
 0x2c2   : > { %12990 = vmatmul.mubr.bf16.gmra.mrb[32].mxu0 %v3975_v19  ;;  %v3991_v19 = vsel %vm19073_vm13, %v3988_v1, %v3990_v10  ;;  %v17722_v1 = vld [vmem:[#allocation2 + $0x189] sm:$0xff] }
 0x2c3   : > { %12993 = vmatprep.mubr.bf16.mxu0 %v3977_v60  ;;  %13038 = vmatpush3.bf16.msra.mxu0 %v14904_v25  ;;  %v3987_v25 = vsel %vm19073_vm13, %v3984_v5, %v3986_v11 }
 0x2c4   : > { %13039 = vmatprep.subr.bf16.mxu0 %v14905_v27 }
 0x2c7   : > { %13040 = vmatpush3.bf16.msra.mxu0 %v14905_v27  ;;  %v3992_v27 = vrot.slane %v17590_v41, 4 }
 0x2c8   : > { %13041 = vmatprep.subr.bf16.mxu0 %v14906_v12 }
 0x2c9   : > { %v3993_v60 = vsel %vm19073_vm13, %v3990_v10, %v3992_v27  ;;  %v3580_v10 = vpack.c.bf16 %v17722_v1, %v17369_v54  ;;  %v14912_v54 = vld [vmem:[%s18837_s3 + $0xa0] sm:$0xff]  }
 0x2ca   : > { %12994 = vmatmul.mubr.bf16.gmra.mrb[36].mxu0 %v3979_v24  ;;  %v3998_v24 = vrot.slane %v17600_v63, 4 }
 0x2cb   : > { %12997 = vmatprep.mubr.bf16.mxu0 %v3981_v18  ;;  %13042 = vmatpush3.bf16.msra.mxu0 %v14906_v12  ;;  %v3994_v12 = vrot.slane %v17594_v26, 4  ;;  %v4000_v18 = vrot.slane %v17602_v22, 4  ;;  %v4008_v53 = vrot.slane %v3580_v10, 4  ;;  %v4711_v10 = vld [vmem:[#allocation2 + $0x82] sm:$0xff] }
 0x2cc   : > { %13043 = vmatprep.subr.bf16.mxu0 %v14907_v13  ;;  %v3999_v49 = vsel %vm19073_vm13, %v3996_v4, %v3998_v24 }
 0x2cd   : > { %v3995_v33 = vsel %vm19073_vm13, %v3992_v27, %v3994_v12  ;;  %v4001_v5 = vsel %vm19073_vm13, %v3998_v24, %v4000_v18  ;;  %v19708_v27 = vpack.c.bf16 %v17350_v16, %v17311_v6  ;;  %v14909_v6 = vld [vmem:[%s18837_s3 + $0x88] sm:$0xff]   ;;  %v14910_v16 = vld [vmem:[%s18837_s3 + $0x90] sm:$0xff]   ;;  %v4706_v24 = vld [vmem:[#allocation2 + $0x5a] sm:$0xff] }
 0x2cf   : > { %13044 = vmatpush3.bf16.msra.mxu0 %v14907_v13  ;;  %v3997_v13 = vsel %vm19073_vm13, %v3994_v12, %v3996_v4  ;;  %v4006_v20 = vrot.slane %v19708_v27, 4  ;;  %v14919_v4 = vld [vmem:[%s18837_s3 + $0x158] sm:$0xff]   ;;  %v4712_v27 = vld [vmem:[#allocation2 + $0x8a] sm:$0xff] }
 0x2d0   : > { %13093 = vmatprep.subr.bf16.mxu0 %v14908_v34 }
 0x2d2   : > { %12998 = vmatmul.mubr.bf16.gmra.mrb[40].mxu0 %v3983_v31  ;;  %v4002_v31 = vrot.slane %v3577_v36, 4  ;;  %v3553_v36 = vld [vmem:[#allocation2 + $0x199] sm:$0xff] }
 0x2d3   : > { %13001 = vmatprep.mubr.bf16.mxu0 %v3985_v2  ;;  %v19707_v2 = vpack.c.bf16 %v17279_v38, %v17320_v46  ;;  %v3581_v46 = vpack.c.bf16 %v3553_v36, %v17358_v9  ;;  %v14911_v9 = vld [vmem:[%s18837_s3 + $0x98] sm:$0xff]  }
 0x2d5   : > { %v4004_v11 = vrot.slane %v19707_v2, 4  ;;  %v14921_v2 = vld [vmem:[%s18837_s3 + $0x168] sm:$0xff]  }
 0x2d7   : > { %v4007_v38 = vsel %vm19073_vm13, %v4004_v11, %v4006_v20 }
 0x2da   : > { %13002 = vmatmul.mubr.bf16.gmra.mrb[44].mxu0 %v3987_v25  ;;  %v4003_v25 = vsel %vm19073_vm13, %v4000_v18, %v4002_v31  ;;  %v4707_v18 = vld [vmem:[#allocation2 + $0x62] sm:$0xff] }
 0x2db   : > { %13005 = vmatprep.mubr.bf16.mxu0 %v3989_v21  ;;  %v4005_v21 = vsel %vm19073_vm13, %v4002_v31, %v4004_v11 }
 0x2e2   : > { %13006 = vmatmul.mubr.bf16.gmra.mrb[48].mxu0 %v3991_v19  ;;  %v4009_v19 = vsel %vm19073_vm13, %v4006_v20, %v4008_v53  ;;  %v4709_v20 = vld [vmem:[#allocation2 + $0x72] sm:$0xff] }
 0x2e3   : > { %13009 = vmatprep.mubr.bf16.mxu0 %v3993_v60  ;;  %v4010_v60 = vrot.slane %v3581_v46, 4  ;;  %v17852_v46 = vld [vmem:[%s18837_s3 + $0x200] sm:$0xff]  }
 0x2e5   : > { %v4011_v12 = vsel %vm19073_vm13, %v4008_v53, %v4010_v60  ;;  %vm15109_vm13 = vmpackc.low %vm15125_vm3, %vm17342_vm9  ;;  %v4715_v60 = vld [vmem:[#allocation2 + $0xa2] sm:$0xff] }
 0x2ea   : > { %13010 = vmatmul.mubr.bf16.gmra.mrb[52].mxu0 %v3995_v33 }
 0x2eb   : > { %13013 = vmatprep.mubr.bf16.mxu0 %v3997_v13  ;;  %v14920_v13 = vld [vmem:[%s18837_s3 + $0x160] sm:$0xff]  }
 0x2f2   : > { %13014 = vmatmul.mubr.bf16.gmra.mrb[56].mxu0 %v3999_v49  ;;  %v4708_v49 = vld [vmem:[#allocation2 + $0x6a] sm:$0xff] }
 0x2f3   : > { %13017 = vmatprep.mubr.bf16.mxu0 %v4001_v5  ;;  %v4705_v5 = vld [vmem:[#allocation2 + $0x52] sm:$0xff]  ;;  %v17830_v11 = vpack.c.bf16 %v4708_v49, %v4707_v18  ;;  %v4732_v18 = vld [vmem:[#allocation2 + $0x12a] sm:$0xff] }
 0x2f4   : > { %v17825_v31 = vpack.c.bf16 %v4706_v24, %v4705_v5  ;;  %v4731_v24 = vld [vmem:[#allocation2 + $0x122] sm:$0xff] }
 0x2f5   : > { %v17893_v5 = vpack.c.bf16 %v4732_v18, %v4731_v24  ;;  %v14926_v24 = vld [vmem:[%s18837_s3 + $0x210] sm:$0xff]  }
 0x2f6   : > { %v5163_v18 = vrot.slane %v17825_v31, 4 }
 0x2fa   : > { %13018 = vmatmul.mubr.bf16.gmra.mrb[60].mxu0 %v4003_v25  ;;  %v14922_v25 = vld [vmem:[%s18837_s3 + $0x170] sm:$0xff]  }
 0x2fb   : > { %13021 = vmatprep.mubr.bf16.mxu0 %v4005_v21  ;;  %v4710_v21 = vld [vmem:[#allocation2 + $0x7a] sm:$0xff] }
 0x2fc   : > { %v17840_v53 = vpack.c.bf16 %v4710_v21, %v4709_v20  ;;  %v4734_v21 = vld [vmem:[#allocation2 + $0x13a] sm:$0xff] }
 0x302   : > { %13022 = vmatmul.mubr.bf16.gmra.mrb[64].mxu0 %v4007_v38  ;;  %v17845_v38 = vpack.c.bf16 %v4712_v27, %v4711_v10  ;;  %v4735_v10 = vld [vmem:[#allocation2 + $0x142] sm:$0xff]  ;;  %v4736_v27 = vld [vmem:[#allocation2 + $0x14a] sm:$0xff] }
 0x303   : > { %13025 = vmatprep.mubr.bf16.mxu0 %v4009_v19  ;;  %v4714_v19 = vld [vmem:[#allocation2 + $0x9a] sm:$0xff] }
 0x30a   : > { %13026 = vmatmul.mubr.bf16.gmra.mrb[68].mxu0 %v4011_v12  ;;  %v4716_v12 = vld [vmem:[#allocation2 + $0xaa] sm:$0xff] }
 0x30b   : > { %13045 = vmatprep.mubr.bf16.mxu0 %v17531_v15  ;;  %v14913_v15 = vld [vmem:[%s18837_s3 + $0xa8] sm:$0xff]  }
 0x312   : > { %13046 = vmatmul.mubr.bf16.vlgmr.msra.gmra.mrb[24].mxu0 %v17536_v43  ;;  %v14914_v43 = vld [vmem:[%s18837_s3 + $0xb0] sm:$0xff]  }
 0x313   : > { %13094 = vmatpush3.bf16.msra.mxu0 %v14908_v34  ;;  %13049 = vmatprep.mubr.bf16.mxu0 %v17543_v14  ;;  %v14915_v14 = vld [vmem:[%s18837_s3 + $0xb8] sm:$0xff]  }
 0x314   : > { %13095 = vmatprep.subr.bf16.mxu0 %v14909_v6 }
 0x317   : > { %13096 = vmatpush3.bf16.msra.mxu0 %v14909_v6  ;;  %v4713_v6 = vld [vmem:[#allocation2 + $0x92] sm:$0xff] }
 0x318   : > { %13097 = vmatprep.subr.bf16.mxu0 %v14910_v16 }
 0x31a   : > { %13050 = vmatmul.mubr.bf16.gmra.mrb[28].mxu0 %v17548_v17  ;;  %v14916_v17 = vld [vmem:[%s18837_s3 + $0x140] sm:$0xff]  }
 0x31b   : > { %13053 = vmatprep.mubr.bf16.mxu0 %v17555_v7  ;;  %13098 = vmatpush3.bf16.msra.mxu0 %v14910_v16  ;;  %v15110_v7 = vpack.c.bf16 %v17722_v1, %v17364_v57  ;;  %v4697_v57 = vld [vmem:[#allocation2 + $0x12] sm:$0xff]  ;;  %v14929_v1 = vld [vmem:[%s18839_s5] sm:$0xff]   ;;  %v17854_v16 = vpack.c.bf16 %v4714_v19, %v4713_v6  ;;  %v15071_v19 = vld [vmem:[%s15201_s20 + $0x28] sm:$0xff]  }
 0x31c   : > { %13099 = vmatprep.subr.bf16.mxu0 %v14911_v9  ;;  %12655 = vmatprep.subr.bf16.mxu1 %v14929_v1  ;;  %v4738_v6 = vld [vmem:[#allocation2 + $0x15a] sm:$0xff] }
 0x31d   : > { %12656 = vmatpush3.bf16.msra.mxu1 %v14929_v1  ;;  %v15070_v1 = vld [vmem:[%s15201_s20 + $0x20] sm:$0xff]  }
 0x31f   : > { %13100 = vmatpush3.bf16.msra.mxu0 %v14911_v9  ;;  %v17857_v9 = vpack.c.bf16 %v4716_v12, %v4715_v60  ;;  %v15072_v60 = vld [vmem:[%s15201_s20 + $0x30] sm:$0xff]  }
 0x320   : > { %13101 = vmatprep.subr.bf16.mxu0 %v14912_v54  ;;  %v4737_v12 = vld [vmem:[#allocation2 + $0x152] sm:$0xff] }
 0x322   : > { %13054 = vmatmul.mubr.bf16.gmra.mrb[32].mxu0 %v17560_v39  ;;  %v15113_v39 = vpack.c.bf16 %v3553_v36, %v17352_v35  ;;  %v14923_v36 = vld [vmem:[%s18837_s3 + $0x178] sm:$0xff]  }
 0x323   : > { %13057 = vmatprep.mubr.bf16.mxu0 %v17569_v51  ;;  %13102 = vmatpush3.bf16.msra.mxu0 %v14912_v54  ;;  %v3554_v51 = vld [vmem:[#allocation2 + $0x1a1] sm:$0xff] }
 0x324   : > { %13103 = vmatprep.subr.bf16.mxu0 %v14913_v15  ;;  %v14931_v54 = vld [vmem:[%s18839_s5 + $0x8] sm:$0xff]  }
 0x325   : > { %12657 = vmatprep.subr.bf16.mxu1 %v14931_v54 }
 0x326   : > { %12658 = vmatpush3.bf16.msra.mxu1 %v14931_v54  ;;  %v4739_v54 = vld [vmem:[#allocation2 + $0x162] sm:$0xff] }
 0x327   : > { %13104 = vmatpush3.bf16.msra.mxu0 %v14913_v15  ;;  %v4718_v15 = vld [vmem:[#allocation2 + $0xba] sm:$0xff] }
 0x328   : > { %13105 = vmatprep.subr.bf16.mxu0 %v14914_v43 }
 0x32a   : > { %13058 = vmatmul.mubr.bf16.gmra.mrb[36].mxu0 %v17572_v8  ;;  %v3555_v8 = vld [vmem:[#allocation2 + $0x1a9] sm:$0xff] }
 0x32b   : > { %13061 = vmatprep.mubr.bf16.mxu0 %v17576_v48  ;;  %13106 = vmatpush3.bf16.msra.mxu0 %v14914_v43  ;;  %v4695_v48 = vld [vmem:[#allocation2 + $0x2] sm:$0xff] }
 0x32c   : > { %13107 = vmatprep.subr.bf16.mxu0 %v14915_v14  ;;  %v4719_v43 = vld [vmem:[#allocation2 + $0xc2] sm:$0xff] }
 0x32f   : > { %13108 = vmatpush3.bf16.msra.mxu0 %v14915_v14  ;;  %v4720_v14 = vld [vmem:[#allocation2 + $0xca] sm:$0xff] }
 0x330   : > { %13157 = vmatprep.subr.bf16.mxu0 %v14916_v17 }
 0x332   : > { %13062 = vmatmul.mubr.bf16.gmra.mrb[40].mxu0 %v17578_v0  ;;  %v4696_v0 = vld [vmem:[#allocation2 + $0xa] sm:$0xff] }
 0x333   : > { %13065 = vmatprep.mubr.bf16.mxu0 %v17582_v37  ;;  %v3582_v37 = vpack.c.bf16 %v3555_v8, %v3554_v51  ;;  %v4721_v51 = vld [vmem:[#allocation2 + $0xd2] sm:$0xff]  ;;  %v4722_v8 = vld [vmem:[#allocation2 + $0xda] sm:$0xff] }
 0x33a   : > { %13066 = vmatmul.mubr.bf16.gmra.mrb[44].mxu0 %v17584_v28  ;;  %v4749_v28 = vpack.c.bf16 %v4696_v0, %v4695_v48  ;;  %v4723_v48 = vld [vmem:[#allocation2 + $0xe2] sm:$0xff]  ;;  %v4724_v0 = vld [vmem:[#allocation2 + $0xea] sm:$0xff] }
 0x33b   : > { %13069 = vmatprep.mubr.bf16.mxu0 %v17588_v58  ;;  %v4698_v58 = vld [vmem:[#allocation2 + $0x1a] sm:$0xff] }
 0x342   : > { %13070 = vmatmul.mubr.bf16.gmra.mrb[48].mxu0 %v17590_v41  ;;  %v4699_v41 = vld [vmem:[#allocation2 + $0x22] sm:$0xff] }
 0x343   : > { %13073 = vmatprep.mubr.bf16.mxu0 %v17594_v26  ;;  %v4700_v26 = vld [vmem:[#allocation2 + $0x2a] sm:$0xff] }
 0x344   : > { %v17806_v35 = vpack.c.bf16 %v4700_v26, %v4699_v41  ;;  %v4725_v41 = vld [vmem:[#allocation2 + $0xf2] sm:$0xff]  ;;  %v4726_v26 = vld [vmem:[#allocation2 + $0xfa] sm:$0xff] }
 0x34a   : > { %13074 = vmatmul.mubr.bf16.gmra.mrb[52].mxu0 %v17596_v45  ;;  %v17801_v45 = vpack.c.bf16 %v4698_v58, %v4697_v57  ;;  %v14934_v58 = vld [vmem:[%s18839_s5 + $0x10] ss:$0 sps:$4 sm:$0x33]  }
 0x34b   : > { %13077 = vmatprep.mubr.bf16.mxu0 %v17600_v63  ;;  %v14917_v63 = vld [vmem:[%s18837_s3 + $0x148] sm:$0xff]  }
 0x352   : > { %13078 = vmatmul.mubr.bf16.gmra.mrb[56].mxu0 %v17602_v22  ;;  %v14918_v22 = vld [vmem:[%s18837_s3 + $0x150] sm:$0xff]  }
 0x353   : > { %15102 = vmatprep.mubr.msk.bf16.mxu0 %vm17613_vm1, %v17619_v40  ;;  %vm15112_vm1 = vmpackc.low %vm15125_vm3, %vm17331_vm12  ;;  %v4703_v40 = vld [vmem:[#allocation2 + $0x42] sm:$0xff] }
 0x35a   : > { %15105 = vmatmul.mubr.msk.bf16.gmra.mrb[60].mxu0 %vm15094_vm15, %v17630_v50  ;;  %v4704_v50 = vld [vmem:[#allocation2 + $0x4a] sm:$0xff]  ;;  %vm19711_vm15 = vcmask 293888  }
 0x35b   : > { %15108 = vmatprep.mubr.msk.bf16.mxu0 %vm15097_vm14, %v17646_v47  ;;  %v4701_v47 = vld [vmem:[#allocation2 + $0x32] sm:$0xff]  ;;  %v17818_v33 = vpack.c.bf16 %v4704_v50, %v4703_v40  ;;  %v15067_v50 = vld [vmem:[%s15201_s20 + $0x8] sm:$0xff]   ;;  %vm19712_vm14 = vmmov %vm19711_vm15 }
 0x35c   : > { %v17813_v34 = vpack.c.bf16 %v4702_v59, %v4701_v47  ;;  %v17881_v59 = vpack.c.bf16 %v4726_v26, %v4725_v41  ;;  %v15068_v47 = vld [vmem:[%s15201_s20 + $0x10] sm:$0xff]   ;;  %v15075_v26 = vld [vmem:[%s15201_s20 + $0x48] sm:$0xff]  }
 0x362   : > { %15111 = vmatmul.mubr.msk.bf16.gmra.mrb[64].mxu0 %vm15109_vm13, %v15110_v7  ;;  %vm19709_vm13 = vcmask 1041408  }
 0x363   : > { %15114 = vmatprep.mubr.msk.bf16.mxu0 %vm15112_vm1, %v15113_v39  ;;  %v17866_v39 = vpack.c.bf16 %v4720_v14, %v4719_v43  ;;  %14725 = vmatprep.subr.msk.bf16.mxu1 %vm19709_vm13, %v14934_v58  ;;  %vm19710_vm3 = vmmov %vm19709_vm13  ;;  %v17911_v43 = vpack.c.bf16 %v4738_v6, %v4737_v12  ;;  %v14930_v12 = vld [vmem:[%s18837_s3 + $0x228] sm:$0xff]  }
 0x364   : > { %v2018_v57 = vsel %vm19710_vm3, %v14934_v58, 0  ;;  %vm19713_vm1 = vmmov %vm19712_vm14  ;;  %v5156_v58 = vrot.slane %v17801_v45, 4 }
 0x365   : > { %12660 = vmatpush3.bf16.msra.mxu1 %v2018_v57  ;;  %vm19714_vm13 = vmmov %vm19713_vm1 }
 0x366   : > { %vm19715_vm3 = vmmov %vm19713_vm1 }
 0x368   : > { %12662 = vmatmul.mubr.msk.bf16.vlgmr.msra.gmra.mrb[24].mxu1 %vm19711_vm15, %v15067_v50  ;;  %vm19716_vm15 = vmmov %vm19713_vm1 }
 0x369   : > { %12665 = vmatprep.mubr.msk.bf16.mxu1 %vm19712_vm14, %v15068_v47  ;;  %vm19717_vm14 = vmmov %vm19713_vm1  ;;  %v15077_v47 = vld [vmem:[%s15201_s20 + $0x58] sm:$0xff]  }
 0x36a   : > { %13090 = vmatmul.mubr.bf16.gmra.mrb[68].mxu0 %v3582_v37  ;;  %v17870_v37 = vpack.c.bf16 %v4722_v8, %v4721_v51  ;;  %v15074_v51 = vld [vmem:[%s15201_s20 + $0x40] sm:$0xff]   ;;  %v4741_v8 = vld [vmem:[#allocation2 + $0x172] sm:$0xff] }
 0x36b   : > { %13109 = vmatprep.mubr.bf16.mxu0 %v4749_v28  ;;  %v17872_v28 = vpack.c.bf16 %v4724_v0, %v4723_v48  ;;  %v4742_v48 = vld [vmem:[#allocation2 + $0x17a] sm:$0xff]  ;;  %v5157_v0 = vrot.slane %v17806_v35, 4 }
 0x36c   : > { %v17923_v41 = vpack.c.bf16 %v4742_v48, %v4741_v8  ;;  %v5171_v8 = vrot.slane %v17854_v16, 4  ;;  %v5173_v48 = vrot.slane %v17857_v9, 4 }
 0x372   : > { %13110 = vmatmul.mubr.bf16.vlgmr.msra.gmra.mrb[24].mxu0 %v17801_v45  ;;  %v14925_v45 = vld [vmem:[%s18837_s3 + $0x208] sm:$0xff]  }
 0x373   : > { %13158 = vmatpush3.bf16.msra.mxu0 %v14916_v17  ;;  %13113 = vmatprep.mubr.bf16.mxu0 %v17806_v35  ;;  %v4717_v17 = vld [vmem:[#allocation2 + $0xb2] sm:$0xff]  ;;  %v5161_v35 = vrot.slane %v17818_v33, 4 }
 0x374   : > { %13159 = vmatprep.subr.bf16.mxu0 %v14917_v63  ;;  %v17864_v7 = vpack.c.bf16 %v4718_v15, %v4717_v17  ;;  %v4740_v15 = vld [vmem:[#allocation2 + $0x16a] sm:$0xff]  ;;  %v15073_v17 = vld [vmem:[%s15201_s20 + $0x38] sm:$0xff]  }
 0x375   : > { %v17913_v14 = vpack.c.bf16 %v4740_v15, %v4739_v54  ;;  %v15081_v54 = vld [vmem:[%s15201_s20 + $0x78] sm:$0xff]  }
 0x377   : > { %13160 = vmatpush3.bf16.msra.mxu0 %v14917_v63  ;;  %v4727_v63 = vld [vmem:[#allocation2 + $0x102] sm:$0xff] }
 0x378   : > { %13161 = vmatprep.subr.bf16.mxu0 %v14918_v22 }
 0x37a   : > { %13114 = vmatmul.mubr.bf16.gmra.mrb[28].mxu0 %v17813_v34 }
 0x37b   : > { %13117 = vmatprep.mubr.bf16.mxu0 %v17818_v33  ;;  %13162 = vmatpush3.bf16.msra.mxu0 %v14918_v22  ;;  %v4728_v22 = vld [vmem:[#allocation2 + $0x10a] sm:$0xff] }
 0x37c   : > { %13163 = vmatprep.subr.bf16.mxu0 %v14919_v4  ;;  %v17883_v40 = vpack.c.bf16 %v4728_v22, %v4727_v63  ;;  %v15076_v63 = vld [vmem:[%s15201_s20 + $0x50] sm:$0xff]   ;;  %v5159_v22 = vrot.slane %v17813_v34, 4 }
 0x37f   : > { %13164 = vmatpush3.bf16.msra.mxu0 %v14919_v4  ;;  %v4729_v4 = vld [vmem:[#allocation2 + $0x112] sm:$0xff] }
 0x380   : > { %13165 = vmatprep.subr.bf16.mxu0 %v14920_v13 }
 0x382   : > { %13118 = vmatmul.mubr.bf16.gmra.mrb[32].mxu0 %v17825_v31 }
 0x383   : > { %13121 = vmatprep.mubr.bf16.mxu0 %v17830_v11  ;;  %13166 = vmatpush3.bf16.msra.mxu0 %v14920_v13  ;;  %v4730_v13 = vld [vmem:[#allocation2 + $0x11a] sm:$0xff] }
 0x384   : > { %13167 = vmatprep.subr.bf16.mxu0 %v14921_v2  ;;  %v17891_v49 = vpack.c.bf16 %v4730_v13, %v4729_v4  ;;  %v15078_v13 = vld [vmem:[%s15201_s20 + $0x60] sm:$0xff]  }
 0x387   : > { %13168 = vmatpush3.bf16.msra.mxu0 %v14921_v2  ;;  %v15069_v2 = vld [vmem:[%s15201_s20 + $0x18] sm:$0xff]  }
 0x388   : > { %13169 = vmatprep.subr.bf16.mxu0 %v14922_v25  ;;  %12666 = vmatmul.mubr.msk.bf16.gmra.mrb[28].mxu1 %vm19713_vm1, %v15069_v2  ;;  %v5165_v2 = vrot.slane %v17830_v11, 4 }
 0x389   : > { %12669 = vmatprep.mubr.msk.bf16.mxu1 %vm19714_vm13, %v15070_v1  ;;  %vm19718_vm13 = vmmov %vm19713_vm1  ;;  %v14927_v1 = vld [vmem:[%s18837_s3 + $0x218] sm:$0xff]  }
 0x38a   : > { %13122 = vmatmul.mubr.bf16.gmra.mrb[36].mxu0 %v17840_v53 }
 0x38b   : > { %13125 = vmatprep.mubr.bf16.mxu0 %v17845_v38  ;;  %13170 = vmatpush3.bf16.msra.mxu0 %v14922_v25  ;;  %v4733_v25 = vld [vmem:[#allocation2 + $0x132] sm:$0xff] }
 0x38c   : > { %13171 = vmatprep.subr.bf16.mxu0 %v14923_v36  ;;  %v17901_v20 = vpack.c.bf16 %v4734_v21, %v4733_v25  ;;  %v15079_v21 = vld [vmem:[%s15201_s20 + $0x68] sm:$0xff]  }
 0x38f   : > { %13172 = vmatpush3.bf16.msra.mxu0 %v14923_v36  ;;  %v17903_v36 = vpack.c.bf16 %v4736_v27, %v4735_v10  ;;  %v15080_v10 = vld [vmem:[%s15201_s20 + $0x70] sm:$0xff]   ;;  %v14928_v27 = vld [vmem:[%s18837_s3 + $0x220] sm:$0xff]  }
 0x390   : > { %13221 = vmatprep.subr.bf16.mxu0 %v17852_v46  ;;  %12670 = vmatmul.mubr.msk.bf16.gmra.mrb[32].mxu1 %vm19715_vm3, %v15071_v19  ;;  %vm19719_vm3 = vcmask 1043456   ;;  %v5167_v19 = vrot.slane %v17840_v53, 4 }
 0x391   : > { %12673 = vmatprep.mubr.msk.bf16.mxu1 %vm19716_vm15, %v15072_v60  ;;  %v5158_v57 = vsel %vm19719_vm3, %v5156_v58, %v5157_v0  ;;  %vm19720_vm15 = vmmov %vm19713_vm1  ;;  %v5169_v60 = vrot.slane %v17845_v38, 4 }
 0x392   : > { %13126 = vmatmul.mubr.bf16.gmra.mrb[40].mxu0 %v17854_v16 }
 0x393   : > { %13129 = vmatprep.mubr.bf16.mxu0 %v17857_v9 }
 0x398   : > { %12674 = vmatmul.mubr.msk.bf16.gmra.mrb[36].mxu1 %vm19717_vm14, %v15073_v17  ;;  %vm19721_vm14 = vmmov %vm19719_vm3  ;;  %v15082_v17 = vld [vmem:[%s15201_s20 + $0x80] sm:$0xff]  }
 0x399   : > { %12677 = vmatprep.mubr.msk.bf16.mxu1 %vm19713_vm1, %v15074_v51  ;;  %v5160_v50 = vsel %vm19721_vm14, %v5157_v0, %v5159_v22  ;;  %vm19725_vm14 = vmmov %vm19713_vm1  ;;  %v14932_v51 = vld [vmem:[%s18837_s3 + $0x230] sm:$0xff]   ;;  %v14933_v0 = vld [vmem:[%s18837_s3 + $0x238] sm:$0xff]  }
 0x39a   : > { %13130 = vmatmul.mubr.bf16.gmra.mrb[44].mxu0 %v17864_v7 }
 0x39b   : > { %13133 = vmatprep.mubr.bf16.mxu0 %v17866_v39 }
 0x3a0   : > { %12678 = vmatmul.mubr.msk.bf16.gmra.mrb[40].mxu1 %vm19718_vm13, %v15075_v26  ;;  %vm19722_vm13 = vmmov %vm19719_vm3  ;;  %v15083_v26 = vld [vmem:[%s15201_s20 + $0x88] sm:$0xff]  }
 0x3a1   : > { %12681 = vmatprep.mubr.msk.bf16.mxu1 %vm19720_vm15, %v15076_v63  ;;  %v5162_v4 = vsel %vm19722_vm13, %v5159_v22, %v5161_v35  ;;  %vm19723_vm3 = vmmov %vm19713_vm1  ;;  %v15084_v63 = vld [vmem:[%s15201_s20 + $0x90] sm:$0xff]   ;;  %v5175_v22 = vrot.slane %v17864_v7, 4 }
 0x3a2   : > { %13134 = vmatmul.mubr.bf16.gmra.mrb[48].mxu0 %v17870_v37  ;;  %vm19724_vm15 = vmmov %vm19722_vm13 }
 0x3a3   : > { %13137 = vmatprep.mubr.bf16.mxu0 %v17872_v28  ;;  %v5164_v25 = vsel %vm19724_vm15, %v5161_v35, %v5163_v18  ;;  %v5177_v35 = vrot.slane %v17866_v39, 4 }
 0x3a8   : > { %12682 = vmatmul.mubr.msk.bf16.gmra.mrb[44].mxu1 %vm19713_vm1, %v15077_v47  ;;  %vm19726_vm1 = vmmov %vm19722_vm13 }
 0x3a9   : > { %12685 = vmatprep.mubr.msk.bf16.mxu1 %vm19723_vm3, %v15078_v13  ;;  %vm19727_vm13 = vmmov %vm19723_vm3  ;;  %v5179_v13 = vrot.slane %v17870_v37, 4 }
 0x3aa   : > { %13138 = vmatmul.mubr.bf16.gmra.mrb[52].mxu0 %v17881_v59  ;;  %vm19728_vm3 = vmmov %vm19726_vm1 }
 0x3ab   : > { %13141 = vmatprep.mubr.bf16.mxu0 %v17883_v40  ;;  %v5168_v6 = vsel %vm19728_vm3, %v5165_v2, %v5167_v19  ;;  %vm19729_vm15 = vmmov %vm19727_vm13 }
 0x3b0   : > { %12686 = vmatmul.mubr.msk.bf16.gmra.mrb[48].mxu1 %vm19725_vm14, %v15079_v21  ;;  %vm19730_vm14 = vmmov %vm19726_vm1  ;;  %v5183_v21 = vrot.slane %v17881_v59, 4 }
 0x3b1   : > { %12689 = vmatprep.mubr.msk.bf16.mxu1 %vm19727_vm13, %v15080_v10  ;;  %v5170_v15 = vsel %vm19730_vm14, %v5167_v19, %v5169_v60 }
 0x3b2   : > { %13142 = vmatmul.mubr.bf16.gmra.mrb[56].mxu0 %v17891_v49 }
 0x3b3   : > { %13145 = vmatprep.mubr.bf16.mxu0 %v17893_v5 }
 0x3b8   : > { %12690 = vmatmul.mubr.msk.bf16.gmra.mrb[52].mxu1 %vm19729_vm15, %v15081_v54 }
 0x3ba   : > { %13146 = vmatmul.mubr.bf16.gmra.mrb[60].mxu0 %v17901_v20 }
 0x3bb   : > { %13149 = vmatprep.mubr.bf16.mxu0 %v17903_v36 }
 0x3c2   : > { %13150 = vmatmul.mubr.bf16.gmra.mrb[64].mxu0 %v17911_v43 }
 0x3c3   : > { %13153 = vmatprep.mubr.bf16.mxu0 %v17913_v14 }
 0x3ca   : > { %13154 = vmatmul.mubr.bf16.gmra.mrb[68].mxu0 %v17923_v41 }
 0x3cb   : > { %13173 = vmatprep.mubr.bf16.mxu0 %v5158_v57 }
 0x3d2   : > { %13174 = vmatmul.mubr.bf16.vlgmr.msra.gmra.mrb[24].mxu0 %v5160_v50  ;;  %v15085_v50 = vld [vmem:[%s15201_s20 + $0x98] sm:$0xff]  }
 0x3d3   : > { %13222 = vmatpush3.bf16.msra.mxu0 %v17852_v46  ;;  %13177 = vmatprep.mubr.bf16.mxu0 %v5162_v4  ;;  %v5166_v46 = vsel %vm19726_vm1, %v5163_v18, %v5165_v2  ;;  %vm19731_vm1 = vmmov %vm19727_vm13  ;;  %v15086_v4 = vld [vmem:[%s15201_s20 + $0xa0] sm:$0xff]   ;;  %v15087_v2 = vld [vmem:[%s15201_s20 + $0xa8] sm:$0xff]  }
 0x3d4   : > { %13223 = vmatprep.subr.bf16.mxu0 %v14925_v45  ;;  %12693 = vmatprep.mubr.msk.bf16.mxu1 %vm19731_vm1, %v15082_v17  ;;  %vm19732_vm13 = vmmov %vm19728_vm3  ;;  %v14936_v17 = vld [vmem:[%s18841_s7 + $0x48] sm:$0xff]  }
 0x3d5   : > { %v5172_v58 = vsel %vm19732_vm13, %v5169_v60, %v5171_v8  ;;  %vm19733_vm3 = vmmov %vm19731_vm1  ;;  %v5187_v60 = vrot.slane %v17891_v49, 4 }
 0x3d6   : > { %12694 = vmatmul.mubr.msk.bf16.gmra.mrb[56].mxu1 %vm19733_vm3, %v15083_v26  ;;  %vm19734_vm15 = vmmov %vm19732_vm13  ;;  %v5195_v26 = vrot.slane %v17911_v43, 4 }
 0x3d7   : > { %13224 = vmatpush3.bf16.msra.mxu0 %v14925_v45  ;;  %v5174_v57 = vsel %vm19734_vm15, %v5171_v8, %v5173_v48  ;;  %vm19735_vm14 = vmmov %vm19731_vm1  ;;  %v5193_v8 = vrot.slane %v17903_v36, 4 }
 0x3d8   : > { %13225 = vmatprep.subr.bf16.mxu0 %v14926_v24  ;;  %12697 = vmatprep.mubr.msk.bf16.mxu1 %vm19735_vm14, %v15084_v63  ;;  %vm19736_vm1 = vmmov %vm19732_vm13  ;;  %v4743_v63 = vld [vmem:[#allocation2 + $0x182] sm:$0xff] }
 0x3d9   : > { %v5176_v45 = vsel %vm19736_vm1, %v5173_v48, %v5175_v22  ;;  %vm19737_vm13 = vmmov %vm19733_vm3  ;;  %v14937_v48 = vld [vmem:[%s18841_s7 + $0x50] sm:$0xff]  }
 0x3da   : > { %13178 = vmatmul.mubr.bf16.gmra.mrb[28].mxu0 %v5164_v25  ;;  %vm19738_vm3 = vmmov %vm19736_vm1  ;;  %v15088_v25 = vld [vmem:[%s15201_s20 + $0xb0] sm:$0xff]  }
 0x3db   : > { %13181 = vmatprep.mubr.bf16.mxu0 %v5166_v46  ;;  %13226 = vmatpush3.bf16.msra.mxu0 %v14926_v24  ;;  %v5178_v47 = vsel %vm19738_vm3, %v5175_v22, %v5177_v35  ;;  %vm19739_vm15 = vmmov %vm19737_vm13  ;;  %v5181_v24 = vrot.slane %v17872_v28, 4  ;;  %v5185_v46 = vrot.slane %v17883_v40, 4  ;;  %v4744_v22 = vld [vmem:[#allocation2 + $0x18a] sm:$0xff] }
 0x3dc   : > { %13227 = vmatprep.subr.bf16.mxu0 %v14927_v1  ;;  %vm19740_vm14 = vmmov %vm19736_vm1 }
 0x3dd   : > { %v5180_v18 = vsel %vm19740_vm14, %v5177_v35, %v5179_v13  ;;  %vm19741_vm9 = vmmov %vm19737_vm13 }
 0x3de   : > { %12698 = vmatmul.mubr.msk.bf16.gmra.mrb[60].mxu1 %vm19737_vm13, %v15085_v50  ;;  %vm19742_vm13 = vmmov %vm19741_vm9  ;;  %v4773_v50 = vpack.c.bf16 %v4744_v22, %v4743_v63 }
 0x3df   : > { %13228 = vmatpush3.bf16.msra.mxu0 %v14927_v1  ;;  %12701 = vmatprep.mubr.msk.bf16.mxu1 %vm19739_vm15, %v15086_v4  ;;  %v5182_v1 = vsel %vm19736_vm1, %v5179_v13, %v5181_v24  ;;  %vm19743_vm3 = vmmov %vm19736_vm1  ;;  %v4745_v13 = vld [vmem:[#allocation2 + $0x192] sm:$0xff] }
 0x3e0   : > { %13229 = vmatprep.subr.bf16.mxu0 %v14928_v27  ;;  %v5184_v10 = vsel %vm19743_vm3, %v5181_v24, %v5183_v21  ;;  %vm19744_vm15 = vmmov %vm19741_vm9  ;;  %v5201_v4 = vrot.slane %v4773_v50, 4  ;;  %v4746_v24 = vld [vmem:[#allocation2 + $0x19a] sm:$0xff] }
 0x3e1   : > { %vm19745_vm14 = vmmov %vm19736_vm1 }
 0x3e2   : > { %13182 = vmatmul.mubr.bf16.gmra.mrb[32].mxu0 %v5168_v6  ;;  %v5186_v19 = vsel %vm19745_vm14, %v5183_v21, %v5185_v46  ;;  %vm19748_vm3 = vmmov %vm19736_vm1 }
 0x3e3   : > { %13185 = vmatprep.mubr.bf16.mxu0 %v5170_v15  ;;  %13230 = vmatpush3.bf16.msra.mxu0 %v14928_v27  ;;  %v15089_v27 = vld [vmem:[%s15201_s20 + $0xb8] sm:$0xff]   ;;  %v14935_v15 = vld [vmem:[%s18841_s7 + $0x40] sm:$0xff]   ;;  %vm19750_vm14 = vmmov %vm19736_vm1 }
 0x3e4   : > { %13231 = vmatprep.subr.bf16.mxu0 %v14930_v12  ;;  %13285 = vmatprep.subr.bf16.mxu1 %v14935_v15 }
 0x3e5   : > { %13286 = vmatpush3.bf16.msra.mxu1 %v14935_v15 }
 0x3e6   : > { %12702 = vmatmul.mubr.msk.bf16.gmra.mrb[64].mxu1 %vm19741_vm9, %v15087_v2  ;;  %vm19746_vm9 = vmmov %vm19736_vm1  ;;  %13287 = vmatprep.subr.bf16.mxu1 %v14936_v17  ;;  %v4774_v2 = vpack.c.bf16 %v4746_v24, %v4745_v13 }
 0x3e7   : > { %13232 = vmatpush3.bf16.msra.mxu0 %v14930_v12  ;;  %12705 = vmatprep.mubr.msk.bf16.mxu1 %vm19742_vm13, %v15088_v25  ;;  %v5189_v12 = vrot.slane %v17893_v5, 4  ;;  %v5188_v6 = vsel %vm19746_vm9, %v5185_v46, %v5187_v60  ;;  %vm19747_vm13 = vmmov %vm19736_vm1 }
 0x3e8   : > { %13233 = vmatprep.subr.bf16.mxu0 %v14932_v51  ;;  %vm19751_vm9 = vmmov %vm19736_vm1  ;;  %v5203_v25 = vrot.slane %v4774_v2, 4 }
 0x3e9   : > { %v5190_v54 = vsel %vm19736_vm1, %v5187_v60, %v5189_v12  ;;  %13288 = vmatpush3.bf16.msra.mxu1 %v14936_v17 }
 0x3ea   : > { %13186 = vmatmul.mubr.bf16.gmra.mrb[36].mxu0 %v5172_v58  ;;  %13289 = vmatprep.subr.bf16.mxu1 %v14937_v48 }
 0x3eb   : > { %13189 = vmatprep.mubr.bf16.mxu0 %v5174_v57  ;;  %13234 = vmatpush3.bf16.msra.mxu0 %v14932_v51  ;;  %v5191_v51 = vrot.slane %v17901_v20, 4  ;;  %v5197_v57 = vrot.slane %v17913_v14, 4 }
 0x3ec   : > { %13235 = vmatprep.subr.bf16.mxu0 %v14933_v0 }
 0x3ed   : > { %v5194_v58 = vsel %vm19748_vm3, %v5191_v51, %v5193_v8  ;;  %13290 = vmatpush3.bf16.msra.mxu1 %v14937_v48 }
 0x3ee   : > { %12706 = vmatmul.mubr.msk.bf16.gmra.mrb[68].mxu1 %vm19744_vm15, %v15089_v27  ;;  %vm19749_vm15 = vmmov %vm19736_vm1 }
 0x3ef   : > { %13236 = vmatpush3.bf16.msra.mxu0 %v14933_v0  ;;  %v5192_v0 = vsel %vm19747_vm13, %v5189_v12, %v5191_v51  ;;  %v5196_v35 = vsel %vm19749_vm15, %v5193_v8, %v5195_v26  ;;  %vm19752_vm13 = vmmov %vm19736_vm1 }
 0x3f0   : > { %v5204_v21 = vsel %vm19752_vm13, %v5201_v4, %v5203_v25 }
 0x3f2   : > { %13190 = vmatmul.mubr.bf16.gmra.mrb[40].mxu0 %v5176_v45  ;;  %v5198_v45 = vsel %vm19750_vm14, %v5195_v26, %v5197_v57 }
 0x3f3   : > { %13193 = vmatprep.mubr.bf16.mxu0 %v5178_v47  ;;  %v5199_v47 = vrot.slane %v17923_v41, 4 }
 0x3fa   : > { %13194 = vmatmul.mubr.bf16.gmra.mrb[44].mxu0 %v5180_v18  ;;  %v5200_v18 = vsel %vm19751_vm9, %v5197_v57, %v5199_v47 }
 0x3fb   : > { %13197 = vmatprep.mubr.bf16.mxu0 %v5182_v1  ;;  %v5202_v1 = vsel %vm19736_vm1, %v5199_v47, %v5201_v4  ;;  %v18143_v4 = vld [vmem:[%s18841_s7] sm:$0xff]  }
 0x402   : > { %13198 = vmatmul.mubr.bf16.gmra.mrb[48].mxu0 %v5184_v10 }
 0x403   : > { %13201 = vmatprep.mubr.bf16.mxu0 %v5186_v19 }
 0x40a   : > { %13202 = vmatmul.mubr.bf16.gmra.mrb[52].mxu0 %v5188_v6 }
 0x40b   : > { %13205 = vmatprep.mubr.bf16.mxu0 %v5190_v54 }
 0x412   : > { %13206 = vmatmul.mubr.bf16.gmra.mrb[56].mxu0 %v5192_v0 }
 0x413   : > { %13209 = vmatprep.mubr.bf16.mxu0 %v5194_v58 }
 0x41a   : > { %13210 = vmatmul.mubr.bf16.gmra.mrb[60].mxu0 %v5196_v35 }
 0x41b   : > { %13213 = vmatprep.mubr.bf16.mxu0 %v5198_v45 }
 0x422   : > { %13214 = vmatmul.mubr.bf16.gmra.mrb[64].mxu0 %v5200_v18 }
 0x423   : > { %13217 = vmatprep.mubr.bf16.mxu0 %v5202_v1 }
 0x42a   : > { %13218 = vmatmul.mubr.bf16.gmra.mrb[68].mxu0 %v5204_v21 }
 0x42b   : > { %13237 = vmatprep.mubr.bf16.mxu0 %v17813_v34  ;;  %v4747_v34 = vld [vmem:[#allocation2 + $0x1a2] sm:$0xff] }
 0x432   : > { %13238 = vmatmul.mubr.bf16.vlgmr.msra.gmra.mrb[24].mxu0 %v17818_v33  ;;  %v4748_v33 = vld [vmem:[#allocation2 + $0x1aa] sm:$0xff] }
 0x433   : > { %13241 = vmatprep.mubr.bf16.mxu0 %v17825_v31  ;;  %v4775_v31 = vpack.c.bf16 %v4748_v33, %v4747_v34 }
 0x43a   : > { %13242 = vmatmul.mubr.bf16.gmra.mrb[28].mxu0 %v17830_v11 }
 0x43b   : > { %13245 = vmatprep.mubr.bf16.mxu0 %v17840_v53  ;;  %v18053_v11 = vpop.f32.mrb[24].mxu1 }
 0x43c   : > { %v18055_v53 = vpop.f32.mrb[25].mxu1 }
 0x442   : > { %13246 = vmatmul.mubr.bf16.gmra.mrb[32].mxu0 %v17845_v38  ;;  %v18057_v38 = vpop.f32.mrb[26].mxu1 }
 0x443   : > { %13249 = vmatprep.mubr.bf16.mxu0 %v17854_v16  ;;  %v18059_v16 = vpop.f32.mrb[27].mxu1 }
 0x44a   : > { %13250 = vmatmul.mubr.bf16.gmra.mrb[36].mxu0 %v17857_v9  ;;  %v14938_v9 = vld [vmem:[%s18841_s7 + $0x58] sm:$0xff]  }
 0x44b   : > { %13253 = vmatprep.mubr.bf16.mxu0 %v17864_v7  ;;  %13291 = vmatprep.subr.bf16.mxu1 %v14938_v9 }
 0x44c   : > { %13292 = vmatpush3.bf16.msra.mxu1 %v14938_v9 }
 0x452   : > { %13254 = vmatmul.mubr.bf16.gmra.mrb[40].mxu0 %v17866_v39 }
 0x453   : > { %13257 = vmatprep.mubr.bf16.mxu0 %v17870_v37 }
 0x45a   : > { %13258 = vmatmul.mubr.bf16.gmra.mrb[44].mxu0 %v17872_v28 }
 0x45b   : > { %13261 = vmatprep.mubr.bf16.mxu0 %v17881_v59  ;;  %v18064_v7 = vpop.f32.mrb[28].mxu1  ;;  %v14939_v59 = vld [vmem:[%s18841_s7 + $0x60] sm:$0xff]  }
 0x45c   : > { %v18066_v39 = vpop.f32.mrb[29].mxu1  ;;  %13293 = vmatprep.subr.bf16.mxu1 %v14939_v59 }
 0x45d   : > { %v18068_v37 = vpop.f32.mrb[30].mxu1  ;;  %13294 = vmatpush3.bf16.msra.mxu1 %v14939_v59 }
 0x45e   : > { %v18070_v28 = vpop.f32.mrb[31].mxu1 }
 0x462   : > { %13262 = vmatmul.mubr.bf16.gmra.mrb[48].mxu0 %v17883_v40 }
 0x463   : > { %13265 = vmatprep.mubr.bf16.mxu0 %v17891_v49  ;;  %v18075_v40 = vpop.f32.mrb[32].mxu1  ;;  %v14940_v49 = vld [vmem:[%s18841_s7 + $0x68] sm:$0xff]  }
 0x464   : > { %13295 = vmatprep.subr.bf16.mxu1 %v14940_v49 }
 0x465   : > { %13296 = vmatpush3.bf16.msra.mxu1 %v14940_v49  ;;  %v18173_v49 = vld [vmem:[%s18838_s4] ss:$0 sm:$0xff] }
 0x46a   : > { %13266 = vmatmul.mubr.bf16.gmra.mrb[52].mxu0 %v17893_v5  ;;  %v18080_v5 = vpop.f32.mrb[33].mxu1 }
 0x46b   : > { %13269 = vmatprep.mubr.bf16.mxu0 %v17901_v20  ;;  %v18082_v20 = vpop.f32.mrb[34].mxu1 }
 0x472   : > { %13270 = vmatmul.mubr.bf16.gmra.mrb[56].mxu0 %v17903_v36  ;;  %v18084_v36 = vpop.f32.mrb[35].mxu1 }
 0x473   : > { %13273 = vmatprep.mubr.bf16.mxu0 %v17911_v43  ;;  %v14941_v43 = vld [vmem:[%s18841_s7 + $0x70] sm:$0xff]  }
 0x474   : > { %13297 = vmatprep.subr.bf16.mxu1 %v14941_v43 }
 0x475   : > { %13298 = vmatpush3.bf16.msra.mxu1 %v14941_v43 }
 0x47a   : > { %13274 = vmatmul.mubr.bf16.gmra.mrb[60].mxu0 %v17913_v14  ;;  %v18089_v14 = vpop.f32.mrb[36].mxu1 }
 0x47b   : > { %13277 = vmatprep.mubr.bf16.mxu0 %v17923_v41  ;;  %v14942_v41 = vld [vmem:[%s18841_s7 + $0x78] sm:$0xff]   ;;  %v18094_v46 = vpop.f32.mrb[37].mxu1 }
 0x47c   : > { %v18096_v10 = vpop.f32.mrb[38].mxu1  ;;  %13299 = vmatprep.subr.bf16.mxu1 %v14942_v41 }
 0x47d   : > { %13300 = vmatpush3.bf16.msra.mxu1 %v14942_v41  ;;  %v18098_v27 = vpop.f32.mrb[39].mxu1 }
 0x47e   : > { %v18100_v19 = vpop.f32.mrb[40].mxu1  ;;  %13325 = vmatprep.subr.bf16.mxu1 %v18143_v4 }
 0x47f   : > { %v18102_v60 = vpop.f32.mrb[41].mxu1 }
 0x480   : > { %v18104_v12 = vpop.f32.mrb[42].mxu1 }
 0x481   : > { %v18106_v6 = vpop.f32.mrb[43].mxu1 }
 0x482   : > { %13278 = vmatmul.mubr.bf16.gmra.mrb[64].mxu0 %v4773_v50  ;;  %v18108_v54 = vpop.f32.mrb[44].mxu1 }
 0x483   : > { %13281 = vmatprep.mubr.bf16.mxu0 %v4774_v2  ;;  %v18110_v15 = vpop.f32.mrb[45].mxu1 }
 0x484   : > { %v18112_v17 = vpop.f32.mrb[46].mxu1 }
 0x485   : > { %v18114_v51 = vpop.f32.mrb[47].mxu1 }
 0x486   : > { %v18116_v8 = vpop.f32.mrb[48].mxu1 }
 0x487   : > { %v18118_v48 = vpop.f32.mrb[49].mxu1 }
 0x488   : > { %v18120_v0 = vpop.f32.mrb[50].mxu1 }
 0x489   : > { %v18122_v58 = vpop.f32.mrb[51].mxu1 }
 0x48a   : > { %13282 = vmatmul.mubr.bf16.gmra.mrb[68].mxu0 %v4775_v31 }
 0x48b   : > { %v18124_v26 = vpop.f32.mrb[52].mxu1 }
 0x48c   : > { %v18126_v57 = vpop.f32.mrb[53].mxu1 }
 0x48d   : > { %v18128_v63 = vpop.f32.mrb[54].mxu1 }
 0x48e   : > { %v18130_v22 = vpop.f32.mrb[55].mxu1 }
 0x4a9   : > { %v18132_v35 = vpop.f32.mrb[56].mxu1 }
 0x4aa   : > { %v18134_v45 = vpop.f32.mrb[57].mxu1 }
 0x4ab   : > { %v18136_v50 = vpop.f32.mrb[58].mxu1 }
 0x4ac   : > { %v18138_v47 = vpop.f32.mrb[59].mxu1 }
 0x4b1   : > { %v18145_v13 = vpop.f32.mrb[60].mxu1 }
 0x4b2   : > { %v18148_v24 = vpop.f32.mrb[61].mxu1 }
 0x4b3   : > { %v18150_v18 = vpop.f32.mrb[62].mxu1 }
 0x4b4   : > { %19753 = vst [vmem:[#allocation35_spill] sm:$0xff] %v18150_v18  ;;  %v18152_v2 = vpop.f32.mrb[63].mxu1 }
 0x4b5   : > { %19754 = vst [vmem:[#allocation48_spill] sm:$0xff] %v18152_v2 }
 0x4b9   : > { %v18154_v1 = vpop.f32.mrb[64].mxu1 }
 0x4ba   : > { %19755 = vst [vmem:[#allocation42_spill] sm:$0xff] %v18154_v1  ;;  %v18156_v25 = vpop.f32.mrb[65].mxu1 }
 0x4bb   : > { %19756 = vst [vmem:[#allocation37_spill] sm:$0xff] %v18156_v25  ;;  %v18158_v21 = vpop.f32.mrb[66].mxu1 }
 0x4bc   : > { %19757 = vst [vmem:[#allocation49_spill] sm:$0xff] %v18158_v21  ;;  %v18160_v34 = vpop.f32.mrb[67].mxu1 }
 0x4bd   : > { %19758 = vst [vmem:[#allocation43_spill] sm:$0xff] %v18160_v34 }
 0x4c1   : > { %v18162_v33 = vpop.f32.mrb[68].mxu1 }
 0x4c2   : > { %19759 = vst [vmem:[#allocation39_spill] sm:$0xff] %v18162_v33  ;;  %v18164_v31 = vpop.f32.mrb[69].mxu1 }
 0x4c3   : > { %19760 = vst [vmem:[#allocation52_spill] sm:$0xff] %v18164_v31  ;;  %v18166_v9 = vpop.f32.mrb[70].mxu1 }
 0x4c4   : > { %19761 = vst [vmem:[#allocation45_spill] sm:$0xff] %v18166_v9  ;;  %v18168_v59 = vpop.f32.mrb[71].mxu1 }
 0x4c5   : > { %19762 = vst [vmem:[#allocation41_spill] sm:$0xff] %v18168_v59 }
 0x505   : > { %v13239_v43 = vpop.f32.mrb[24].mxu0 }
 0x506   : > { %v13931_v41 = vadd.f32 %v13239_v43, %v18173_v49  ;;  %v5649_v61 = vpop.f32.mrb[25].mxu0 }
 0x507   : > { %v13932_v62 = vadd.f32 %v18173_v49, %v5649_v61  ;;  %v13240_v44 = vpop.f32.mrb[26].mxu0 }
 0x508   : > { %v5938_v29 = vmul.f32 0.2, %v13931_v41  ;;  %vm5890_vm3 = vcmp.ge.f32.partialorder %v13931_v41, 0.0  ;;  %v13933_v31 = vadd.f32 %v13240_v44, %v18173_v49  ;;  %v5652_v33 = vpop.f32.mrb[27].mxu0 }
 0x509   : > { %v5936_v9 = vmul.f32 0.2, %v13932_v62  ;;  %vm5888_vm15 = vcmp.ge.f32.partialorder %v13932_v62, 0.0  ;;  %v13934_v59 = vadd.f32 %v18173_v49, %v5652_v33 }
 0x50a   : > { %v5986_v42 = vsel %vm5890_vm3, %v13931_v41, %v5938_v29  ;;  %v5939_v43 = vmul.f32 0.2, %v13933_v31  ;;  %vm5891_vm14 = vcmp.ge.f32.partialorder %v13933_v31, 0.0 }
 0x50b   : > { %v6034_v61 = vadd.f32 %v18053_v11, %v5986_v42  ;;  %v5984_v34 = vsel %vm5888_vm15, %v13932_v62, %v5936_v9  ;;  %v5937_v30 = vmul.f32 0.2, %v13934_v59  ;;  %vm5889_vm9 = vcmp.ge.f32.partialorder %v13934_v59, 0.0  ;;  %v19763_v62 = vld [vmem:[#allocation94_spill] sm:$0xff] }
 0x50c   : > { %v6032_v44 = vadd.f32 %v5984_v34, %v18055_v53  ;;  %v5987_v21 = vsel %vm5891_vm14, %v13933_v31, %v5939_v43  ;;  %vm19764_vm1 = vnez %v19763_v62 }
 0x50d   : > { %v6089_v25 = vadd.f32 %v18182_v23, %v6034_v61  ;;  %v6035_v33 = vadd.f32 %v18057_v38, %v5987_v21  ;;  %v5985_v29 = vsel %vm5889_vm9, %v13934_v59, %v5937_v30  ;;  %v13243_v41 = vpop.f32.mrb[28].mxu0  ;;  %v19765_v38 = vld [vmem:[#allocation100_spill] sm:$0xff] }
 0x50e   : > { %v6087_v1 = vadd.f32 %v18182_v23, %v6032_v44  ;;  %v6033_v2 = vadd.f32 %v5985_v29, %v18059_v16  ;;  %v13935_v18 = vadd.f32 %v13243_v41, %v18173_v49  ;;  %v5665_v42 = vpop.f32.mrb[29].mxu0  ;;  %vm19766_vm13 = vnez %v19765_v38 }
 0x50f   : > { %v6137_v11 = vsel %vm19764_vm1, %v6089_v25, 0.0  ;;  %v6090_v53 = vadd.f32 %v18182_v23, %v6035_v33  ;;  %v13936_v34 = vadd.f32 %v18173_v49, %v5665_v42  ;;  %v13244_v31 = vpop.f32.mrb[30].mxu0  ;;  %v19767_v25 = vld [vmem:[#allocation103_spill] sm:$0xff] }
 0x510   : > { %6438 = vst [vmem:[#allocation3 + $0x29] sm:$0xff] %v6137_v11  ;;  %v6135_v30 = vsel %vm19766_vm13, %v6087_v1, 0.0  ;;  %v6088_v21 = vadd.f32 %v18182_v23, %v6033_v2  ;;  %v5942_v9 = vmul.f32 0.2, %v13935_v18  ;;  %vm5894_vm3 = vcmp.ge.f32.partialorder %v13935_v18, 0.0  ;;  %v5668_v16 = vpop.f32.mrb[31].mxu0 }
 0x511   : > { %6436 = vst [vmem:[#allocation3 + $0x19] sm:$0xff] %v6135_v30  ;;  %vm19768_vm15 = vnez %v19767_v25  ;;  %v5940_v43 = vmul.f32 0.2, %v13936_v34  ;;  %v13937_v61 = vadd.f32 %v13244_v31, %v18173_v49  ;;  %vm5892_vm14 = vcmp.ge.f32.partialorder %v13936_v34, 0.0  ;;  %v19769_v1 = vld [vmem:[#allocation9_spill] sm:$0xff] }
 0x512   : > { %v6138_v59 = vsel %vm19768_vm15, %v6090_v53, 0.0  ;;  %vm19770_vm9 = vnez %v19769_v1  ;;  %v5990_v33 = vsel %vm5894_vm3, %v13935_v18, %v5942_v9  ;;  %v13938_v29 = vadd.f32 %v18173_v49, %v5668_v16  ;;  %v6560_v1 = vld [vmem:[#allocation3 + $0x1] ss:$2 sm:$0xff] }
 0x513   : > { %v11733_v2 = vpack.c.bf16 %v6138_v59, %v6137_v11  ;;  %6439 = vst [vmem:[#allocation3 + $0x31] sm:$0xff] %v6138_v59  ;;  %v6136_v44 = vsel %vm19770_vm9, %v6088_v21, 0.0  ;;  %v6038_v42 = vadd.f32 %v18064_v7, %v5990_v33  ;;  %v5943_v62 = vmul.f32 0.2, %v13937_v61 }
 0x514   : > { %v11728_v41 = vpack.c.bf16 %v6136_v44, %v6135_v30  ;;  %6437 = vst [vmem:[#allocation3 + $0x21] sm:$0xff] %v6136_v44  ;;  %v5988_v38 = vsel %vm5892_vm14, %v13936_v34, %v5940_v43  ;;  %v5941_v31 = vmul.f32 0.2, %v13938_v29  ;;  %vm5895_vm1 = vcmp.ge.f32.partialorder %v13937_v61, 0.0  ;;  %v19771_v34 = vld [vmem:[#allocation73_spill] sm:$0xff] }
 0x515   : > { %11905 = vst [vmem:[%s18203_s29 + $0x8] sm:$0xff] %v11733_v2   ;;  %v6036_v53 = vadd.f32 %v5988_v38, %v18066_v39  ;;  %vm5893_vm13 = vcmp.ge.f32.partialorder %v13938_v29, 0.0  ;;  %v6093_v11 = vadd.f32 %v18182_v23, %v6038_v42  ;;  %v5991_v25 = vsel %vm5895_vm1, %v13937_v61, %v5943_v62  ;;  %v13247_v21 = vpop.f32.mrb[32].mxu0  ;;  %v19773_v61 = vld [vmem:[#allocation80_spill] sm:$0xff]  ;;  %v19775_v38 = vld [vmem:[#allocation62_spill] sm:$0xff] }
 0x516   : > { %11729 = vst [vmem:[%s18203_s29] sm:$0xff] %v11728_v41   ;;  %v6039_v30 = vadd.f32 %v18068_v37, %v5991_v25  ;;  %v5989_v9 = vsel %vm5893_vm13, %v13938_v29, %v5941_v31  ;;  %v13939_v7 = vadd.f32 %v13247_v21, %v18173_v49  ;;  %v5681_v16 = vpop.f32.mrb[33].mxu0  ;;  %vm19772_vm3 = vnez %v19771_v34 }
 0x517   : > { %v6091_v18 = vadd.f32 %v18182_v23, %v6036_v53  ;;  %v6141_v59 = vsel %vm19772_vm3, %v6093_v11, 0.0  ;;  %v6037_v39 = vadd.f32 %v5989_v9, %v18070_v28  ;;  %v13940_v43 = vadd.f32 %v18173_v49, %v5681_v16  ;;  %v13248_v2 = vpop.f32.mrb[34].mxu0 }
 0x518   : > { %6442 = vst [vmem:[#allocation3 + $0x49] sm:$0xff] %v6141_v59  ;;  %vm19774_vm15 = vnez %v19773_v61  ;;  %v6094_v33 = vadd.f32 %v18182_v23, %v6039_v30  ;;  %v5946_v37 = vmul.f32 0.2, %v13939_v7  ;;  %vm5898_vm14 = vcmp.ge.f32.partialorder %v13939_v7, 0.0  ;;  %v5684_v29 = vpop.f32.mrb[35].mxu0 }
 0x519   : > { %v6139_v44 = vsel %vm19774_vm15, %v6091_v18, 0.0  ;;  %v6092_v41 = vadd.f32 %v18182_v23, %v6037_v39  ;;  %v5944_v42 = vmul.f32 0.2, %v13940_v43  ;;  %v13941_v62 = vadd.f32 %v13248_v2, %v18173_v49  ;;  %v6562_v28 = vld [vmem:[#allocation3 + $0x11] ss:$2 sm:$0xff]  ;;  %v19777_v18 = vld [vmem:[#allocation56_spill] sm:$0xff] }
 0x51a   : > { %6440 = vst [vmem:[#allocation3 + $0x39] sm:$0xff] %v6139_v44  ;;  %vm5896_vm9 = vcmp.ge.f32.partialorder %v13940_v43, 0.0  ;;  %vm19776_vm1 = vnez %v19775_v38  ;;  %v5994_v31 = vsel %vm5898_vm14, %v13939_v7, %v5946_v37  ;;  %v13942_v11 = vadd.f32 %v18173_v49, %v5684_v29  ;;  %v19779_v29 = vld [vmem:[#allocation10_spill] sm:$0xff] }
 0x51b   : > { %v6142_v53 = vsel %vm19776_vm1, %v6094_v33, 0.0  ;;  %v6607_v25 = vpack.c.bf16 %v6562_v28, %v6560_v1  ;;  %vm19778_vm13 = vnez %v19777_v18  ;;  %v6042_v9 = vadd.f32 %v18075_v40, %v5994_v31  ;;  %v19781_v31 = vld [vmem:[#allocation5_spill] sm:$0xff] }
 0x51c   : > { %v11743_v21 = vpack.c.bf16 %v6142_v53, %v6141_v59  ;;  %6443 = vst [vmem:[#allocation3 + $0x51] sm:$0xff] %v6142_v53  ;;  %v6140_v30 = vsel %vm19778_vm13, %v6092_v41, 0.0  ;;  %v5947_v16 = vmul.f32 0.2, %v13941_v62  ;;  %v5992_v39 = vsel %vm5896_vm9, %v13940_v43, %v5944_v42 }
 0x51d   : > { %v11738_v34 = vpack.c.bf16 %v6140_v30, %v6139_v44  ;;  %6441 = vst [vmem:[#allocation3 + $0x41] sm:$0xff] %v6140_v30  ;;  %v5945_v2 = vmul.f32 0.2, %v13942_v11  ;;  %vm5899_vm3 = vcmp.ge.f32.partialorder %v13941_v62, 0.0  ;;  %13301 = vmatprep.mubr.bf16.mxu1 %v6607_v25  ;;  %v6097_v7 = vadd.f32 %v18182_v23, %v6042_v9  ;;  %v13251_v61 = vpop.f32.mrb[36].mxu0 }
 0x51e   : > { %11907 = vst [vmem:[%s18203_s29 + $0x18] sm:$0xff] %v11743_v21   ;;  %v6040_v1 = vadd.f32 %v5992_v39, %v18080_v5  ;;  %v5995_v59 = vsel %vm5899_vm3, %v13941_v62, %v5947_v16  ;;  %vm5897_vm15 = vcmp.ge.f32.partialorder %v13942_v11, 0.0  ;;  %v13943_v40 = vadd.f32 %v13251_v61, %v18173_v49  ;;  %v5697_v44 = vpop.f32.mrb[37].mxu0 }
 0x51f   : > { %11906 = vst [vmem:[%s18203_s29 + $0x10] sm:$0xff] %v11738_v34   ;;  %v6043_v33 = vadd.f32 %v18082_v20, %v5995_v59  ;;  %v5993_v37 = vsel %vm5897_vm15, %v13942_v11, %v5945_v2  ;;  %vm19780_vm14 = vnez %v19779_v29  ;;  %v13944_v28 = vadd.f32 %v18173_v49, %v5697_v44  ;;  %v13252_v5 = vpop.f32.mrb[38].mxu0  ;;  %v19785_v2 = vld [vmem:[#allocation11_spill] sm:$0xff] }
 0x520   : > { %v6145_v43 = vsel %vm19780_vm14, %v6097_v7, 0.0  ;;  %v6095_v41 = vadd.f32 %v18182_v23, %v6040_v1  ;;  %v6041_v42 = vadd.f32 %v5993_v37, %v18084_v36  ;;  %v5950_v38 = vmul.f32 0.2, %v13943_v40  ;;  %v5700_v53 = vpop.f32.mrb[39].mxu0  ;;  %v19783_v36 = vld [vmem:[#allocation13_spill] sm:$0xff] }
 0x521   : > { %6446 = vst [vmem:[#allocation3 + $0x69] sm:$0xff] %v6145_v43  ;;  %v6098_v62 = vadd.f32 %v18182_v23, %v6043_v33  ;;  %vm5902_vm9 = vcmp.ge.f32.partialorder %v13943_v40, 0.0  ;;  %v13945_v20 = vadd.f32 %v13252_v5, %v18173_v49  ;;  %vm19782_vm1 = vnez %v19781_v31  ;;  %v6566_v34 = vld [vmem:[#allocation3 + $0x31] ss:$2 sm:$0xff] }
 0x522   : > { %v6143_v11 = vsel %vm19782_vm1, %v6095_v41, 0.0  ;;  %v6096_v25 = vadd.f32 %v18182_v23, %v6041_v42  ;;  %v5948_v21 = vmul.f32 0.2, %v13944_v28  ;;  %vm5900_vm13 = vcmp.ge.f32.partialorder %v13944_v28, 0.0  ;;  %v14944_v42 = vld [vmem:[%s18841_s7 + $0x8] sm:$0xff]  }
 0x523   : > { %6444 = vst [vmem:[#allocation3 + $0x59] sm:$0xff] %v6143_v11  ;;  %vm19784_vm3 = vnez %v19783_v36  ;;  %v5998_v30 = vsel %vm5902_vm9, %v13943_v40, %v5950_v38  ;;  %v5951_v9 = vmul.f32 0.2, %v13945_v20  ;;  %v13946_v16 = vadd.f32 %v18173_v49, %v5700_v53  ;;  %v6564_v40 = vld [vmem:[#allocation3 + $0x21] ss:$2 sm:$0xff] }
 0x524   : > { %v6146_v18 = vsel %vm19784_vm3, %v6098_v62, 0.0  ;;  %vm19786_vm15 = vnez %v19785_v2  ;;  %v6046_v1 = vadd.f32 %v18089_v14, %v5998_v30  ;;  %v5996_v59 = vsel %vm5900_vm13, %v13944_v28, %v5948_v21  ;;  %v19787_v38 = vld [vmem:[#allocation16_spill] sm:$0xff]  ;;  %v19789_v21 = vld [vmem:[#allocation14_spill] sm:$0xff] }
 0x525   : > { %v11753_v39 = vpack.c.bf16 %v6146_v18, %v6145_v43  ;;  %6447 = vst [vmem:[#allocation3 + $0x71] sm:$0xff] %v6146_v18  ;;  %v6144_v7 = vsel %vm19786_vm15, %v6096_v25, 0.0  ;;  %v6044_v33 = vadd.f32 %v5996_v59, %v18094_v46  ;;  %v5949_v37 = vmul.f32 0.2, %v13946_v16  ;;  %v13255_v41 = vpop.f32.mrb[40].mxu0  ;;  %v19791_v2 = vld [vmem:[#allocation24_spill] sm:$0xff] }
 0x526   : > { %v11748_v61 = vpack.c.bf16 %v6144_v7, %v6143_v11  ;;  %6445 = vst [vmem:[#allocation3 + $0x61] sm:$0xff] %v6144_v7  ;;  %vm5903_vm14 = vcmp.ge.f32.partialorder %v13945_v20, 0.0  ;;  %v6101_v44 = vadd.f32 %v18182_v23, %v6046_v1  ;;  %vm5901_vm9 = vcmp.ge.f32.partialorder %v13946_v16, 0.0  ;;  %v5713_v62 = vpop.f32.mrb[41].mxu0  ;;  %v6568_v25 = vld [vmem:[#allocation3 + $0x41] ss:$2 sm:$0xff] }
 0x527   : > { %11909 = vst [vmem:[%s18203_s29 + $0x28] sm:$0xff] %v11753_v39   ;;  %v5999_v29 = vsel %vm5903_vm14, %v13945_v20, %v5951_v9  ;;  %v6608_v43 = vpack.c.bf16 %v6566_v34, %v6564_v40  ;;  %v6099_v14 = vadd.f32 %v18182_v23, %v6044_v33  ;;  %v5997_v46 = vsel %vm5901_vm9, %v13946_v16, %v5949_v37  ;;  %v13256_v11 = vpop.f32.mrb[42].mxu0  ;;  %v14945_v39 = vld [vmem:[%s18841_s7 + $0x10] sm:$0xff]  }
 0x528   : > { %11908 = vst [vmem:[%s18203_s29 + $0x20] sm:$0xff] %v11748_v61   ;;  %v6047_v28 = vadd.f32 %v18096_v10, %v5999_v29  ;;  %v13947_v5 = vadd.f32 %v13255_v41, %v18173_v49  ;;  %vm19788_vm1 = vnez %v19787_v38  ;;  %v6045_v20 = vadd.f32 %v5997_v46, %v18098_v27  ;;  %v5716_v30 = vpop.f32.mrb[43].mxu0  ;;  %v19793_v33 = vld [vmem:[#allocation19_spill] sm:$0xff] }
 0x529   : > { %v6149_v53 = vsel %vm19788_vm1, %v6101_v44, 0.0  ;;  %13302 = vmatmul.mubr.bf16.vlgmr.msra.gmra.mrb[72].mxu1 %v6608_v43  ;;  %v13948_v31 = vadd.f32 %v18173_v49, %v5713_v62  ;;  %vm19790_vm13 = vnez %v19789_v21  ;;  %v13949_v16 = vadd.f32 %v13256_v11, %v18173_v49 }
 0x52a   : > { %6450 = vst [vmem:[#allocation3 + $0x89] sm:$0xff] %v6149_v53  ;;  %v6147_v36 = vsel %vm19790_vm13, %v6099_v14, 0.0  ;;  %v6102_v10 = vadd.f32 %v18182_v23, %v6047_v28  ;;  %v5954_v18 = vmul.f32 0.2, %v13947_v5  ;;  %vm5906_vm3 = vcmp.ge.f32.partialorder %v13947_v5, 0.0  ;;  %13326 = vmatpush3.bf16.msra.mxu1 %v18143_v4 }
 0x52b   : > { %6448 = vst [vmem:[#allocation3 + $0x79] sm:$0xff] %v6147_v36  ;;  %v6100_v9 = vadd.f32 %v18182_v23, %v6045_v20  ;;  %v5952_v27 = vmul.f32 0.2, %v13948_v31  ;;  %vm5904_vm15 = vcmp.ge.f32.partialorder %v13948_v31, 0.0  ;;  %v6570_v34 = vld [vmem:[#allocation3 + $0x51] ss:$2 sm:$0xff]  ;;  %13327 = vmatprep.subr.bf16.mxu1 %v14944_v42  ;;  %vm19792_vm14 = vnez %v19791_v2 }
 0x52c   : > { %v6150_v7 = vsel %vm19792_vm14, %v6102_v10, 0.0  ;;  %v6002_v1 = vsel %vm5906_vm3, %v13947_v5, %v5954_v18  ;;  %v13950_v4 = vadd.f32 %v18173_v49, %v5716_v30  ;;  %v6609_v59 = vpack.c.bf16 %v6570_v34, %v6568_v25 }
 0x52d   : > { %v11763_v61 = vpack.c.bf16 %v6150_v7, %v6149_v53  ;;  %6451 = vst [vmem:[#allocation3 + $0x91] sm:$0xff] %v6150_v7  ;;  %vm19794_vm9 = vnez %v19793_v33  ;;  %v6050_v40 = vadd.f32 %v18100_v19, %v6002_v1  ;;  %v5955_v44 = vmul.f32 0.2, %v13949_v16  ;;  %v13259_v5 = vpop.f32.mrb[44].mxu0  ;;  %v14946_v19 = vld [vmem:[%s18841_s7 + $0x18] sm:$0xff]  }
 0x52e   : > { %v6148_v37 = vsel %vm19794_vm9, %v6100_v9, 0.0  ;;  %v6000_v43 = vsel %vm5904_vm15, %v13948_v31, %v5952_v27  ;;  %v5953_v41 = vmul.f32 0.2, %v13950_v4  ;;  %vm5907_vm1 = vcmp.ge.f32.partialorder %v13949_v16, 0.0  ;;  %13305 = vmatprep.mubr.bf16.mxu1 %v6609_v59  ;;  %13328 = vmatpush3.bf16.msra.mxu1 %v14944_v42  ;;  %v5729_v42 = vpop.f32.mrb[45].mxu0 }
 0x52f   : > { %v11758_v29 = vpack.c.bf16 %v6148_v37, %v6147_v36  ;;  %6449 = vst [vmem:[#allocation3 + $0x81] sm:$0xff] %v6148_v37  ;;  %11911 = vst [vmem:[%s18203_s29 + $0x38] sm:$0xff] %v11763_v61   ;;  %v6105_v14 = vadd.f32 %v18182_v23, %v6050_v40  ;;  %v6048_v28 = vadd.f32 %v6000_v43, %v18102_v60  ;;  %vm5905_vm13 = vcmp.ge.f32.partialorder %v13950_v4, 0.0  ;;  %v13260_v25 = vpop.f32.mrb[46].mxu0  ;;  %v6572_v61 = vld [vmem:[#allocation3 + $0x61] ss:$2 sm:$0xff] }
 0x530   : > { %v6003_v46 = vsel %vm5907_vm1, %v13949_v16, %v5955_v44  ;;  %13329 = vmatprep.subr.bf16.mxu1 %v14945_v39  ;;  %v6001_v38 = vsel %vm5905_vm13, %v13950_v4, %v5953_v41  ;;  %v13951_v53 = vadd.f32 %v13259_v5, %v18173_v49  ;;  %vm19795_vm3 = vnez %v19514_v32  ;;  %v5732_v10 = vpop.f32.mrb[47].mxu0 }
 0x531   : > { %11910 = vst [vmem:[%s18203_s29 + $0x30] sm:$0xff] %v11758_v29   ;;  %v6051_v62 = vadd.f32 %v18104_v12, %v6003_v46  ;;  %v6153_v20 = vsel %vm19795_vm3, %v6105_v14, 0.0  ;;  %v6103_v60 = vadd.f32 %v18182_v23, %v6048_v28  ;;  %v6049_v31 = vadd.f32 %v6001_v38, %v18106_v6  ;;  %v14947_v6 = vld [vmem:[%s18841_s7 + $0x20] sm:$0xff]  }
 0x532   : > { %v13952_v11 = vadd.f32 %v18173_v49, %v5729_v42  ;;  %6454 = vst [vmem:[#allocation3 + $0xa9] sm:$0xff] %v6153_v20  ;;  %v5958_v36 = vmul.f32 0.2, %v13951_v53  ;;  %vm5910_vm15 = vcmp.ge.f32.partialorder %v13951_v53, 0.0  ;;  %v13953_v12 = vadd.f32 %v13260_v25, %v18173_v49  ;;  %13330 = vmatpush3.bf16.msra.mxu1 %v14945_v39 }
 0x533   : > { %v6106_v21 = vadd.f32 %v18182_v23, %v6051_v62  ;;  %vm19796_vm14 = vnez %v19521_v55  ;;  %v6104_v18 = vadd.f32 %v18182_v23, %v6049_v31  ;;  %13331 = vmatprep.subr.bf16.mxu1 %v14946_v19  ;;  %vm19797_vm1 = vnez %v19534_v56  ;;  %v6574_v55 = vld [vmem:[#allocation3 + $0x71] ss:$2 sm:$0xff] }
 0x534   : > { %v6151_v32 = vsel %vm19796_vm14, %v6103_v60, 0.0  ;;  %v5956_v30 = vmul.f32 0.2, %v13952_v11  ;;  %vm5908_vm9 = vcmp.ge.f32.partialorder %v13952_v11, 0.0  ;;  %v6006_v27 = vsel %vm5910_vm15, %v13951_v53, %v5958_v36  ;;  %v19800_v62 = vld [vmem:[#allocation22_spill] sm:$0xff]  ;;  %v14949_v31 = vld [vmem:[%s18841_s7 + $0x30] sm:$0xff]  }
 0x535   : > { %6452 = vst [vmem:[#allocation3 + $0x99] sm:$0xff] %v6151_v32  ;;  %v6154_v9 = vsel %vm19797_vm1, %v6106_v21, 0.0  ;;  %v5959_v16 = vmul.f32 0.2, %v13953_v12  ;;  %v13954_v34 = vadd.f32 %v18173_v49, %v5732_v10  ;;  %vm19798_vm13 = vnez %v19542_v3  ;;  %v13263_v3 = vpop.f32.mrb[48].mxu0 }
 0x536   : > { %v11773_v39 = vpack.c.bf16 %v6154_v9, %v6153_v20  ;;  %6455 = vst [vmem:[#allocation3 + $0xb1] sm:$0xff] %v6154_v9  ;;  %v6152_v2 = vsel %vm19798_vm13, %v6104_v18, 0.0  ;;  %v6054_v7 = vadd.f32 %v18108_v54, %v6006_v27  ;;  %v6004_v1 = vsel %vm5908_vm9, %v13952_v11, %v5956_v30  ;;  %13332 = vmatpush3.bf16.msra.mxu1 %v14946_v19  ;;  %v14948_v54 = vld [vmem:[%s18841_s7 + $0x28] sm:$0xff]   ;;  %v5745_v41 = vpop.f32.mrb[49].mxu0  ;;  %v6576_v19 = vld [vmem:[#allocation3 + $0x81] ss:$2 sm:$0xff] }
 0x537   : > { %v11768_v4 = vpack.c.bf16 %v6152_v2, %v6151_v32  ;;  %6453 = vst [vmem:[#allocation3 + $0xa1] sm:$0xff] %v6152_v2  ;;  %v6052_v56 = vadd.f32 %v6004_v1, %v18110_v15  ;;  %v5957_v59 = vmul.f32 0.2, %v13954_v34  ;;  %vm5911_vm3 = vcmp.ge.f32.partialorder %v13953_v12, 0.0  ;;  %13333 = vmatprep.subr.bf16.mxu1 %v14947_v6  ;;  %v13264_v5 = vpop.f32.mrb[50].mxu0  ;;  %v19802_v11 = vld [vmem:[#allocation27_spill] sm:$0xff] }
 0x538   : > { %11913 = vst [vmem:[%s18203_s29 + $0x48] sm:$0xff] %v11773_v39   ;;  %v6109_v33 = vadd.f32 %v18182_v23, %v6054_v7  ;;  %v6007_v37 = vsel %vm5911_vm3, %v13953_v12, %v5959_v16  ;;  %vm5909_vm15 = vcmp.ge.f32.partialorder %v13954_v34, 0.0  ;;  %v6610_v40 = vpack.c.bf16 %v6574_v55, %v6572_v61  ;;  %v5748_v42 = vpop.f32.mrb[51].mxu0  ;;  %v19804_v32 = vld [vmem:[#allocation28_spill] sm:$0xff] }
 0x539   : > { %11912 = vst [vmem:[%s18203_s29 + $0x40] sm:$0xff] %v11768_v4   ;;  %v6107_v44 = vadd.f32 %v18182_v23, %v6052_v56  ;;  %v6055_v15 = vadd.f32 %v18112_v17, %v6007_v37  ;;  %v6005_v29 = vsel %vm5909_vm15, %v13954_v34, %v5957_v59  ;;  %v13955_v43 = vadd.f32 %v13263_v3, %v18173_v49  ;;  %v19806_v59 = vld [vmem:[#allocation4_spill] sm:$0xff] }
 0x53a   : > { %vm19799_vm14 = vnez %v19559_v52  ;;  %v6053_v28 = vadd.f32 %v6005_v29, %v18114_v51  ;;  %13306 = vmatmul.mubr.bf16.gmra.mrb[76].mxu1 %v6610_v40  ;;  %v13956_v46 = vadd.f32 %v18173_v49, %v5745_v41  ;;  %vm19801_vm9 = vnez %v19800_v62 }
 0x53b   : > { %v6157_v14 = vsel %vm19799_vm14, %v6109_v33, 0.0  ;;  %v6155_v38 = vsel %vm19801_vm9, %v6107_v44, 0.0  ;;  %v6110_v17 = vadd.f32 %v18182_v23, %v6055_v15  ;;  %v5962_v53 = vmul.f32 0.2, %v13955_v43  ;;  %13334 = vmatpush3.bf16.msra.mxu1 %v14947_v6  ;;  %v19808_v15 = vld [vmem:[#allocation51_spill] sm:$0xff] }
 0x53c   : > { %6458 = vst [vmem:[#allocation3 + $0xc9] sm:$0xff] %v6157_v14  ;;  %vm5914_vm1 = vcmp.ge.f32.partialorder %v13955_v43, 0.0  ;;  %6456 = vst [vmem:[#allocation3 + $0xb9] sm:$0xff] %v6155_v38  ;;  %v6108_v52 = vadd.f32 %v18182_v23, %v6053_v28  ;;  %v5960_v20 = vmul.f32 0.2, %v13956_v46  ;;  %v13957_v51 = vadd.f32 %v13264_v5, %v18173_v49  ;;  %13335 = vmatprep.subr.bf16.mxu1 %v14948_v54 }
 0x53d   : > { %vm5912_vm13 = vcmp.ge.f32.partialorder %v13956_v46, 0.0  ;;  %v6578_v60 = vld [vmem:[#allocation3 + $0x91] ss:$2 sm:$0xff]  ;;  %vm19803_vm3 = vnez %v19802_v11  ;;  %v6010_v21 = vsel %vm5914_vm1, %v13955_v43, %v5962_v53  ;;  %v13958_v36 = vadd.f32 %v18173_v49, %v5748_v42  ;;  %v13267_v2 = vpop.f32.mrb[52].mxu0 }
 0x53e   : > { %v6158_v25 = vsel %vm19803_vm3, %v6110_v17, 0.0  ;;  %v6611_v12 = vpack.c.bf16 %v6578_v60, %v6576_v19  ;;  %vm19805_vm15 = vnez %v19804_v32  ;;  %v6058_v30 = vadd.f32 %v18116_v8, %v6010_v21  ;;  %v14950_v8 = vld [vmem:[%s18841_s7 + $0x38] sm:$0xff]   ;;  %v5761_v56 = vpop.f32.mrb[53].mxu0  ;;  %v19812_v17 = vld [vmem:[#allocation6_spill] sm:$0xff] }
 0x53f   : > { %v11783_v10 = vpack.c.bf16 %v6158_v25, %v6157_v14  ;;  %6459 = vst [vmem:[#allocation3 + $0xd1] sm:$0xff] %v6158_v25  ;;  %v6156_v18 = vsel %vm19805_vm15, %v6108_v52, 0.0  ;;  %v5963_v6 = vmul.f32 0.2, %v13957_v51  ;;  %v6008_v27 = vsel %vm5912_vm13, %v13956_v46, %v5960_v20  ;;  %13336 = vmatpush3.bf16.msra.mxu1 %v14948_v54  ;;  %v13268_v40 = vpop.f32.mrb[54].mxu0  ;;  %v19810_v14 = vld [vmem:[#allocation12_spill] sm:$0xff] }
 0x540   : > { %v11778_v9 = vpack.c.bf16 %v6156_v18, %v6155_v38  ;;  %6457 = vst [vmem:[#allocation3 + $0xc1] sm:$0xff] %v6156_v18  ;;  %v5961_v16 = vmul.f32 0.2, %v13958_v36  ;;  %vm5915_vm14 = vcmp.ge.f32.partialorder %v13957_v51, 0.0  ;;  %13309 = vmatprep.mubr.bf16.mxu1 %v6611_v12  ;;  %v6113_v34 = vadd.f32 %v18182_v23, %v6058_v30  ;;  %13337 = vmatprep.subr.bf16.mxu1 %v14949_v31  ;;  %v5764_v44 = vpop.f32.mrb[55].mxu0  ;;  %v19814_v18 = vld [vmem:[#allocation7_spill] sm:$0xff] }
 0x541   : > { %11915 = vst [vmem:[%s18203_s29 + $0x58] sm:$0xff] %v11783_v10   ;;  %v6056_v55 = vadd.f32 %v6008_v27, %v18118_v48  ;;  %v6011_v39 = vsel %vm5915_vm14, %v13957_v51, %v5963_v6  ;;  %vm5913_vm9 = vcmp.ge.f32.partialorder %v13958_v36, 0.0  ;;  %v13959_v4 = vadd.f32 %v13267_v2, %v18173_v49 }
 0x542   : > { %11914 = vst [vmem:[%s18203_s29 + $0x50] sm:$0xff] %v11778_v9   ;;  %v6059_v7 = vadd.f32 %v18120_v0, %v6011_v39  ;;  %v6009_v1 = vsel %vm5913_vm9, %v13958_v36, %v5961_v16  ;;  %vm19807_vm1 = vnez %v19806_v59  ;;  %v13960_v37 = vadd.f32 %v18173_v49, %v5761_v56 }
 0x543   : > { %v6161_v61 = vsel %vm19807_vm1, %v6113_v34, 0.0  ;;  %v6111_v48 = vadd.f32 %v18182_v23, %v6056_v55  ;;  %v6057_v33 = vadd.f32 %v6009_v1, %v18122_v58  ;;  %v5966_v54 = vmul.f32 0.2, %v13959_v4  ;;  %13338 = vmatpush3.bf16.msra.mxu1 %v14949_v31  ;;  %v18363_v58 = vld [vmem:[%s18841_s7 + $0x80] sm:$0xff]   ;;  %v6582_v62 = vld [vmem:[#allocation3 + $0xb1] ss:$2 sm:$0xff] }
 0x544   : > { %6462 = vst [vmem:[#allocation3 + $0xe9] sm:$0xff] %v6161_v61  ;;  %v6114_v3 = vadd.f32 %v18182_v23, %v6059_v7  ;;  %vm5918_vm13 = vcmp.ge.f32.partialorder %v13959_v4, 0.0  ;;  %v13961_v0 = vadd.f32 %v13268_v40, %v18173_v49  ;;  %vm19809_vm3 = vnez %v19808_v15  ;;  %13339 = vmatprep.subr.bf16.mxu1 %v14950_v8  ;;  %v6580_v31 = vld [vmem:[#allocation3 + $0xa1] ss:$2 sm:$0xff]  ;;  %v19816_v34 = vld [vmem:[#allocation15_spill] sm:$0xff] }
 0x545   : > { %v6159_v29 = vsel %vm19809_vm3, %v6111_v48, 0.0  ;;  %v6112_v43 = vadd.f32 %v18182_v23, %v6057_v33  ;;  %v5964_v41 = vmul.f32 0.2, %v13960_v37  ;;  %vm5916_vm15 = vcmp.ge.f32.partialorder %v13960_v37, 0.0  ;;  %v13271_v36 = vpop.f32.mrb[56].mxu0 }
 0x546   : > { %6460 = vst [vmem:[#allocation3 + $0xd9] sm:$0xff] %v6159_v29  ;;  %vm19811_vm14 = vnez %v19810_v14  ;;  %v6014_v46 = vsel %vm5918_vm13, %v13959_v4, %v5966_v54  ;;  %v5967_v5 = vmul.f32 0.2, %v13961_v0  ;;  %v13962_v19 = vadd.f32 %v18173_v49, %v5764_v44  ;;  %v5777_v32 = vpop.f32.mrb[57].mxu0  ;;  %v19818_v4 = vld [vmem:[#allocation60_spill] sm:$0xff] }
 0x547   : > { %v6162_v28 = vsel %vm19811_vm14, %v6114_v3, 0.0  ;;  %vm19813_vm9 = vnez %v19812_v17  ;;  %v6062_v42 = vadd.f32 %v18124_v26, %v6014_v46  ;;  %v6012_v52 = vsel %vm5916_vm15, %v13960_v37, %v5964_v41  ;;  %13340 = vmatpush3.bf16.msra.mxu1 %v14950_v8  ;;  %v13272_v27 = vpop.f32.mrb[58].mxu0  ;;  %v6584_v16 = vld [vmem:[#allocation3 + $0xc1] ss:$2 sm:$0xff] }
 0x548   : > { %v11793_v38 = vpack.c.bf16 %v6162_v28, %v6161_v61  ;;  %6463 = vst [vmem:[#allocation3 + $0xf1] sm:$0xff] %v6162_v28  ;;  %v6160_v53 = vsel %vm19813_vm9, %v6112_v43, 0.0  ;;  %v6060_v51 = vadd.f32 %v6012_v52, %v18126_v57  ;;  %v5965_v60 = vmul.f32 0.2, %v13962_v19  ;;  %13365 = vmatprep.subr.bf16.mxu1 %v18363_v58  ;;  %v5780_v2 = vpop.f32.mrb[59].mxu0  ;;  %v19820_v37 = vld [vmem:[#allocation57_spill] sm:$0xff] }
 0x549   : > { %v11788_v20 = vpack.c.bf16 %v6160_v53, %v6159_v29  ;;  %6461 = vst [vmem:[#allocation3 + $0xe1] sm:$0xff] %v6160_v53  ;;  %vm5919_vm1 = vcmp.ge.f32.partialorder %v13961_v0, 0.0  ;;  %v6117_v11 = vadd.f32 %v18182_v23, %v6062_v42  ;;  %vm5917_vm13 = vcmp.ge.f32.partialorder %v13962_v19, 0.0 }
 0x54a   : > { %11917 = vst [vmem:[%s18203_s29 + $0x68] sm:$0xff] %v11793_v38   ;;  %v6015_v25 = vsel %vm5919_vm1, %v13961_v0, %v5967_v5  ;;  %v6612_v21 = vpack.c.bf16 %v6582_v62, %v6580_v31  ;;  %v6115_v26 = vadd.f32 %v18182_v23, %v6060_v51  ;;  %v6013_v10 = vsel %vm5917_vm13, %v13962_v19, %v5965_v60  ;;  %v19822_v19 = vld [vmem:[#allocation17_spill] sm:$0xff]  ;;  %v19824_v51 = vld [vmem:[#allocation18_spill] sm:$0xff] }
 0x54b   : > { %11916 = vst [vmem:[%s18203_s29 + $0x60] sm:$0xff] %v11788_v20   ;;  %v6063_v12 = vadd.f32 %v18128_v63, %v6015_v25  ;;  %v13963_v57 = vadd.f32 %v13271_v36, %v18173_v49  ;;  %vm19815_vm3 = vnez %v19814_v18  ;;  %v6061_v6 = vadd.f32 %v6013_v10, %v18130_v22 }
 0x54c   : > { %v6165_v30 = vsel %vm19815_vm3, %v6117_v11, 0.0  ;;  %13310 = vmatmul.mubr.bf16.gmra.mrb[80].mxu1 %v6612_v21  ;;  %v13964_v9 = vadd.f32 %v18173_v49, %v5777_v32  ;;  %vm19817_vm15 = vnez %v19816_v34  ;;  %v13965_v22 = vadd.f32 %v13272_v27, %v18173_v49 }
 0x54d   : > { %6466 = vst [vmem:[#allocation3 + $0x109] sm:$0xff] %v6165_v30  ;;  %v6163_v55 = vsel %vm19817_vm15, %v6115_v26, 0.0  ;;  %v6118_v63 = vadd.f32 %v18182_v23, %v6063_v12  ;;  %v5970_v39 = vmul.f32 0.2, %v13963_v57  ;;  %vm5922_vm14 = vcmp.ge.f32.partialorder %v13963_v57, 0.0  ;;  %v13275_v14 = vpop.f32.mrb[60].mxu0 }
 0x54e   : > { %6464 = vst [vmem:[#allocation3 + $0xf9] sm:$0xff] %v6163_v55  ;;  %v6116_v8 = vadd.f32 %v18182_v23, %v6061_v6  ;;  %v5968_v7 = vmul.f32 0.2, %v13964_v9  ;;  %vm5920_vm9 = vcmp.ge.f32.partialorder %v13964_v9, 0.0  ;;  %v6586_v1 = vld [vmem:[#allocation3 + $0xd1] ss:$2 sm:$0xff]  ;;  %vm19819_vm1 = vnez %v19818_v4 }
 0x54f   : > { %v6166_v56 = vsel %vm19819_vm1, %v6118_v63, 0.0  ;;  %v6018_v59 = vsel %vm5922_vm14, %v13963_v57, %v5970_v39  ;;  %v13966_v61 = vadd.f32 %v18173_v49, %v5780_v2  ;;  %v6613_v48 = vpack.c.bf16 %v6586_v1, %v6584_v16  ;;  %v5793_v5 = vpop.f32.mrb[61].mxu0  ;;  %v19828_v57 = vld [vmem:[#allocation30_spill] sm:$0xff] }
 0x550   : > { %v11803_v33 = vpack.c.bf16 %v6166_v56, %v6165_v30  ;;  %6467 = vst [vmem:[#allocation3 + $0x111] sm:$0xff] %v6166_v56  ;;  %vm19821_vm13 = vnez %v19820_v37  ;;  %v6066_v3 = vadd.f32 %v18132_v35, %v6018_v59  ;;  %v5971_v54 = vmul.f32 0.2, %v13965_v22  ;;  %v6588_v16 = vld [vmem:[#allocation3 + $0xe1] ss:$2 sm:$0xff] }
 0x551   : > { %v6164_v40 = vsel %vm19821_vm13, %v6116_v8, 0.0  ;;  %v6016_v44 = vsel %vm5920_vm9, %v13964_v9, %v5968_v7  ;;  %v5969_v15 = vmul.f32 0.2, %v13966_v61  ;;  %vm5923_vm3 = vcmp.ge.f32.partialorder %v13965_v22, 0.0  ;;  %13313 = vmatprep.mubr.bf16.mxu1 %v6613_v48  ;;  %v19830_v8 = vld [vmem:[#allocation35_spill] sm:$0xff]  ;;  %v19833_v56 = vld [vmem:[#allocation48_spill] sm:$0xff] }
 0x552   : > { %v11798_v0 = vpack.c.bf16 %v6164_v40, %v6163_v55  ;;  %6465 = vst [vmem:[#allocation3 + $0x101] sm:$0xff] %v6164_v40  ;;  %11919 = vst [vmem:[%s18203_s29 + $0x78] sm:$0xff] %v11803_v33   ;;  %v6121_v29 = vadd.f32 %v18182_v23, %v6066_v3  ;;  %v6064_v43 = vadd.f32 %v6016_v44, %v18134_v45  ;;  %vm5921_vm15 = vcmp.ge.f32.partialorder %v13966_v61, 0.0  ;;  %v13276_v45 = vpop.f32.mrb[62].mxu0  ;;  %v19846_v37 = vld [vmem:[#allocation52_spill] sm:$0xff] }
 0x553   : > { %v6019_v41 = vsel %vm5923_vm3, %v13965_v22, %v5971_v54  ;;  %v6017_v46 = vsel %vm5921_vm15, %v13966_v61, %v5969_v15  ;;  %v13967_v35 = vadd.f32 %v13275_v14, %v18173_v49  ;;  %vm19823_vm14 = vnez %v19822_v19  ;;  %v5796_v20 = vpop.f32.mrb[63].mxu0 }
 0x554   : > { %11918 = vst [vmem:[%s18203_s29 + $0x70] sm:$0xff] %v11798_v0   ;;  %v6067_v28 = vadd.f32 %v18136_v50, %v6019_v41  ;;  %v6169_v62 = vsel %vm19823_vm14, %v6121_v29, 0.0  ;;  %v6119_v38 = vadd.f32 %v18182_v23, %v6064_v43  ;;  %v6065_v17 = vadd.f32 %v6017_v46, %v18138_v47  ;;  %v19826_v47 = vld [vmem:[#allocation29_spill] sm:$0xff] }
 0x555   : > { %v13968_v53 = vadd.f32 %v18173_v49, %v5793_v5  ;;  %6470 = vst [vmem:[#allocation3 + $0x129] sm:$0xff] %v6169_v62  ;;  %v5974_v52 = vmul.f32 0.2, %v13967_v35  ;;  %vm5926_vm9 = vcmp.ge.f32.partialorder %v13967_v35, 0.0  ;;  %v13969_v50 = vadd.f32 %v13276_v45, %v18173_v49  ;;  %v6590_v12 = vld [vmem:[#allocation3 + $0xf1] ss:$2 sm:$0xff] }
 0x556   : > { %v6122_v42 = vadd.f32 %v18182_v23, %v6067_v28  ;;  %vm19825_vm1 = vnez %v19824_v51  ;;  %v6120_v31 = vadd.f32 %v18182_v23, %v6065_v17  ;;  %vm19827_vm3 = vnez %v19826_v47  ;;  %v13279_v39 = vpop.f32.mrb[64].mxu0 }
 0x557   : > { %v6167_v60 = vsel %vm19825_vm1, %v6119_v38, 0.0  ;;  %v5972_v11 = vmul.f32 0.2, %v13968_v53  ;;  %vm5924_vm13 = vcmp.ge.f32.partialorder %v13968_v53, 0.0  ;;  %v6022_v21 = vsel %vm5926_vm9, %v13967_v35, %v5974_v52  ;;  %v5809_v1 = vpop.f32.mrb[65].mxu0  ;;  %v19837_v38 = vld [vmem:[#allocation42_spill] sm:$0xff] }
 0x558   : > { %6468 = vst [vmem:[#allocation3 + $0x119] sm:$0xff] %v6167_v60  ;;  %v6170_v25 = vsel %vm19827_vm3, %v6122_v42, 0.0  ;;  %v5975_v36 = vmul.f32 0.2, %v13969_v50  ;;  %v13970_v26 = vadd.f32 %v18173_v49, %v5796_v20  ;;  %vm19829_vm15 = vnez %v19828_v57  ;;  %v13280_v48 = vpop.f32.mrb[66].mxu0  ;;  %v19838_v20 = vld [vmem:[#allocation37_spill] sm:$0xff] }
 0x559   : > { %v11813_v10 = vpack.c.bf16 %v6170_v25, %v6169_v62  ;;  %6471 = vst [vmem:[#allocation3 + $0x131] sm:$0xff] %v6170_v25  ;;  %v6168_v32 = vsel %vm19829_vm15, %v6120_v31, 0.0  ;;  %v6070_v18 = vadd.f32 %v18145_v13, %v6022_v21  ;;  %v6020_v30 = vsel %vm5924_vm13, %v13968_v53, %v5972_v11  ;;  %v6592_v33 = vld [vmem:[#allocation3 + $0x101] ss:$2 sm:$0xff]  ;;  %v5812_v0 = vpop.f32.mrb[67].mxu0  ;;  %v19841_v57 = vld [vmem:[#allocation43_spill] sm:$0xff] }
 0x55a   : > { %v11808_v6 = vpack.c.bf16 %v6168_v32, %v6167_v60  ;;  %6469 = vst [vmem:[#allocation3 + $0x121] sm:$0xff] %v6168_v32  ;;  %v6068_v9 = vadd.f32 %v6020_v30, %v18148_v24  ;;  %v5973_v27 = vmul.f32 0.2, %v13970_v26  ;;  %vm5927_vm14 = vcmp.ge.f32.partialorder %v13969_v50, 0.0  ;;  %v19831_v24 = vld [vmem:[#allocation20_spill] sm:$0xff]  ;;  %v19839_v11 = vld [vmem:[#allocation49_spill] sm:$0xff] }
 0x55b   : > { %11921 = vst [vmem:[%s18203_s29 + $0x88] sm:$0xff] %v11813_v10   ;;  %v6125_v34 = vadd.f32 %v18182_v23, %v6070_v18  ;;  %v6023_v55 = vsel %vm5927_vm14, %v13969_v50, %v5975_v36  ;;  %vm5925_vm9 = vcmp.ge.f32.partialorder %v13970_v26, 0.0  ;;  %v6614_v63 = vpack.c.bf16 %v6590_v12, %v6588_v16 }
 0x55c   : > { %11920 = vst [vmem:[%s18203_s29 + $0x80] sm:$0xff] %v11808_v6   ;;  %v6123_v2 = vadd.f32 %v18182_v23, %v6068_v9  ;;  %v6071_v13 = vadd.f32 %v19830_v8, %v6023_v55  ;;  %v6021_v7 = vsel %vm5925_vm9, %v13970_v26, %v5973_v27  ;;  %v13971_v22 = vadd.f32 %v13279_v39, %v18173_v49  ;;  %v6490_v26 = vld [vmem:[#allocation3 + $0x30] ss:$2 sm:$0xff] }
 0x55d   : > { %vm19832_vm1 = vnez %v19831_v24  ;;  %v6069_v59 = vadd.f32 %v6021_v7, %v19833_v56  ;;  %13314 = vmatmul.mubr.bf16.gmra.mrb[84].mxu1 %v6614_v63  ;;  %v13972_v61 = vadd.f32 %v18173_v49, %v5809_v1  ;;  %v13973_v29 = vadd.f32 %v13280_v48, %v18173_v49  ;;  %v13283_v31 = vpop.f32.mrb[68].mxu0 }
 0x55e   : > { %v6173_v4 = vsel %vm19832_vm1, %v6125_v34, 0.0  ;;  %v6171_v40 = vsel %vm17126_vm7, %v6123_v2, 0.0  ;;  %v6126_v3 = vadd.f32 %v18182_v23, %v6071_v13  ;;  %v5978_v54 = vmul.f32 0.2, %v13971_v22  ;;  %v5825_v36 = vpop.f32.mrb[69].mxu0 }
 0x55f   : > { %6474 = vst [vmem:[#allocation3 + $0x149] sm:$0xff] %v6173_v4  ;;  %vm5930_vm13 = vcmp.ge.f32.partialorder %v13971_v22, 0.0  ;;  %6472 = vst [vmem:[#allocation3 + $0x139] sm:$0xff] %v6171_v40  ;;  %v6124_v44 = vadd.f32 %v18182_v23, %v6069_v59  ;;  %v5976_v15 = vmul.f32 0.2, %v13972_v61  ;;  %vm5928_vm3 = vcmp.ge.f32.partialorder %v13972_v61, 0.0 }
 0x560   : > { %v6594_v43 = vld [vmem:[#allocation3 + $0x111] ss:$2 sm:$0xff]  ;;  %v6174_v14 = vsel %vm17139_vm4, %v6126_v3, 0.0  ;;  %v6026_v28 = vsel %vm5930_vm13, %v13971_v22, %v5978_v54  ;;  %v13974_v46 = vadd.f32 %v18173_v49, %v5812_v0  ;;  %v5979_v53 = vmul.f32 0.2, %v13973_v29  ;;  %v13284_v30 = vpop.f32.mrb[70].mxu0 }
 0x561   : > { %v6615_v35 = vpack.c.bf16 %v6594_v43, %v6592_v33  ;;  %v11823_v5 = vpack.c.bf16 %v6174_v14, %v6173_v4  ;;  %6475 = vst [vmem:[#allocation3 + $0x151] sm:$0xff] %v6174_v14  ;;  %v6172_v62 = vsel %vm17156_vm0, %v6124_v44, 0.0  ;;  %v6074_v17 = vadd.f32 %v19837_v38, %v6026_v28  ;;  %v5828_v16 = vpop.f32.mrb[71].mxu0  ;;  %v19845_v59 = vld [vmem:[#allocation39_spill] sm:$0xff]  ;;  %v6596_v54 = vld [vmem:[#allocation3 + $0x121] ss:$2 sm:$0xff] }
 0x562   : > { %v11818_v45 = vpack.c.bf16 %v6172_v62, %v6171_v40  ;;  %6473 = vst [vmem:[#allocation3 + $0x141] sm:$0xff] %v6172_v62  ;;  %v6024_v42 = vsel %vm5928_vm3, %v13972_v61, %v5976_v15  ;;  %v5977_v52 = vmul.f32 0.2, %v13974_v46  ;;  %vm5931_vm7 = vcmp.ge.f32.partialorder %v13973_v29, 0.0  ;;  %v15090_v15 = vld [vmem:[%s18840_s6] ss:$0 sm:$0xff] }
 0x563   : > { %13317 = vmatprep.mubr.bf16.mxu1 %v6615_v35  ;;  %11923 = vst [vmem:[%s18203_s29 + $0x98] sm:$0xff] %v11823_v5   ;;  %v6129_v50 = vadd.f32 %v18182_v23, %v6074_v17  ;;  %v6072_v51 = vadd.f32 %v6024_v42, %v19838_v20  ;;  %v6027_v60 = vsel %vm5931_vm7, %v13973_v29, %v5979_v53  ;;  %vm5929_vm4 = vcmp.ge.f32.partialorder %v13974_v46, 0.0  ;;  %v19847_v43 = vld [vmem:[#allocation45_spill] sm:$0xff]  ;;  %v19852_v20 = vld [vmem:[#allocation40_spill] sm:$0xff]  ;;  %v6506_v2 = vld [vmem:[#allocation3 + $0xb0] ss:$2 sm:$0xff] }
 0x564   : > { %11922 = vst [vmem:[%s18203_s29 + $0x90] sm:$0xff] %v11818_v45   ;;  %v6075_v47 = vadd.f32 %v19839_v11, %v6027_v60  ;;  %v6025_v25 = vsel %vm5929_vm4, %v13974_v46, %v5977_v52  ;;  %v13975_v21 = vadd.f32 %v13283_v31, %v18173_v49  ;;  %v13976_v18 = vadd.f32 %v18173_v49, %v5825_v36  ;;  %v19849_v35 = vld [vmem:[#allocation41_spill] sm:$0xff]  ;;  %v6486_v11 = vld [vmem:[#allocation3 + $0x10] ss:$2 sm:$0xff] }
 0x565   : > { %v6177_v12 = vsel %vm17165_vm11, %v6129_v50, 0.0  ;;  %v6127_v10 = vadd.f32 %v18182_v23, %v6072_v51  ;;  %v6073_v32 = vadd.f32 %v6025_v25, %v19841_v57  ;;  %v13977_v27 = vadd.f32 %v13284_v30, %v18173_v49  ;;  %v6484_v31 = vld [vmem:[#allocation3] ss:$2 sm:$0xff]  ;;  %v14957_v4 = vld [vmem:[%s18841_s7 + $0xb0] sm:$0xff]  }
 0x566   : > { %6478 = vst [vmem:[#allocation3 + $0x169] sm:$0xff] %v6177_v12  ;;  %v6130_v6 = vadd.f32 %v18182_v23, %v6075_v47  ;;  %v5982_v9 = vmul.f32 0.2, %v13975_v21  ;;  %vm5934_vm0 = vcmp.ge.f32.partialorder %v13975_v21, 0.0  ;;  %v5980_v39 = vmul.f32 0.2, %v13976_v18 }
 0x567   : > { %v6175_v55 = vsel %vm17204_vm5, %v6127_v10, 0.0  ;;  %v6128_v63 = vadd.f32 %v18182_v23, %v6073_v32  ;;  %vm5932_vm11 = vcmp.ge.f32.partialorder %v13976_v18, 0.0  ;;  %v5983_v7 = vmul.f32 0.2, %v13977_v27  ;;  %v6598_v1 = vld [vmem:[#allocation3 + $0x131] ss:$2 sm:$0xff] }
 0x568   : > { %6476 = vst [vmem:[#allocation3 + $0x159] sm:$0xff] %v6175_v55  ;;  %v6178_v8 = vsel %vm17213_vm8, %v6130_v6, 0.0  ;;  %v6030_v13 = vsel %vm5934_vm0, %v13975_v21, %v5982_v9  ;;  %v13978_v22 = vadd.f32 %v18173_v49, %v5828_v16  ;;  %v6028_v48 = vsel %vm5932_vm11, %v13976_v18, %v5980_v39  ;;  %v6488_v10 = vld [vmem:[#allocation3 + $0x20] ss:$2 sm:$0xff]  ;;  %v14952_v18 = vld [vmem:[%s18841_s7 + $0x88] sm:$0xff]   ;;  %v14953_v6 = vld [vmem:[%s18841_s7 + $0x90] sm:$0xff]  }
 0x569   : > { %v11833_v24 = vpack.c.bf16 %v6178_v8, %v6177_v12  ;;  %6479 = vst [vmem:[#allocation3 + $0x171] sm:$0xff] %v6178_v8  ;;  %v6176_v56 = vsel %vm17226_vm10, %v6128_v63, 0.0  ;;  %v6078_v61 = vadd.f32 %v19845_v59, %v6030_v13  ;;  %v6076_v40 = vadd.f32 %v6028_v48, %v19846_v37  ;;  %v6600_v17 = vld [vmem:[#allocation3 + $0x141] ss:$2 sm:$0xff]  ;;  %v6494_v12 = vld [vmem:[#allocation3 + $0x50] ss:$2 sm:$0xff] }
 0x56a   : > { %v11828_v33 = vpack.c.bf16 %v6176_v56, %v6175_v55  ;;  %6477 = vst [vmem:[#allocation3 + $0x161] sm:$0xff] %v6176_v56  ;;  %v5981_v3 = vmul.f32 0.2, %v13978_v22  ;;  %vm5935_vm5 = vcmp.ge.f32.partialorder %v13977_v27, 0.0  ;;  %vm5933_vm8 = vcmp.ge.f32.partialorder %v13978_v22, 0.0  ;;  %v14954_v63 = vld [vmem:[%s18841_s7 + $0x98] sm:$0xff]  }
 0x56b   : > { %11925 = vst [vmem:[%s18203_s29 + $0xa8] sm:$0xff] %v11833_v24   ;;  %v6133_v49 = vadd.f32 %v18182_v23, %v6078_v61  ;;  %v6031_v0 = vsel %vm5935_vm5, %v13977_v27, %v5983_v7  ;;  %v6616_v44 = vpack.c.bf16 %v6598_v1, %v6596_v54  ;;  %v6131_v29 = vadd.f32 %v15090_v15, %v6076_v40  ;;  %v6492_v32 = vld [vmem:[#allocation3 + $0x40] ss:$2 sm:$0xff]  ;;  %v6498_v9 = vld [vmem:[#allocation3 + $0x70] ss:$2 sm:$0xff] }
 0x56c   : > { %11924 = vst [vmem:[%s18203_s29 + $0xa0] sm:$0xff] %v11828_v33   ;;  %v6079_v41 = vadd.f32 %v19847_v43, %v6031_v0  ;;  %v6029_v14 = vsel %vm5933_vm8, %v13978_v22, %v5981_v3  ;;  %v6531_v36 = vpack.c.bf16 %v6486_v11, %v6484_v31  ;;  %v6532_v57 = vpack.c.bf16 %v6490_v26, %v6488_v10  ;;  %v6502_v27 = vld [vmem:[#allocation3 + $0x90] ss:$2 sm:$0xff]  ;;  %v6496_v16 = vld [vmem:[#allocation3 + $0x60] ss:$2 sm:$0xff] }
 0x56d   : > { %v6181_v46 = vsel %vm17235_vm2, %v6133_v49, 0.0  ;;  %v6077_v5 = vadd.f32 %v6029_v14, %v19849_v35  ;;  %13318 = vmatmul.mubr.bf16.gmra.mrb[88].mxu1 %v6616_v44  ;;  %v6179_v19 = vsel %vm17257_vm6, %v6131_v29, 0.0  ;;  %vm19853_vm2 = vnez %v19852_v20  ;;  %v6500_v55 = vld [vmem:[#allocation3 + $0x80] ss:$2 sm:$0xff]  ;;  %v6510_v8 = vld [vmem:[#allocation3 + $0xd0] ss:$2 sm:$0xff] }
 0x56e   : > { %6482 = vst [vmem:[#allocation3 + $0x189] sm:$0xff] %v6181_v46  ;;  %v6134_v62 = vadd.f32 %v15090_v15, %v6079_v41  ;;  %6480 = vst [vmem:[#allocation3 + $0x179] sm:$0xff] %v6179_v19  ;;  %v6533_v30 = vpack.c.bf16 %v6494_v12, %v6492_v32  ;;  %v6534_v34 = vpack.c.bf16 %v6498_v9, %v6496_v16  ;;  %v6504_v13 = vld [vmem:[#allocation3 + $0xa0] ss:$2 sm:$0xff]  ;;  %v14956_v1 = vld [vmem:[%s18841_s7 + $0xa8] sm:$0xff]  }
 0x56f   : > { %v6132_v38 = vadd.f32 %v15090_v15, %v6077_v5  ;;  %v6602_v53 = vld [vmem:[#allocation3 + $0x151] ss:$2 sm:$0xff]  ;;  %v6535_v39 = vpack.c.bf16 %v6502_v27, %v6500_v55  ;;  %v6536_v7 = vpack.c.bf16 %v6506_v2, %v6504_v13  ;;  %v6508_v22 = vld [vmem:[#allocation3 + $0xc0] ss:$2 sm:$0xff]  ;;  %v6514_v56 = vld [vmem:[#allocation3 + $0xf0] ss:$2 sm:$0xff] }
 0x570   : > { %v6182_v42 = vsel %vm17331_vm12, %v6134_v62, 0.0  ;;  %v6617_v52 = vpack.c.bf16 %v6602_v53, %v6600_v17  ;;  %v6537_v24 = vpack.c.bf16 %v6510_v8, %v6508_v22  ;;  %v6518_v59 = vld [vmem:[#allocation3 + $0x110] ss:$2 sm:$0xff]  ;;  %v6512_v61 = vld [vmem:[#allocation3 + $0xe0] ss:$2 sm:$0xff] }
 0x571   : > { %v11843_v50 = vpack.c.bf16 %v6182_v42, %v6181_v46  ;;  %6483 = vst [vmem:[#allocation3 + $0x191] sm:$0xff] %v6182_v42  ;;  %v6180_v51 = vsel %vm19853_vm2, %v6132_v38, 0.0  ;;  %v6604_v47 = vld [vmem:[#allocation3 + $0x161] ss:$2 sm:$0xff]  ;;  %v6538_v48 = vpack.c.bf16 %v6514_v56, %v6512_v61  ;;  %v6516_v33 = vld [vmem:[#allocation3 + $0x100] ss:$2 sm:$0xff] }
 0x572   : > { %v11838_v60 = vpack.c.bf16 %v6180_v51, %v6179_v19  ;;  %6481 = vst [vmem:[#allocation3 + $0x181] sm:$0xff] %v6180_v51  ;;  %13321 = vmatprep.mubr.bf16.mxu1 %v6617_v52  ;;  %v14958_v37 = vld [vmem:[%s18841_s7 + $0xb8] sm:$0xff]   ;;  %v6539_v40 = vpack.c.bf16 %v6518_v59, %v6516_v33  ;;  %v14959_v3 = vld [vmem:[%s18841_s7 + $0xc0] sm:$0xff]   ;;  %v6522_v54 = vld [vmem:[#allocation3 + $0x130] ss:$2 sm:$0xff] }
 0x573   : > { %11927 = vst [vmem:[%s18203_s29 + $0xb8] sm:$0xff] %v11843_v50   ;;  %v6526_v49 = vld [vmem:[#allocation3 + $0x150] ss:$2 sm:$0xff]  ;;  %v6520_v0 = vld [vmem:[#allocation3 + $0x120] ss:$2 sm:$0xff] }
 0x574   : > { %11926 = vst [vmem:[%s18203_s29 + $0xb0] sm:$0xff] %v11838_v60   ;;  %v6540_v44 = vpack.c.bf16 %v6522_v54, %v6520_v0  ;;  %v6524_v15 = vld [vmem:[#allocation3 + $0x140] ss:$2 sm:$0xff]  ;;  %v14960_v17 = vld [vmem:[%s18841_s7 + $0xc8] sm:$0xff]   ;;  %v14961_v45 = vld [vmem:[%s18841_s7 + $0xd0] sm:$0xff]  }
 0x575   : > { %v6606_v25 = vld [vmem:[#allocation3 + $0x171] ss:$2 sm:$0xff]  ;;  %v6541_v29 = vpack.c.bf16 %v6526_v49, %v6524_v15  ;;  %v6530_v43 = vld [vmem:[#allocation3 + $0x170] ss:$2 sm:$0xff]  ;;  %v6528_v28 = vld [vmem:[#allocation3 + $0x160] ss:$2 sm:$0xff] }
 0x576   : > { %v6618_v21 = vpack.c.bf16 %v6606_v25, %v6604_v47  ;;  %v6991_v41 = vld [vmem:[#allocation3 + $0x2] ss:$2 sm:$0xff]  ;;  %v6993_v14 = vld [vmem:[#allocation3 + $0x12] ss:$2 sm:$0xff]  ;;  %v6542_v46 = vpack.c.bf16 %v6530_v43, %v6528_v28  ;;  %v7271_v22 = vld [vmem:[#allocation3 + $0x13] ss:$2 sm:$0xff] }
 0x577   : > { %v7038_v35 = vpack.c.bf16 %v6993_v14, %v6991_v41  ;;  %v6997_v5 = vld [vmem:[#allocation3 + $0x32] ss:$2 sm:$0xff]  ;;  %v6995_v19 = vld [vmem:[#allocation3 + $0x22] ss:$2 sm:$0xff]  ;;  %v7275_v56 = vld [vmem:[#allocation3 + $0x33] ss:$2 sm:$0xff] }
 0x578   : > { %13322 = vmatmul.mubr.bf16.gmra.mrb[92].mxu1 %v6618_v21  ;;  %v7001_v23 = vld [vmem:[#allocation3 + $0x52] ss:$2 sm:$0xff]  ;;  %v7039_v62 = vpack.c.bf16 %v6997_v5, %v6995_v19  ;;  %v6999_v38 = vld [vmem:[#allocation3 + $0x42] ss:$2 sm:$0xff]  ;;  %v7279_v59 = vld [vmem:[#allocation3 + $0x53] ss:$2 sm:$0xff] }
 0x579   : > { %13341 = vmatprep.mubr.bf16.mxu1 %v6531_v36  ;;  %v7040_v53 = vpack.c.bf16 %v7001_v23, %v6999_v38  ;;  %v7005_v42 = vld [vmem:[#allocation3 + $0x72] ss:$2 sm:$0xff]  ;;  %v7003_v50 = vld [vmem:[#allocation3 + $0x62] ss:$2 sm:$0xff]  ;;  %v7273_v61 = vld [vmem:[#allocation3 + $0x23] ss:$2 sm:$0xff] }
 0x57a   : > { %v7009_v52 = vld [vmem:[#allocation3 + $0x92] ss:$2 sm:$0xff]  ;;  %v7041_v20 = vpack.c.bf16 %v7005_v42, %v7003_v50  ;;  %v7007_v51 = vld [vmem:[#allocation3 + $0x82] ss:$2 sm:$0xff]  ;;  %v7277_v33 = vld [vmem:[#allocation3 + $0x43] ss:$2 sm:$0xff] }
 0x57b   : > { %v14962_v60 = vld [vmem:[%s18841_s7 + $0xd8] sm:$0xff]   ;;  %v7042_v31 = vpack.c.bf16 %v7009_v52, %v7007_v51  ;;  %v14963_v11 = vld [vmem:[%s18841_s7 + $0xe0] sm:$0xff]   ;;  %v14964_v12 = vld [vmem:[%s18841_s7 + $0xe8] sm:$0xff]  }
 0x57c   : > { %v7013_v47 = vld [vmem:[#allocation3 + $0xb2] ss:$2 sm:$0xff]  ;;  %v7011_v21 = vld [vmem:[#allocation3 + $0xa2] ss:$2 sm:$0xff]  ;;  %v7283_v54 = vld [vmem:[#allocation3 + $0x73] ss:$2 sm:$0xff] }
 0x57d   : > { %v7017_v25 = vld [vmem:[#allocation3 + $0xd2] ss:$2 sm:$0xff]  ;;  %v7043_v36 = vpack.c.bf16 %v7013_v47, %v7011_v21  ;;  %v7015_v26 = vld [vmem:[#allocation3 + $0xc2] ss:$2 sm:$0xff]  ;;  %v7287_v49 = vld [vmem:[#allocation3 + $0x93] ss:$2 sm:$0xff] }
 0x57e   : > { %v7044_v10 = vpack.c.bf16 %v7017_v25, %v7015_v26  ;;  %v7021_v32 = vld [vmem:[#allocation3 + $0xf2] ss:$2 sm:$0xff]  ;;  %v7023_v9 = vld [vmem:[#allocation3 + $0x102] ss:$2 sm:$0xff]  ;;  %v7281_v0 = vld [vmem:[#allocation3 + $0x63] ss:$2 sm:$0xff] }
 0x57f   : > { %v14966_v27 = vld [vmem:[%s18841_s7 + $0xf8] sm:$0xff]   ;;  %v14971_v41 = vld [vmem:[%s18841_s7 + $0x120] sm:$0xff]   ;;  %v14972_v23 = vld [vmem:[%s18841_s7 + $0x128] sm:$0xff]  }
 0x580   : > { %13342 = vmatmul.mubr.bf16.vlgmr.msra.gmra.mrb[72].mxu1 %v6532_v57  ;;  %v14965_v57 = vld [vmem:[%s18841_s7 + $0xf0] sm:$0xff]   ;;  %v7031_v2 = vld [vmem:[#allocation3 + $0x142] ss:$2 sm:$0xff]  ;;  %v7285_v15 = vld [vmem:[#allocation3 + $0x83] ss:$2 sm:$0xff] }
 0x581   : > { %13366 = vmatpush3.bf16.msra.mxu1 %v18363_v58  ;;  %13345 = vmatprep.mubr.bf16.mxu1 %v6533_v30  ;;  %v14955_v58 = vld [vmem:[%s18841_s7 + $0xa0] sm:$0xff]   ;;  %v7029_v55 = vld [vmem:[#allocation3 + $0x132] ss:$2 sm:$0xff]  ;;  %v7320_v43 = vpack.c.bf16 %v7287_v49, %v7285_v15  ;;  %v7291_v14 = vld [vmem:[#allocation3 + $0xb3] ss:$2 sm:$0xff] }
 0x582   : > { %13367 = vmatprep.subr.bf16.mxu1 %v14952_v18  ;;  %v7019_v30 = vld [vmem:[#allocation3 + $0xe2] ss:$2 sm:$0xff]  ;;  %v7037_v13 = vld [vmem:[#allocation3 + $0x172] ss:$2 sm:$0xff]  ;;  %v7295_v28 = vld [vmem:[#allocation3 + $0xd3] ss:$2 sm:$0xff] }
 0x583   : > { %v7293_v5 = vld [vmem:[#allocation3 + $0xc3] ss:$2 sm:$0xff]  ;;  %v7299_v38 = vld [vmem:[#allocation3 + $0xf3] ss:$2 sm:$0xff]  ;;  %v7549_v26 = vld [vmem:[#allocation3 + $0x28] ss:$2 sm:$0xff] }
 0x584   : > { %v7322_v19 = vpack.c.bf16 %v7295_v28, %v7293_v5  ;;  %v7301_v42 = vld [vmem:[#allocation3 + $0x103] ss:$2 sm:$0xff]  ;;  %v7307_v51 = vld [vmem:[#allocation3 + $0x133] ss:$2 sm:$0xff]  ;;  %v7583_v15 = vld [vmem:[#allocation3 + $0x138] ss:$2 sm:$0xff] }
 0x585   : > { %13368 = vmatpush3.bf16.msra.mxu1 %v14952_v18  ;;  %v7025_v18 = vld [vmem:[#allocation3 + $0x112] ss:$2 sm:$0xff]  ;;  %v7309_v47 = vld [vmem:[#allocation3 + $0x143] ss:$2 sm:$0xff]  ;;  %v7315_v21 = vld [vmem:[#allocation3 + $0x173] ss:$2 sm:$0xff] }
 0x586   : > { %13369 = vmatprep.subr.bf16.mxu1 %v14953_v6  ;;  %v7046_v16 = vpack.c.bf16 %v7025_v18, %v7023_v9  ;;  %v14974_v52 = vld [vmem:[%s18841_s7 + $0x138] sm:$0xff]   ;;  %v7553_v18 = vld [vmem:[#allocation3 + $0x48] ss:$2 sm:$0xff] }
 0x587   : > { %v14982_v49 = vld [vmem:[%s18841_s7 + $0x178] sm:$0xff]  }
 0x588   : > { %13346 = vmatmul.mubr.bf16.gmra.mrb[76].mxu1 %v6534_v34  ;;  %v14967_v34 = vld [vmem:[%s18841_s7 + $0x100] sm:$0xff]   ;;  %v7825_v5 = vld [vmem:[#allocation3 + $0x19] ss:$2 sm:$0xff] }
 0x589   : > { %13349 = vmatprep.mubr.bf16.mxu1 %v6535_v39  ;;  %13370 = vmatpush3.bf16.msra.mxu1 %v14953_v6  ;;  %v7045_v6 = vpack.c.bf16 %v7021_v32, %v7019_v30  ;;  %v7027_v39 = vld [vmem:[#allocation3 + $0x122] ss:$2 sm:$0xff] }
 0x58a   : > { %13371 = vmatprep.subr.bf16.mxu1 %v14954_v63  ;;  %v7551_v32 = vld [vmem:[#allocation3 + $0x38] ss:$2 sm:$0xff] }
 0x58b   : > { %v7555_v30 = vld [vmem:[#allocation3 + $0x58] ss:$2 sm:$0xff]  ;;  %v7595_v9 = vpack.c.bf16 %v7553_v18, %v7551_v32  ;;  %v14988_v18 = vld [vmem:[%s18841_s7 + $0x1a8] sm:$0xff]  }
 0x58d   : > { %13372 = vmatpush3.bf16.msra.mxu1 %v14954_v63  ;;  %v7033_v63 = vld [vmem:[#allocation3 + $0x152] ss:$2 sm:$0xff] }
 0x58e   : > { %13373 = vmatprep.subr.bf16.mxu1 %v14955_v58  ;;  %v7048_v8 = vpack.c.bf16 %v7033_v63, %v7031_v2  ;;  %v7561_v63 = vld [vmem:[#allocation3 + $0x88] ss:$2 sm:$0xff] }
 0x590   : > { %13350 = vmatmul.mubr.bf16.gmra.mrb[80].mxu1 %v6536_v7  ;;  %v7269_v7 = vld [vmem:[#allocation3 + $0x3] ss:$2 sm:$0xff] }
 0x591   : > { %13353 = vmatprep.mubr.bf16.mxu1 %v6537_v24  ;;  %13374 = vmatpush3.bf16.msra.mxu1 %v14955_v58  ;;  %v7047_v58 = vpack.c.bf16 %v7029_v55, %v7027_v39  ;;  %v7559_v55 = vld [vmem:[#allocation3 + $0x78] ss:$2 sm:$0xff] }
 0x592   : > { %13375 = vmatprep.subr.bf16.mxu1 %v14956_v1  ;;  %v7563_v39 = vld [vmem:[#allocation3 + $0x98] ss:$2 sm:$0xff]  ;;  %v7597_v2 = vpack.c.bf16 %v7561_v63, %v7559_v55 }
 0x593   : > { %v14990_v63 = vld [vmem:[%s18841_s7 + $0x1b8] sm:$0xff]  }
 0x595   : > { %13376 = vmatpush3.bf16.msra.mxu1 %v14956_v1  ;;  %v7035_v1 = vld [vmem:[#allocation3 + $0x162] ss:$2 sm:$0xff] }
 0x596   : > { %13377 = vmatprep.subr.bf16.mxu1 %v14957_v4  ;;  %v7049_v24 = vpack.c.bf16 %v7037_v13, %v7035_v1  ;;  %v7569_v1 = vld [vmem:[#allocation3 + $0xc8] ss:$2 sm:$0xff] }
 0x598   : > { %13354 = vmatmul.mubr.bf16.gmra.mrb[84].mxu1 %v6538_v48  ;;  %v7317_v48 = vpack.c.bf16 %v7275_v56, %v7273_v61 }
 0x599   : > { %13357 = vmatprep.mubr.bf16.mxu1 %v6539_v40  ;;  %13378 = vmatpush3.bf16.msra.mxu1 %v14957_v4  ;;  %v7316_v4 = vpack.c.bf16 %v7271_v22, %v7269_v7  ;;  %v7318_v40 = vpack.c.bf16 %v7279_v59, %v7277_v33  ;;  %v14979_v7 = vld [vmem:[%s18841_s7 + $0x160] sm:$0xff]   ;;  %v7567_v22 = vld [vmem:[#allocation3 + $0xb8] ss:$2 sm:$0xff]  ;;  %v14980_v59 = vld [vmem:[%s18841_s7 + $0x168] sm:$0xff]  }
 0x59a   : > { %13379 = vmatprep.subr.bf16.mxu1 %v14958_v37  ;;  %v7599_v56 = vpack.c.bf16 %v7569_v1, %v7567_v22  ;;  %v7575_v33 = vld [vmem:[#allocation3 + $0xf8] ss:$2 sm:$0xff] }
 0x59d   : > { %13380 = vmatpush3.bf16.msra.mxu1 %v14958_v37  ;;  %v14968_v37 = vld [vmem:[%s18841_s7 + $0x108] sm:$0xff]  }
 0x59e   : > { %13405 = vmatprep.subr.bf16.mxu1 %v14959_v3 }
 0x5a0   : > { %13358 = vmatmul.mubr.bf16.gmra.mrb[88].mxu1 %v6540_v44  ;;  %v7319_v44 = vpack.c.bf16 %v7283_v54, %v7281_v0 }
 0x5a1   : > { %13361 = vmatprep.mubr.bf16.mxu1 %v6541_v29  ;;  %v14970_v29 = vld [vmem:[%s18841_s7 + $0x118] sm:$0xff]  }
 0x5a8   : > { %13362 = vmatmul.mubr.bf16.gmra.mrb[92].mxu1 %v6542_v46  ;;  %v7289_v46 = vld [vmem:[#allocation3 + $0xa3] ss:$2 sm:$0xff] }
 0x5a9   : > { %13381 = vmatprep.mubr.bf16.mxu1 %v7038_v35  ;;  %v7321_v35 = vpack.c.bf16 %v7291_v14, %v7289_v46  ;;  %v7591_v46 = vld [vmem:[#allocation3 + $0x178] ss:$2 sm:$0xff] }
 0x5b0   : > { %13382 = vmatmul.mubr.bf16.vlgmr.msra.gmra.mrb[72].mxu1 %v7039_v62  ;;  %v14973_v62 = vld [vmem:[%s18841_s7 + $0x130] sm:$0xff]  }
 0x5b1   : > { %13406 = vmatpush3.bf16.msra.mxu1 %v14959_v3  ;;  %13385 = vmatprep.mubr.bf16.mxu1 %v7040_v53  ;;  %v14969_v3 = vld [vmem:[%s18841_s7 + $0x110] sm:$0xff]   ;;  %v7297_v53 = vld [vmem:[#allocation3 + $0xe3] ss:$2 sm:$0xff] }
 0x5b2   : > { %13407 = vmatprep.subr.bf16.mxu1 %v14960_v17 }
 0x5b5   : > { %13408 = vmatpush3.bf16.msra.mxu1 %v14960_v17  ;;  %v7303_v17 = vld [vmem:[#allocation3 + $0x113] ss:$2 sm:$0xff] }
 0x5b6   : > { %13409 = vmatprep.subr.bf16.mxu1 %v14961_v45  ;;  %v7324_v50 = vpack.c.bf16 %v7303_v17, %v7301_v42  ;;  %v7831_v17 = vld [vmem:[#allocation3 + $0x49] ss:$2 sm:$0xff] }
 0x5b8   : > { %13386 = vmatmul.mubr.bf16.gmra.mrb[76].mxu1 %v7041_v20  ;;  %v14975_v20 = vld [vmem:[%s18841_s7 + $0x140] sm:$0xff]  }
 0x5b9   : > { %13389 = vmatprep.mubr.bf16.mxu1 %v7042_v31  ;;  %13410 = vmatpush3.bf16.msra.mxu1 %v14961_v45  ;;  %v7323_v45 = vpack.c.bf16 %v7299_v38, %v7297_v53  ;;  %v7305_v31 = vld [vmem:[#allocation3 + $0x123] ss:$2 sm:$0xff] }
 0x5ba   : > { %13411 = vmatprep.subr.bf16.mxu1 %v14962_v60  ;;  %v7829_v38 = vld [vmem:[#allocation3 + $0x39] ss:$2 sm:$0xff] }
 0x5bb   : > { %v7833_v53 = vld [vmem:[#allocation3 + $0x59] ss:$2 sm:$0xff]  ;;  %v7873_v42 = vpack.c.bf16 %v7831_v17, %v7829_v38  ;;  %v14996_v17 = vld [vmem:[%s18841_s7 + $0x1e8] sm:$0xff]  }
 0x5bd   : > { %13412 = vmatpush3.bf16.msra.mxu1 %v14962_v60  ;;  %v7311_v60 = vld [vmem:[#allocation3 + $0x153] ss:$2 sm:$0xff] }
 0x5be   : > { %13413 = vmatprep.subr.bf16.mxu1 %v14963_v11  ;;  %v7326_v25 = vpack.c.bf16 %v7311_v60, %v7309_v47  ;;  %v7839_v60 = vld [vmem:[#allocation3 + $0x89] ss:$2 sm:$0xff] }
 0x5c0   : > { %13390 = vmatmul.mubr.bf16.gmra.mrb[80].mxu1 %v7043_v36  ;;  %v7547_v36 = vld [vmem:[#allocation3 + $0x18] ss:$2 sm:$0xff] }
 0x5c1   : > { %13393 = vmatprep.mubr.bf16.mxu1 %v7044_v10  ;;  %13414 = vmatpush3.bf16.msra.mxu1 %v14963_v11  ;;  %v7325_v11 = vpack.c.bf16 %v7307_v51, %v7305_v31  ;;  %v7837_v51 = vld [vmem:[#allocation3 + $0x79] ss:$2 sm:$0xff] }
 0x5c2   : > { %13415 = vmatprep.subr.bf16.mxu1 %v14964_v12  ;;  %v7841_v31 = vld [vmem:[#allocation3 + $0x99] ss:$2 sm:$0xff]  ;;  %v7875_v47 = vpack.c.bf16 %v7839_v60, %v7837_v51 }
 0x5c3   : > { %v14998_v60 = vld [vmem:[%s18841_s7 + $0x1f8] sm:$0xff]  }
 0x5c5   : > { %13416 = vmatpush3.bf16.msra.mxu1 %v14964_v12  ;;  %v7313_v12 = vld [vmem:[#allocation3 + $0x163] ss:$2 sm:$0xff] }
 0x5c6   : > { %13417 = vmatprep.subr.bf16.mxu1 %v14965_v57  ;;  %v7327_v10 = vpack.c.bf16 %v7315_v21, %v7313_v12  ;;  %v7847_v12 = vld [vmem:[#allocation3 + $0xc9] ss:$2 sm:$0xff] }
 0x5c8   : > { %13394 = vmatmul.mubr.bf16.gmra.mrb[84].mxu1 %v7045_v6  ;;  %v7557_v6 = vld [vmem:[#allocation3 + $0x68] ss:$2 sm:$0xff] }
 0x5c9   : > { %13397 = vmatprep.mubr.bf16.mxu1 %v7046_v16  ;;  %13418 = vmatpush3.bf16.msra.mxu1 %v14965_v57  ;;  %v7594_v57 = vpack.c.bf16 %v7549_v26, %v7547_v36  ;;  %v7596_v16 = vpack.c.bf16 %v7557_v6, %v7555_v30  ;;  %v14987_v36 = vld [vmem:[%s18841_s7 + $0x1a0] sm:$0xff]   ;;  %v7845_v26 = vld [vmem:[#allocation3 + $0xb9] ss:$2 sm:$0xff] }
 0x5ca   : > { %13419 = vmatprep.subr.bf16.mxu1 %v14966_v27  ;;  %v7877_v32 = vpack.c.bf16 %v7847_v12, %v7845_v26  ;;  %v14989_v6 = vld [vmem:[%s18841_s7 + $0x1b0] sm:$0xff]  }
 0x5cd   : > { %13420 = vmatpush3.bf16.msra.mxu1 %v14966_v27  ;;  %v14976_v27 = vld [vmem:[%s18841_s7 + $0x148] sm:$0xff]  }
 0x5ce   : > { %13445 = vmatprep.subr.bf16.mxu1 %v14967_v34 }
 0x5d0   : > { %13398 = vmatmul.mubr.bf16.gmra.mrb[88].mxu1 %v7047_v58  ;;  %v7565_v58 = vld [vmem:[#allocation3 + $0xa8] ss:$2 sm:$0xff] }
 0x5d1   : > { %13401 = vmatprep.mubr.bf16.mxu1 %v7048_v8  ;;  %v14978_v8 = vld [vmem:[%s18841_s7 + $0x158] sm:$0xff]   ;;  %v7598_v13 = vpack.c.bf16 %v7565_v58, %v7563_v39  ;;  %v14991_v58 = vld [vmem:[%s18841_s7 + $0x1c0] sm:$0xff]  }
 0x5d8   : > { %13402 = vmatmul.mubr.bf16.gmra.mrb[92].mxu1 %v7049_v24  ;;  %v7571_v24 = vld [vmem:[#allocation3 + $0xd8] ss:$2 sm:$0xff] }
 0x5d9   : > { %13421 = vmatprep.mubr.bf16.mxu1 %v7316_v4  ;;  %v7573_v4 = vld [vmem:[#allocation3 + $0xe8] ss:$2 sm:$0xff] }
 0x5da   : > { %v7600_v61 = vpack.c.bf16 %v7573_v4, %v7571_v24  ;;  %v7869_v24 = vld [vmem:[#allocation3 + $0x179] ss:$2 sm:$0xff]  ;;  %v7871_v4 = vld [vmem:[#allocation3 + $0x189] ss:$2 sm:$0xff] }
 0x5e0   : > { %13422 = vmatmul.mubr.bf16.vlgmr.msra.gmra.mrb[72].mxu1 %v7317_v48  ;;  %v14981_v48 = vld [vmem:[%s18841_s7 + $0x170] sm:$0xff]  }
 0x5e1   : > { %13446 = vmatpush3.bf16.msra.mxu1 %v14967_v34  ;;  %13425 = vmatprep.mubr.bf16.mxu1 %v7318_v40  ;;  %v14977_v34 = vld [vmem:[%s18841_s7 + $0x150] sm:$0xff]  }
 0x5e2   : > { %13447 = vmatprep.subr.bf16.mxu1 %v14968_v37  ;;  %v7579_v40 = vld [vmem:[#allocation3 + $0x118] ss:$2 sm:$0xff] }
 0x5e5   : > { %13448 = vmatpush3.bf16.msra.mxu1 %v14968_v37  ;;  %v7577_v37 = vld [vmem:[#allocation3 + $0x108] ss:$2 sm:$0xff] }
 0x5e6   : > { %13449 = vmatprep.subr.bf16.mxu1 %v14969_v3  ;;  %v7601_v54 = vpack.c.bf16 %v7577_v37, %v7575_v33  ;;  %v8107_v33 = vld [vmem:[#allocation3 + $0x3a] ss:$2 sm:$0xff]  ;;  %v8109_v37 = vld [vmem:[#allocation3 + $0x4a] ss:$2 sm:$0xff] }
 0x5e8   : > { %13426 = vmatmul.mubr.bf16.gmra.mrb[76].mxu1 %v7319_v44  ;;  %v14983_v44 = vld [vmem:[%s18841_s7 + $0x180] sm:$0xff]  }
 0x5e9   : > { %13429 = vmatprep.mubr.bf16.mxu1 %v7320_v43  ;;  %13450 = vmatpush3.bf16.msra.mxu1 %v14969_v3  ;;  %v7581_v3 = vld [vmem:[#allocation3 + $0x128] ss:$2 sm:$0xff]  ;;  %v7587_v43 = vld [vmem:[#allocation3 + $0x158] ss:$2 sm:$0xff] }
 0x5ea   : > { %13451 = vmatprep.subr.bf16.mxu1 %v14970_v29  ;;  %v7602_v0 = vpack.c.bf16 %v7581_v3, %v7579_v40  ;;  %v8111_v40 = vld [vmem:[#allocation3 + $0x5a] ss:$2 sm:$0xff]  ;;  %v8113_v3 = vld [vmem:[#allocation3 + $0x6a] ss:$2 sm:$0xff] }
 0x5ed   : > { %13452 = vmatpush3.bf16.msra.mxu1 %v14970_v29  ;;  %v7585_v29 = vld [vmem:[#allocation3 + $0x148] ss:$2 sm:$0xff] }
 0x5ee   : > { %13453 = vmatprep.subr.bf16.mxu1 %v14971_v41  ;;  %v7603_v14 = vpack.c.bf16 %v7585_v29, %v7583_v15  ;;  %v8115_v15 = vld [vmem:[#allocation3 + $0x7a] ss:$2 sm:$0xff]  ;;  %v8117_v29 = vld [vmem:[#allocation3 + $0x8a] ss:$2 sm:$0xff] }
 0x5f0   : > { %13430 = vmatmul.mubr.bf16.gmra.mrb[80].mxu1 %v7321_v35  ;;  %v7593_v35 = vld [vmem:[#allocation3 + $0x188] ss:$2 sm:$0xff] }
 0x5f1   : > { %13433 = vmatprep.mubr.bf16.mxu1 %v7322_v19  ;;  %13454 = vmatpush3.bf16.msra.mxu1 %v14971_v41  ;;  %v7589_v41 = vld [vmem:[#allocation3 + $0x168] ss:$2 sm:$0xff]  ;;  %v7605_v19 = vpack.c.bf16 %v7593_v35, %v7591_v46 }
 0x5f2   : > { %13455 = vmatprep.subr.bf16.mxu1 %v14972_v23  ;;  %v7604_v28 = vpack.c.bf16 %v7589_v41, %v7587_v43  ;;  %v8119_v43 = vld [vmem:[#allocation3 + $0x9a] ss:$2 sm:$0xff]  ;;  %v8121_v41 = vld [vmem:[#allocation3 + $0xaa] ss:$2 sm:$0xff] }
 0x5f3   : > { %v8154_v46 = vpack.c.bf16 %v8121_v41, %v8119_v43  ;;  %v14995_v35 = vld [vmem:[%s18841_s7 + $0x1e0] sm:$0xff]  }
 0x5f4   : > { %v15007_v41 = vld [vmem:[%s18841_s7 + $0x240] sm:$0xff]  }
 0x5f5   : > { %13456 = vmatpush3.bf16.msra.mxu1 %v14972_v23  ;;  %v7827_v23 = vld [vmem:[#allocation3 + $0x29] ss:$2 sm:$0xff] }
 0x5f6   : > { %13457 = vmatprep.subr.bf16.mxu1 %v14973_v62 }
 0x5f8   : > { %13434 = vmatmul.mubr.bf16.gmra.mrb[84].mxu1 %v7323_v45  ;;  %v7835_v45 = vld [vmem:[#allocation3 + $0x69] ss:$2 sm:$0xff] }
 0x5f9   : > { %13437 = vmatprep.mubr.bf16.mxu1 %v7324_v50  ;;  %13458 = vmatpush3.bf16.msra.mxu1 %v14973_v62  ;;  %v7872_v62 = vpack.c.bf16 %v7827_v23, %v7825_v5  ;;  %v7874_v50 = vpack.c.bf16 %v7835_v45, %v7833_v53  ;;  %v8123_v5 = vld [vmem:[#allocation3 + $0xba] ss:$2 sm:$0xff]  ;;  %v8125_v23 = vld [vmem:[#allocation3 + $0xca] ss:$2 sm:$0xff] }
 0x5fa   : > { %13459 = vmatprep.subr.bf16.mxu1 %v14974_v52  ;;  %v8155_v38 = vpack.c.bf16 %v8125_v23, %v8123_v5  ;;  %v14997_v45 = vld [vmem:[%s18841_s7 + $0x1f0] sm:$0xff]  }
 0x5fb   : > { %v8421_v5 = vld [vmem:[#allocation3 + $0x15b] ss:$2 sm:$0xff] }
 0x5fd   : > { %13460 = vmatpush3.bf16.msra.mxu1 %v14974_v52  ;;  %v14984_v52 = vld [vmem:[%s18841_s7 + $0x188] sm:$0xff]  }
 0x5fe   : > { %13485 = vmatprep.subr.bf16.mxu1 %v14975_v20 }
 0x600   : > { %13438 = vmatmul.mubr.bf16.gmra.mrb[88].mxu1 %v7325_v11  ;;  %v7843_v11 = vld [vmem:[#allocation3 + $0xa9] ss:$2 sm:$0xff] }
 0x601   : > { %13441 = vmatprep.mubr.bf16.mxu1 %v7326_v25  ;;  %v14986_v25 = vld [vmem:[%s18841_s7 + $0x198] sm:$0xff]   ;;  %v7876_v21 = vpack.c.bf16 %v7843_v11, %v7841_v31  ;;  %v14999_v11 = vld [vmem:[%s18841_s7 + $0x200] sm:$0xff]  }
 0x608   : > { %13442 = vmatmul.mubr.bf16.gmra.mrb[92].mxu1 %v7327_v10  ;;  %v7849_v10 = vld [vmem:[#allocation3 + $0xd9] ss:$2 sm:$0xff] }
 0x609   : > { %13461 = vmatprep.mubr.bf16.mxu1 %v7594_v57  ;;  %v7851_v57 = vld [vmem:[#allocation3 + $0xe9] ss:$2 sm:$0xff] }
 0x60a   : > { %v7878_v30 = vpack.c.bf16 %v7851_v57, %v7849_v10  ;;  %v8147_v10 = vld [vmem:[#allocation3 + $0x17a] ss:$2 sm:$0xff]  ;;  %v8149_v57 = vld [vmem:[#allocation3 + $0x18a] ss:$2 sm:$0xff] }
 0x610   : > { %13462 = vmatmul.mubr.bf16.vlgmr.msra.gmra.mrb[72].mxu1 %v7595_v9  ;;  %v7853_v9 = vld [vmem:[#allocation3 + $0xf9] ss:$2 sm:$0xff] }
 0x611   : > { %13486 = vmatpush3.bf16.msra.mxu1 %v14975_v20  ;;  %13465 = vmatprep.mubr.bf16.mxu1 %v7596_v16  ;;  %v14985_v20 = vld [vmem:[%s18841_s7 + $0x190] sm:$0xff]  }
 0x612   : > { %13487 = vmatprep.subr.bf16.mxu1 %v14976_v27  ;;  %v7857_v16 = vld [vmem:[#allocation3 + $0x119] ss:$2 sm:$0xff] }
 0x615   : > { %13488 = vmatpush3.bf16.msra.mxu1 %v14976_v27  ;;  %v7855_v27 = vld [vmem:[#allocation3 + $0x109] ss:$2 sm:$0xff] }
 0x616   : > { %13489 = vmatprep.subr.bf16.mxu1 %v14977_v34  ;;  %v7879_v55 = vpack.c.bf16 %v7855_v27, %v7853_v9  ;;  %v8387_v9 = vld [vmem:[#allocation3 + $0x4b] ss:$2 sm:$0xff] }
 0x617   : > { %v8391_v27 = vld [vmem:[#allocation3 + $0x6b] ss:$2 sm:$0xff] }
 0x618   : > { %13466 = vmatmul.mubr.bf16.gmra.mrb[76].mxu1 %v7597_v2  ;;  %v7861_v2 = vld [vmem:[#allocation3 + $0x139] ss:$2 sm:$0xff] }
 0x619   : > { %13469 = vmatprep.mubr.bf16.mxu1 %v7598_v13  ;;  %13490 = vmatpush3.bf16.msra.mxu1 %v14977_v34  ;;  %v7859_v34 = vld [vmem:[#allocation3 + $0x129] ss:$2 sm:$0xff]  ;;  %v7865_v13 = vld [vmem:[#allocation3 + $0x159] ss:$2 sm:$0xff] }
 0x61a   : > { %13491 = vmatprep.subr.bf16.mxu1 %v14978_v8  ;;  %v7880_v39 = vpack.c.bf16 %v7859_v34, %v7857_v16  ;;  %v8385_v16 = vld [vmem:[#allocation3 + $0x3b] ss:$2 sm:$0xff] }
 0x61b   : > { %v8429_v34 = vpack.c.bf16 %v8387_v9, %v8385_v16  ;;  %v8670_v9 = vld [vmem:[#allocation3 + $0xf0] ss:$2 sm:$0xff] }
 0x61d   : > { %13492 = vmatpush3.bf16.msra.mxu1 %v14978_v8  ;;  %v7863_v8 = vld [vmem:[#allocation3 + $0x149] ss:$2 sm:$0xff] }
 0x61e   : > { %13493 = vmatprep.subr.bf16.mxu1 %v14979_v7  ;;  %v7881_v22 = vpack.c.bf16 %v7863_v8, %v7861_v2  ;;  %v8395_v2 = vld [vmem:[#allocation3 + $0x8b] ss:$2 sm:$0xff] }
 0x61f   : > { %v8399_v8 = vld [vmem:[#allocation3 + $0xab] ss:$2 sm:$0xff] }
 0x620   : > { %13470 = vmatmul.mubr.bf16.gmra.mrb[80].mxu1 %v7599_v56  ;;  %v8103_v56 = vld [vmem:[#allocation3 + $0x1a] ss:$2 sm:$0xff] }
 0x621   : > { %13473 = vmatprep.mubr.bf16.mxu1 %v7600_v61  ;;  %13494 = vmatpush3.bf16.msra.mxu1 %v14979_v7  ;;  %v7867_v7 = vld [vmem:[#allocation3 + $0x169] ss:$2 sm:$0xff]  ;;  %v7883_v61 = vpack.c.bf16 %v7871_v4, %v7869_v24 }
 0x622   : > { %13495 = vmatprep.subr.bf16.mxu1 %v14980_v59  ;;  %v7882_v1 = vpack.c.bf16 %v7867_v7, %v7865_v13  ;;  %v8393_v13 = vld [vmem:[#allocation3 + $0x7b] ss:$2 sm:$0xff] }
 0x623   : > { %v8431_v7 = vpack.c.bf16 %v8395_v2, %v8393_v13  ;;  %v15003_v4 = vld [vmem:[%s18841_s7 + $0x220] sm:$0xff]   ;;  %v8674_v2 = vld [vmem:[#allocation3 + $0x130] ss:$2 sm:$0xff] }
 0x625   : > { %13496 = vmatpush3.bf16.msra.mxu1 %v14980_v59  ;;  %v8105_v59 = vld [vmem:[#allocation3 + $0x2a] ss:$2 sm:$0xff] }
 0x626   : > { %13497 = vmatprep.subr.bf16.mxu1 %v14981_v48 }
 0x628   : > { %13474 = vmatmul.mubr.bf16.gmra.mrb[84].mxu1 %v7601_v54  ;;  %v8151_v54 = vpack.c.bf16 %v8109_v37, %v8107_v33  ;;  %v8405_v33 = vld [vmem:[#allocation3 + $0xdb] ss:$2 sm:$0xff]  ;;  %v15004_v37 = vld [vmem:[%s18841_s7 + $0x228] sm:$0xff]  }
 0x629   : > { %13477 = vmatprep.mubr.bf16.mxu1 %v7602_v0  ;;  %13498 = vmatpush3.bf16.msra.mxu1 %v14981_v48  ;;  %v8150_v48 = vpack.c.bf16 %v8105_v59, %v8103_v56  ;;  %v8152_v0 = vpack.c.bf16 %v8113_v3, %v8111_v40  ;;  %v8403_v56 = vld [vmem:[#allocation3 + $0xcb] ss:$2 sm:$0xff] }
 0x62a   : > { %13499 = vmatprep.subr.bf16.mxu1 %v14982_v49  ;;  %v8407_v59 = vld [vmem:[#allocation3 + $0xeb] ss:$2 sm:$0xff] }
 0x62b   : > { %v8434_v40 = vpack.c.bf16 %v8407_v59, %v8405_v33  ;;  %v15005_v3 = vld [vmem:[%s18841_s7 + $0x230] sm:$0xff]   ;;  %v8916_v33 = vld [vmem:[#allocation3 + $0x41] ss:$2 sm:$0xff] }
 0x62d   : > { %13500 = vmatpush3.bf16.msra.mxu1 %v14982_v49  ;;  %v14992_v49 = vld [vmem:[%s18841_s7 + $0x1c8] sm:$0xff]  }
 0x62e   : > { %13525 = vmatprep.subr.bf16.mxu1 %v14983_v44 }
 0x630   : > { %13478 = vmatmul.mubr.bf16.gmra.mrb[88].mxu1 %v7603_v14  ;;  %v8153_v14 = vpack.c.bf16 %v8117_v29, %v8115_v15  ;;  %v8413_v15 = vld [vmem:[#allocation3 + $0x11b] ss:$2 sm:$0xff] }
 0x631   : > { %13481 = vmatprep.mubr.bf16.mxu1 %v7604_v28  ;;  %v14994_v28 = vld [vmem:[%s18841_s7 + $0x1d8] sm:$0xff]  }
 0x632   : > { %v15006_v29 = vld [vmem:[%s18841_s7 + $0x238] sm:$0xff]  }
 0x638   : > { %13482 = vmatmul.mubr.bf16.gmra.mrb[92].mxu1 %v7605_v19  ;;  %v8127_v19 = vld [vmem:[#allocation3 + $0xda] ss:$2 sm:$0xff] }
 0x639   : > { %13501 = vmatprep.mubr.bf16.mxu1 %v7872_v62  ;;  %v8129_v62 = vld [vmem:[#allocation3 + $0xea] ss:$2 sm:$0xff] }
 0x63a   : > { %v8156_v53 = vpack.c.bf16 %v8129_v62, %v8127_v19  ;;  %v8425_v19 = vld [vmem:[#allocation3 + $0x17b] ss:$2 sm:$0xff]  ;;  %v8427_v62 = vld [vmem:[#allocation3 + $0x18b] ss:$2 sm:$0xff] }
 0x640   : > { %13502 = vmatmul.mubr.bf16.vlgmr.msra.gmra.mrb[72].mxu1 %v7873_v42  ;;  %v8131_v42 = vld [vmem:[#allocation3 + $0xfa] ss:$2 sm:$0xff] }
 0x641   : > { %13526 = vmatpush3.bf16.msra.mxu1 %v14983_v44  ;;  %13505 = vmatprep.mubr.bf16.mxu1 %v7874_v50  ;;  %v14993_v44 = vld [vmem:[%s18841_s7 + $0x1d0] sm:$0xff]  }
 0x642   : > { %13527 = vmatprep.subr.bf16.mxu1 %v14984_v52  ;;  %v8135_v50 = vld [vmem:[#allocation3 + $0x11a] ss:$2 sm:$0xff] }
 0x645   : > { %13528 = vmatpush3.bf16.msra.mxu1 %v14984_v52  ;;  %v8133_v52 = vld [vmem:[#allocation3 + $0x10a] ss:$2 sm:$0xff] }
 0x646   : > { %13529 = vmatprep.subr.bf16.mxu1 %v14985_v20  ;;  %v8157_v51 = vpack.c.bf16 %v8133_v52, %v8131_v42  ;;  %v8661_v42 = vld [vmem:[#allocation3 + $0x60] ss:$2 sm:$0xff] }
 0x647   : > { %v8663_v52 = vld [vmem:[#allocation3 + $0x80] ss:$2 sm:$0xff] }
 0x648   : > { %13506 = vmatmul.mubr.bf16.gmra.mrb[76].mxu1 %v7875_v47  ;;  %v8139_v47 = vld [vmem:[#allocation3 + $0x13a] ss:$2 sm:$0xff] }
 0x649   : > { %13509 = vmatprep.mubr.bf16.mxu1 %v7876_v21  ;;  %13530 = vmatpush3.bf16.msra.mxu1 %v14985_v20  ;;  %v8137_v20 = vld [vmem:[#allocation3 + $0x12a] ss:$2 sm:$0xff]  ;;  %v8143_v21 = vld [vmem:[#allocation3 + $0x15a] ss:$2 sm:$0xff] }
 0x64a   : > { %13531 = vmatprep.subr.bf16.mxu1 %v14986_v25  ;;  %v8158_v31 = vpack.c.bf16 %v8137_v20, %v8135_v50  ;;  %v8660_v50 = vld [vmem:[#allocation3 + $0x50] ss:$2 sm:$0xff] }
 0x64b   : > { %v8686_v20 = vpack.c.bf16 %v8661_v42, %v8660_v50  ;;  %v8927_v42 = vld [vmem:[#allocation3 + $0xf1] ss:$2 sm:$0xff] }
 0x64d   : > { %13532 = vmatpush3.bf16.msra.mxu1 %v14986_v25  ;;  %v8141_v25 = vld [vmem:[#allocation3 + $0x14a] ss:$2 sm:$0xff] }
 0x64e   : > { %13533 = vmatprep.subr.bf16.mxu1 %v14987_v36  ;;  %v8159_v26 = vpack.c.bf16 %v8141_v25, %v8139_v47  ;;  %v8665_v47 = vld [vmem:[#allocation3 + $0xa0] ss:$2 sm:$0xff] }
 0x64f   : > { %v8667_v25 = vld [vmem:[#allocation3 + $0xc0] ss:$2 sm:$0xff] }
 0x650   : > { %13510 = vmatmul.mubr.bf16.gmra.mrb[80].mxu1 %v7877_v32  ;;  %v8383_v32 = vld [vmem:[#allocation3 + $0x2b] ss:$2 sm:$0xff] }
 0x651   : > { %13513 = vmatprep.mubr.bf16.mxu1 %v7878_v30  ;;  %13534 = vmatpush3.bf16.msra.mxu1 %v14987_v36  ;;  %v8145_v36 = vld [vmem:[#allocation3 + $0x16a] ss:$2 sm:$0xff]  ;;  %v8381_v30 = vld [vmem:[#allocation3 + $0x1b] ss:$2 sm:$0xff] }
 0x652   : > { %13535 = vmatprep.subr.bf16.mxu1 %v14988_v18  ;;  %v8160_v12 = vpack.c.bf16 %v8145_v36, %v8143_v21  ;;  %v8664_v21 = vld [vmem:[#allocation3 + $0x90] ss:$2 sm:$0xff] }
 0x653   : > { %v8688_v36 = vpack.c.bf16 %v8665_v47, %v8664_v21  ;;  %v8931_v47 = vld [vmem:[#allocation3 + $0x131] ss:$2 sm:$0xff] }
 0x655   : > { %13536 = vmatpush3.bf16.msra.mxu1 %v14988_v18  ;;  %v8161_v18 = vpack.c.bf16 %v8149_v57, %v8147_v10  ;;  %v15011_v57 = vld [vmem:[%s18841_s7 + $0x260] sm:$0xff]  }
 0x656   : > { %13537 = vmatprep.subr.bf16.mxu1 %v14989_v6 }
 0x658   : > { %13514 = vmatmul.mubr.bf16.gmra.mrb[84].mxu1 %v7879_v55  ;;  %v8389_v55 = vld [vmem:[#allocation3 + $0x5b] ss:$2 sm:$0xff] }
 0x659   : > { %13517 = vmatprep.mubr.bf16.mxu1 %v7880_v39  ;;  %13538 = vmatpush3.bf16.msra.mxu1 %v14989_v6  ;;  %v8428_v6 = vpack.c.bf16 %v8383_v32, %v8381_v30  ;;  %v8430_v39 = vpack.c.bf16 %v8391_v27, %v8389_v55  ;;  %v8669_v32 = vld [vmem:[#allocation3 + $0xe0] ss:$2 sm:$0xff]  ;;  %v8668_v30 = vld [vmem:[#allocation3 + $0xd0] ss:$2 sm:$0xff] }
 0x65a   : > { %13539 = vmatprep.subr.bf16.mxu1 %v14990_v63  ;;  %v15012_v27 = vld [vmem:[%s18841_s7 + $0x268] sm:$0xff]   ;;  %v8673_v55 = vld [vmem:[#allocation3 + $0x120] ss:$2 sm:$0xff] }
 0x65d   : > { %13540 = vmatpush3.bf16.msra.mxu1 %v14990_v63  ;;  %v15000_v63 = vld [vmem:[%s18841_s7 + $0x208] sm:$0xff]  }
 0x65e   : > { %13565 = vmatprep.subr.bf16.mxu1 %v14991_v58 }
 0x660   : > { %13518 = vmatmul.mubr.bf16.gmra.mrb[88].mxu1 %v7881_v22  ;;  %v8397_v22 = vld [vmem:[#allocation3 + $0x9b] ss:$2 sm:$0xff] }
 0x661   : > { %13521 = vmatprep.mubr.bf16.mxu1 %v7882_v1  ;;  %v15002_v1 = vld [vmem:[%s18841_s7 + $0x218] sm:$0xff]   ;;  %v8432_v24 = vpack.c.bf16 %v8399_v8, %v8397_v22 }
 0x662   : > { %v15014_v8 = vld [vmem:[%s18841_s7 + $0x278] sm:$0xff]  }
 0x663   : > { %v8677_v22 = vld [vmem:[#allocation3 + $0x160] ss:$2 sm:$0xff] }
 0x668   : > { %13522 = vmatmul.mubr.bf16.gmra.mrb[92].mxu1 %v7883_v61  ;;  %v8401_v61 = vld [vmem:[#allocation3 + $0xbb] ss:$2 sm:$0xff] }
 0x669   : > { %13541 = vmatprep.mubr.bf16.mxu1 %v8150_v48  ;;  %v8433_v48 = vpack.c.bf16 %v8403_v56, %v8401_v61  ;;  %v8678_v56 = vld [vmem:[#allocation3 + $0x170] ss:$2 sm:$0xff] }
 0x66a   : > { %v8682_v61 = vld [vmem:[#allocation3 + $0x190] ss:$2 sm:$0xff] }
 0x670   : > { %13542 = vmatmul.mubr.bf16.vlgmr.msra.gmra.mrb[72].mxu1 %v8151_v54  ;;  %v8411_v54 = vld [vmem:[#allocation3 + $0x10b] ss:$2 sm:$0xff] }
 0x671   : > { %13566 = vmatpush3.bf16.msra.mxu1 %v14991_v58  ;;  %13545 = vmatprep.mubr.bf16.mxu1 %v8152_v0  ;;  %v15001_v58 = vld [vmem:[%s18841_s7 + $0x210] sm:$0xff]  }
 0x672   : > { %13567 = vmatprep.subr.bf16.mxu1 %v14992_v49  ;;  %v8409_v0 = vld [vmem:[#allocation3 + $0xfb] ss:$2 sm:$0xff] }
 0x675   : > { %13568 = vmatpush3.bf16.msra.mxu1 %v14992_v49  ;;  %v8415_v49 = vld [vmem:[#allocation3 + $0x12b] ss:$2 sm:$0xff] }
 0x676   : > { %13569 = vmatprep.subr.bf16.mxu1 %v14993_v44  ;;  %v8436_v43 = vpack.c.bf16 %v8415_v49, %v8413_v15  ;;  %v8920_v49 = vld [vmem:[#allocation3 + $0x81] ss:$2 sm:$0xff]  ;;  %v8919_v15 = vld [vmem:[#allocation3 + $0x71] ss:$2 sm:$0xff] }
 0x678   : > { %13546 = vmatmul.mubr.bf16.gmra.mrb[76].mxu1 %v8153_v14  ;;  %v8419_v14 = vld [vmem:[#allocation3 + $0x14b] ss:$2 sm:$0xff] }
 0x679   : > { %13549 = vmatprep.mubr.bf16.mxu1 %v8154_v46  ;;  %13570 = vmatpush3.bf16.msra.mxu1 %v14993_v44  ;;  %v8435_v44 = vpack.c.bf16 %v8411_v54, %v8409_v0  ;;  %v8417_v46 = vld [vmem:[#allocation3 + $0x13b] ss:$2 sm:$0xff] }
 0x67a   : > { %13571 = vmatprep.subr.bf16.mxu1 %v14994_v28  ;;  %v8918_v54 = vld [vmem:[#allocation3 + $0x61] ss:$2 sm:$0xff]  ;;  %v8917_v0 = vld [vmem:[#allocation3 + $0x51] ss:$2 sm:$0xff] }
 0x67d   : > { %13572 = vmatpush3.bf16.msra.mxu1 %v14994_v28  ;;  %v8423_v28 = vld [vmem:[#allocation3 + $0x16b] ss:$2 sm:$0xff] }
 0x67e   : > { %13573 = vmatprep.subr.bf16.mxu1 %v14995_v35  ;;  %v8438_v23 = vpack.c.bf16 %v8423_v28, %v8421_v5  ;;  %v8924_v28 = vld [vmem:[#allocation3 + $0xc1] ss:$2 sm:$0xff]  ;;  %v8923_v5 = vld [vmem:[#allocation3 + $0xb1] ss:$2 sm:$0xff] }
 0x680   : > { %13550 = vmatmul.mubr.bf16.gmra.mrb[80].mxu1 %v8155_v38  ;;  %v8659_v38 = vld [vmem:[#allocation3 + $0x40] ss:$2 sm:$0xff] }
 0x681   : > { %13553 = vmatprep.mubr.bf16.mxu1 %v8156_v53  ;;  %13574 = vmatpush3.bf16.msra.mxu1 %v14995_v35  ;;  %v8437_v35 = vpack.c.bf16 %v8419_v14, %v8417_v46  ;;  %v8658_v53 = vld [vmem:[#allocation3 + $0x30] ss:$2 sm:$0xff]  ;;  %v8922_v14 = vld [vmem:[#allocation3 + $0xa1] ss:$2 sm:$0xff]  ;;  %v8921_v46 = vld [vmem:[#allocation3 + $0x91] ss:$2 sm:$0xff] }
 0x682   : > { %13575 = vmatprep.subr.bf16.mxu1 %v14996_v17 }
 0x685   : > { %13576 = vmatpush3.bf16.msra.mxu1 %v14996_v17  ;;  %v8439_v17 = vpack.c.bf16 %v8427_v62, %v8425_v19  ;;  %v8946_v19 = vpack.c.bf16 %v8924_v28, %v8923_v5  ;;  %v15019_v62 = vld [vmem:[%s18841_s7 + $0x2a0] sm:$0xff]   ;;  %v15030_v28 = vld [vmem:[%s18841_s7 + $0x2f8] sm:$0xff]  }
 0x686   : > { %13577 = vmatprep.subr.bf16.mxu1 %v14997_v45  ;;  %v9191_v5 = vld [vmem:[#allocation3 + $0x162] ss:$2 sm:$0xff] }
 0x688   : > { %13554 = vmatmul.mubr.bf16.gmra.mrb[84].mxu1 %v8157_v51  ;;  %v8662_v51 = vld [vmem:[#allocation3 + $0x70] ss:$2 sm:$0xff] }
 0x689   : > { %13557 = vmatprep.mubr.bf16.mxu1 %v8158_v31  ;;  %13578 = vmatpush3.bf16.msra.mxu1 %v14997_v45  ;;  %v8685_v45 = vpack.c.bf16 %v8659_v38, %v8658_v53  ;;  %v8687_v31 = vpack.c.bf16 %v8663_v52, %v8662_v51  ;;  %v8926_v38 = vld [vmem:[#allocation3 + $0xe1] ss:$2 sm:$0xff]  ;;  %v8925_v53 = vld [vmem:[#allocation3 + $0xd1] ss:$2 sm:$0xff] }
 0x68a   : > { %13579 = vmatprep.subr.bf16.mxu1 %v14998_v60  ;;  %v15020_v52 = vld [vmem:[%s18841_s7 + $0x2a8] sm:$0xff]   ;;  %v8930_v51 = vld [vmem:[#allocation3 + $0x121] ss:$2 sm:$0xff] }
 0x68d   : > { %13580 = vmatpush3.bf16.msra.mxu1 %v14998_v60  ;;  %v15008_v60 = vld [vmem:[%s18841_s7 + $0x248] sm:$0xff]  }
 0x68e   : > { %13605 = vmatprep.subr.bf16.mxu1 %v14999_v11 }
 0x690   : > { %13558 = vmatmul.mubr.bf16.gmra.mrb[88].mxu1 %v8159_v26  ;;  %v8666_v26 = vld [vmem:[#allocation3 + $0xb0] ss:$2 sm:$0xff] }
 0x691   : > { %13561 = vmatprep.mubr.bf16.mxu1 %v8160_v12  ;;  %v15010_v12 = vld [vmem:[%s18841_s7 + $0x258] sm:$0xff]   ;;  %v8689_v10 = vpack.c.bf16 %v8667_v25, %v8666_v26 }
 0x692   : > { %v15022_v25 = vld [vmem:[%s18841_s7 + $0x2b8] sm:$0xff]  }
 0x693   : > { %v8934_v26 = vld [vmem:[#allocation3 + $0x161] ss:$2 sm:$0xff] }
 0x698   : > { %13562 = vmatmul.mubr.bf16.gmra.mrb[92].mxu1 %v8161_v18  ;;  %v8671_v18 = vld [vmem:[#allocation3 + $0x100] ss:$2 sm:$0xff] }
 0x699   : > { %13581 = vmatprep.mubr.bf16.mxu1 %v8428_v6  ;;  %v8690_v6 = vpack.c.bf16 %v8669_v32, %v8668_v30  ;;  %v8691_v16 = vpack.c.bf16 %v8671_v18, %v8670_v9  ;;  %v8935_v32 = vld [vmem:[#allocation3 + $0x171] ss:$2 sm:$0xff]  ;;  %v9173_v9 = vld [vmem:[#allocation3 + $0x42] ss:$2 sm:$0xff] }
 0x69a   : > { %v8939_v30 = vld [vmem:[#allocation3 + $0x191] ss:$2 sm:$0xff] }
 0x6a0   : > { %13582 = vmatmul.mubr.bf16.vlgmr.msra.gmra.mrb[72].mxu1 %v8429_v34  ;;  %v15013_v34 = vld [vmem:[%s18841_s7 + $0x270] sm:$0xff]  }
 0x6a1   : > { %13606 = vmatpush3.bf16.msra.mxu1 %v14999_v11  ;;  %13585 = vmatprep.mubr.bf16.mxu1 %v8430_v39  ;;  %v15009_v11 = vld [vmem:[%s18841_s7 + $0x250] sm:$0xff]  }
 0x6a2   : > { %13607 = vmatprep.subr.bf16.mxu1 %v15000_v63  ;;  %v8672_v39 = vld [vmem:[#allocation3 + $0x110] ss:$2 sm:$0xff] }
 0x6a5   : > { %13608 = vmatpush3.bf16.msra.mxu1 %v15000_v63  ;;  %v8675_v63 = vld [vmem:[#allocation3 + $0x140] ss:$2 sm:$0xff] }
 0x6a6   : > { %13609 = vmatprep.subr.bf16.mxu1 %v15001_v58  ;;  %v8693_v13 = vpack.c.bf16 %v8675_v63, %v8674_v2  ;;  %v9177_v63 = vld [vmem:[#allocation3 + $0x82] ss:$2 sm:$0xff]  ;;  %v9176_v2 = vld [vmem:[#allocation3 + $0x72] ss:$2 sm:$0xff] }
 0x6a8   : > { %13586 = vmatmul.mubr.bf16.gmra.mrb[76].mxu1 %v8431_v7  ;;  %v15015_v7 = vld [vmem:[%s18841_s7 + $0x280] sm:$0xff]  }
 0x6a9   : > { %13589 = vmatprep.mubr.bf16.mxu1 %v8432_v24  ;;  %13610 = vmatpush3.bf16.msra.mxu1 %v15001_v58  ;;  %v8692_v58 = vpack.c.bf16 %v8673_v55, %v8672_v39  ;;  %v8676_v24 = vld [vmem:[#allocation3 + $0x150] ss:$2 sm:$0xff] }
 0x6aa   : > { %13611 = vmatprep.subr.bf16.mxu1 %v15002_v1  ;;  %v9175_v55 = vld [vmem:[#allocation3 + $0x62] ss:$2 sm:$0xff]  ;;  %v9174_v39 = vld [vmem:[#allocation3 + $0x52] ss:$2 sm:$0xff] }
 0x6ad   : > { %13612 = vmatpush3.bf16.msra.mxu1 %v15002_v1  ;;  %v8680_v1 = vld [vmem:[#allocation3 + $0x180] ss:$2 sm:$0xff] }
 0x6ae   : > { %13613 = vmatprep.subr.bf16.mxu1 %v15003_v4  ;;  %v8695_v59 = vpack.c.bf16 %v8680_v1, %v8678_v56  ;;  %v9181_v1 = vld [vmem:[#allocation3 + $0xc2] ss:$2 sm:$0xff]  ;;  %v9180_v56 = vld [vmem:[#allocation3 + $0xb2] ss:$2 sm:$0xff] }
 0x6b0   : > { %13590 = vmatmul.mubr.bf16.gmra.mrb[80].mxu1 %v8433_v48  ;;  %v8684_v48 = vld [vmem:[#allocation3 + $0x1a0] ss:$2 sm:$0xff] }
 0x6b1   : > { %13593 = vmatprep.mubr.bf16.mxu1 %v8434_v40  ;;  %13614 = vmatpush3.bf16.msra.mxu1 %v15003_v4  ;;  %v8694_v4 = vpack.c.bf16 %v8677_v22, %v8676_v24  ;;  %v8915_v40 = vld [vmem:[#allocation3 + $0x31] ss:$2 sm:$0xff]  ;;  %v9179_v22 = vld [vmem:[#allocation3 + $0xa2] ss:$2 sm:$0xff]  ;;  %v9178_v24 = vld [vmem:[#allocation3 + $0x92] ss:$2 sm:$0xff] }
 0x6b2   : > { %13615 = vmatprep.subr.bf16.mxu1 %v15004_v37 }
 0x6b5   : > { %13616 = vmatpush3.bf16.msra.mxu1 %v15004_v37  ;;  %v8696_v37 = vpack.c.bf16 %v8684_v48, %v8682_v61  ;;  %v9203_v61 = vpack.c.bf16 %v9181_v1, %v9180_v56  ;;  %v15027_v48 = vld [vmem:[%s18841_s7 + $0x2e0] sm:$0xff]   ;;  %v15038_v1 = vld [vmem:[%s18841_s7 + $0x338] sm:$0xff]  }
 0x6b6   : > { %13617 = vmatprep.subr.bf16.mxu1 %v15005_v3  ;;  %v9447_v56 = vld [vmem:[#allocation3 + $0x153] ss:$2 sm:$0xff] }
 0x6b8   : > { %13594 = vmatmul.mubr.bf16.gmra.mrb[84].mxu1 %v8435_v44  ;;  %v8943_v44 = vpack.c.bf16 %v8918_v54, %v8917_v0  ;;  %v9184_v54 = vld [vmem:[#allocation3 + $0xf2] ss:$2 sm:$0xff] }
 0x6b9   : > { %13597 = vmatprep.mubr.bf16.mxu1 %v8436_v43  ;;  %13618 = vmatpush3.bf16.msra.mxu1 %v15005_v3  ;;  %v8942_v3 = vpack.c.bf16 %v8916_v33, %v8915_v40  ;;  %v8944_v43 = vpack.c.bf16 %v8920_v49, %v8919_v15  ;;  %v9183_v33 = vld [vmem:[#allocation3 + $0xe2] ss:$2 sm:$0xff]  ;;  %v9182_v40 = vld [vmem:[#allocation3 + $0xd2] ss:$2 sm:$0xff] }
 0x6ba   : > { %13619 = vmatprep.subr.bf16.mxu1 %v15006_v29  ;;  %v15028_v49 = vld [vmem:[%s18841_s7 + $0x2e8] sm:$0xff]  }
 0x6bb   : > { %v9187_v15 = vld [vmem:[#allocation3 + $0x122] ss:$2 sm:$0xff] }
 0x6bd   : > { %13620 = vmatpush3.bf16.msra.mxu1 %v15006_v29  ;;  %v15016_v29 = vld [vmem:[%s18841_s7 + $0x288] sm:$0xff]  }
 0x6be   : > { %13645 = vmatprep.subr.bf16.mxu1 %v15007_v41 }
 0x6c0   : > { %13598 = vmatmul.mubr.bf16.gmra.mrb[88].mxu1 %v8437_v35  ;;  %v8945_v35 = vpack.c.bf16 %v8922_v14, %v8921_v46  ;;  %v9188_v14 = vld [vmem:[#allocation3 + $0x132] ss:$2 sm:$0xff] }
 0x6c1   : > { %13601 = vmatprep.mubr.bf16.mxu1 %v8438_v23  ;;  %v15018_v23 = vld [vmem:[%s18841_s7 + $0x298] sm:$0xff]  }
 0x6c8   : > { %13602 = vmatmul.mubr.bf16.gmra.mrb[92].mxu1 %v8439_v17  ;;  %v8928_v17 = vld [vmem:[#allocation3 + $0x101] ss:$2 sm:$0xff] }
 0x6c9   : > { %13621 = vmatprep.mubr.bf16.mxu1 %v8685_v45  ;;  %v8947_v45 = vpack.c.bf16 %v8926_v38, %v8925_v53  ;;  %v8948_v50 = vpack.c.bf16 %v8928_v17, %v8927_v42  ;;  %v9192_v38 = vld [vmem:[#allocation3 + $0x172] ss:$2 sm:$0xff]  ;;  %v9429_v42 = vld [vmem:[#allocation3 + $0x33] ss:$2 sm:$0xff] }
 0x6ca   : > { %v9196_v53 = vld [vmem:[#allocation3 + $0x192] ss:$2 sm:$0xff] }
 0x6d0   : > { %13622 = vmatmul.mubr.bf16.vlgmr.msra.gmra.mrb[72].mxu1 %v8686_v20  ;;  %v15021_v20 = vld [vmem:[%s18841_s7 + $0x2b0] sm:$0xff]  }
 0x6d1   : > { %13646 = vmatpush3.bf16.msra.mxu1 %v15007_v41  ;;  %13625 = vmatprep.mubr.bf16.mxu1 %v8687_v31  ;;  %v15017_v41 = vld [vmem:[%s18841_s7 + $0x290] sm:$0xff]  }
 0x6d2   : > { %13647 = vmatprep.subr.bf16.mxu1 %v15008_v60  ;;  %v8929_v31 = vld [vmem:[#allocation3 + $0x111] ss:$2 sm:$0xff] }
 0x6d5   : > { %13648 = vmatpush3.bf16.msra.mxu1 %v15008_v60  ;;  %v8932_v60 = vld [vmem:[#allocation3 + $0x141] ss:$2 sm:$0xff] }
 0x6d6   : > { %13649 = vmatprep.subr.bf16.mxu1 %v15009_v11  ;;  %v8950_v21 = vpack.c.bf16 %v8932_v60, %v8931_v47  ;;  %v9432_v60 = vld [vmem:[#allocation3 + $0x63] ss:$2 sm:$0xff] }
 0x6d8   : > { %13626 = vmatmul.mubr.bf16.gmra.mrb[76].mxu1 %v8688_v36  ;;  %v15023_v36 = vld [vmem:[%s18841_s7 + $0x2c0] sm:$0xff]  }
 0x6d9   : > { %13629 = vmatprep.mubr.bf16.mxu1 %v8689_v10  ;;  %13650 = vmatpush3.bf16.msra.mxu1 %v15009_v11  ;;  %v8949_v11 = vpack.c.bf16 %v8930_v51, %v8929_v31  ;;  %v8933_v10 = vld [vmem:[#allocation3 + $0x151] ss:$2 sm:$0xff] }
 0x6da   : > { %13651 = vmatprep.subr.bf16.mxu1 %v15010_v12  ;;  %v9431_v51 = vld [vmem:[#allocation3 + $0x53] ss:$2 sm:$0xff] }
 0x6db   : > { %v9433_v31 = vld [vmem:[#allocation3 + $0x73] ss:$2 sm:$0xff]  ;;  %v9457_v47 = vpack.c.bf16 %v9432_v60, %v9431_v51  ;;  %v9698_v51 = vld [vmem:[#allocation3 + $0x108] ss:$2 sm:$0xff] }
 0x6dc   : > { %v15044_v60 = vld [vmem:[%s18841_s7 + $0x368] sm:$0xff]  }
 0x6dd   : > { %13652 = vmatpush3.bf16.msra.mxu1 %v15010_v12  ;;  %v8937_v12 = vld [vmem:[#allocation3 + $0x181] ss:$2 sm:$0xff] }
 0x6de   : > { %13653 = vmatprep.subr.bf16.mxu1 %v15011_v57  ;;  %v8952_v18 = vpack.c.bf16 %v8937_v12, %v8935_v32  ;;  %v9436_v12 = vld [vmem:[#allocation3 + $0xa3] ss:$2 sm:$0xff] }
 0x6e0   : > { %13630 = vmatmul.mubr.bf16.gmra.mrb[80].mxu1 %v8690_v6  ;;  %v8941_v6 = vld [vmem:[#allocation3 + $0x1a1] ss:$2 sm:$0xff] }
 0x6e1   : > { %13633 = vmatprep.mubr.bf16.mxu1 %v8691_v16  ;;  %13654 = vmatpush3.bf16.msra.mxu1 %v15011_v57  ;;  %v8951_v57 = vpack.c.bf16 %v8934_v26, %v8933_v10  ;;  %v9172_v16 = vld [vmem:[#allocation3 + $0x32] ss:$2 sm:$0xff]  ;;  %v9435_v26 = vld [vmem:[#allocation3 + $0x93] ss:$2 sm:$0xff] }
 0x6e2   : > { %13655 = vmatprep.subr.bf16.mxu1 %v15012_v27  ;;  %v9437_v10 = vld [vmem:[#allocation3 + $0xb3] ss:$2 sm:$0xff]  ;;  %v9459_v32 = vpack.c.bf16 %v9436_v12, %v9435_v26  ;;  %v9702_v26 = vld [vmem:[#allocation3 + $0x148] ss:$2 sm:$0xff] }
 0x6e3   : > { %v15046_v12 = vld [vmem:[%s18841_s7 + $0x378] sm:$0xff]  }
 0x6e5   : > { %13656 = vmatpush3.bf16.msra.mxu1 %v15012_v27  ;;  %v8953_v27 = vpack.c.bf16 %v8941_v6, %v8939_v30  ;;  %v15035_v6 = vld [vmem:[%s18841_s7 + $0x320] sm:$0xff]  }
 0x6e6   : > { %13657 = vmatprep.subr.bf16.mxu1 %v15013_v34 }
 0x6e8   : > { %13634 = vmatmul.mubr.bf16.gmra.mrb[84].mxu1 %v8692_v58  ;;  %v9200_v58 = vpack.c.bf16 %v9175_v55, %v9174_v39 }
 0x6e9   : > { %13637 = vmatprep.mubr.bf16.mxu1 %v8693_v13  ;;  %13658 = vmatpush3.bf16.msra.mxu1 %v15013_v34  ;;  %v9199_v34 = vpack.c.bf16 %v9173_v9, %v9172_v16  ;;  %v9201_v13 = vpack.c.bf16 %v9177_v63, %v9176_v2  ;;  %v9439_v9 = vld [vmem:[#allocation3 + $0xd3] ss:$2 sm:$0xff] }
 0x6ea   : > { %13659 = vmatprep.subr.bf16.mxu1 %v15014_v8  ;;  %v9441_v16 = vld [vmem:[#allocation3 + $0xf3] ss:$2 sm:$0xff] }
 0x6eb   : > { %v15036_v63 = vld [vmem:[%s18841_s7 + $0x328] sm:$0xff]  }
 0x6ec   : > { %v9443_v2 = vld [vmem:[#allocation3 + $0x113] ss:$2 sm:$0xff] }
 0x6ed   : > { %13660 = vmatpush3.bf16.msra.mxu1 %v15014_v8  ;;  %v15024_v8 = vld [vmem:[%s18841_s7 + $0x2c8] sm:$0xff]  }
 0x6ee   : > { %13685 = vmatprep.subr.bf16.mxu1 %v15015_v7 }
 0x6f0   : > { %13638 = vmatmul.mubr.bf16.gmra.mrb[88].mxu1 %v8694_v4  ;;  %v9202_v4 = vpack.c.bf16 %v9179_v22, %v9178_v24 }
 0x6f1   : > { %13641 = vmatprep.mubr.bf16.mxu1 %v8695_v59  ;;  %v15026_v59 = vld [vmem:[%s18841_s7 + $0x2d8] sm:$0xff]  }
 0x6f8   : > { %13642 = vmatmul.mubr.bf16.gmra.mrb[92].mxu1 %v8696_v37  ;;  %v9185_v37 = vld [vmem:[#allocation3 + $0x102] ss:$2 sm:$0xff] }
 0x6f9   : > { %13661 = vmatprep.mubr.bf16.mxu1 %v8942_v3  ;;  %v9204_v3 = vpack.c.bf16 %v9183_v33, %v9182_v40  ;;  %v9205_v0 = vpack.c.bf16 %v9185_v37, %v9184_v54  ;;  %v9453_v40 = vld [vmem:[#allocation3 + $0x193] ss:$2 sm:$0xff]  ;;  %v9687_v54 = vld [vmem:[#allocation3 + $0x58] ss:$2 sm:$0xff] }
 0x700   : > { %13662 = vmatmul.mubr.bf16.vlgmr.msra.gmra.mrb[72].mxu1 %v8943_v44  ;;  %v15029_v44 = vld [vmem:[%s18841_s7 + $0x2f0] sm:$0xff]  }
 0x701   : > { %13686 = vmatpush3.bf16.msra.mxu1 %v15015_v7  ;;  %13665 = vmatprep.mubr.bf16.mxu1 %v8944_v43  ;;  %v15025_v7 = vld [vmem:[%s18841_s7 + $0x2d0] sm:$0xff]  }
 0x702   : > { %13687 = vmatprep.subr.bf16.mxu1 %v15016_v29  ;;  %v9186_v43 = vld [vmem:[#allocation3 + $0x112] ss:$2 sm:$0xff] }
 0x705   : > { %13688 = vmatpush3.bf16.msra.mxu1 %v15016_v29  ;;  %v9189_v29 = vld [vmem:[#allocation3 + $0x142] ss:$2 sm:$0xff] }
 0x706   : > { %13689 = vmatprep.subr.bf16.mxu1 %v15017_v41  ;;  %v9207_v46 = vpack.c.bf16 %v9189_v29, %v9188_v14  ;;  %v9691_v29 = vld [vmem:[#allocation3 + $0x98] ss:$2 sm:$0xff]  ;;  %v9690_v14 = vld [vmem:[#allocation3 + $0x88] ss:$2 sm:$0xff] }
 0x708   : > { %13666 = vmatmul.mubr.bf16.gmra.mrb[76].mxu1 %v8945_v35  ;;  %v15031_v35 = vld [vmem:[%s18841_s7 + $0x300] sm:$0xff]  }
 0x709   : > { %13669 = vmatprep.mubr.bf16.mxu1 %v8946_v19  ;;  %13690 = vmatpush3.bf16.msra.mxu1 %v15017_v41  ;;  %v9206_v41 = vpack.c.bf16 %v9187_v15, %v9186_v43  ;;  %v9190_v19 = vld [vmem:[#allocation3 + $0x152] ss:$2 sm:$0xff] }
 0x70a   : > { %13691 = vmatprep.subr.bf16.mxu1 %v15018_v23  ;;  %v9689_v15 = vld [vmem:[#allocation3 + $0x78] ss:$2 sm:$0xff]  ;;  %v9688_v43 = vld [vmem:[#allocation3 + $0x68] ss:$2 sm:$0xff] }
 0x70d   : > { %13692 = vmatpush3.bf16.msra.mxu1 %v15018_v23  ;;  %v9194_v23 = vld [vmem:[#allocation3 + $0x182] ss:$2 sm:$0xff] }
 0x70e   : > { %13693 = vmatprep.subr.bf16.mxu1 %v15019_v62  ;;  %v9209_v17 = vpack.c.bf16 %v9194_v23, %v9192_v38  ;;  %v9695_v23 = vld [vmem:[#allocation3 + $0xd8] ss:$2 sm:$0xff]  ;;  %v9694_v38 = vld [vmem:[#allocation3 + $0xc8] ss:$2 sm:$0xff] }
 0x710   : > { %13670 = vmatmul.mubr.bf16.gmra.mrb[80].mxu1 %v8947_v45  ;;  %v9198_v45 = vld [vmem:[#allocation3 + $0x1a2] ss:$2 sm:$0xff] }
 0x711   : > { %13673 = vmatprep.mubr.bf16.mxu1 %v8948_v50  ;;  %13694 = vmatpush3.bf16.msra.mxu1 %v15019_v62  ;;  %v9208_v62 = vpack.c.bf16 %v9191_v5, %v9190_v19  ;;  %v9210_v50 = vpack.c.bf16 %v9198_v45, %v9196_v53  ;;  %v9693_v5 = vld [vmem:[#allocation3 + $0xb8] ss:$2 sm:$0xff]  ;;  %v9692_v19 = vld [vmem:[#allocation3 + $0xa8] ss:$2 sm:$0xff]  ;;  %v9717_v53 = vpack.c.bf16 %v9695_v23, %v9694_v38  ;;  %v9962_v38 = vld [vmem:[#allocation3 + $0x179] ss:$2 sm:$0xff] }
 0x712   : > { %13695 = vmatprep.subr.bf16.mxu1 %v15020_v52  ;;  %v15043_v45 = vld [vmem:[%s18841_s7 + $0x360] sm:$0xff]   ;;  %v15054_v23 = vld [vmem:[%s18841_s7 + $0x3b8] sm:$0xff]  }
 0x715   : > { %13696 = vmatpush3.bf16.msra.mxu1 %v15020_v52  ;;  %v9430_v52 = vld [vmem:[#allocation3 + $0x43] ss:$2 sm:$0xff] }
 0x716   : > { %13697 = vmatprep.subr.bf16.mxu1 %v15021_v20 }
 0x718   : > { %13674 = vmatmul.mubr.bf16.gmra.mrb[84].mxu1 %v8949_v11  ;;  %v9434_v11 = vld [vmem:[#allocation3 + $0x83] ss:$2 sm:$0xff] }
 0x719   : > { %13677 = vmatprep.mubr.bf16.mxu1 %v8950_v21  ;;  %13698 = vmatpush3.bf16.msra.mxu1 %v15021_v20  ;;  %v9456_v20 = vpack.c.bf16 %v9430_v52, %v9429_v42  ;;  %v9458_v21 = vpack.c.bf16 %v9434_v11, %v9433_v31  ;;  %v9697_v42 = vld [vmem:[#allocation3 + $0xf8] ss:$2 sm:$0xff] }
 0x71a   : > { %13699 = vmatprep.subr.bf16.mxu1 %v15022_v25  ;;  %v9699_v52 = vld [vmem:[#allocation3 + $0x118] ss:$2 sm:$0xff] }
 0x71b   : > { %v9719_v31 = vpack.c.bf16 %v9699_v52, %v9698_v51  ;;  %v15045_v11 = vld [vmem:[%s18841_s7 + $0x370] sm:$0xff]  }
 0x71d   : > { %13700 = vmatpush3.bf16.msra.mxu1 %v15022_v25  ;;  %v15032_v25 = vld [vmem:[%s18841_s7 + $0x308] sm:$0xff]  }
 0x71e   : > { %13725 = vmatprep.subr.bf16.mxu1 %v15023_v36 }
 0x720   : > { %13678 = vmatmul.mubr.bf16.gmra.mrb[88].mxu1 %v8951_v57  ;;  %v9438_v57 = vld [vmem:[#allocation3 + $0xc3] ss:$2 sm:$0xff] }
 0x721   : > { %13681 = vmatprep.mubr.bf16.mxu1 %v8952_v18  ;;  %v15034_v18 = vld [vmem:[%s18841_s7 + $0x318] sm:$0xff]   ;;  %v9460_v30 = vpack.c.bf16 %v9438_v57, %v9437_v10  ;;  %v15047_v57 = vld [vmem:[%s18841_s7 + $0x380] sm:$0xff]  }
 0x728   : > { %13682 = vmatmul.mubr.bf16.gmra.mrb[92].mxu1 %v8953_v27  ;;  %v9440_v27 = vld [vmem:[#allocation3 + $0xe3] ss:$2 sm:$0xff] }
 0x729   : > { %13701 = vmatprep.mubr.bf16.mxu1 %v9199_v34  ;;  %v9442_v34 = vld [vmem:[#allocation3 + $0x103] ss:$2 sm:$0xff]  ;;  %v9461_v55 = vpack.c.bf16 %v9440_v27, %v9439_v9 }
 0x72a   : > { %v9462_v39 = vpack.c.bf16 %v9442_v34, %v9441_v16  ;;  %v9710_v16 = vld [vmem:[#allocation3 + $0x1a8] ss:$2 sm:$0xff]  ;;  %v9712_v34 = vld [vmem:[#allocation3 + $0x1b8] ss:$2 sm:$0xff] }
 0x730   : > { %13702 = vmatmul.mubr.bf16.vlgmr.msra.gmra.mrb[72].mxu1 %v9200_v58  ;;  %v15037_v58 = vld [vmem:[%s18841_s7 + $0x330] sm:$0xff]  }
 0x731   : > { %13726 = vmatpush3.bf16.msra.mxu1 %v15023_v36  ;;  %13705 = vmatprep.mubr.bf16.mxu1 %v9201_v13  ;;  %v15033_v36 = vld [vmem:[%s18841_s7 + $0x310] sm:$0xff]  }
 0x732   : > { %13727 = vmatprep.subr.bf16.mxu1 %v15024_v8  ;;  %v9445_v13 = vld [vmem:[#allocation3 + $0x133] ss:$2 sm:$0xff] }
 0x735   : > { %13728 = vmatpush3.bf16.msra.mxu1 %v15024_v8  ;;  %v9444_v8 = vld [vmem:[#allocation3 + $0x123] ss:$2 sm:$0xff] }
 0x736   : > { %13729 = vmatprep.subr.bf16.mxu1 %v15025_v7  ;;  %v9463_v22 = vpack.c.bf16 %v9444_v8, %v9443_v2  ;;  %v9946_v2 = vld [vmem:[#allocation3 + $0x79] ss:$2 sm:$0xff] }
 0x737   : > { %v9948_v8 = vld [vmem:[#allocation3 + $0x99] ss:$2 sm:$0xff] }
 0x738   : > { %13706 = vmatmul.mubr.bf16.gmra.mrb[76].mxu1 %v9202_v4  ;;  %v15039_v4 = vld [vmem:[%s18841_s7 + $0x340] sm:$0xff]  }
 0x739   : > { %13709 = vmatprep.mubr.bf16.mxu1 %v9203_v61  ;;  %13730 = vmatpush3.bf16.msra.mxu1 %v15025_v7  ;;  %v9446_v7 = vld [vmem:[#allocation3 + $0x143] ss:$2 sm:$0xff]  ;;  %v9449_v61 = vld [vmem:[#allocation3 + $0x173] ss:$2 sm:$0xff] }
 0x73a   : > { %13731 = vmatprep.subr.bf16.mxu1 %v15026_v59  ;;  %v9464_v24 = vpack.c.bf16 %v9446_v7, %v9445_v13  ;;  %v9945_v13 = vld [vmem:[#allocation3 + $0x69] ss:$2 sm:$0xff] }
 0x73b   : > { %v9971_v7 = vpack.c.bf16 %v9946_v2, %v9945_v13  ;;  %v10212_v2 = vld [vmem:[#allocation3 + $0x10a] ss:$2 sm:$0xff] }
 0x73d   : > { %13732 = vmatpush3.bf16.msra.mxu1 %v15026_v59  ;;  %v9448_v59 = vld [vmem:[#allocation3 + $0x163] ss:$2 sm:$0xff] }
 0x73e   : > { %13733 = vmatprep.subr.bf16.mxu1 %v15027_v48  ;;  %v9465_v33 = vpack.c.bf16 %v9448_v59, %v9447_v56  ;;  %v9950_v56 = vld [vmem:[#allocation3 + $0xb9] ss:$2 sm:$0xff] }
 0x73f   : > { %v9952_v59 = vld [vmem:[#allocation3 + $0xd9] ss:$2 sm:$0xff] }
 0x740   : > { %13710 = vmatmul.mubr.bf16.gmra.mrb[80].mxu1 %v9204_v3  ;;  %v9455_v3 = vld [vmem:[#allocation3 + $0x1a3] ss:$2 sm:$0xff] }
 0x741   : > { %13713 = vmatprep.mubr.bf16.mxu1 %v9205_v0  ;;  %13734 = vmatpush3.bf16.msra.mxu1 %v15027_v48  ;;  %v9451_v48 = vld [vmem:[#allocation3 + $0x183] ss:$2 sm:$0xff]  ;;  %v9686_v0 = vld [vmem:[#allocation3 + $0x48] ss:$2 sm:$0xff] }
 0x742   : > { %13735 = vmatprep.subr.bf16.mxu1 %v15028_v49  ;;  %v9466_v37 = vpack.c.bf16 %v9451_v48, %v9449_v61  ;;  %v9949_v61 = vld [vmem:[#allocation3 + $0xa9] ss:$2 sm:$0xff] }
 0x743   : > { %v9973_v48 = vpack.c.bf16 %v9950_v56, %v9949_v61  ;;  %v10216_v56 = vld [vmem:[#allocation3 + $0x14a] ss:$2 sm:$0xff] }
 0x745   : > { %13736 = vmatpush3.bf16.msra.mxu1 %v15028_v49  ;;  %v9467_v49 = vpack.c.bf16 %v9455_v3, %v9453_v40  ;;  %v15051_v3 = vld [vmem:[%s18841_s7 + $0x3a0] sm:$0xff]  }
 0x746   : > { %13737 = vmatprep.subr.bf16.mxu1 %v15029_v44 }
 0x748   : > { %13714 = vmatmul.mubr.bf16.gmra.mrb[84].mxu1 %v9206_v41  ;;  %v9714_v41 = vpack.c.bf16 %v9689_v15, %v9688_v43  ;;  %v9955_v15 = vld [vmem:[#allocation3 + $0x109] ss:$2 sm:$0xff] }
 0x749   : > { %13717 = vmatprep.mubr.bf16.mxu1 %v9207_v46  ;;  %13738 = vmatpush3.bf16.msra.mxu1 %v15029_v44  ;;  %v9713_v44 = vpack.c.bf16 %v9687_v54, %v9686_v0  ;;  %v9715_v46 = vpack.c.bf16 %v9691_v29, %v9690_v14  ;;  %v9954_v54 = vld [vmem:[#allocation3 + $0xf9] ss:$2 sm:$0xff]  ;;  %v9953_v0 = vld [vmem:[#allocation3 + $0xe9] ss:$2 sm:$0xff] }
 0x74a   : > { %13739 = vmatprep.subr.bf16.mxu1 %v15030_v28  ;;  %v15052_v29 = vld [vmem:[%s18841_s7 + $0x3a8] sm:$0xff]   ;;  %v9958_v14 = vld [vmem:[#allocation3 + $0x139] ss:$2 sm:$0xff] }
 0x74d   : > { %13740 = vmatpush3.bf16.msra.mxu1 %v15030_v28  ;;  %v15040_v28 = vld [vmem:[%s18841_s7 + $0x348] sm:$0xff]  }
 0x74e   : > { %13765 = vmatprep.subr.bf16.mxu1 %v15031_v35 }
 0x750   : > { %13718 = vmatmul.mubr.bf16.gmra.mrb[88].mxu1 %v9208_v62  ;;  %v9716_v62 = vpack.c.bf16 %v9693_v5, %v9692_v19  ;;  %v9959_v5 = vld [vmem:[#allocation3 + $0x149] ss:$2 sm:$0xff] }
 0x751   : > { %13721 = vmatprep.mubr.bf16.mxu1 %v9209_v17  ;;  %v15042_v17 = vld [vmem:[%s18841_s7 + $0x358] sm:$0xff]  }
 0x758   : > { %13722 = vmatmul.mubr.bf16.gmra.mrb[92].mxu1 %v9210_v50  ;;  %v9696_v50 = vld [vmem:[#allocation3 + $0xe8] ss:$2 sm:$0xff] }
 0x759   : > { %13741 = vmatprep.mubr.bf16.mxu1 %v9456_v20  ;;  %v9718_v20 = vpack.c.bf16 %v9697_v42, %v9696_v50  ;;  %v9967_v50 = vld [vmem:[#allocation3 + $0x1a9] ss:$2 sm:$0xff] }
 0x760   : > { %13742 = vmatmul.mubr.bf16.vlgmr.msra.gmra.mrb[72].mxu1 %v9457_v47  ;;  %v9701_v47 = vld [vmem:[#allocation3 + $0x138] ss:$2 sm:$0xff] }
 0x761   : > { %13766 = vmatpush3.bf16.msra.mxu1 %v15031_v35  ;;  %13745 = vmatprep.mubr.bf16.mxu1 %v9458_v21  ;;  %v15041_v35 = vld [vmem:[%s18841_s7 + $0x350] sm:$0xff]   ;;  %v9700_v21 = vld [vmem:[#allocation3 + $0x128] ss:$2 sm:$0xff] }
 0x762   : > { %13767 = vmatprep.subr.bf16.mxu1 %v15032_v25 }
 0x765   : > { %13768 = vmatpush3.bf16.msra.mxu1 %v15032_v25  ;;  %v9703_v25 = vld [vmem:[#allocation3 + $0x158] ss:$2 sm:$0xff] }
 0x766   : > { %13769 = vmatprep.subr.bf16.mxu1 %v15033_v36  ;;  %v9721_v10 = vpack.c.bf16 %v9703_v25, %v9702_v26  ;;  %v10205_v25 = vld [vmem:[#allocation3 + $0x9a] ss:$2 sm:$0xff]  ;;  %v10204_v26 = vld [vmem:[#allocation3 + $0x8a] ss:$2 sm:$0xff] }
 0x768   : > { %13746 = vmatmul.mubr.bf16.gmra.mrb[76].mxu1 %v9459_v32  ;;  %v9705_v32 = vld [vmem:[#allocation3 + $0x178] ss:$2 sm:$0xff] }
 0x769   : > { %13749 = vmatprep.mubr.bf16.mxu1 %v9460_v30  ;;  %13770 = vmatpush3.bf16.msra.mxu1 %v15033_v36  ;;  %v9720_v36 = vpack.c.bf16 %v9701_v47, %v9700_v21  ;;  %v9708_v30 = vld [vmem:[#allocation3 + $0x198] ss:$2 sm:$0xff] }
 0x76a   : > { %13771 = vmatprep.subr.bf16.mxu1 %v15034_v18  ;;  %v10203_v47 = vld [vmem:[#allocation3 + $0x7a] ss:$2 sm:$0xff]  ;;  %v10202_v21 = vld [vmem:[#allocation3 + $0x6a] ss:$2 sm:$0xff] }
 0x76d   : > { %13772 = vmatpush3.bf16.msra.mxu1 %v15034_v18  ;;  %v9706_v18 = vld [vmem:[#allocation3 + $0x188] ss:$2 sm:$0xff] }
 0x76e   : > { %13773 = vmatprep.subr.bf16.mxu1 %v15035_v6  ;;  %v9723_v27 = vpack.c.bf16 %v9708_v30, %v9706_v18  ;;  %v10209_v18 = vld [vmem:[#allocation3 + $0xda] ss:$2 sm:$0xff]  ;;  %v10206_v30 = vld [vmem:[#allocation3 + $0xaa] ss:$2 sm:$0xff] }
 0x770   : > { %13750 = vmatmul.mubr.bf16.gmra.mrb[80].mxu1 %v9461_v55  ;;  %v9724_v55 = vpack.c.bf16 %v9712_v34, %v9710_v16  ;;  %v15059_v34 = vld [vmem:[%s18841_s7 + $0x3e0] sm:$0xff]  }
 0x771   : > { %13753 = vmatprep.mubr.bf16.mxu1 %v9462_v39  ;;  %13774 = vmatpush3.bf16.msra.mxu1 %v15035_v6  ;;  %v9704_v6 = vld [vmem:[#allocation3 + $0x168] ss:$2 sm:$0xff]  ;;  %v9943_v39 = vld [vmem:[#allocation3 + $0x49] ss:$2 sm:$0xff] }
 0x772   : > { %13775 = vmatprep.subr.bf16.mxu1 %v15036_v63  ;;  %v9722_v9 = vpack.c.bf16 %v9705_v32, %v9704_v6  ;;  %v10207_v32 = vld [vmem:[#allocation3 + $0xba] ss:$2 sm:$0xff] }
 0x773   : > { %v10230_v6 = vpack.c.bf16 %v10207_v32, %v10206_v30  ;;  %v10483_v30 = vld [vmem:[#allocation3 + $0x1bb] ss:$2 sm:$0xff] }
 0x775   : > { %13776 = vmatpush3.bf16.msra.mxu1 %v15036_v63  ;;  %v9944_v63 = vld [vmem:[#allocation3 + $0x59] ss:$2 sm:$0xff] }
 0x776   : > { %13777 = vmatprep.subr.bf16.mxu1 %v15037_v58 }
 0x778   : > { %13754 = vmatmul.mubr.bf16.gmra.mrb[84].mxu1 %v9463_v22  ;;  %v9947_v22 = vld [vmem:[#allocation3 + $0x89] ss:$2 sm:$0xff] }
 0x779   : > { %13757 = vmatprep.mubr.bf16.mxu1 %v9464_v24  ;;  %13778 = vmatpush3.bf16.msra.mxu1 %v15037_v58  ;;  %v9970_v58 = vpack.c.bf16 %v9944_v63, %v9943_v39  ;;  %v9972_v24 = vpack.c.bf16 %v9948_v8, %v9947_v22  ;;  %v10213_v63 = vld [vmem:[#allocation3 + $0x11a] ss:$2 sm:$0xff]  ;;  %v10210_v39 = vld [vmem:[#allocation3 + $0xea] ss:$2 sm:$0xff] }
 0x77a   : > { %13779 = vmatprep.subr.bf16.mxu1 %v15038_v1  ;;  %v15060_v8 = vld [vmem:[%s18841_s7 + $0x3e8] sm:$0xff]   ;;  %v10233_v13 = vpack.c.bf16 %v10213_v63, %v10212_v2  ;;  %v10215_v22 = vld [vmem:[#allocation3 + $0x13a] ss:$2 sm:$0xff] }
 0x77d   : > { %13780 = vmatpush3.bf16.msra.mxu1 %v15038_v1  ;;  %v15048_v1 = vld [vmem:[%s18841_s7 + $0x388] sm:$0xff]  }
 0x77e   : > { %13805 = vmatprep.subr.bf16.mxu1 %v15039_v4 }
 0x780   : > { %13758 = vmatmul.mubr.bf16.gmra.mrb[88].mxu1 %v9465_v33  ;;  %v9951_v33 = vld [vmem:[#allocation3 + $0xc9] ss:$2 sm:$0xff] }
 0x781   : > { %13761 = vmatprep.mubr.bf16.mxu1 %v9466_v37  ;;  %v15050_v37 = vld [vmem:[%s18841_s7 + $0x398] sm:$0xff]   ;;  %v9974_v40 = vpack.c.bf16 %v9952_v59, %v9951_v33  ;;  %v10220_v33 = vld [vmem:[#allocation3 + $0x18a] ss:$2 sm:$0xff] }
 0x782   : > { %v15062_v59 = vld [vmem:[%s18841_s7 + $0x3f8] sm:$0xff]  }
 0x788   : > { %13762 = vmatmul.mubr.bf16.gmra.mrb[92].mxu1 %v9467_v49  ;;  %v9956_v49 = vld [vmem:[#allocation3 + $0x119] ss:$2 sm:$0xff] }
 0x789   : > { %13781 = vmatprep.mubr.bf16.mxu1 %v9713_v44  ;;  %v9975_v44 = vpack.c.bf16 %v9954_v54, %v9953_v0  ;;  %v9976_v43 = vpack.c.bf16 %v9956_v49, %v9955_v15  ;;  %v10224_v49 = vld [vmem:[#allocation3 + $0x1aa] ss:$2 sm:$0xff]  ;;  %v10226_v0 = vld [vmem:[#allocation3 + $0x1ba] ss:$2 sm:$0xff]  ;;  %v10458_v15 = vld [vmem:[#allocation3 + $0x5b] ss:$2 sm:$0xff] }
 0x790   : > { %13782 = vmatmul.mubr.bf16.vlgmr.msra.gmra.mrb[72].mxu1 %v9714_v41  ;;  %v15053_v41 = vld [vmem:[%s18841_s7 + $0x3b0] sm:$0xff]  }
 0x791   : > { %13806 = vmatpush3.bf16.msra.mxu1 %v15039_v4  ;;  %13785 = vmatprep.mubr.bf16.mxu1 %v9715_v46  ;;  %v15049_v4 = vld [vmem:[%s18841_s7 + $0x390] sm:$0xff]   ;;  %v9957_v46 = vld [vmem:[#allocation3 + $0x129] ss:$2 sm:$0xff] }
 0x792   : > { %13807 = vmatprep.subr.bf16.mxu1 %v15040_v28 }
 0x795   : > { %13808 = vmatpush3.bf16.msra.mxu1 %v15040_v28  ;;  %v9960_v28 = vld [vmem:[#allocation3 + $0x159] ss:$2 sm:$0xff] }
 0x796   : > { %13809 = vmatprep.subr.bf16.mxu1 %v15041_v35  ;;  %v9978_v19 = vpack.c.bf16 %v9960_v28, %v9959_v5  ;;  %v10459_v28 = vld [vmem:[#allocation3 + $0x6b] ss:$2 sm:$0xff] }
 0x798   : > { %13786 = vmatmul.mubr.bf16.gmra.mrb[76].mxu1 %v9716_v62  ;;  %v15055_v62 = vld [vmem:[%s18841_s7 + $0x3c0] sm:$0xff]  }
 0x799   : > { %13789 = vmatprep.mubr.bf16.mxu1 %v9717_v53  ;;  %13810 = vmatpush3.bf16.msra.mxu1 %v15041_v35  ;;  %v9977_v35 = vpack.c.bf16 %v9958_v14, %v9957_v46  ;;  %v9965_v53 = vld [vmem:[#allocation3 + $0x199] ss:$2 sm:$0xff] }
 0x79a   : > { %13811 = vmatprep.subr.bf16.mxu1 %v15042_v17  ;;  %v10462_v14 = vld [vmem:[#allocation3 + $0x9b] ss:$2 sm:$0xff] }
 0x79d   : > { %13812 = vmatpush3.bf16.msra.mxu1 %v15042_v17  ;;  %v9963_v17 = vld [vmem:[#allocation3 + $0x189] ss:$2 sm:$0xff] }
 0x79e   : > { %13813 = vmatprep.subr.bf16.mxu1 %v15043_v45  ;;  %v9980_v52 = vpack.c.bf16 %v9965_v53, %v9963_v17  ;;  %v10465_v17 = vld [vmem:[#allocation3 + $0xcb] ss:$2 sm:$0xff] }
 0x7a0   : > { %13790 = vmatmul.mubr.bf16.gmra.mrb[80].mxu1 %v9718_v20  ;;  %v9969_v20 = vld [vmem:[#allocation3 + $0x1b9] ss:$2 sm:$0xff] }
 0x7a1   : > { %13793 = vmatprep.mubr.bf16.mxu1 %v9719_v31  ;;  %13814 = vmatpush3.bf16.msra.mxu1 %v15043_v45  ;;  %v9961_v45 = vld [vmem:[#allocation3 + $0x169] ss:$2 sm:$0xff]  ;;  %v9981_v51 = vpack.c.bf16 %v9969_v20, %v9967_v50  ;;  %v10200_v31 = vld [vmem:[#allocation3 + $0x4a] ss:$2 sm:$0xff] }
 0x7a2   : > { %13815 = vmatprep.subr.bf16.mxu1 %v15044_v60  ;;  %v9979_v42 = vpack.c.bf16 %v9962_v38, %v9961_v45  ;;  %v10468_v45 = vld [vmem:[#allocation3 + $0xfb] ss:$2 sm:$0xff]  ;;  %v10469_v20 = vld [vmem:[#allocation3 + $0x10b] ss:$2 sm:$0xff] }
 0x7a5   : > { %13816 = vmatpush3.bf16.msra.mxu1 %v15044_v60  ;;  %v10201_v60 = vld [vmem:[#allocation3 + $0x5a] ss:$2 sm:$0xff] }
 0x7a6   : > { %13817 = vmatprep.subr.bf16.mxu1 %v15045_v11 }
 0x7a8   : > { %13794 = vmatmul.mubr.bf16.gmra.mrb[84].mxu1 %v9720_v36  ;;  %v10228_v36 = vpack.c.bf16 %v10203_v47, %v10202_v21 }
 0x7a9   : > { %13797 = vmatprep.mubr.bf16.mxu1 %v9721_v10  ;;  %13818 = vmatpush3.bf16.msra.mxu1 %v15045_v11  ;;  %v10227_v11 = vpack.c.bf16 %v10201_v60, %v10200_v31  ;;  %v10229_v10 = vpack.c.bf16 %v10205_v25, %v10204_v26  ;;  %v10472_v60 = vld [vmem:[#allocation3 + $0x13b] ss:$2 sm:$0xff]  ;;  %v10473_v25 = vld [vmem:[#allocation3 + $0x14b] ss:$2 sm:$0xff] }
 0x7aa   : > { %13819 = vmatprep.subr.bf16.mxu1 %v15046_v12  ;;  %v10474_v31 = vld [vmem:[#allocation3 + $0x15b] ss:$2 sm:$0xff]  ;;  %v10477_v26 = vld [vmem:[#allocation3 + $0x18b] ss:$2 sm:$0xff] }
 0x7ab   : > { %v10492_v21 = vpack.c.bf16 %v10474_v31, %v10473_v25 }
 0x7ad   : > { %13820 = vmatpush3.bf16.msra.mxu1 %v15046_v12  ;;  %v15056_v12 = vld [vmem:[%s18841_s7 + $0x3c8] sm:$0xff]  }
 0x7ae   : > { %13845 = vmatprep.subr.bf16.mxu1 %v15047_v57 }
 0x7b0   : > { %13798 = vmatmul.mubr.bf16.gmra.mrb[88].mxu1 %v9722_v9  ;;  %v10208_v9 = vld [vmem:[#allocation3 + $0xca] ss:$2 sm:$0xff] }
 0x7b1   : > { %13801 = vmatprep.mubr.bf16.mxu1 %v9723_v27  ;;  %v15058_v27 = vld [vmem:[%s18841_s7 + $0x3d8] sm:$0xff]   ;;  %v10231_v16 = vpack.c.bf16 %v10209_v18, %v10208_v9  ;;  %v10481_v18 = vld [vmem:[#allocation3 + $0x1ab] ss:$2 sm:$0xff] }
 0x7b8   : > { %13802 = vmatmul.mubr.bf16.gmra.mrb[92].mxu1 %v9724_v55  ;;  %v10211_v55 = vld [vmem:[#allocation3 + $0xfa] ss:$2 sm:$0xff] }
 0x7b9   : > { %13821 = vmatprep.mubr.bf16.mxu1 %v9970_v58  ;;  %v10232_v58 = vpack.c.bf16 %v10211_v55, %v10210_v39 }
 0x7c0   : > { %13822 = vmatmul.mubr.bf16.vlgmr.msra.gmra.mrb[72].mxu1 %v9971_v7  ;;  %v15061_v7 = vld [vmem:[%s18841_s7 + $0x3f0] sm:$0xff]  }
 0x7c1   : > { %13846 = vmatpush3.bf16.msra.mxu1 %v15047_v57  ;;  %13825 = vmatprep.mubr.bf16.mxu1 %v9972_v24  ;;  %v15057_v57 = vld [vmem:[%s18841_s7 + $0x3d0] sm:$0xff]  }
 0x7c2   : > { %13847 = vmatprep.subr.bf16.mxu1 %v15048_v1  ;;  %v10214_v24 = vld [vmem:[#allocation3 + $0x12a] ss:$2 sm:$0xff] }
 0x7c5   : > { %13848 = vmatpush3.bf16.msra.mxu1 %v15048_v1  ;;  %v10217_v1 = vld [vmem:[#allocation3 + $0x15a] ss:$2 sm:$0xff] }
 0x7c6   : > { %13849 = vmatprep.subr.bf16.mxu1 %v15049_v4  ;;  %v10235_v61 = vpack.c.bf16 %v10217_v1, %v10216_v56 }
 0x7c8   : > { %13826 = vmatmul.mubr.bf16.gmra.mrb[76].mxu1 %v9973_v48  ;;  %v10219_v48 = vld [vmem:[#allocation3 + $0x17a] ss:$2 sm:$0xff] }
 0x7c9   : > { %13829 = vmatprep.mubr.bf16.mxu1 %v9974_v40  ;;  %13850 = vmatpush3.bf16.msra.mxu1 %v15049_v4  ;;  %v10234_v4 = vpack.c.bf16 %v10215_v22, %v10214_v24  ;;  %v10218_v40 = vld [vmem:[#allocation3 + $0x16a] ss:$2 sm:$0xff] }
 0x7ca   : > { %13851 = vmatprep.subr.bf16.mxu1 %v15050_v37 }
 0x7cd   : > { %13852 = vmatpush3.bf16.msra.mxu1 %v15050_v37  ;;  %v10222_v37 = vld [vmem:[#allocation3 + $0x19a] ss:$2 sm:$0xff] }
 0x7ce   : > { %13853 = vmatprep.subr.bf16.mxu1 %v15051_v3  ;;  %v10237_v54 = vpack.c.bf16 %v10222_v37, %v10220_v33 }
 0x7d0   : > { %13830 = vmatmul.mubr.bf16.gmra.mrb[80].mxu1 %v9975_v44  ;;  %v10238_v44 = vpack.c.bf16 %v10226_v0, %v10224_v49 }
 0x7d1   : > { %13833 = vmatprep.mubr.bf16.mxu1 %v9976_v43  ;;  %13854 = vmatpush3.bf16.msra.mxu1 %v15051_v3  ;;  %v10236_v3 = vpack.c.bf16 %v10219_v48, %v10218_v40 }
 0x7d2   : > { %13855 = vmatprep.subr.bf16.mxu1 %v15052_v29 }
 0x7d5   : > { %13856 = vmatpush3.bf16.msra.mxu1 %v15052_v29  ;;  %v10457_v29 = vld [vmem:[#allocation3 + $0x4b] ss:$2 sm:$0xff] }
 0x7d6   : > { %13857 = vmatprep.subr.bf16.mxu1 %v15053_v41  ;;  %v10484_v43 = vpack.c.bf16 %v10458_v15, %v10457_v29 }
 0x7d8   : > { %13834 = vmatmul.mubr.bf16.gmra.mrb[84].mxu1 %v9977_v35  ;;  %v10461_v35 = vld [vmem:[#allocation3 + $0x8b] ss:$2 sm:$0xff] }
 0x7d9   : > { %13837 = vmatprep.mubr.bf16.mxu1 %v9978_v19  ;;  %13858 = vmatpush3.bf16.msra.mxu1 %v15053_v41  ;;  %v10460_v41 = vld [vmem:[#allocation3 + $0x7b] ss:$2 sm:$0xff]  ;;  %v10486_v5 = vpack.c.bf16 %v10462_v14, %v10461_v35 }
 0x7da   : > { %13859 = vmatprep.subr.bf16.mxu1 %v15054_v23  ;;  %v10485_v46 = vpack.c.bf16 %v10460_v41, %v10459_v28  ;;  %v10466_v19 = vld [vmem:[#allocation3 + $0xdb] ss:$2 sm:$0xff] }
 0x7db   : > { %v10488_v53 = vpack.c.bf16 %v10466_v19, %v10465_v17 }
 0x7dd   : > { %13860 = vmatpush3.bf16.msra.mxu1 %v15054_v23  ;;  %v10464_v23 = vld [vmem:[#allocation3 + $0xbb] ss:$2 sm:$0xff] }
 0x7de   : > { %13885 = vmatprep.subr.bf16.mxu1 %v15055_v62 }
 0x7e0   : > { %13838 = vmatmul.mubr.bf16.gmra.mrb[88].mxu1 %v9979_v42  ;;  %v10470_v42 = vld [vmem:[#allocation3 + $0x11b] ss:$2 sm:$0xff] }
 0x7e1   : > { %13841 = vmatprep.mubr.bf16.mxu1 %v9980_v52  ;;  %v10467_v52 = vld [vmem:[#allocation3 + $0xeb] ss:$2 sm:$0xff] }
 0x7e2   : > { %v10489_v50 = vpack.c.bf16 %v10468_v45, %v10467_v52 }
 0x7e8   : > { %13842 = vmatmul.mubr.bf16.gmra.mrb[92].mxu1 %v9981_v51  ;;  %v10490_v51 = vpack.c.bf16 %v10470_v42, %v10469_v20 }
 0x7e9   : > { %13861 = vmatprep.mubr.bf16.mxu1 %v10227_v11  ;;  %v10471_v11 = vld [vmem:[#allocation3 + $0x12b] ss:$2 sm:$0xff] }
 0x7ea   : > { %v10491_v47 = vpack.c.bf16 %v10472_v60, %v10471_v11 }
 0x7f0   : > { %13862 = vmatmul.mubr.bf16.vlgmr.msra.gmra.mrb[72].mxu1 %v10228_v36  ;;  %v10476_v36 = vld [vmem:[#allocation3 + $0x17b] ss:$2 sm:$0xff] }
 0x7f1   : > { %13886 = vmatpush3.bf16.msra.mxu1 %v15055_v62  ;;  %13865 = vmatprep.mubr.bf16.mxu1 %v10229_v10  ;;  %v10463_v62 = vld [vmem:[#allocation3 + $0xab] ss:$2 sm:$0xff] }
 0x7f2   : > { %13887 = vmatprep.subr.bf16.mxu1 %v15056_v12  ;;  %v10487_v38 = vpack.c.bf16 %v10464_v23, %v10463_v62  ;;  %v10475_v10 = vld [vmem:[#allocation3 + $0x16b] ss:$2 sm:$0xff] }
 0x7f5   : > { %13888 = vmatpush3.bf16.msra.mxu1 %v15056_v12  ;;  %v10479_v12 = vld [vmem:[#allocation3 + $0x19b] ss:$2 sm:$0xff] }
 0x7f6   : > { %13889 = vmatprep.subr.bf16.mxu1 %v15057_v57  ;;  %v10494_v32 = vpack.c.bf16 %v10479_v12, %v10477_v26 }
 0x7f8   : > { %13866 = vmatmul.mubr.bf16.gmra.mrb[76].mxu1 %v10230_v6  ;;  %v10495_v6 = vpack.c.bf16 %v10483_v30, %v10481_v18 }
 0x7f9   : > { %13869 = vmatprep.mubr.bf16.mxu1 %v10231_v16  ;;  %13890 = vmatpush3.bf16.msra.mxu1 %v15057_v57  ;;  %v10493_v57 = vpack.c.bf16 %v10476_v36, %v10475_v10 }
 0x7fa   : > { %13891 = vmatprep.subr.bf16.mxu1 %v15058_v27 }
 0x7fd   : > { %13892 = vmatpush3.bf16.msra.mxu1 %v15058_v27 }
 0x7fe   : > { %13893 = vmatprep.subr.bf16.mxu1 %v15059_v34 }
 0x800   : > { %13870 = vmatmul.mubr.bf16.gmra.mrb[80].mxu1 %v10232_v58 }
 0x801   : > { %13873 = vmatprep.mubr.bf16.mxu1 %v10233_v13  ;;  %13894 = vmatpush3.bf16.msra.mxu1 %v15059_v34 }
 0x802   : > { %13895 = vmatprep.subr.bf16.mxu1 %v15060_v8 }
 0x805   : > { %13896 = vmatpush3.bf16.msra.mxu1 %v15060_v8 }
 0x806   : > { %13897 = vmatprep.subr.bf16.mxu1 %v15061_v7 }
 0x808   : > { %13874 = vmatmul.mubr.bf16.gmra.mrb[84].mxu1 %v10234_v4 }
 0x809   : > { %13877 = vmatprep.mubr.bf16.mxu1 %v10235_v61  ;;  %13898 = vmatpush3.bf16.msra.mxu1 %v15061_v7 }
 0x80a   : > { %13899 = vmatprep.subr.bf16.mxu1 %v15062_v59 }
 0x80d   : > { %13900 = vmatpush3.bf16.msra.mxu1 %v15062_v59 }
 0x810   : > { %13878 = vmatmul.mubr.bf16.gmra.mrb[88].mxu1 %v10236_v3 }
 0x811   : > { %13881 = vmatprep.mubr.bf16.mxu1 %v10237_v54 }
 0x818   : > { %13882 = vmatmul.mubr.bf16.gmra.mrb[92].mxu1 %v10238_v44 }
 0x819   : > { %13901 = vmatprep.mubr.bf16.mxu1 %v10484_v43 }
 0x820   : > { %13902 = vmatmul.mubr.bf16.vlgmr.msra.gmra.mrb[72].mxu1 %v10485_v46 }
 0x821   : > { %13905 = vmatprep.mubr.bf16.mxu1 %v10486_v5 }
 0x828   : > { %13906 = vmatmul.mubr.bf16.gmra.mrb[76].mxu1 %v10487_v38 }
 0x829   : > { %13909 = vmatprep.mubr.bf16.mxu1 %v10488_v53 }
 0x830   : > { %13910 = vmatmul.mubr.bf16.gmra.mrb[80].mxu1 %v10489_v50 }
 0x831   : > { %13913 = vmatprep.mubr.bf16.mxu1 %v10490_v51 }
 0x838   : > { %13914 = vmatmul.mubr.bf16.gmra.mrb[84].mxu1 %v10491_v47 }
 0x839   : > { %13917 = vmatprep.mubr.bf16.mxu1 %v10492_v21 }
 0x840   : > { %13918 = vmatmul.mubr.bf16.gmra.mrb[88].mxu1 %v10493_v57 }
 0x841   : > { %13921 = vmatprep.mubr.bf16.mxu1 %v10494_v32 }
 0x848   : > { %13922 = vmatmul.mubr.bf16.gmra.mrb[92].mxu1 %v10495_v6 }
 0x8f3   : > { %v13903_v9 = vpop.f32.mrb[72].mxu1 }
 0x8f4   : > { %v10595_v27 = vpop.f32.mrb[73].mxu1 }
 0x8f5   : > { %v13904_v16 = vpop.f32.mrb[74].mxu1 }
 0x8f6   : > { %v11853_v34 = vpack.c.bf16 %v13904_v16, %v13903_v9  ;;  %v10598_v55 = vpop.f32.mrb[75].mxu1 }
 0x8f7   : > { %v11848_v63 = vpack.c.bf16 %v10598_v55, %v10595_v27 }
 0x8f8   : > { %11928 = vst [vmem:[%s18817_s26 + $0x8] sm:$0xff] %v11853_v34  }
 0x8f9   : > { %11849 = vst [vmem:[%s18817_s26] sm:$0xff] %v11848_v63  }
 0x8fb   : > { %v13907_v39 = vpop.f32.mrb[76].mxu1 }
 0x8fc   : > { %v10611_v58 = vpop.f32.mrb[77].mxu1 }
 0x8fd   : > { %v13908_v2 = vpop.f32.mrb[78].mxu1 }
 0x8fe   : > { %v11863_v8 = vpack.c.bf16 %v13908_v2, %v13907_v39  ;;  %v10614_v13 = vpop.f32.mrb[79].mxu1 }
 0x8ff   : > { %v11858_v7 = vpack.c.bf16 %v10614_v13, %v10611_v58 }
 0x900   : > { %11930 = vst [vmem:[%s18817_s26 + $0x18] sm:$0xff] %v11863_v8  }
 0x901   : > { %11929 = vst [vmem:[%s18817_s26 + $0x10] sm:$0xff] %v11858_v7  }
 0x903   : > { %v13911_v22 = vpop.f32.mrb[80].mxu1 }
 0x904   : > { %v10627_v1 = vpop.f32.mrb[81].mxu1 }
 0x905   : > { %v13912_v24 = vpop.f32.mrb[82].mxu1 }
 0x906   : > { %v11873_v4 = vpack.c.bf16 %v13912_v24, %v13911_v22  ;;  %v10630_v56 = vpop.f32.mrb[83].mxu1 }
 0x907   : > { %v11868_v59 = vpack.c.bf16 %v10630_v56, %v10627_v1 }
 0x908   : > { %11932 = vst [vmem:[%s18817_s26 + $0x28] sm:$0xff] %v11873_v4  }
 0x909   : > { %11931 = vst [vmem:[%s18817_s26 + $0x20] sm:$0xff] %v11868_v59  }
 0x90b   : > { %v13915_v61 = vpop.f32.mrb[84].mxu1 }
 0x90c   : > { %v10643_v48 = vpop.f32.mrb[85].mxu1 }
 0x90d   : > { %v13916_v33 = vpop.f32.mrb[86].mxu1 }
 0x90e   : > { %v11883_v37 = vpack.c.bf16 %v13916_v33, %v13915_v61  ;;  %v10646_v40 = vpop.f32.mrb[87].mxu1 }
 0x90f   : > { %v11878_v3 = vpack.c.bf16 %v10646_v40, %v10643_v48 }
 0x910   : > { %11934 = vst [vmem:[%s18817_s26 + $0x38] sm:$0xff] %v11883_v37  }
 0x911   : > { %11933 = vst [vmem:[%s18817_s26 + $0x30] sm:$0xff] %v11878_v3  }
 0x913   : > { %v13919_v54 = vpop.f32.mrb[88].mxu1 }
 0x914   : > { %v10659_v49 = vpop.f32.mrb[89].mxu1 }
 0x915   : > { %v13920_v0 = vpop.f32.mrb[90].mxu1 }
 0x916   : > { %v11893_v44 = vpack.c.bf16 %v13920_v0, %v13919_v54  ;;  %v10662_v15 = vpop.f32.mrb[91].mxu1 }
 0x917   : > { %v11888_v29 = vpack.c.bf16 %v10662_v15, %v10659_v49 }
 0x918   : > { %11936 = vst [vmem:[%s18817_s26 + $0x48] sm:$0xff] %v11893_v44  }
 0x919   : > { %11935 = vst [vmem:[%s18817_s26 + $0x40] sm:$0xff] %v11888_v29  }
 0x91b   : > { %v13923_v43 = vpop.f32.mrb[92].mxu1 }
 0x91c   : > { %v10675_v41 = vpop.f32.mrb[93].mxu1 }
 0x91d   : > { %v13924_v14 = vpop.f32.mrb[94].mxu1 }
 0x91e   : > { %v11903_v28 = vpack.c.bf16 %v13924_v14, %v13923_v43  ;;  %v10678_v46 = vpop.f32.mrb[95].mxu1 }
 0x91f   : > { %v11898_v35 = vpack.c.bf16 %v10678_v46, %v10675_v41 }
 0x920   : > { %11938 = vst [vmem:[%s18817_s26 + $0x58] sm:$0xff] %v11903_v28  }
 0x921   : > { %11937 = vst [vmem:[%s18817_s26 + $0x50] sm:$0xff] %v11898_v35  }
 0x922 PF: > { %s20_s30 = sadd.s32 1, %s15121_s30  }
 0x923   : > { %p17_p4 = scmp.ge.s32.totalorder %s20_s30, 4  }
 0x925   :  { %19 = sbr.rel (!%p17_p4) target bundleno = 1 (0x1), region = 332 }

</bundles_post_ra>
